<compile_context>
chip_gen: v7x
topology: tpu7x:2x2x1
jax: 0.10.0
libtpu: 0.0.40
codegen_flags: <defaults>
</compile_context>

<pallas_src>
import math
import functools

import jax
import jax.numpy as jnp
from jax.experimental import pallas as pl
from jax.experimental.pallas import tpu as pltpu


# ----------------------------------------------------------------------------
# tiling / VMEM helpers
# ----------------------------------------------------------------------------
def _tile(dim, target, aligns=(16, 8)):
    """Largest tile dividing `dim`, <= target, multiple of one of `aligns`
    (tried in order).  Falls back to the full dimension (full-extent blocks
    are always legal)."""
    if dim <= target:
        return dim
    for align in aligns:
        if dim % align != 0:
            continue
        t = (target // align) * align
        while t >= align:
            if dim % t == 0:
                return t
            t -= align
    return dim


def _tile_lane(dim, target):
    """Lane-dim tile: prefer 256-aligned (v6e/v7x MXU width), then 128."""
    return _tile(dim, target, (256, 128))


def _default_vmem_limit():
    """Generation-gated scoped-VMEM limit: ~3/4 of physical, capped at 100 MiB.
    v5e/v6e (128 MiB) -> 96 MiB; v7x (64 MiB per TC) -> 48 MiB."""
    try:
        cap = int(pltpu.get_tpu_info().vmem_capacity_bytes)
    except Exception:
        cap = 64 * 1024 * 1024
    return max(32 * 1024 * 1024, min(3 * cap // 4, 100 * 1024 * 1024))


_VMEM_LIMIT = _default_vmem_limit()


def _cparams(sem):
    return pltpu.CompilerParams(dimension_semantics=sem,
                                vmem_limit_bytes=_VMEM_LIMIT)


def _gelu_tanh(y):
    c = math.sqrt(2.0 / math.pi)
    return 0.5 * y * (1.0 + jnp.tanh(c * (y + 0.044715 * y * y * y)))


def _lane_pack(vals, width):
    """vals[i]: (rows, 1).  Returns (rows, len(vals)*width) with vals[i]
    replicated across lanes [i*width, (i+1)*width) using VPU selects only."""
    n = len(vals)
    rows = vals[0].shape[0]
    out = jnp.broadcast_to(vals[0], (rows, n * width))
    if n > 1:
        lane = jax.lax.broadcasted_iota(jnp.int32, (1, n * width), 1)
        for i in range(1, n):
            out = jnp.where(lane >= i * width, vals[i], out)
    return out


# ----------------------------------------------------------------------------
# Fused LayerNorm + Linear (+ bias, optional tanh-GELU)
#   grid = (M/tm, N/tn); LN is computed once per row tile (j == 0) into a
#   bf16 VMEM scratch and reused across all N tiles (j axis is "arbitrary").
# ----------------------------------------------------------------------------
def _ln_linear_kernel(x_ref, g_ref, b_ref, w_ref, bias_ref, o_ref, xn_ref,
                      *, gelu):
    @pl.when(pl.program_id(1) == 0)
    def _():
        x = x_ref[...].astype(jnp.float32)
        mean = jnp.mean(x, axis=-1, keepdims=True)
        var = jnp.mean(jnp.square(x - mean), axis=-1, keepdims=True)
        xn = (x - mean) * jax.lax.rsqrt(var + 1e-5)
        xn = xn * g_ref[...].astype(jnp.float32) + b_ref[...].astype(jnp.float32)
        xn_ref[...] = xn.astype(xn_ref.dtype)

    y = jnp.dot(xn_ref[...], w_ref[...], preferred_element_type=jnp.float32)
    y = y + bias_ref[...].astype(jnp.float32)
    if gelu:
        y = _gelu_tanh(y)
    o_ref[...] = y.astype(o_ref.dtype)


def ln_linear(x, g, b, w, bias, *, gelu=False):
    """LayerNorm(x) @ w + bias (optionally tanh-GELU), fused in one kernel."""
    M, C = x.shape
    Cw, N = w.shape
    assert Cw == C
    tm = _tile(M, 512, (16, 8))
    tn = _tile_lane(N, 768)
    grid = (M // tm, N // tn)
    flops = 2 * M * N * C
    bytes_accessed = (M * C + C * N + M * N) * x.dtype.itemsize
    return pl.pallas_call(
        functools.partial(_ln_linear_kernel, gelu=gelu),
        out_shape=jax.ShapeDtypeStruct((M, N), x.dtype),
        grid=grid,
        in_specs=[
            pl.BlockSpec((tm, C), lambda i, j: (i, 0)),
            pl.BlockSpec((1, C), lambda i, j: (0, 0)),
            pl.BlockSpec((1, C), lambda i, j: (0, 0)),
            pl.BlockSpec((C, tn), lambda i, j: (0, j)),
            pl.BlockSpec((1, tn), lambda i, j: (0, j)),
        ],
        out_specs=pl.BlockSpec((tm, tn), lambda i, j: (i, j)),
        scratch_shapes=[pltpu.VMEM((tm, C), x.dtype)],   # cached LN(x) tile
        compiler_params=_cparams(("parallel", "arbitrary")),
        cost_estimate=pl.CostEstimate(
            flops=flops,
            transcendentals=M * N if gelu else 0,
            bytes_accessed=bytes_accessed),
    )(x, g.reshape(1, C), b.reshape(1, C), w, bias.reshape(1, N))


# ----------------------------------------------------------------------------
# Linear + bias + residual add, K-tiled with an f32 VMEM accumulator.
# Residual buffer is aliased to the output (no extra HBM output allocation).
# ----------------------------------------------------------------------------
def _linear_res_kernel(x_ref, w_ref, bias_ref, r_ref, o_ref, acc_ref):
    k = pl.program_id(2)

    @pl.when(k == 0)
    def _():
        acc_ref[...] = jnp.zeros_like(acc_ref)

    acc_ref[...] += jnp.dot(x_ref[...], w_ref[...],
                            preferred_element_type=jnp.float32)

    @pl.when(k == pl.num_programs(2) - 1)
    def _():
        y = (acc_ref[...] + bias_ref[...].astype(jnp.float32)
             + r_ref[...].astype(jnp.float32))
        o_ref[...] = y.astype(o_ref.dtype)


def linear_residual(x, w, bias, res):
    M, K = x.shape
    Kw, N = w.shape
    assert Kw == K and res.shape == (M, N) and res.dtype == x.dtype
    tm = _tile(M, 512, (16, 8))
    tn = _tile_lane(N, 768)
    tk = _tile_lane(K, 512)
    grid = (M // tm, N // tn, K // tk)
    flops = 2 * M * N * K
    bytes_accessed = (M * K + K * N + 2 * M * N) * x.dtype.itemsize
    return pl.pallas_call(
        _linear_res_kernel,
        out_shape=jax.ShapeDtypeStruct((M, N), x.dtype),
        grid=grid,
        in_specs=[
            pl.BlockSpec((tm, tk), lambda i, j, k: (i, k)),
            pl.BlockSpec((tk, tn), lambda i, j, k: (k, j)),
            pl.BlockSpec((1, tn), lambda i, j, k: (0, j)),
            pl.BlockSpec((tm, tn), lambda i, j, k: (i, j)),
        ],
        out_specs=pl.BlockSpec((tm, tn), lambda i, j, k: (i, j)),
        scratch_shapes=[pltpu.VMEM((tm, tn), jnp.float32)],
        input_output_aliases={3: 0},   # residual buffer aliases the output
        compiler_params=_cparams(("parallel", "parallel", "arbitrary")),
        cost_estimate=pl.CostEstimate(flops=flops, transcendentals=0,
                                      bytes_accessed=bytes_accessed),
    )(x, w, bias.reshape(1, N), res)


# ----------------------------------------------------------------------------
# Final LayerNorm fused with the weight-tied lm_head.
# LN is cached across the vocab axis; wte is streamed untransposed and blocked
# over the (pre-padded, 128-aligned) vocab dimension.
# ----------------------------------------------------------------------------
def _ln_lm_head_kernel(x_ref, g_ref, b_ref, wte_ref, o_ref, xn_ref):
    @pl.when(pl.program_id(1) == 0)
    def _():
        x = x_ref[...].astype(jnp.float32)
        mean = jnp.mean(x, axis=-1, keepdims=True)
        var = jnp.mean(jnp.square(x - mean), axis=-1, keepdims=True)
        xn = (x - mean) * jax.lax.rsqrt(var + 1e-5)
        xn = xn * g_ref[...].astype(jnp.float32) + b_ref[...].astype(jnp.float32)
        xn_ref[...] = xn.astype(xn_ref.dtype)

    o_ref[...] = jax.lax.dot_general(
        xn_ref[...], wte_ref[...],
        dimension_numbers=(((1,), (1,)), ((), ())),
        preferred_element_type=jnp.float32,
    ).astype(o_ref.dtype)


def ln_lm_head(x, g, b, wte):
    M, C = x.shape
    V, Cw = wte.shape
    assert Cw == C and V % 128 == 0
    tm = _tile(M, 1024, (16, 8))      # large row tile -> fewer wte re-reads
    tv = _tile_lane(V, 512)
    grid = (M // tm, V // tv)
    flops = 2 * M * V * C
    bytes_accessed = (M * C + (M // tm) * V * C) * wte.dtype.itemsize + M * V * 4
    return pl.pallas_call(
        _ln_lm_head_kernel,
        out_shape=jax.ShapeDtypeStruct((M, V), jnp.float32),
        grid=grid,
        in_specs=[
            pl.BlockSpec((tm, C), lambda i, j: (i, 0)),
            pl.BlockSpec((1, C), lambda i, j: (0, 0)),
            pl.BlockSpec((1, C), lambda i, j: (0, 0)),
            pl.BlockSpec((tv, C), lambda i, j: (j, 0)),
        ],
        out_specs=pl.BlockSpec((tm, tv), lambda i, j: (i, j)),
        scratch_shapes=[pltpu.VMEM((tm, C), wte.dtype)],   # cached LN(x) tile
        compiler_params=_cparams(("parallel", "arbitrary")),
        cost_estimate=pl.CostEstimate(flops=flops, transcendentals=0,
                                      bytes_accessed=bytes_accessed),
    )(x, g.reshape(1, C), b.reshape(1, C), wte)


# ----------------------------------------------------------------------------
# Flash-style causal self-attention.
#   grid = (B, T/tq, T/tkv); all heads of one batch row processed per block.
#   Heads are grouped into 128-lane groups (pairs for hd=64): running max /
#   denom live lane-replicated per group in f32 VMEM, acc rescale+accumulate
#   and the finalize stores are lane-dense.  Above-diagonal KV blocks are
#   skipped both in compute (pl.when) and in DMA (clamped k/v index maps).
# ----------------------------------------------------------------------------
def _head_groups(nh, hd):
    if hd >= 128 or 128 % hd != 0:
        gs = 1
    else:
        gs = 128 // hd
    return [list(range(i, min(i + gs, nh))) for i in range(0, nh, gs)]


def _flash_attn_kernel(q_ref, k_ref, v_ref, o_ref, m_ref, l_ref, acc_ref,
                       *, groups, hd, scale):
    qi = pl.program_id(1)
    ki = pl.program_id(2)
    tq = q_ref.shape[1]
    tkv = k_ref.shape[1]

    @pl.when(ki == 0)
    def _():
        m_ref[...] = jnp.full_like(m_ref, -1e30)
        l_ref[...] = jnp.zeros_like(l_ref)
        acc_ref[...] = jnp.zeros_like(acc_ref)

    # Only KV blocks touching / below the causal diagonal contribute (tq==tkv).
    @pl.when(ki <= qi)
    def _():
        q = q_ref[0] * scale            # (tq, C); scale folded into q (bf16)
        k = k_ref[0]                    # (tkv, C)
        v = v_ref[0]                    # (tkv, C)
        rows = qi * tq + jax.lax.broadcasted_iota(jnp.int32, (tq, tkv), 0)
        cols = ki * tkv + jax.lax.broadcasted_iota(jnp.int32, (tq, tkv), 1)
        causal = cols <= rows

        for g, heads in enumerate(groups):
            gw = len(heads) * hd
            g0 = heads[0] * hd
            gsl = slice(g0, g0 + gw)
            m_prev = m_ref[g, :, :gw]              # (tq, gw), replicated per head
            m_new_h, l_cur_h, pv_h = [], [], []
            for hh, h in enumerate(heads):
                sl = slice(h * hd, (h + 1) * hd)
                s = jax.lax.dot_general(
                    q[:, sl], k[:, sl],
                    dimension_numbers=(((1,), (1,)), ((), ())),
                    preferred_element_type=jnp.float32)      # (tq, tkv) f32
                s = jnp.where(causal, s, -1e30)
                mp = m_prev[:, hh * hd:hh * hd + 1]          # (tq, 1)
                mn = jnp.maximum(mp, jnp.max(s, axis=-1, keepdims=True))
                p = jnp.exp(s - mn)
                m_new_h.append(mn)
                l_cur_h.append(jnp.sum(p, axis=-1, keepdims=True))
                pv_h.append(jnp.dot(p.astype(v.dtype), v[:, sl],
                                    preferred_element_type=jnp.float32))
            m_new = _lane_pack(m_new_h, hd)                  # (tq, gw)
            l_cur = _lane_pack(l_cur_h, hd)
            alpha = jnp.exp(m_prev - m_new)                  # per-head, replicated
            pv = pv_h[0] if len(pv_h) == 1 else jnp.concatenate(pv_h, axis=-1)
            l_ref[g, :, :gw] = alpha * l_ref[g, :, :gw] + l_cur
            acc_ref[:, gsl] = alpha * acc_ref[:, gsl] + pv   # lane-dense RMW
            m_ref[g, :, :gw] = m_new

    @pl.when(ki == pl.num_programs(2) - 1)
    def _():
        for g, heads in enumerate(groups):
            gw = len(heads) * hd
            g0 = heads[0] * hd
            gsl = slice(g0, g0 + gw)
            inv = pl.reciprocal(l_ref[g, :, :gw], approx=True)
            o_ref[0, :, gsl] = (acc_ref[:, gsl] * inv).astype(o_ref.dtype)


def causal_attention(qkv, n_head, head_dim):
    """qkv: (B, T, 3C) fused projection output; returns (B, T, C)."""
    B, T, threeC = qkv.shape
    C = n_head * head_dim
    assert threeC == 3 * C
    tq = _tile(T, 256, (16, 8))
    tkv = tq                      # equal tiles keep the causal skip/clamp simple
    groups = _head_groups(n_head, head_dim)
    gw_max = len(groups[0]) * head_dim
    grid = (B, T // tq, T // tkv)

    # q fetched per (b, qi); k/v index maps clamp the kv block index so the
    # DMA for above-diagonal blocks is elided (same block index -> copy skipped).
    q_spec = pl.BlockSpec((1, tq, C), lambda b, qi, ki: (b, qi, 0))
    k_spec = pl.BlockSpec((1, tkv, C),
                          lambda b, qi, ki: (b, jnp.minimum(ki, qi), 1))
    v_spec = pl.BlockSpec((1, tkv, C),
                          lambda b, qi, ki: (b, jnp.minimum(ki, qi), 2))
    o_spec = pl.BlockSpec((1, tq, C), lambda b, qi, ki: (b, qi, 0))

    flops = 2 * B * T * T * C            # QK^T + PV with causal halving
    transc = B * n_head * T * T // 2
    bytes_accessed = (2 * B * T * 3 * C + B * T * C) * qkv.dtype.itemsize
    kernel = functools.partial(_flash_attn_kernel, groups=groups, hd=head_dim,
                               scale=1.0 / math.sqrt(head_dim))
    return pl.pallas_call(
        kernel,
        out_shape=jax.ShapeDtypeStruct((B, T, C), qkv.dtype),
        grid=grid,
        in_specs=[q_spec, k_spec, v_spec],
        out_specs=o_spec,
        scratch_shapes=[
            pltpu.VMEM((len(groups), tq, gw_max), jnp.float32),  # running max
            pltpu.VMEM((len(groups), tq, gw_max), jnp.float32),  # running denom
            pltpu.VMEM((tq, C), jnp.float32),                    # un-normalized out
        ],
        compiler_params=_cparams(("parallel", "parallel", "arbitrary")),
        cost_estimate=pl.CostEstimate(flops=flops, transcendentals=transc,
                                      bytes_accessed=bytes_accessed),
    )(qkv, qkv, qkv)


# ----------------------------------------------------------------------------
# GPT config / params / forward
# ----------------------------------------------------------------------------
class GPTConfig:
    def __init__(self, block_size=1024, vocab_size=50257, n_layer=12,
                 n_head=12, n_embd=768):
        self.block_size = block_size
        self.vocab_size = vocab_size
        self.n_layer = n_layer
        self.n_head = n_head
        self.n_embd = n_embd


def init_params(key, cfg, dtype=jnp.bfloat16):
    std = 0.02
    std_proj = 0.02 * (2 * cfg.n_layer) ** (-0.5)   # NANOGPT_SCALE_INIT
    C = cfg.n_embd
    keys = iter(jax.random.split(key, 2 + 4 * cfg.n_layer))

    def normal(k, shape, s):
        return (s * jax.random.normal(k, shape, jnp.float32)).astype(dtype)

    params = {
        "wte": normal(next(keys), (cfg.vocab_size, C), std),
        "wpe": normal(next(keys), (cfg.block_size, C), std),
        "ln_f_g": jnp.ones((C,), jnp.float32),
        "ln_f_b": jnp.zeros((C,), jnp.float32),
        "blocks": [],
    }
    for _ in range(cfg.n_layer):
        params["blocks"].append({
            "ln1_g": jnp.ones((C,), jnp.float32),
            "ln1_b": jnp.zeros((C,), jnp.float32),
            "w_attn": normal(next(keys), (C, 3 * C), std),
            "b_attn": jnp.zeros((3 * C,), dtype),
            "w_attn_proj": normal(next(keys), (C, C), std_proj),
            "b_attn_proj": jnp.zeros((C,), dtype),
            "ln2_g": jnp.ones((C,), jnp.float32),
            "ln2_b": jnp.zeros((C,), jnp.float32),
            "w_fc": normal(next(keys), (C, 4 * C), std),
            "b_fc": jnp.zeros((4 * C,), dtype),
            "w_mlp_proj": normal(next(keys), (4 * C, C), std_proj),
            "b_mlp_proj": jnp.zeros((C,), dtype),
        })
    return params


def gpt_forward(params, idx, cfg):
    B, T = idx.shape
    C = cfg.n_embd
    nh = cfg.n_head
    hd = C // nh
    M = B * T

    # embeddings (gather = glue)
    tok_emb = jnp.take(params["wte"], idx, axis=0)          # (B, T, C)
    pos_emb = params["wpe"][:T]                              # (T, C)
    x = (tok_emb + pos_emb).reshape(M, C)                    # (B*T, C)

    for blk in params["blocks"]:
        # --- attention sub-block: LN1 fused into the QKV projection ---
        qkv = ln_linear(x, blk["ln1_g"], blk["ln1_b"],
                        blk["w_attn"], blk["b_attn"])        # (B*T, 3C)
        y = causal_attention(qkv.reshape(B, T, 3 * C), nh, hd)   # (B, T, C)
        x = linear_residual(y.reshape(M, C), blk["w_attn_proj"],
                            blk["b_attn_proj"], x)

        # --- MLP sub-block: LN2 fused into the FC projection (+ tanh-GELU) ---
        h = ln_linear(x, blk["ln2_g"], blk["ln2_b"],
                      blk["w_fc"], blk["b_fc"], gelu=True)   # (B*T, 4C)
        x = linear_residual(h, blk["w_mlp_proj"], blk["b_mlp_proj"], x)

    # final LN fused with the weight-tied lm_head; pad vocab to a multiple of
    # 128 so the lm_head weight stream is always tileable (avoids whole-vocab
    # VMEM blocks with vocab sizes like 50257).
    V = cfg.vocab_size
    Vp = ((V + 127) // 128) * 128
    wte_head = params["wte"] if Vp == V else jnp.pad(
        params["wte"], ((0, Vp - V), (0, 0)))
    logits = ln_lm_head(x, params["ln_f_g"], params["ln_f_b"], wte_head)
    if Vp != V:
        logits = logits[:, :V]
    return logits.reshape(B, T, V)


# ----------------------------------------------------------------------------
# main
# ----------------------------------------------------------------------------
if __name__ == "__main__":
    cfg = GPTConfig(block_size=64, vocab_size=512, n_layer=2,
                    n_head=4, n_embd=256)

    key = jax.random.PRNGKey(0)
    pkey, dkey = jax.random.split(key)
    params = init_params(pkey, cfg)

    B, T = 2, 64
    idx = jax.random.randint(dkey, (B, T), 0, cfg.vocab_size, dtype=jnp.int32)

    fwd = jax.jit(functools.partial(gpt_forward, cfg=cfg))
    logits = jax.block_until_ready(fwd(params, idx))

    assert logits.shape == (B, T, cfg.vocab_size)
    assert logits.dtype == jnp.float32
    assert bool(jnp.all(jnp.isfinite(logits)))
    print("KERNEL_OK")
</pallas_src>

<mosaic_0001>
module attributes {stable_mosaic.version = 11 : i64} {
  func.func @_linear_res_kernel(%arg0: i32, %arg1: i32, %arg2: i32, %arg3: memref<128x256xbf16, #tpu.memory_space<vmem>>, %arg4: memref<256x256xbf16, #tpu.memory_space<vmem>>, %arg5: memref<1x256xbf16, #tpu.memory_space<vmem>>, %arg6: memref<128x256xbf16, #tpu.memory_space<vmem>>, %arg7: memref<128x256xbf16, #tpu.memory_space<vmem>>, %arg8: memref<128x256xf32, #tpu.memory_space<vmem>>) attributes {dimension_semantics = [#tpu.dimension_semantics<parallel>, #tpu.dimension_semantics<parallel>, #tpu.dimension_semantics<arbitrary>], iteration_bounds = array<i64: 1, 1, 1>, scalar_prefetch = 0 : i64, scratch_operands = 1 : i64, tpu.core_type = #tpu.core_type<tc>, window_params = [{transform_indices = @transform_0, window_bounds = array<i64: 128, 256>}, {transform_indices = @transform_1, window_bounds = array<i64: 256, 256>}, {transform_indices = @transform_2, window_bounds = array<i64: 1, 256>}, {transform_indices = @transform_3, window_bounds = array<i64: 128, 256>}, {transform_indices = @transform_4, window_bounds = array<i64: 128, 256>}]} {
    %c0_i32 = arith.constant 0 : i32
    %0 = arith.cmpi eq, %arg2, %c0_i32 : i32
    %1 = arith.extui %0 : i1 to i32
    %c0_i32_0 = arith.constant 0 : i32
    %2 = arith.cmpi ne, %1, %c0_i32_0 : i32
    scf.if %2 {
      %cst_10 = arith.constant 0.000000e+00 : f32
      %12 = vector.broadcast %cst_10 : f32 to vector<128x256xf32>
      %c0_11 = arith.constant 0 : index
      %c0_12 = arith.constant 0 : index
      %13 = vector.load %arg8[%c0_11, %c0_12] : memref<128x256xf32, #tpu.memory_space<vmem>>, vector<128x256xf32>
      tpu.vector_store %arg8[%c0_11, %c0_12], %12 {strides = array<i32>} : memref<128x256xf32, #tpu.memory_space<vmem>>, vector<128x256xf32>,
    } else {
    }
    %c0 = arith.constant 0 : index
    %c0_1 = arith.constant 0 : index
    %3 = vector.load %arg8[%c0, %c0_1] : memref<128x256xf32, #tpu.memory_space<vmem>>, vector<128x256xf32>
    %c0_2 = arith.constant 0 : index
    %c0_3 = arith.constant 0 : index
    %4 = vector.load %arg3[%c0_2, %c0_3] : memref<128x256xbf16, #tpu.memory_space<vmem>>, vector<128x256xbf16>
    %c0_4 = arith.constant 0 : index
    %c0_5 = arith.constant 0 : index
    %5 = vector.load %arg4[%c0_4, %c0_5] : memref<256x256xbf16, #tpu.memory_space<vmem>>, vector<256x256xbf16>
    %cst = arith.constant dense<0.000000e+00> : vector<128x256xf32>
    %6 = tpu.matmul %4, %5, %cst {dimension_numbers = #tpu.dot_dimension_numbers<[1], [0], [0], [1], [0, 0, 1, 1], [], []>} : vector<128x256xbf16>, vector<256x256xbf16>, vector<128x256xf32> -> vector<128x256xf32>
    %7 = arith.addf %3, %6 : vector<128x256xf32>
    %c0_6 = arith.constant 0 : index
    %c0_7 = arith.constant 0 : index
    %8 = vector.load %arg8[%c0_6, %c0_7] : memref<128x256xf32, #tpu.memory_space<vmem>>, vector<128x256xf32>
    tpu.vector_store %arg8[%c0_6, %c0_7], %7 {strides = array<i32>} : memref<128x256xf32, #tpu.memory_space<vmem>>, vector<128x256xf32>,
    %c0_i32_8 = arith.constant 0 : i32
    %9 = arith.cmpi eq, %arg2, %c0_i32_8 : i32
    %10 = arith.extui %9 : i1 to i32
    %c0_i32_9 = arith.constant 0 : i32
    %11 = arith.cmpi ne, %10, %c0_i32_9 : i32
    scf.if %11 {
      %c0_10 = arith.constant 0 : index
      %c0_11 = arith.constant 0 : index
      %12 = vector.load %arg8[%c0_10, %c0_11] : memref<128x256xf32, #tpu.memory_space<vmem>>, vector<128x256xf32>
      %c0_12 = arith.constant 0 : index
      %c0_13 = arith.constant 0 : index
      %13 = vector.load %arg5[%c0_12, %c0_13] : memref<1x256xbf16, #tpu.memory_space<vmem>>, vector<1x256xbf16>
      %14 = arith.extf %13 : vector<1x256xbf16> to vector<1x256xf32>
      %15 = vector.broadcast %14 : vector<1x256xf32> to vector<128x256xf32>
      %16 = arith.addf %12, %15 : vector<128x256xf32>
      %c0_14 = arith.constant 0 : index
      %c0_15 = arith.constant 0 : index
      %17 = vector.load %arg6[%c0_14, %c0_15] : memref<128x256xbf16, #tpu.memory_space<vmem>>, vector<128x256xbf16>
      %18 = arith.extf %17 : vector<128x256xbf16> to vector<128x256xf32>
      %19 = arith.addf %16, %18 : vector<128x256xf32>
      %20 = arith.truncf %19 : vector<128x256xf32> to vector<128x256xbf16>
      %c0_16 = arith.constant 0 : index
      %c0_17 = arith.constant 0 : index
      %21 = vector.load %arg7[%c0_16, %c0_17] : memref<128x256xbf16, #tpu.memory_space<vmem>>, vector<128x256xbf16>
      tpu.vector_store %arg7[%c0_16, %c0_17], %20 {strides = array<i32>} : memref<128x256xbf16, #tpu.memory_space<vmem>>, vector<128x256xbf16>,
    } else {
    }
    return
  }
  func.func @transform_0(%arg0: i32, %arg1: i32, %arg2: i32) -> (i32, i32) {
    %c0_i32 = arith.constant 0 : i32
    return %arg0, %arg2 : i32, i32
  }
  func.func @transform_1(%arg0: i32, %arg1: i32, %arg2: i32) -> (i32, i32) {
    %c0_i32 = arith.constant 0 : i32
    return %arg2, %arg1 : i32, i32
  }
  func.func @transform_2(%arg0: i32, %arg1: i32, %arg2: i32) -> (i32, i32) {
    %c0_i32 = arith.constant 0 : i32
    %c0_i32_0 = arith.constant 0 : i32
    return %c0_i32, %arg1 : i32, i32
  }
  func.func @transform_3(%arg0: i32, %arg1: i32, %arg2: i32) -> (i32, i32) {
    %c0_i32 = arith.constant 0 : i32
    return %arg0, %arg1 : i32, i32
  }
  func.func @transform_4(%arg0: i32, %arg1: i32, %arg2: i32) -> (i32, i32) {
    %c0_i32 = arith.constant 0 : i32
    return %arg0, %arg1 : i32, i32
  }
}

module attributes {stable_mosaic.version = 11 : i64} {
  func.func @_ln_linear_kernel(%arg0: i32, %arg1: i32, %arg2: memref<128x256xbf16, #tpu.memory_space<vmem>>, %arg3: memref<1x256xf32, #tpu.memory_space<vmem>>, %arg4: memref<1x256xf32, #tpu.memory_space<vmem>>, %arg5: memref<256x512xbf16, #tpu.memory_space<vmem>>, %arg6: memref<1x512xbf16, #tpu.memory_space<vmem>>, %arg7: memref<128x512xbf16, #tpu.memory_space<vmem>>, %arg8: memref<128x256xbf16, #tpu.memory_space<vmem>>) attributes {dimension_semantics = [#tpu.dimension_semantics<parallel>, #tpu.dimension_semantics<arbitrary>], iteration_bounds = array<i64: 1, 2>, scalar_prefetch = 0 : i64, scratch_operands = 1 : i64, tpu.core_type = #tpu.core_type<tc>, window_params = [{transform_indices = @transform_0, window_bounds = array<i64: 128, 256>}, {pipeline_mode = #tpu.pipeline_mode<synchronous>, transform_indices = @transform_1, window_bounds = array<i64: 1, 256>}, {pipeline_mode = #tpu.pipeline_mode<synchronous>, transform_indices = @transform_2, window_bounds = array<i64: 1, 256>}, {transform_indices = @transform_3, window_bounds = array<i64: 256, 512>}, {transform_indices = @transform_4, window_bounds = array<i64: 1, 512>}, {transform_indices = @transform_5, window_bounds = array<i64: 128, 512>}]} {
    %c0_i32 = arith.constant 0 : i32
    %0 = arith.cmpi eq, %arg1, %c0_i32 : i32
    %1 = arith.extui %0 : i1 to i32
    %c0_i32_0 = arith.constant 0 : i32
    %2 = arith.cmpi ne, %1, %c0_i32_0 : i32
    scf.if %2 {
      %c0_12 = arith.constant 0 : index
      %c0_13 = arith.constant 0 : index
      %25 = vector.load %arg2[%c0_12, %c0_13] : memref<128x256xbf16, #tpu.memory_space<vmem>>, vector<128x256xbf16>
      %26 = arith.extf %25 : vector<128x256xbf16> to vector<128x256xf32>
      %cst_14 = arith.constant dense<0.000000e+00> : vector<128xf32>
      %27 = vector.multi_reduction <add>, %26, %cst_14 [1] : vector<128x256xf32> to vector<128xf32>
      %28 = vector.shape_cast %27 : vector<128xf32> to vector<128x1xf32>
      %cst_15 = arith.constant 2.560000e+02 : f32
      %29 = vector.broadcast %cst_15 : f32 to vector<128x1xf32>
      %30 = arith.divf %28, %29 : vector<128x1xf32>
      %31 = vector.broadcast %30 : vector<128x1xf32> to vector<128x256xf32>
      %32 = arith.subf %26, %31 : vector<128x256xf32>
      %33 = arith.mulf %32, %32 : vector<128x256xf32>
      %cst_16 = arith.constant dense<0.000000e+00> : vector<128xf32>
      %34 = vector.multi_reduction <add>, %33, %cst_16 [1] : vector<128x256xf32> to vector<128xf32>
      %35 = vector.shape_cast %34 : vector<128xf32> to vector<128x1xf32>
      %cst_17 = arith.constant 2.560000e+02 : f32
      %36 = vector.broadcast %cst_17 : f32 to vector<128x1xf32>
      %37 = arith.divf %35, %36 : vector<128x1xf32>
      %38 = vector.broadcast %30 : vector<128x1xf32> to vector<128x256xf32>
      %39 = arith.subf %26, %38 : vector<128x256xf32>
      %cst_18 = arith.constant 9.99999974E-6 : f32
      %40 = vector.broadcast %cst_18 : f32 to vector<128x1xf32>
      %41 = arith.addf %37, %40 : vector<128x1xf32>
      %42 = math.rsqrt %41 : vector<128x1xf32>
      %43 = vector.broadcast %42 : vector<128x1xf32> to vector<128x256xf32>
      %44 = arith.mulf %39, %43 : vector<128x256xf32>
      %c0_19 = arith.constant 0 : index
      %c0_20 = arith.constant 0 : index
      %45 = vector.load %arg3[%c0_19, %c0_20] : memref<1x256xf32, #tpu.memory_space<vmem>>, vector<1x256xf32>
      %46 = vector.broadcast %45 : vector<1x256xf32> to vector<128x256xf32>
      %47 = arith.mulf %44, %46 : vector<128x256xf32>
      %c0_21 = arith.constant 0 : index
      %c0_22 = arith.constant 0 : index
      %48 = vector.load %arg4[%c0_21, %c0_22] : memref<1x256xf32, #tpu.memory_space<vmem>>, vector<1x256xf32>
      %49 = vector.broadcast %48 : vector<1x256xf32> to vector<128x256xf32>
      %50 = arith.addf %47, %49 : vector<128x256xf32>
      %51 = arith.truncf %50 : vector<128x256xf32> to vector<128x256xbf16>
      %c0_23 = arith.constant 0 : index
      %c0_24 = arith.constant 0 : index
      %52 = vector.load %arg8[%c0_23, %c0_24] : memref<128x256xbf16, #tpu.memory_space<vmem>>, vector<128x256xbf16>
      tpu.vector_store %arg8[%c0_23, %c0_24], %51 {strides = array<i32>} : memref<128x256xbf16, #tpu.memory_space<vmem>>, vector<128x256xbf16>,
    } else {
    }
    %c0 = arith.constant 0 : index
    %c0_1 = arith.constant 0 : index
    %3 = vector.load %arg8[%c0, %c0_1] : memref<128x256xbf16, #tpu.memory_space<vmem>>, vector<128x256xbf16>
    %c0_2 = arith.constant 0 : index
    %c0_3 = arith.constant 0 : index
    %4 = vector.load %arg5[%c0_2, %c0_3] : memref<256x512xbf16, #tpu.memory_space<vmem>>, vector<256x512xbf16>
    %cst = arith.constant dense<0.000000e+00> : vector<128x512xf32>
    %5 = tpu.matmul %3, %4, %cst {dimension_numbers = #tpu.dot_dimension_numbers<[1], [0], [0], [1], [0, 0, 1, 1], [], []>} : vector<128x256xbf16>, vector<256x512xbf16>, vector<128x512xf32> -> vector<128x512xf32>
    %c0_4 = arith.constant 0 : index
    %c0_5 = arith.constant 0 : index
    %6 = vector.load %arg6[%c0_4, %c0_5] : memref<1x512xbf16, #tpu.memory_space<vmem>>, vector<1x512xbf16>
    %7 = arith.extf %6 : vector<1x512xbf16> to vector<1x512xf32>
    %8 = vector.broadcast %7 : vector<1x512xf32> to vector<128x512xf32>
    %9 = arith.addf %5, %8 : vector<128x512xf32>
    %cst_6 = arith.constant 5.000000e-01 : f32
    %10 = vector.broadcast %cst_6 : f32 to vector<128x512xf32>
    %11 = arith.mulf %10, %9 : vector<128x512xf32>
    %cst_7 = arith.constant 4.471500e-02 : f32
    %12 = vector.broadcast %cst_7 : f32 to vector<128x512xf32>
    %13 = arith.mulf %12, %9 : vector<128x512xf32>
    %14 = arith.mulf %13, %9 : vector<128x512xf32>
    %15 = arith.mulf %14, %9 : vector<128x512xf32>
    %16 = arith.addf %9, %15 : vector<128x512xf32>
    %cst_8 = arith.constant 0.797884583 : f32
    %17 = vector.broadcast %cst_8 : f32 to vector<128x512xf32>
    %18 = arith.mulf %17, %16 : vector<128x512xf32>
    %19 = math.tanh %18 : vector<128x512xf32>
    %cst_9 = arith.constant 1.000000e+00 : f32
    %20 = vector.broadcast %cst_9 : f32 to vector<128x512xf32>
    %21 = arith.addf %20, %19 : vector<128x512xf32>
    %22 = arith.mulf %11, %21 : vector<128x512xf32>
    %23 = arith.truncf %22 : vector<128x512xf32> to vector<128x512xbf16>
    %c0_10 = arith.constant 0 : index
    %c0_11 = arith.constant 0 : index
    %24 = vector.load %arg7[%c0_10, %c0_11] : memref<128x512xbf16, #tpu.memory_space<vmem>>, vector<128x512xbf16>
    tpu.vector_store %arg7[%c0_10, %c0_11], %23 {strides = array<i32>} : memref<128x512xbf16, #tpu.memory_space<vmem>>, vector<128x512xbf16>,
    return
  }
  func.func @transform_0(%arg0: i32, %arg1: i32) -> (i32, i32) {
    %c0_i32 = arith.constant 0 : i32
    %c0_i32_0 = arith.constant 0 : i32
    return %arg0, %c0_i32 : i32, i32
  }
  func.func @transform_1(%arg0: i32, %arg1: i32) -> (i32, i32) {
    %c0_i32 = arith.constant 0 : i32
    %c0_i32_0 = arith.constant 0 : i32
    %c0_i32_1 = arith.constant 0 : i32
    return %c0_i32, %c0_i32_0 : i32, i32
  }
  func.func @transform_2(%arg0: i32, %arg1: i32) -> (i32, i32) {
    %c0_i32 = arith.constant 0 : i32
    %c0_i32_0 = arith.constant 0 : i32
    %c0_i32_1 = arith.constant 0 : i32
    return %c0_i32, %c0_i32_0 : i32, i32
  }
  func.func @transform_3(%arg0: i32, %arg1: i32) -> (i32, i32) {
    %c0_i32 = arith.constant 0 : i32
    %c0_i32_0 = arith.constant 0 : i32
    return %c0_i32, %arg1 : i32, i32
  }
  func.func @transform_4(%arg0: i32, %arg1: i32) -> (i32, i32) {
    %c0_i32 = arith.constant 0 : i32
    %c0_i32_0 = arith.constant 0 : i32
    return %c0_i32, %arg1 : i32, i32
  }
  func.func @transform_5(%arg0: i32, %arg1: i32) -> (i32, i32) {
    %c0_i32 = arith.constant 0 : i32
    return %arg0, %arg1 : i32, i32
  }
}

module attributes {stable_mosaic.version = 11 : i64} {
  func.func @_ln_linear_kernel(%arg0: i32, %arg1: i32, %arg2: memref<128x256xbf16, #tpu.memory_space<vmem>>, %arg3: memref<1x256xf32, #tpu.memory_space<vmem>>, %arg4: memref<1x256xf32, #tpu.memory_space<vmem>>, %arg5: memref<256x768xbf16, #tpu.memory_space<vmem>>, %arg6: memref<1x768xbf16, #tpu.memory_space<vmem>>, %arg7: memref<128x768xbf16, #tpu.memory_space<vmem>>, %arg8: memref<128x256xbf16, #tpu.memory_space<vmem>>) attributes {dimension_semantics = [#tpu.dimension_semantics<parallel>, #tpu.dimension_semantics<arbitrary>], iteration_bounds = array<i64: 1, 1>, scalar_prefetch = 0 : i64, scratch_operands = 1 : i64, tpu.core_type = #tpu.core_type<tc>, window_params = [{transform_indices = @transform_0, window_bounds = array<i64: 128, 256>}, {pipeline_mode = #tpu.pipeline_mode<synchronous>, transform_indices = @transform_1, window_bounds = array<i64: 1, 256>}, {pipeline_mode = #tpu.pipeline_mode<synchronous>, transform_indices = @transform_2, window_bounds = array<i64: 1, 256>}, {transform_indices = @transform_3, window_bounds = array<i64: 256, 768>}, {transform_indices = @transform_4, window_bounds = array<i64: 1, 768>}, {transform_indices = @transform_5, window_bounds = array<i64: 128, 768>}]} {
    %c0_i32 = arith.constant 0 : i32
    %0 = arith.cmpi eq, %arg1, %c0_i32 : i32
    %1 = arith.extui %0 : i1 to i32
    %c0_i32_0 = arith.constant 0 : i32
    %2 = arith.cmpi ne, %1, %c0_i32_0 : i32
    scf.if %2 {
      %c0_8 = arith.constant 0 : index
      %c0_9 = arith.constant 0 : index
      %12 = vector.load %arg2[%c0_8, %c0_9] : memref<128x256xbf16, #tpu.memory_space<vmem>>, vector<128x256xbf16>
      %13 = arith.extf %12 : vector<128x256xbf16> to vector<128x256xf32>
      %cst_10 = arith.constant dense<0.000000e+00> : vector<128xf32>
      %14 = vector.multi_reduction <add>, %13, %cst_10 [1] : vector<128x256xf32> to vector<128xf32>
      %15 = vector.shape_cast %14 : vector<128xf32> to vector<128x1xf32>
      %cst_11 = arith.constant 2.560000e+02 : f32
      %16 = vector.broadcast %cst_11 : f32 to vector<128x1xf32>
      %17 = arith.divf %15, %16 : vector<128x1xf32>
      %18 = vector.broadcast %17 : vector<128x1xf32> to vector<128x256xf32>
      %19 = arith.subf %13, %18 : vector<128x256xf32>
      %20 = arith.mulf %19, %19 : vector<128x256xf32>
      %cst_12 = arith.constant dense<0.000000e+00> : vector<128xf32>
      %21 = vector.multi_reduction <add>, %20, %cst_12 [1] : vector<128x256xf32> to vector<128xf32>
      %22 = vector.shape_cast %21 : vector<128xf32> to vector<128x1xf32>
      %cst_13 = arith.constant 2.560000e+02 : f32
      %23 = vector.broadcast %cst_13 : f32 to vector<128x1xf32>
      %24 = arith.divf %22, %23 : vector<128x1xf32>
      %25 = vector.broadcast %17 : vector<128x1xf32> to vector<128x256xf32>
      %26 = arith.subf %13, %25 : vector<128x256xf32>
      %cst_14 = arith.constant 9.99999974E-6 : f32
      %27 = vector.broadcast %cst_14 : f32 to vector<128x1xf32>
      %28 = arith.addf %24, %27 : vector<128x1xf32>
      %29 = math.rsqrt %28 : vector<128x1xf32>
      %30 = vector.broadcast %29 : vector<128x1xf32> to vector<128x256xf32>
      %31 = arith.mulf %26, %30 : vector<128x256xf32>
      %c0_15 = arith.constant 0 : index
      %c0_16 = arith.constant 0 : index
      %32 = vector.load %arg3[%c0_15, %c0_16] : memref<1x256xf32, #tpu.memory_space<vmem>>, vector<1x256xf32>
      %33 = vector.broadcast %32 : vector<1x256xf32> to vector<128x256xf32>
      %34 = arith.mulf %31, %33 : vector<128x256xf32>
      %c0_17 = arith.constant 0 : index
      %c0_18 = arith.constant 0 : index
      %35 = vector.load %arg4[%c0_17, %c0_18] : memref<1x256xf32, #tpu.memory_space<vmem>>, vector<1x256xf32>
      %36 = vector.broadcast %35 : vector<1x256xf32> to vector<128x256xf32>
      %37 = arith.addf %34, %36 : vector<128x256xf32>
      %38 = arith.truncf %37 : vector<128x256xf32> to vector<128x256xbf16>
      %c0_19 = arith.constant 0 : index
      %c0_20 = arith.constant 0 : index
      %39 = vector.load %arg8[%c0_19, %c0_20] : memref<128x256xbf16, #tpu.memory_space<vmem>>, vector<128x256xbf16>
      tpu.vector_store %arg8[%c0_19, %c0_20], %38 {strides = array<i32>} : memref<128x256xbf16, #tpu.memory_space<vmem>>, vector<128x256xbf16>,
    } else {
    }
    %c0 = arith.constant 0 : index
    %c0_1 = arith.constant 0 : index
    %3 = vector.load %arg8[%c0, %c0_1] : memref<128x256xbf16, #tpu.memory_space<vmem>>, vector<128x256xbf16>
    %c0_2 = arith.constant 0 : index
    %c0_3 = arith.constant 0 : index
    %4 = vector.load %arg5[%c0_2, %c0_3] : memref<256x768xbf16, #tpu.memory_space<vmem>>, vector<256x768xbf16>
    %cst = arith.constant dense<0.000000e+00> : vector<128x768xf32>
    %5 = tpu.matmul %3, %4, %cst {dimension_numbers = #tpu.dot_dimension_numbers<[1], [0], [0], [1], [0, 0, 1, 1], [], []>} : vector<128x256xbf16>, vector<256x768xbf16>, vector<128x768xf32> -> vector<128x768xf32>
    %c0_4 = arith.constant 0 : index
    %c0_5 = arith.constant 0 : index
    %6 = vector.load %arg6[%c0_4, %c0_5] : memref<1x768xbf16, #tpu.memory_space<vmem>>, vector<1x768xbf16>
    %7 = arith.extf %6 : vector<1x768xbf16> to vector<1x768xf32>
    %8 = vector.broadcast %7 : vector<1x768xf32> to vector<128x768xf32>
    %9 = arith.addf %5, %8 : vector<128x768xf32>
    %10 = arith.truncf %9 : vector<128x768xf32> to vector<128x768xbf16>
    %c0_6 = arith.constant 0 : index
    %c0_7 = arith.constant 0 : index
    %11 = vector.load %arg7[%c0_6, %c0_7] : memref<128x768xbf16, #tpu.memory_space<vmem>>, vector<128x768xbf16>
    tpu.vector_store %arg7[%c0_6, %c0_7], %10 {strides = array<i32>} : memref<128x768xbf16, #tpu.memory_space<vmem>>, vector<128x768xbf16>,
    return
  }
  func.func @transform_0(%arg0: i32, %arg1: i32) -> (i32, i32) {
    %c0_i32 = arith.constant 0 : i32
    %c0_i32_0 = arith.constant 0 : i32
    return %arg0, %c0_i32 : i32, i32
  }
  func.func @transform_1(%arg0: i32, %arg1: i32) -> (i32, i32) {
    %c0_i32 = arith.constant 0 : i32
    %c0_i32_0 = arith.constant 0 : i32
    %c0_i32_1 = arith.constant 0 : i32
    return %c0_i32, %c0_i32_0 : i32, i32
  }
  func.func @transform_2(%arg0: i32, %arg1: i32) -> (i32, i32) {
    %c0_i32 = arith.constant 0 : i32
    %c0_i32_0 = arith.constant 0 : i32
    %c0_i32_1 = arith.constant 0 : i32
    return %c0_i32, %c0_i32_0 : i32, i32
  }
  func.func @transform_3(%arg0: i32, %arg1: i32) -> (i32, i32) {
    %c0_i32 = arith.constant 0 : i32
    %c0_i32_0 = arith.constant 0 : i32
    return %c0_i32, %arg1 : i32, i32
  }
  func.func @transform_4(%arg0: i32, %arg1: i32) -> (i32, i32) {
    %c0_i32 = arith.constant 0 : i32
    %c0_i32_0 = arith.constant 0 : i32
    return %c0_i32, %arg1 : i32, i32
  }
  func.func @transform_5(%arg0: i32, %arg1: i32) -> (i32, i32) {
    %c0_i32 = arith.constant 0 : i32
    return %arg0, %arg1 : i32, i32
  }
}

module attributes {stable_mosaic.version = 11 : i64} {
  func.func @_flash_attn_kernel(%arg0: i32, %arg1: i32, %arg2: i32, %arg3: memref<1x64x256xbf16, #tpu.memory_space<vmem>>, %arg4: memref<1x64x256xbf16, #tpu.memory_space<vmem>>, %arg5: memref<1x64x256xbf16, #tpu.memory_space<vmem>>, %arg6: memref<1x64x256xbf16, #tpu.memory_space<vmem>>, %arg7: memref<2x64x128xf32, #tpu.memory_space<vmem>>, %arg8: memref<2x64x128xf32, #tpu.memory_space<vmem>>, %arg9: memref<64x256xf32, #tpu.memory_space<vmem>>) attributes {dimension_semantics = [#tpu.dimension_semantics<parallel>, #tpu.dimension_semantics<parallel>, #tpu.dimension_semantics<arbitrary>], iteration_bounds = array<i64: 2, 1, 1>, scalar_prefetch = 0 : i64, scratch_operands = 3 : i64, tpu.core_type = #tpu.core_type<tc>, window_params = [{transform_indices = @transform_0, window_bounds = array<i64: 1, 64, 256>}, {transform_indices = @transform_1, window_bounds = array<i64: 1, 64, 256>}, {transform_indices = @transform_2, window_bounds = array<i64: 1, 64, 256>}, {transform_indices = @transform_3, window_bounds = array<i64: 1, 64, 256>}]} {
    %c0_i32 = arith.constant 0 : i32
    %0 = arith.cmpi eq, %arg2, %c0_i32 : i32
    %1 = arith.extui %0 : i1 to i32
    %c0_i32_0 = arith.constant 0 : i32
    %2 = arith.cmpi ne, %1, %c0_i32_0 : i32
    scf.if %2 {
      %cst = arith.constant -1.000000e+30 : f32
      %9 = vector.broadcast %cst : f32 to vector<2x64x128xf32>
      %c0 = arith.constant 0 : index
      %c0_4 = arith.constant 0 : index
      %c0_5 = arith.constant 0 : index
      %10 = vector.load %arg7[%c0, %c0_4, %c0_5] : memref<2x64x128xf32, #tpu.memory_space<vmem>>, vector<2x64x128xf32>
      tpu.vector_store %arg7[%c0, %c0_4, %c0_5], %9 {strides = array<i32>} : memref<2x64x128xf32, #tpu.memory_space<vmem>>, vector<2x64x128xf32>,
      %cst_6 = arith.constant 0.000000e+00 : f32
      %11 = vector.broadcast %cst_6 : f32 to vector<2x64x128xf32>
      %c0_7 = arith.constant 0 : index
      %c0_8 = arith.constant 0 : index
      %c0_9 = arith.constant 0 : index
      %12 = vector.load %arg8[%c0_7, %c0_8, %c0_9] : memref<2x64x128xf32, #tpu.memory_space<vmem>>, vector<2x64x128xf32>
      tpu.vector_store %arg8[%c0_7, %c0_8, %c0_9], %11 {strides = array<i32>} : memref<2x64x128xf32, #tpu.memory_space<vmem>>, vector<2x64x128xf32>,
      %cst_10 = arith.constant 0.000000e+00 : f32
      %13 = vector.broadcast %cst_10 : f32 to vector<64x256xf32>
      %c0_11 = arith.constant 0 : index
      %c0_12 = arith.constant 0 : index
      %14 = vector.load %arg9[%c0_11, %c0_12] : memref<64x256xf32, #tpu.memory_space<vmem>>, vector<64x256xf32>
      tpu.vector_store %arg9[%c0_11, %c0_12], %13 {strides = array<i32>} : memref<64x256xf32, #tpu.memory_space<vmem>>, vector<64x256xf32>,
    } else {
    }
    %3 = arith.cmpi sle, %arg2, %arg1 : i32
    %4 = arith.extui %3 : i1 to i32
    %c0_i32_1 = arith.constant 0 : i32
    %5 = arith.cmpi ne, %4, %c0_i32_1 : i32
    scf.if %5 {
      %c0 = arith.constant 0 : index
      %c0_4 = arith.constant 0 : index
      %c0_5 = arith.constant 0 : index
      %9 = vector.load %arg3[%c0, %c0_4, %c0_5] : memref<1x64x256xbf16, #tpu.memory_space<vmem>>, vector<1x64x256xbf16>
      %10 = vector.shape_cast %9 : vector<1x64x256xbf16> to vector<64x256xbf16>
      %cst = arith.constant 1.250000e-01 : bf16
      %11 = vector.broadcast %cst : bf16 to vector<64x256xbf16>
      %12 = arith.mulf %10, %11 : vector<64x256xbf16>
      %c0_6 = arith.constant 0 : index
      %c0_7 = arith.constant 0 : index
      %c0_8 = arith.constant 0 : index
      %13 = vector.load %arg4[%c0_6, %c0_7, %c0_8] : memref<1x64x256xbf16, #tpu.memory_space<vmem>>, vector<1x64x256xbf16>
      %14 = vector.shape_cast %13 : vector<1x64x256xbf16> to vector<64x256xbf16>
      %c0_9 = arith.constant 0 : index
      %c0_10 = arith.constant 0 : index
      %c0_11 = arith.constant 0 : index
      %15 = vector.load %arg5[%c0_9, %c0_10, %c0_11] : memref<1x64x256xbf16, #tpu.memory_space<vmem>>, vector<1x64x256xbf16>
      %16 = vector.shape_cast %15 : vector<1x64x256xbf16> to vector<64x256xbf16>
      %c64_i32 = arith.constant 64 : i32
      %17 = arith.muli %arg1, %c64_i32 : i32
      %18 = tpu.iota {dimensions = array<i32: 0>} : vector<64x64xi32>
      %19 = vector.broadcast %17 : i32 to vector<64x64xi32>
      %20 = arith.addi %19, %18 : vector<64x64xi32>
      %c64_i32_12 = arith.constant 64 : i32
      %21 = arith.muli %arg2, %c64_i32_12 : i32
      %22 = tpu.iota {dimensions = array<i32: 1>} : vector<64x64xi32>
      %23 = vector.broadcast %21 : i32 to vector<64x64xi32>
      %24 = arith.addi %23, %22 : vector<64x64xi32>
      %25 = arith.cmpi sle, %24, %20 : vector<64x64xi32>
      %c0_13 = arith.constant 0 : index
      %c0_14 = arith.constant 0 : index
      %c0_15 = arith.constant 0 : index
      %26 = vector.load %arg7[%c0_13, %c0_14, %c0_15] : memref<2x64x128xf32, #tpu.memory_space<vmem>>, vector<1x64x128xf32>
      %27 = vector.shape_cast %26 : vector<1x64x128xf32> to vector<64x128xf32>
      %28 = vector.extract_strided_slice %12 {offsets = [0, 0], sizes = [64, 64], strides = [1, 1]} : vector<64x256xbf16> to vector<64x64xbf16>
      %29 = vector.extract_strided_slice %14 {offsets = [0, 0], sizes = [64, 64], strides = [1, 1]} : vector<64x256xbf16> to vector<64x64xbf16>
      %cst_16 = arith.constant dense<0.000000e+00> : vector<64x64xf32>
      %30 = tpu.matmul %28, %29, %cst_16 {dimension_numbers = #tpu.dot_dimension_numbers<[1], [1], [0], [0], [0, 0, 1, 0], [], []>} : vector<64x64xbf16>, vector<64x64xbf16>, vector<64x64xf32> -> vector<64x64xf32>
      %cst_17 = arith.constant -1.000000e+30 : f32
      %31 = vector.broadcast %cst_17 : f32 to vector<64x64xf32>
      %32 = arith.select %25, %30, %31 : vector<64x64xi1>, vector<64x64xf32>
      %33 = vector.extract_strided_slice %27 {offsets = [0, 0], sizes = [64, 1], strides = [1, 1]} : vector<64x128xf32> to vector<64x1xf32>
      %cst_18 = arith.constant dense<0xFF800000> : vector<64xf32>
      %34 = vector.multi_reduction <maximumf>, %32, %cst_18 [1] : vector<64x64xf32> to vector<64xf32>
      %35 = vector.shape_cast %34 : vector<64xf32> to vector<64x1xf32>
      %36 = arith.maximumf %33, %35 : vector<64x1xf32>
      %37 = vector.broadcast %36 : vector<64x1xf32> to vector<64x64xf32>
      %38 = arith.subf %32, %37 : vector<64x64xf32>
      %39 = math.exp %38 : vector<64x64xf32>
      %cst_19 = arith.constant dense<0.000000e+00> : vector<64xf32>
      %40 = vector.multi_reduction <add>, %39, %cst_19 [1] : vector<64x64xf32> to vector<64xf32>
      %41 = vector.shape_cast %40 : vector<64xf32> to vector<64x1xf32>
      %42 = arith.truncf %39 : vector<64x64xf32> to vector<64x64xbf16>
      %43 = vector.extract_strided_slice %16 {offsets = [0, 0], sizes = [64, 64], strides = [1, 1]} : vector<64x256xbf16> to vector<64x64xbf16>
      %cst_20 = arith.constant dense<0.000000e+00> : vector<64x64xf32>
      %44 = tpu.matmul %42, %43, %cst_20 {dimension_numbers = #tpu.dot_dimension_numbers<[1], [0], [0], [1], [0, 0, 1, 1], [], []>} : vector<64x64xbf16>, vector<64x64xbf16>, vector<64x64xf32> -> vector<64x64xf32>
      %45 = vector.extract_strided_slice %12 {offsets = [0, 64], sizes = [64, 64], strides = [1, 1]} : vector<64x256xbf16> to vector<64x64xbf16>
      %46 = vector.extract_strided_slice %14 {offsets = [0, 64], sizes = [64, 64], strides = [1, 1]} : vector<64x256xbf16> to vector<64x64xbf16>
      %cst_21 = arith.constant dense<0.000000e+00> : vector<64x64xf32>
      %47 = tpu.matmul %45, %46, %cst_21 {dimension_numbers = #tpu.dot_dimension_numbers<[1], [1], [0], [0], [0, 0, 1, 0], [], []>} : vector<64x64xbf16>, vector<64x64xbf16>, vector<64x64xf32> -> vector<64x64xf32>
      %cst_22 = arith.constant -1.000000e+30 : f32
      %48 = vector.broadcast %cst_22 : f32 to vector<64x64xf32>
      %49 = arith.select %25, %47, %48 : vector<64x64xi1>, vector<64x64xf32>
      %50 = vector.extract_strided_slice %27 {offsets = [0, 64], sizes = [64, 1], strides = [1, 1]} : vector<64x128xf32> to vector<64x1xf32>
      %cst_23 = arith.constant dense<0xFF800000> : vector<64xf32>
      %51 = vector.multi_reduction <maximumf>, %49, %cst_23 [1] : vector<64x64xf32> to vector<64xf32>
      %52 = vector.shape_cast %51 : vector<64xf32> to vector<64x1xf32>
      %53 = arith.maximumf %50, %52 : vector<64x1xf32>
      %54 = vector.broadcast %53 : vector<64x1xf32> to vector<64x64xf32>
      %55 = arith.subf %49, %54 : vector<64x64xf32>
      %56 = math.exp %55 : vector<64x64xf32>
      %cst_24 = arith.constant dense<0.000000e+00> : vector<64xf32>
      %57 = vector.multi_reduction <add>, %56, %cst_24 [1] : vector<64x64xf32> to vector<64xf32>
      %58 = vector.shape_cast %57 : vector<64xf32> to vector<64x1xf32>
      %59 = arith.truncf %56 : vector<64x64xf32> to vector<64x64xbf16>
      %60 = vector.extract_strided_slice %16 {offsets = [0, 64], sizes = [64, 64], strides = [1, 1]} : vector<64x256xbf16> to vector<64x64xbf16>
      %cst_25 = arith.constant dense<0.000000e+00> : vector<64x64xf32>
      %61 = tpu.matmul %59, %60, %cst_25 {dimension_numbers = #tpu.dot_dimension_numbers<[1], [0], [0], [1], [0, 0, 1, 1], [], []>} : vector<64x64xbf16>, vector<64x64xbf16>, vector<64x64xf32> -> vector<64x64xf32>
      %62 = vector.shape_cast %36 : vector<64x1xf32> to vector<64x1xf32>
      %63 = vector.broadcast %62 : vector<64x1xf32> to vector<64x128xf32>
      %64 = tpu.iota {dimensions = array<i32: 1>} : vector<1x128xi32>
      %c64_i32_26 = arith.constant 64 : i32
      %65 = vector.broadcast %c64_i32_26 : i32 to vector<1x128xi32>
      %66 = arith.cmpi sge, %64, %65 : vector<1x128xi32>
      %67 = vector.shape_cast %66 : vector<1x128xi1> to vector<1x128xi1>
      %68 = vector.broadcast %67 : vector<1x128xi1> to vector<64x128xi1>
      %69 = vector.shape_cast %53 : vector<64x1xf32> to vector<64x1xf32>
      %70 = vector.broadcast %69 : vector<64x1xf32> to vector<64x128xf32>
      %71 = arith.select %68, %70, %63 : vector<64x128xi1>, vector<64x128xf32>
      %72 = vector.shape_cast %41 : vector<64x1xf32> to vector<64x1xf32>
      %73 = vector.broadcast %72 : vector<64x1xf32> to vector<64x128xf32>
      %74 = tpu.iota {dimensions = array<i32: 1>} : vector<1x128xi32>
      %c64_i32_27 = arith.constant 64 : i32
      %75 = vector.broadcast %c64_i32_27 : i32 to vector<1x128xi32>
      %76 = arith.cmpi sge, %74, %75 : vector<1x128xi32>
      %77 = vector.shape_cast %76 : vector<1x128xi1> to vector<1x128xi1>
      %78 = vector.broadcast %77 : vector<1x128xi1> to vector<64x128xi1>
      %79 = vector.shape_cast %58 : vector<64x1xf32> to vector<64x1xf32>
      %80 = vector.broadcast %79 : vector<64x1xf32> to vector<64x128xf32>
      %81 = arith.select %78, %80, %73 : vector<64x128xi1>, vector<64x128xf32>
      %82 = arith.subf %27, %71 : vector<64x128xf32>
      %83 = math.exp %82 : vector<64x128xf32>
      %84 = tpu.concatenate %44, %61 in 1 : vector<64x64xf32>, vector<64x64xf32> -> vector<64x128xf32>
      %c0_28 = arith.constant 0 : index
      %c0_29 = arith.constant 0 : index
      %c0_30 = arith.constant 0 : index
      %85 = vector.load %arg8[%c0_28, %c0_29, %c0_30] : memref<2x64x128xf32, #tpu.memory_space<vmem>>, vector<1x64x128xf32>
      %86 = vector.shape_cast %85 : vector<1x64x128xf32> to vector<64x128xf32>
      %87 = arith.mulf %83, %86 : vector<64x128xf32>
      %88 = arith.addf %87, %81 : vector<64x128xf32>
      %c0_31 = arith.constant 0 : index
      %c0_32 = arith.constant 0 : index
      %c0_33 = arith.constant 0 : index
      %89 = vector.load %arg8[%c0_31, %c0_32, %c0_33] : memref<2x64x128xf32, #tpu.memory_space<vmem>>, vector<1x64x128xf32>
      %90 = vector.shape_cast %89 : vector<1x64x128xf32> to vector<64x128xf32>
      %91 = vector.shape_cast %88 : vector<64x128xf32> to vector<1x64x128xf32>
      tpu.vector_store %arg8[%c0_31, %c0_32, %c0_33], %91 {strides = array<i32>} : memref<2x64x128xf32, #tpu.memory_space<vmem>>, vector<1x64x128xf32>,
      %c0_34 = arith.constant 0 : index
      %c0_35 = arith.constant 0 : index
      %92 = vector.load %arg9[%c0_34, %c0_35] : memref<64x256xf32, #tpu.memory_space<vmem>>, vector<64x128xf32>
      %93 = arith.mulf %83, %92 : vector<64x128xf32>
      %94 = arith.addf %93, %84 : vector<64x128xf32>
      %c0_36 = arith.constant 0 : index
      %c0_37 = arith.constant 0 : index
      %95 = vector.load %arg9[%c0_36, %c0_37] : memref<64x256xf32, #tpu.memory_space<vmem>>, vector<64x128xf32>
      tpu.vector_store %arg9[%c0_36, %c0_37], %94 {strides = array<i32>} : memref<64x256xf32, #tpu.memory_space<vmem>>, vector<64x128xf32>,
      %c0_38 = arith.constant 0 : index
      %c0_39 = arith.constant 0 : index
      %c0_40 = arith.constant 0 : index
      %96 = vector.load %arg7[%c0_38, %c0_39, %c0_40] : memref<2x64x128xf32, #tpu.memory_space<vmem>>, vector<1x64x128xf32>
      %97 = vector.shape_cast %96 : vector<1x64x128xf32> to vector<64x128xf32>
      %98 = vector.shape_cast %71 : vector<64x128xf32> to vector<1x64x128xf32>
      tpu.vector_store %arg7[%c0_38, %c0_39, %c0_40], %98 {strides = array<i32>} : memref<2x64x128xf32, #tpu.memory_space<vmem>>, vector<1x64x128xf32>,
      %c1 = arith.constant 1 : index
      %c0_41 = arith.constant 0 : index
      %c0_42 = arith.constant 0 : index
      %99 = vector.load %arg7[%c1, %c0_41, %c0_42] : memref<2x64x128xf32, #tpu.memory_space<vmem>>, vector<1x64x128xf32>
      %100 = vector.shape_cast %99 : vector<1x64x128xf32> to vector<64x128xf32>
      %101 = vector.extract_strided_slice %12 {offsets = [0, 128], sizes = [64, 64], strides = [1, 1]} : vector<64x256xbf16> to vector<64x64xbf16>
      %102 = vector.extract_strided_slice %14 {offsets = [0, 128], sizes = [64, 64], strides = [1, 1]} : vector<64x256xbf16> to vector<64x64xbf16>
      %cst_43 = arith.constant dense<0.000000e+00> : vector<64x64xf32>
      %103 = tpu.matmul %101, %102, %cst_43 {dimension_numbers = #tpu.dot_dimension_numbers<[1], [1], [0], [0], [0, 0, 1, 0], [], []>} : vector<64x64xbf16>, vector<64x64xbf16>, vector<64x64xf32> -> vector<64x64xf32>
      %cst_44 = arith.constant -1.000000e+30 : f32
      %104 = vector.broadcast %cst_44 : f32 to vector<64x64xf32>
      %105 = arith.select %25, %103, %104 : vector<64x64xi1>, vector<64x64xf32>
      %106 = vector.extract_strided_slice %100 {offsets = [0, 0], sizes = [64, 1], strides = [1, 1]} : vector<64x128xf32> to vector<64x1xf32>
      %cst_45 = arith.constant dense<0xFF800000> : vector<64xf32>
      %107 = vector.multi_reduction <maximumf>, %105, %cst_45 [1] : vector<64x64xf32> to vector<64xf32>
      %108 = vector.shape_cast %107 : vector<64xf32> to vector<64x1xf32>
      %109 = arith.maximumf %106, %108 : vector<64x1xf32>
      %110 = vector.broadcast %109 : vector<64x1xf32> to vector<64x64xf32>
      %111 = arith.subf %105, %110 : vector<64x64xf32>
      %112 = math.exp %111 : vector<64x64xf32>
      %cst_46 = arith.constant dense<0.000000e+00> : vector<64xf32>
      %113 = vector.multi_reduction <add>, %112, %cst_46 [1] : vector<64x64xf32> to vector<64xf32>
      %114 = vector.shape_cast %113 : vector<64xf32> to vector<64x1xf32>
      %115 = arith.truncf %112 : vector<64x64xf32> to vector<64x64xbf16>
      %116 = vector.extract_strided_slice %16 {offsets = [0, 128], sizes = [64, 64], strides = [1, 1]} : vector<64x256xbf16> to vector<64x64xbf16>
      %cst_47 = arith.constant dense<0.000000e+00> : vector<64x64xf32>
      %117 = tpu.matmul %115, %116, %cst_47 {dimension_numbers = #tpu.dot_dimension_numbers<[1], [0], [0], [1], [0, 0, 1, 1], [], []>} : vector<64x64xbf16>, vector<64x64xbf16>, vector<64x64xf32> -> vector<64x64xf32>
      %118 = vector.extract_strided_slice %12 {offsets = [0, 192], sizes = [64, 64], strides = [1, 1]} : vector<64x256xbf16> to vector<64x64xbf16>
      %119 = vector.extract_strided_slice %14 {offsets = [0, 192], sizes = [64, 64], strides = [1, 1]} : vector<64x256xbf16> to vector<64x64xbf16>
      %cst_48 = arith.constant dense<0.000000e+00> : vector<64x64xf32>
      %120 = tpu.matmul %118, %119, %cst_48 {dimension_numbers = #tpu.dot_dimension_numbers<[1], [1], [0], [0], [0, 0, 1, 0], [], []>} : vector<64x64xbf16>, vector<64x64xbf16>, vector<64x64xf32> -> vector<64x64xf32>
      %cst_49 = arith.constant -1.000000e+30 : f32
      %121 = vector.broadcast %cst_49 : f32 to vector<64x64xf32>
      %122 = arith.select %25, %120, %121 : vector<64x64xi1>, vector<64x64xf32>
      %123 = vector.extract_strided_slice %100 {offsets = [0, 64], sizes = [64, 1], strides = [1, 1]} : vector<64x128xf32> to vector<64x1xf32>
      %cst_50 = arith.constant dense<0xFF800000> : vector<64xf32>
      %124 = vector.multi_reduction <maximumf>, %122, %cst_50 [1] : vector<64x64xf32> to vector<64xf32>
      %125 = vector.shape_cast %124 : vector<64xf32> to vector<64x1xf32>
      %126 = arith.maximumf %123, %125 : vector<64x1xf32>
      %127 = vector.broadcast %126 : vector<64x1xf32> to vector<64x64xf32>
      %128 = arith.subf %122, %127 : vector<64x64xf32>
      %129 = math.exp %128 : vector<64x64xf32>
      %cst_51 = arith.constant dense<0.000000e+00> : vector<64xf32>
      %130 = vector.multi_reduction <add>, %129, %cst_51 [1] : vector<64x64xf32> to vector<64xf32>
      %131 = vector.shape_cast %130 : vector<64xf32> to vector<64x1xf32>
      %132 = arith.truncf %129 : vector<64x64xf32> to vector<64x64xbf16>
      %133 = vector.extract_strided_slice %16 {offsets = [0, 192], sizes = [64, 64], strides = [1, 1]} : vector<64x256xbf16> to vector<64x64xbf16>
      %cst_52 = arith.constant dense<0.000000e+00> : vector<64x64xf32>
      %134 = tpu.matmul %132, %133, %cst_52 {dimension_numbers = #tpu.dot_dimension_numbers<[1], [0], [0], [1], [0, 0, 1, 1], [], []>} : vector<64x64xbf16>, vector<64x64xbf16>, vector<64x64xf32> -> vector<64x64xf32>
      %135 = vector.shape_cast %109 : vector<64x1xf32> to vector<64x1xf32>
      %136 = vector.broadcast %135 : vector<64x1xf32> to vector<64x128xf32>
      %137 = tpu.iota {dimensions = array<i32: 1>} : vector<1x128xi32>
      %c64_i32_53 = arith.constant 64 : i32
      %138 = vector.broadcast %c64_i32_53 : i32 to vector<1x128xi32>
      %139 = arith.cmpi sge, %137, %138 : vector<1x128xi32>
      %140 = vector.shape_cast %139 : vector<1x128xi1> to vector<1x128xi1>
      %141 = vector.broadcast %140 : vector<1x128xi1> to vector<64x128xi1>
      %142 = vector.shape_cast %126 : vector<64x1xf32> to vector<64x1xf32>
      %143 = vector.broadcast %142 : vector<64x1xf32> to vector<64x128xf32>
      %144 = arith.select %141, %143, %136 : vector<64x128xi1>, vector<64x128xf32>
      %145 = vector.shape_cast %114 : vector<64x1xf32> to vector<64x1xf32>
      %146 = vector.broadcast %145 : vector<64x1xf32> to vector<64x128xf32>
      %147 = tpu.iota {dimensions = array<i32: 1>} : vector<1x128xi32>
      %c64_i32_54 = arith.constant 64 : i32
      %148 = vector.broadcast %c64_i32_54 : i32 to vector<1x128xi32>
      %149 = arith.cmpi sge, %147, %148 : vector<1x128xi32>
      %150 = vector.shape_cast %149 : vector<1x128xi1> to vector<1x128xi1>
      %151 = vector.broadcast %150 : vector<1x128xi1> to vector<64x128xi1>
      %152 = vector.shape_cast %131 : vector<64x1xf32> to vector<64x1xf32>
      %153 = vector.broadcast %152 : vector<64x1xf32> to vector<64x128xf32>
      %154 = arith.select %151, %153, %146 : vector<64x128xi1>, vector<64x128xf32>
      %155 = arith.subf %100, %144 : vector<64x128xf32>
      %156 = math.exp %155 : vector<64x128xf32>
      %157 = tpu.concatenate %117, %134 in 1 : vector<64x64xf32>, vector<64x64xf32> -> vector<64x128xf32>
      %c1_55 = arith.constant 1 : index
      %c0_56 = arith.constant 0 : index
      %c0_57 = arith.constant 0 : index
      %158 = vector.load %arg8[%c1_55, %c0_56, %c0_57] : memref<2x64x128xf32, #tpu.memory_space<vmem>>, vector<1x64x128xf32>
      %159 = vector.shape_cast %158 : vector<1x64x128xf32> to vector<64x128xf32>
      %160 = arith.mulf %156, %159 : vector<64x128xf32>
      %161 = arith.addf %160, %154 : vector<64x128xf32>
      %c1_58 = arith.constant 1 : index
      %c0_59 = arith.constant 0 : index
      %c0_60 = arith.constant 0 : index
      %162 = vector.load %arg8[%c1_58, %c0_59, %c0_60] : memref<2x64x128xf32, #tpu.memory_space<vmem>>, vector<1x64x128xf32>
      %163 = vector.shape_cast %162 : vector<1x64x128xf32> to vector<64x128xf32>
      %164 = vector.shape_cast %161 : vector<64x128xf32> to vector<1x64x128xf32>
      tpu.vector_store %arg8[%c1_58, %c0_59, %c0_60], %164 {strides = array<i32>} : memref<2x64x128xf32, #tpu.memory_space<vmem>>, vector<1x64x128xf32>,
      %c0_61 = arith.constant 0 : index
      %c128 = arith.constant 128 : index
      %165 = vector.load %arg9[%c0_61, %c128] : memref<64x256xf32, #tpu.memory_space<vmem>>, vector<64x128xf32>
      %166 = arith.mulf %156, %165 : vector<64x128xf32>
      %167 = arith.addf %166, %157 : vector<64x128xf32>
      %c0_62 = arith.constant 0 : index
      %c128_63 = arith.constant 128 : index
      %168 = vector.load %arg9[%c0_62, %c128_63] : memref<64x256xf32, #tpu.memory_space<vmem>>, vector<64x128xf32>
      tpu.vector_store %arg9[%c0_62, %c128_63], %167 {strides = array<i32>} : memref<64x256xf32, #tpu.memory_space<vmem>>, vector<64x128xf32>,
      %c1_64 = arith.constant 1 : index
      %c0_65 = arith.constant 0 : index
      %c0_66 = arith.constant 0 : index
      %169 = vector.load %arg7[%c1_64, %c0_65, %c0_66] : memref<2x64x128xf32, #tpu.memory_space<vmem>>, vector<1x64x128xf32>
      %170 = vector.shape_cast %169 : vector<1x64x128xf32> to vector<64x128xf32>
      %171 = vector.shape_cast %144 : vector<64x128xf32> to vector<1x64x128xf32>
      tpu.vector_store %arg7[%c1_64, %c0_65, %c0_66], %171 {strides = array<i32>} : memref<2x64x128xf32, #tpu.memory_space<vmem>>, vector<1x64x128xf32>,
    } else {
    }
    %c0_i32_2 = arith.constant 0 : i32
    %6 = arith.cmpi eq, %arg2, %c0_i32_2 : i32
    %7 = arith.extui %6 : i1 to i32
    %c0_i32_3 = arith.constant 0 : i32
    %8 = arith.cmpi ne, %7, %c0_i32_3 : i32
    scf.if %8 {
      %c0 = arith.constant 0 : index
      %c0_4 = arith.constant 0 : index
      %c0_5 = arith.constant 0 : index
      %9 = vector.load %arg8[%c0, %c0_4, %c0_5] : memref<2x64x128xf32, #tpu.memory_space<vmem>>, vector<1x64x128xf32>
      %10 = vector.shape_cast %9 : vector<1x64x128xf32> to vector<64x128xf32>
      %11 = tpu.reciprocal %10 {approx = true} : vector<64x128xf32> -> vector<64x128xf32>
      %c0_6 = arith.constant 0 : index
      %c0_7 = arith.constant 0 : index
      %12 = vector.load %arg9[%c0_6, %c0_7] : memref<64x256xf32, #tpu.memory_space<vmem>>, vector<64x128xf32>
      %13 = arith.mulf %12, %11 : vector<64x128xf32>
      %14 = arith.truncf %13 : vector<64x128xf32> to vector<64x128xbf16>
      %c0_8 = arith.constant 0 : index
      %c0_9 = arith.constant 0 : index
      %c0_10 = arith.constant 0 : index
      %15 = vector.load %arg6[%c0_8, %c0_9, %c0_10] : memref<1x64x256xbf16, #tpu.memory_space<vmem>>, vector<1x64x128xbf16>
      %16 = vector.shape_cast %15 : vector<1x64x128xbf16> to vector<64x128xbf16>
      %17 = vector.shape_cast %14 : vector<64x128xbf16> to vector<1x64x128xbf16>
      tpu.vector_store %arg6[%c0_8, %c0_9, %c0_10], %17 {strides = array<i32>} : memref<1x64x256xbf16, #tpu.memory_space<vmem>>, vector<1x64x128xbf16>,
      %c1 = arith.constant 1 : index
      %c0_11 = arith.constant 0 : index
      %c0_12 = arith.constant 0 : index
      %18 = vector.load %arg8[%c1, %c0_11, %c0_12] : memref<2x64x128xf32, #tpu.memory_space<vmem>>, vector<1x64x128xf32>
      %19 = vector.shape_cast %18 : vector<1x64x128xf32> to vector<64x128xf32>
      %20 = tpu.reciprocal %19 {approx = true} : vector<64x128xf32> -> vector<64x128xf32>
      %c0_13 = arith.constant 0 : index
      %c128 = arith.constant 128 : index
      %21 = vector.load %arg9[%c0_13, %c128] : memref<64x256xf32, #tpu.memory_space<vmem>>, vector<64x128xf32>
      %22 = arith.mulf %21, %20 : vector<64x128xf32>
      %23 = arith.truncf %22 : vector<64x128xf32> to vector<64x128xbf16>
      %c0_14 = arith.constant 0 : index
      %c0_15 = arith.constant 0 : index
      %c128_16 = arith.constant 128 : index
      %24 = vector.load %arg6[%c0_14, %c0_15, %c128_16] : memref<1x64x256xbf16, #tpu.memory_space<vmem>>, vector<1x64x128xbf16>
      %25 = vector.shape_cast %24 : vector<1x64x128xbf16> to vector<64x128xbf16>
      %26 = vector.shape_cast %23 : vector<64x128xbf16> to vector<1x64x128xbf16>
      tpu.vector_store %arg6[%c0_14, %c0_15, %c128_16], %26 {strides = array<i32>} : memref<1x64x256xbf16, #tpu.memory_space<vmem>>, vector<1x64x128xbf16>,
    } else {
    }
    return
  }
  func.func @transform_0(%arg0: i32, %arg1: i32, %arg2: i32) -> (i32, i32, i32) {
    %c0_i32 = arith.constant 0 : i32
    %c0_i32_0 = arith.constant 0 : i32
    return %arg0, %arg1, %c0_i32 : i32, i32, i32
  }
  func.func @transform_1(%arg0: i32, %arg1: i32, %arg2: i32) -> (i32, i32, i32) {
    %0 = arith.minsi %arg2, %arg1 : i32
    %c1_i32 = arith.constant 1 : i32
    %c0_i32 = arith.constant 0 : i32
    return %arg0, %0, %c1_i32 : i32, i32, i32
  }
  func.func @transform_2(%arg0: i32, %arg1: i32, %arg2: i32) -> (i32, i32, i32) {
    %0 = arith.minsi %arg2, %arg1 : i32
    %c2_i32 = arith.constant 2 : i32
    %c0_i32 = arith.constant 0 : i32
    return %arg0, %0, %c2_i32 : i32, i32, i32
  }
  func.func @transform_3(%arg0: i32, %arg1: i32, %arg2: i32) -> (i32, i32, i32) {
    %c0_i32 = arith.constant 0 : i32
    %c0_i32_0 = arith.constant 0 : i32
    return %arg0, %arg1, %c0_i32 : i32, i32, i32
  }
}

module attributes {stable_mosaic.version = 11 : i64} {
  func.func @_ln_lm_head_kernel(%arg0: i32, %arg1: i32, %arg2: memref<128x256xbf16, #tpu.memory_space<vmem>>, %arg3: memref<1x256xf32, #tpu.memory_space<vmem>>, %arg4: memref<1x256xf32, #tpu.memory_space<vmem>>, %arg5: memref<512x256xbf16, #tpu.memory_space<vmem>>, %arg6: memref<128x512xf32, #tpu.memory_space<vmem>>, %arg7: memref<128x256xbf16, #tpu.memory_space<vmem>>) attributes {dimension_semantics = [#tpu.dimension_semantics<parallel>, #tpu.dimension_semantics<arbitrary>], iteration_bounds = array<i64: 1, 1>, scalar_prefetch = 0 : i64, scratch_operands = 1 : i64, tpu.core_type = #tpu.core_type<tc>, window_params = [{transform_indices = @transform_0, window_bounds = array<i64: 128, 256>}, {pipeline_mode = #tpu.pipeline_mode<synchronous>, transform_indices = @transform_1, window_bounds = array<i64: 1, 256>}, {pipeline_mode = #tpu.pipeline_mode<synchronous>, transform_indices = @transform_2, window_bounds = array<i64: 1, 256>}, {transform_indices = @transform_3, window_bounds = array<i64: 512, 256>}, {transform_indices = @transform_4, window_bounds = array<i64: 128, 512>}]} {
    %c0_i32 = arith.constant 0 : i32
    %0 = arith.cmpi eq, %arg1, %c0_i32 : i32
    %1 = arith.extui %0 : i1 to i32
    %c0_i32_0 = arith.constant 0 : i32
    %2 = arith.cmpi ne, %1, %c0_i32_0 : i32
    scf.if %2 {
      %c0_6 = arith.constant 0 : index
      %c0_7 = arith.constant 0 : index
      %7 = vector.load %arg2[%c0_6, %c0_7] : memref<128x256xbf16, #tpu.memory_space<vmem>>, vector<128x256xbf16>
      %8 = arith.extf %7 : vector<128x256xbf16> to vector<128x256xf32>
      %cst_8 = arith.constant dense<0.000000e+00> : vector<128xf32>
      %9 = vector.multi_reduction <add>, %8, %cst_8 [1] : vector<128x256xf32> to vector<128xf32>
      %10 = vector.shape_cast %9 : vector<128xf32> to vector<128x1xf32>
      %cst_9 = arith.constant 2.560000e+02 : f32
      %11 = vector.broadcast %cst_9 : f32 to vector<128x1xf32>
      %12 = arith.divf %10, %11 : vector<128x1xf32>
      %13 = vector.broadcast %12 : vector<128x1xf32> to vector<128x256xf32>
      %14 = arith.subf %8, %13 : vector<128x256xf32>
      %15 = arith.mulf %14, %14 : vector<128x256xf32>
      %cst_10 = arith.constant dense<0.000000e+00> : vector<128xf32>
      %16 = vector.multi_reduction <add>, %15, %cst_10 [1] : vector<128x256xf32> to vector<128xf32>
      %17 = vector.shape_cast %16 : vector<128xf32> to vector<128x1xf32>
      %cst_11 = arith.constant 2.560000e+02 : f32
      %18 = vector.broadcast %cst_11 : f32 to vector<128x1xf32>
      %19 = arith.divf %17, %18 : vector<128x1xf32>
      %20 = vector.broadcast %12 : vector<128x1xf32> to vector<128x256xf32>
      %21 = arith.subf %8, %20 : vector<128x256xf32>
      %cst_12 = arith.constant 9.99999974E-6 : f32
      %22 = vector.broadcast %cst_12 : f32 to vector<128x1xf32>
      %23 = arith.addf %19, %22 : vector<128x1xf32>
      %24 = math.rsqrt %23 : vector<128x1xf32>
      %25 = vector.broadcast %24 : vector<128x1xf32> to vector<128x256xf32>
      %26 = arith.mulf %21, %25 : vector<128x256xf32>
      %c0_13 = arith.constant 0 : index
      %c0_14 = arith.constant 0 : index
      %27 = vector.load %arg3[%c0_13, %c0_14] : memref<1x256xf32, #tpu.memory_space<vmem>>, vector<1x256xf32>
      %28 = vector.broadcast %27 : vector<1x256xf32> to vector<128x256xf32>
      %29 = arith.mulf %26, %28 : vector<128x256xf32>
      %c0_15 = arith.constant 0 : index
      %c0_16 = arith.constant 0 : index
      %30 = vector.load %arg4[%c0_15, %c0_16] : memref<1x256xf32, #tpu.memory_space<vmem>>, vector<1x256xf32>
      %31 = vector.broadcast %30 : vector<1x256xf32> to vector<128x256xf32>
      %32 = arith.addf %29, %31 : vector<128x256xf32>
      %33 = arith.truncf %32 : vector<128x256xf32> to vector<128x256xbf16>
      %c0_17 = arith.constant 0 : index
      %c0_18 = arith.constant 0 : index
      %34 = vector.load %arg7[%c0_17, %c0_18] : memref<128x256xbf16, #tpu.memory_space<vmem>>, vector<128x256xbf16>
      tpu.vector_store %arg7[%c0_17, %c0_18], %33 {strides = array<i32>} : memref<128x256xbf16, #tpu.memory_space<vmem>>, vector<128x256xbf16>,
    } else {
    }
    %c0 = arith.constant 0 : index
    %c0_1 = arith.constant 0 : index
    %3 = vector.load %arg7[%c0, %c0_1] : memref<128x256xbf16, #tpu.memory_space<vmem>>, vector<128x256xbf16>
    %c0_2 = arith.constant 0 : index
    %c0_3 = arith.constant 0 : index
    %4 = vector.load %arg5[%c0_2, %c0_3] : memref<512x256xbf16, #tpu.memory_space<vmem>>, vector<512x256xbf16>
    %cst = arith.constant dense<0.000000e+00> : vector<128x512xf32>
    %5 = tpu.matmul %3, %4, %cst {dimension_numbers = #tpu.dot_dimension_numbers<[1], [1], [0], [0], [0, 0, 1, 0], [], []>} : vector<128x256xbf16>, vector<512x256xbf16>, vector<128x512xf32> -> vector<128x512xf32>
    %c0_4 = arith.constant 0 : index
    %c0_5 = arith.constant 0 : index
    %6 = vector.load %arg6[%c0_4, %c0_5] : memref<128x512xf32, #tpu.memory_space<vmem>>, vector<128x512xf32>
    tpu.vector_store %arg6[%c0_4, %c0_5], %5 {strides = array<i32>} : memref<128x512xf32, #tpu.memory_space<vmem>>, vector<128x512xf32>,
    return
  }
  func.func @transform_0(%arg0: i32, %arg1: i32) -> (i32, i32) {
    %c0_i32 = arith.constant 0 : i32
    %c0_i32_0 = arith.constant 0 : i32
    return %arg0, %c0_i32 : i32, i32
  }
  func.func @transform_1(%arg0: i32, %arg1: i32) -> (i32, i32) {
    %c0_i32 = arith.constant 0 : i32
    %c0_i32_0 = arith.constant 0 : i32
    %c0_i32_1 = arith.constant 0 : i32
    return %c0_i32, %c0_i32_0 : i32, i32
  }
  func.func @transform_2(%arg0: i32, %arg1: i32) -> (i32, i32) {
    %c0_i32 = arith.constant 0 : i32
    %c0_i32_0 = arith.constant 0 : i32
    %c0_i32_1 = arith.constant 0 : i32
    return %c0_i32, %c0_i32_0 : i32, i32
  }
  func.func @transform_3(%arg0: i32, %arg1: i32) -> (i32, i32) {
    %c0_i32 = arith.constant 0 : i32
    %c0_i32_0 = arith.constant 0 : i32
    return %arg1, %c0_i32 : i32, i32
  }
  func.func @transform_4(%arg0: i32, %arg1: i32) -> (i32, i32) {
    %c0_i32 = arith.constant 0 : i32
    return %arg0, %arg1 : i32, i32
  }
}

module attributes {stable_mosaic.version = 11 : i64} {
  func.func @_linear_res_kernel(%arg0: i32, %arg1: i32, %arg2: i32, %arg3: memref<128x512xbf16, #tpu.memory_space<vmem>>, %arg4: memref<512x256xbf16, #tpu.memory_space<vmem>>, %arg5: memref<1x256xbf16, #tpu.memory_space<vmem>>, %arg6: memref<128x256xbf16, #tpu.memory_space<vmem>>, %arg7: memref<128x256xbf16, #tpu.memory_space<vmem>>, %arg8: memref<128x256xf32, #tpu.memory_space<vmem>>) attributes {dimension_semantics = [#tpu.dimension_semantics<parallel>, #tpu.dimension_semantics<parallel>, #tpu.dimension_semantics<arbitrary>], iteration_bounds = array<i64: 1, 1, 2>, scalar_prefetch = 0 : i64, scratch_operands = 1 : i64, tpu.core_type = #tpu.core_type<tc>, window_params = [{transform_indices = @transform_0, window_bounds = array<i64: 128, 512>}, {transform_indices = @transform_1, window_bounds = array<i64: 512, 256>}, {transform_indices = @transform_2, window_bounds = array<i64: 1, 256>}, {transform_indices = @transform_3, window_bounds = array<i64: 128, 256>}, {transform_indices = @transform_4, window_bounds = array<i64: 128, 256>}]} {
    %c0_i32 = arith.constant 0 : i32
    %0 = arith.cmpi eq, %arg2, %c0_i32 : i32
    %1 = arith.extui %0 : i1 to i32
    %c0_i32_0 = arith.constant 0 : i32
    %2 = arith.cmpi ne, %1, %c0_i32_0 : i32
    scf.if %2 {
      %cst_9 = arith.constant 0.000000e+00 : f32
      %12 = vector.broadcast %cst_9 : f32 to vector<128x256xf32>
      %c0_10 = arith.constant 0 : index
      %c0_11 = arith.constant 0 : index
      %13 = vector.load %arg8[%c0_10, %c0_11] : memref<128x256xf32, #tpu.memory_space<vmem>>, vector<128x256xf32>
      tpu.vector_store %arg8[%c0_10, %c0_11], %12 {strides = array<i32>} : memref<128x256xf32, #tpu.memory_space<vmem>>, vector<128x256xf32>,
    } else {
    }
    %c0 = arith.constant 0 : index
    %c0_1 = arith.constant 0 : index
    %3 = vector.load %arg8[%c0, %c0_1] : memref<128x256xf32, #tpu.memory_space<vmem>>, vector<128x256xf32>
    %c0_2 = arith.constant 0 : index
    %c0_3 = arith.constant 0 : index
    %4 = vector.load %arg3[%c0_2, %c0_3] : memref<128x512xbf16, #tpu.memory_space<vmem>>, vector<128x512xbf16>
    %c0_4 = arith.constant 0 : index
    %c0_5 = arith.constant 0 : index
    %5 = vector.load %arg4[%c0_4, %c0_5] : memref<512x256xbf16, #tpu.memory_space<vmem>>, vector<512x256xbf16>
    %cst = arith.constant dense<0.000000e+00> : vector<128x256xf32>
    %6 = tpu.matmul %4, %5, %cst {dimension_numbers = #tpu.dot_dimension_numbers<[1], [0], [0], [1], [0, 0, 1, 1], [], []>} : vector<128x512xbf16>, vector<512x256xbf16>, vector<128x256xf32> -> vector<128x256xf32>
    %7 = arith.addf %3, %6 : vector<128x256xf32>
    %c0_6 = arith.constant 0 : index
    %c0_7 = arith.constant 0 : index
    %8 = vector.load %arg8[%c0_6, %c0_7] : memref<128x256xf32, #tpu.memory_space<vmem>>, vector<128x256xf32>
    tpu.vector_store %arg8[%c0_6, %c0_7], %7 {strides = array<i32>} : memref<128x256xf32, #tpu.memory_space<vmem>>, vector<128x256xf32>,
    %c1_i32 = arith.constant 1 : i32
    %9 = arith.cmpi eq, %arg2, %c1_i32 : i32
    %10 = arith.extui %9 : i1 to i32
    %c0_i32_8 = arith.constant 0 : i32
    %11 = arith.cmpi ne, %10, %c0_i32_8 : i32
    scf.if %11 {
      %c0_9 = arith.constant 0 : index
      %c0_10 = arith.constant 0 : index
      %12 = vector.load %arg8[%c0_9, %c0_10] : memref<128x256xf32, #tpu.memory_space<vmem>>, vector<128x256xf32>
      %c0_11 = arith.constant 0 : index
      %c0_12 = arith.constant 0 : index
      %13 = vector.load %arg5[%c0_11, %c0_12] : memref<1x256xbf16, #tpu.memory_space<vmem>>, vector<1x256xbf16>
      %14 = arith.extf %13 : vector<1x256xbf16> to vector<1x256xf32>
      %15 = vector.broadcast %14 : vector<1x256xf32> to vector<128x256xf32>
      %16 = arith.addf %12, %15 : vector<128x256xf32>
      %c0_13 = arith.constant 0 : index
      %c0_14 = arith.constant 0 : index
      %17 = vector.load %arg6[%c0_13, %c0_14] : memref<128x256xbf16, #tpu.memory_space<vmem>>, vector<128x256xbf16>
      %18 = arith.extf %17 : vector<128x256xbf16> to vector<128x256xf32>
      %19 = arith.addf %16, %18 : vector<128x256xf32>
      %20 = arith.truncf %19 : vector<128x256xf32> to vector<128x256xbf16>
      %c0_15 = arith.constant 0 : index
      %c0_16 = arith.constant 0 : index
      %21 = vector.load %arg7[%c0_15, %c0_16] : memref<128x256xbf16, #tpu.memory_space<vmem>>, vector<128x256xbf16>
      tpu.vector_store %arg7[%c0_15, %c0_16], %20 {strides = array<i32>} : memref<128x256xbf16, #tpu.memory_space<vmem>>, vector<128x256xbf16>,
    } else {
    }
    return
  }
  func.func @transform_0(%arg0: i32, %arg1: i32, %arg2: i32) -> (i32, i32) {
    %c0_i32 = arith.constant 0 : i32
    return %arg0, %arg2 : i32, i32
  }
  func.func @transform_1(%arg0: i32, %arg1: i32, %arg2: i32) -> (i32, i32) {
    %c0_i32 = arith.constant 0 : i32
    return %arg2, %arg1 : i32, i32
  }
  func.func @transform_2(%arg0: i32, %arg1: i32, %arg2: i32) -> (i32, i32) {
    %c0_i32 = arith.constant 0 : i32
    %c0_i32_0 = arith.constant 0 : i32
    return %c0_i32, %arg1 : i32, i32
  }
  func.func @transform_3(%arg0: i32, %arg1: i32, %arg2: i32) -> (i32, i32) {
    %c0_i32 = arith.constant 0 : i32
    return %arg0, %arg1 : i32, i32
  }
  func.func @transform_4(%arg0: i32, %arg1: i32, %arg2: i32) -> (i32, i32) {
    %c0_i32 = arith.constant 0 : i32
    return %arg0, %arg1 : i32, i32
  }
}

</mosaic_0001>

<bundles_post_ra>
// kernel: gpt_forward.13
= control target key start
LH: loop header
LB: loop body
LE: loop exit
PB: predicated region body
PF: predicated region fallthrough
CT: control target
= control target key end

     0   :  { %v588_v48 = vlaneseq  ;;  %s1322_s1 = inlined_call_operand.vmem [shape: bf16[256,256], index: 1, kind: input, shape index: {}]   ;;  %s1323_s0 = inlined_call_operand.vmem [shape: bf16[128,256], index: 0, kind: input, shape index: {}]   ;;  %s1324_s2 = inlined_call_operand.vmem [shape: bf16[1,256], index: 2, kind: input, shape index: {}]   ;;  %s1325_s3 = inlined_call_operand.vmem [shape: bf16[128,256], index: 3, kind: input, shape index: {}, may-alias: {3,4}]   ;;  %s1326_s4 = inlined_call_operand.vmem [shape: bf16[128,256], index: 4, kind: output, shape index: {}, may-alias: {3,4}]  }
   0x1   :  { %v946_v0 = vld [vmem:[%s1322_s1 + $0x4] ss:$8 sps:$4 sm:$0xff]   ;;  %v948_v1 = vld [vmem:[%s1322_s1] ss:$8 sps:$4 sm:$0xff]   ;;  %v949_v2 = vld [vmem:[%s1322_s1 + $0x14] ss:$8 sps:$4 sm:$0xff]  }
   0x2   :  { %373 = vmatprep.subr.bf16.mxu0 %v946_v0  ;;  %914 = vmatprep.subr.bf16.mxu1 %v946_v0  ;;  %v951_v3 = vld [vmem:[%s1322_s1 + $0x10] ss:$8 sps:$4 sm:$0xff]   ;;  %v952_v4 = vld [vmem:[%s1322_s1 + $0x24] ss:$8 sps:$4 sm:$0xff]   ;;  %v954_v5 = vld [vmem:[%s1322_s1 + $0x20] ss:$8 sps:$4 sm:$0xff]  }
   0x3   :  { %374 = vmatpush1.bf16.msra.mxu0 %v948_v1  ;;  %930 = vmatpush1.bf16.msra.mxu1 %v948_v1  ;;  %v955_v6 = vld [vmem:[%s1322_s1 + $0x34] ss:$8 sps:$4 sm:$0xff]   ;;  %v957_v7 = vld [vmem:[%s1322_s1 + $0x30] ss:$8 sps:$4 sm:$0xff]   ;;  %v958_v8 = vld [vmem:[%s1322_s1 + $0x44] ss:$8 sps:$4 sm:$0xff]  }
   0x4   :  { %375 = vmatprep.subr.bf16.mxu0 %v949_v2  ;;  %915 = vmatprep.subr.bf16.mxu1 %v949_v2  ;;  %v960_v9 = vld [vmem:[%s1322_s1 + $0x40] ss:$8 sps:$4 sm:$0xff]   ;;  %v961_v10 = vld [vmem:[%s1322_s1 + $0x54] ss:$8 sps:$4 sm:$0xff]   ;;  %v963_v11 = vld [vmem:[%s1322_s1 + $0x50] ss:$8 sps:$4 sm:$0xff]  }
   0x5   :  { %v964_v12 = vld [vmem:[%s1322_s1 + $0x64] ss:$8 sps:$4 sm:$0xff]   ;;  %v966_v14 = vld [vmem:[%s1322_s1 + $0x60] ss:$8 sps:$4 sm:$0xff]   ;;  %v967_v16 = vld [vmem:[%s1322_s1 + $0x74] ss:$8 sps:$4 sm:$0xff]  }
   0x6   :  { %v996_v13 = vld [vmem:[%s1323_s0 + $0x4] ss:$8 sps:$4 sm:$0xff]   ;;  %v969_v17 = vld [vmem:[%s1322_s1 + $0x70] ss:$8 sps:$4 sm:$0xff]   ;;  %v972_v19 = vld [vmem:[%s1322_s1 + $0x80] ss:$8 sps:$4 sm:$0xff]  }
   0x7   :  { %376 = vmatpush1.bf16.msra.mxu0 %v951_v3  ;;  %931 = vmatpush1.bf16.msra.mxu1 %v951_v3  ;;  %v999_v15 = vld [vmem:[%s1323_s0 + $0x44] ss:$8 sps:$4 sm:$0xff]   ;;  %v973_v20 = vld [vmem:[%s1322_s1 + $0x94] ss:$8 sps:$4 sm:$0xff]   ;;  %v975_v21 = vld [vmem:[%s1322_s1 + $0x90] ss:$8 sps:$4 sm:$0xff]  }
   0x8   :  { %377 = vmatprep.subr.bf16.mxu0 %v952_v4  ;;  %916 = vmatprep.subr.bf16.mxu1 %v952_v4  ;;  %v970_v18 = vld [vmem:[%s1322_s1 + $0x84] ss:$8 sps:$4 sm:$0xff]   ;;  %v978_v23 = vld [vmem:[%s1322_s1 + $0xa0] ss:$8 sps:$4 sm:$0xff]   ;;  %v979_v24 = vld [vmem:[%s1322_s1 + $0xb4] ss:$8 sps:$4 sm:$0xff]  }
   0x9   :  { %405 = vmatprep.mubr.bf16.mxu0 %v996_v13  ;;  %445 = vmatprep.mubr.bf16.mxu1 %v999_v15  ;;  %v976_v22 = vld [vmem:[%s1322_s1 + $0xa4] ss:$8 sps:$4 sm:$0xff]   ;;  %v981_v25 = vld [vmem:[%s1322_s1 + $0xb0] ss:$8 sps:$4 sm:$0xff]   ;;  %v984_v27 = vld [vmem:[%s1322_s1 + $0xc0] ss:$8 sps:$4 sm:$0xff]  }
   0xa   :  { %v982_v26 = vld [vmem:[%s1322_s1 + $0xc4] ss:$8 sps:$4 sm:$0xff]   ;;  %v985_v28 = vld [vmem:[%s1322_s1 + $0xd4] ss:$8 sps:$4 sm:$0xff]   ;;  %v987_v29 = vld [vmem:[%s1322_s1 + $0xd0] ss:$8 sps:$4 sm:$0xff]  }
   0xb   :  { %378 = vmatpush1.bf16.msra.mxu0 %v954_v5  ;;  %932 = vmatpush1.bf16.msra.mxu1 %v954_v5  ;;  %v988_v30 = vld [vmem:[%s1322_s1 + $0xe4] ss:$8 sps:$4 sm:$0xff]   ;;  %v990_v31 = vld [vmem:[%s1322_s1 + $0xe0] ss:$8 sps:$4 sm:$0xff]   ;;  %v991_v32 = vld [vmem:[%s1322_s1 + $0xf4] ss:$8 sps:$4 sm:$0xff]  }
   0xc   :  { %379 = vmatprep.subr.bf16.mxu0 %v955_v6  ;;  %917 = vmatprep.subr.bf16.mxu1 %v955_v6  ;;  %v993_v33 = vld [vmem:[%s1322_s1 + $0xf0] ss:$8 sps:$4 sm:$0xff]   ;;  %v994_v34 = vld [vmem:[%s1323_s0] ss:$8 sps:$4 sm:$0xff]   ;;  %v1000_v36 = vld [vmem:[%s1323_s0 + $0x14] ss:$8 sps:$4 sm:$0xff]  }
   0xd   :  { %v997_v35 = vld [vmem:[%s1323_s0 + $0x40] ss:$8 sps:$4 sm:$0xff]   ;;  %v1002_v37 = vld [vmem:[%s1323_s0 + $0x54] ss:$8 sps:$4 sm:$0xff]   ;;  %v1004_v38 = vld [vmem:[%s1323_s0 + $0x10] ss:$8 sps:$4 sm:$0xff]  }
   0xe   :  { %v1005_v39 = vld [vmem:[%s1323_s0 + $0x50] ss:$8 sps:$4 sm:$0xff]   ;;  %v1006_v40 = vld [vmem:[%s1323_s0 + $0x24] ss:$8 sps:$4 sm:$0xff]   ;;  %v1010_v42 = vld [vmem:[%s1323_s0 + $0x20] ss:$8 sps:$4 sm:$0xff]  }
   0xf   :  { %380 = vmatpush1.bf16.msra.mxu0 %v957_v7  ;;  %933 = vmatpush1.bf16.msra.mxu1 %v957_v7  ;;  %v1008_v41 = vld [vmem:[%s1323_s0 + $0x64] ss:$8 sps:$4 sm:$0xff]   ;;  %v1011_v43 = vld [vmem:[%s1323_s0 + $0x60] ss:$8 sps:$4 sm:$0xff]   ;;  %v1012_v44 = vld [vmem:[%s1323_s0 + $0x34] ss:$8 sps:$4 sm:$0xff]  }
  0x10   :  { %381 = vmatprep.subr.bf16.mxu0 %v958_v8  ;;  %918 = vmatprep.subr.bf16.mxu1 %v958_v8  ;;  %v1014_v45 = vld [vmem:[%s1323_s0 + $0x74] ss:$8 sps:$4 sm:$0xff]   ;;  %v1016_v46 = vld [vmem:[%s1323_s0 + $0x30] ss:$8 sps:$4 sm:$0xff]   ;;  %v589_v49 = vshrl.u32 %v588_v48, 7  ;;  %v638_v56 = vld [vmem:[%s1325_s3] sm:$0xff] }
  0x11   :  { %v1017_v47 = vld [vmem:[%s1323_s0 + $0x70] ss:$8 sps:$4 sm:$0xff]   ;;  %v585_v50 = vld [vmem:[%s1324_s2] sm:$0x3]  ;;  %v639_v60 = vld [vmem:[%s1325_s3 + $0x8] sm:$0xff]  ;;  %v654_v62 = vunpack.c.l.bf16 %v638_v56  ;;  %v655_v2 = vunpack.c.h.bf16 %v638_v56 }
  0x12   :  { %v586_v51 = vunpack.c.l.bf16 %v585_v50  ;;  %v590_v52 = vsub.s32 0, %v589_v49  ;;  %v594_v53 = vsub.s32 2, %v589_v49  ;;  %v646_v57 = vld [vmem:[%s1325_s3 + $0x40] sm:$0xff]  ;;  %v647_v61 = vld [vmem:[%s1325_s3 + $0x48] sm:$0xff]  ;;  %v656_v8 = vunpack.c.l.bf16 %v639_v60 }
  0x13   :  { %382 = vmatpush1.bf16.msra.mxu0 %v960_v9  ;;  %934 = vmatpush1.bf16.msra.mxu1 %v960_v9  ;;  %v670_v63 = vunpack.c.l.bf16 %v646_v57  ;;  %v671_v3 = vunpack.c.h.bf16 %v646_v57  ;;  %v672_v9 = vunpack.c.l.bf16 %v647_v61  ;;  %v673_v15 = vunpack.c.h.bf16 %v647_v61 }
  0x14   :  { %383 = vmatprep.subr.bf16.mxu0 %v961_v10  ;;  %919 = vmatprep.subr.bf16.mxu1 %v961_v10  ;;  %v591_v54 = vrot.slane %v586_v51, %v590_v52  ;;  %v595_v55 = vrot.slane %v586_v51, %v594_v53 }
  0x16   :  { %v1196_v58 = vrot.slane %v591_v54, %v590_v52  ;;  %v1198_v59 = vrot.slane %v595_v55, %v590_v52 }
  0x17   :  { %384 = vmatpush1.bf16.msra.mxu0 %v963_v11  ;;  %935 = vmatpush1.bf16.msra.mxu1 %v963_v11 }
  0x18   :  { %385 = vmatprep.subr.bf16.mxu0 %v964_v12  ;;  %920 = vmatprep.subr.bf16.mxu1 %v964_v12 }
  0x1b   :  { %386 = vmatpush1.bf16.msra.mxu0 %v966_v14  ;;  %936 = vmatpush1.bf16.msra.mxu1 %v966_v14  ;;  %v657_v14 = vunpack.c.h.bf16 %v639_v60 }
  0x1c   :  { %387 = vmatprep.subr.bf16.mxu0 %v967_v16  ;;  %921 = vmatprep.subr.bf16.mxu1 %v967_v16 }
  0x1f   :  { %388 = vmatpush1.bf16.msra.mxu0 %v969_v17  ;;  %937 = vmatpush1.bf16.msra.mxu1 %v969_v17 }
  0x20   :  { %389 = vmatprep.subr.bf16.mxu0 %v970_v18  ;;  %922 = vmatprep.subr.bf16.mxu1 %v970_v18 }
  0x23   :  { %390 = vmatpush1.bf16.msra.mxu0 %v972_v19  ;;  %938 = vmatpush1.bf16.msra.mxu1 %v972_v19 }
  0x24   :  { %391 = vmatprep.subr.bf16.mxu0 %v973_v20  ;;  %923 = vmatprep.subr.bf16.mxu1 %v973_v20 }
  0x27   :  { %392 = vmatpush1.bf16.msra.mxu0 %v975_v21  ;;  %939 = vmatpush1.bf16.msra.mxu1 %v975_v21 }
  0x28   :  { %393 = vmatprep.subr.bf16.mxu0 %v976_v22  ;;  %924 = vmatprep.subr.bf16.mxu1 %v976_v22 }
  0x2b   :  { %394 = vmatpush1.bf16.msra.mxu0 %v978_v23  ;;  %940 = vmatpush1.bf16.msra.mxu1 %v978_v23 }
  0x2c   :  { %395 = vmatprep.subr.bf16.mxu0 %v979_v24  ;;  %925 = vmatprep.subr.bf16.mxu1 %v979_v24 }
  0x2f   :  { %396 = vmatpush1.bf16.msra.mxu0 %v981_v25  ;;  %941 = vmatpush1.bf16.msra.mxu1 %v981_v25 }
  0x30   :  { %397 = vmatprep.subr.bf16.mxu0 %v982_v26  ;;  %926 = vmatprep.subr.bf16.mxu1 %v982_v26  ;;  %v640_v26 = vld [vmem:[%s1325_s3 + $0x10] sm:$0xff] }
  0x33   :  { %398 = vmatpush1.bf16.msra.mxu0 %v984_v27  ;;  %942 = vmatpush1.bf16.msra.mxu1 %v984_v27  ;;  %v648_v27 = vld [vmem:[%s1325_s3 + $0x50] sm:$0xff] }
  0x34   :  { %399 = vmatprep.subr.bf16.mxu0 %v985_v28  ;;  %927 = vmatprep.subr.bf16.mxu1 %v985_v28 }
  0x37   :  { %400 = vmatpush1.bf16.msra.mxu0 %v987_v29  ;;  %943 = vmatpush1.bf16.msra.mxu1 %v987_v29 }
  0x38   :  { %401 = vmatprep.subr.bf16.mxu0 %v988_v30  ;;  %928 = vmatprep.subr.bf16.mxu1 %v988_v30 }
  0x3b   :  { %402 = vmatpush1.bf16.msra.mxu0 %v990_v31  ;;  %944 = vmatpush1.bf16.msra.mxu1 %v990_v31 }
  0x3c   :  { %403 = vmatprep.subr.bf16.mxu0 %v991_v32  ;;  %929 = vmatprep.subr.bf16.mxu1 %v991_v32 }
  0x3f   :  { %404 = vmatpush1.bf16.msra.mxu0 %v993_v33  ;;  %945 = vmatpush1.bf16.msra.mxu1 %v993_v33 }
  0x42   :  { %406 = vmatmul.mubr.bf16.vlgmr.msra.gmra.mrb[0].mxu0 %v994_v34  ;;  %446 = vmatmul.mubr.bf16.vlgmr.msra.gmra.mrb[0].mxu1 %v997_v35  ;;  %v641_v34 = vld [vmem:[%s1325_s3 + $0x18] sm:$0xff] }
  0x43   :  { %415 = vmatprep.mubr.bf16.mxu0 %v1000_v36  ;;  %455 = vmatprep.mubr.bf16.mxu1 %v1002_v37  ;;  %v649_v35 = vld [vmem:[%s1325_s3 + $0x58] sm:$0xff]  ;;  %v658_v36 = vunpack.c.l.bf16 %v640_v26  ;;  %v674_v37 = vunpack.c.l.bf16 %v648_v27  ;;  %v660_v48 = vunpack.c.l.bf16 %v641_v34  ;;  %v661_v54 = vunpack.c.h.bf16 %v641_v34 }
  0x44   :  { %v676_v49 = vunpack.c.l.bf16 %v649_v35  ;;  %v677_v55 = vunpack.c.h.bf16 %v649_v35 }
  0x4a   :  { %416 = vmatmul.mubr.bf16.gmra.mrb[4].mxu0 %v1004_v38  ;;  %456 = vmatmul.mubr.bf16.gmra.mrb[4].mxu1 %v1005_v39 }
  0x4b   :  { %425 = vmatprep.mubr.bf16.mxu0 %v1006_v40  ;;  %465 = vmatprep.mubr.bf16.mxu1 %v1008_v41 }
  0x52   :  { %426 = vmatmul.mubr.bf16.gmra.mrb[8].mxu0 %v1010_v42  ;;  %466 = vmatmul.mubr.bf16.gmra.mrb[8].mxu1 %v1011_v43  ;;  %v659_v42 = vunpack.c.h.bf16 %v640_v26  ;;  %v675_v43 = vunpack.c.h.bf16 %v648_v27 }
  0x53   :  { %435 = vmatprep.mubr.bf16.mxu0 %v1012_v44  ;;  %475 = vmatprep.mubr.bf16.mxu1 %v1014_v45 }
  0x5a   :  { %436 = vmatmul.mubr.bf16.gmra.mrb[12].mxu0 %v1016_v46  ;;  %476 = vmatmul.mubr.bf16.gmra.mrb[12].mxu1 %v1017_v47 }
 0x115   :  { %v407_v0 = vpop.f32.mrb[0].mxu0  ;;  %v447_v1 = vpop.f32.mrb[0].mxu1 }
 0x116   :  { %v606_v4 = vadd.f32 %v1196_v58, %v407_v0  ;;  %v622_v5 = vadd.f32 %v1196_v58, %v447_v1  ;;  %v409_v6 = vpop.f32.mrb[1].mxu0  ;;  %v449_v7 = vpop.f32.mrb[1].mxu1 }
 0x117   :  { %v607_v10 = vadd.f32 %v1198_v59, %v409_v6  ;;  %v623_v11 = vadd.f32 %v1198_v59, %v449_v7  ;;  %v411_v12 = vpop.f32.mrb[2].mxu0  ;;  %v451_v13 = vpop.f32.mrb[2].mxu1 }
 0x118   :  { %v686_v16 = vadd.f32 %v654_v62, %v606_v4  ;;  %v702_v17 = vadd.f32 %v670_v63, %v622_v5  ;;  %v608_v18 = vadd.f32 %v1196_v58, %v411_v12  ;;  %v624_v19 = vadd.f32 %v1196_v58, %v451_v13  ;;  %v413_v20 = vpop.f32.mrb[3].mxu0  ;;  %v453_v21 = vpop.f32.mrb[3].mxu1 }
 0x119   :  { %v687_v22 = vadd.f32 %v655_v2, %v607_v10  ;;  %v703_v23 = vadd.f32 %v671_v3, %v623_v11  ;;  %v609_v24 = vadd.f32 %v1198_v59, %v413_v20  ;;  %v625_v25 = vadd.f32 %v1198_v59, %v453_v21 }
 0x11a   :  { %v688_v28 = vadd.f32 %v656_v8, %v608_v18  ;;  %v704_v29 = vadd.f32 %v672_v9, %v624_v19 }
 0x11b   :  { %v898_v30 = vpack.c.bf16 %v687_v22, %v686_v16  ;;  %v906_v31 = vpack.c.bf16 %v703_v23, %v702_v17  ;;  %v689_v32 = vadd.f32 %v657_v14, %v609_v24  ;;  %v705_v33 = vadd.f32 %v673_v15, %v625_v25 }
 0x11d   :  { %814 = vst [vmem:[%s1326_s4] sm:$0xff] %v898_v30  ;;  %822 = vst [vmem:[%s1326_s4 + $0x40] sm:$0xff] %v906_v31  ;;  %v899_v38 = vpack.c.bf16 %v689_v32, %v688_v28  ;;  %v907_v39 = vpack.c.bf16 %v705_v33, %v704_v29  ;;  %v417_v40 = vpop.f32.mrb[4].mxu0  ;;  %v457_v41 = vpop.f32.mrb[4].mxu1 }
 0x11e   :  { %v610_v44 = vadd.f32 %v1196_v58, %v417_v40  ;;  %v626_v45 = vadd.f32 %v1196_v58, %v457_v41  ;;  %v419_v46 = vpop.f32.mrb[5].mxu0  ;;  %v459_v47 = vpop.f32.mrb[5].mxu1 }
 0x11f   :  { %815 = vst [vmem:[%s1326_s4 + $0x8] sm:$0xff] %v899_v38  ;;  %823 = vst [vmem:[%s1326_s4 + $0x48] sm:$0xff] %v907_v39  ;;  %v611_v50 = vadd.f32 %v1198_v59, %v419_v46  ;;  %v627_v51 = vadd.f32 %v1198_v59, %v459_v47  ;;  %v421_v52 = vpop.f32.mrb[6].mxu0  ;;  %v461_v53 = vpop.f32.mrb[6].mxu1 }
 0x120   :  { %v690_v56 = vadd.f32 %v658_v36, %v610_v44  ;;  %v706_v57 = vadd.f32 %v674_v37, %v626_v45  ;;  %v612_v60 = vadd.f32 %v1196_v58, %v421_v52  ;;  %v628_v61 = vadd.f32 %v1196_v58, %v461_v53  ;;  %v423_v62 = vpop.f32.mrb[7].mxu0  ;;  %v463_v63 = vpop.f32.mrb[7].mxu1 }
 0x121   :  { %v691_v0 = vadd.f32 %v659_v42, %v611_v50  ;;  %v707_v1 = vadd.f32 %v675_v43, %v627_v51  ;;  %v613_v2 = vadd.f32 %v1198_v59, %v423_v62  ;;  %v629_v3 = vadd.f32 %v1198_v59, %v463_v63 }
 0x122   :  { %v692_v6 = vadd.f32 %v660_v48, %v612_v60  ;;  %v708_v7 = vadd.f32 %v676_v49, %v628_v61 }
 0x123   :  { %v900_v8 = vpack.c.bf16 %v691_v0, %v690_v56  ;;  %v908_v9 = vpack.c.bf16 %v707_v1, %v706_v57  ;;  %v693_v10 = vadd.f32 %v661_v54, %v613_v2  ;;  %v709_v11 = vadd.f32 %v677_v55, %v629_v3 }
 0x125   :  { %v901_v16 = vpack.c.bf16 %v693_v10, %v692_v6  ;;  %v909_v17 = vpack.c.bf16 %v709_v11, %v708_v7  ;;  %v427_v18 = vpop.f32.mrb[8].mxu0  ;;  %v467_v19 = vpop.f32.mrb[8].mxu1 }
 0x126   :  { %v642_v4 = vld [vmem:[%s1325_s3 + $0x20] sm:$0xff]  ;;  %v643_v12 = vld [vmem:[%s1325_s3 + $0x28] sm:$0xff]  ;;  %v614_v22 = vadd.f32 %v1196_v58, %v427_v18  ;;  %v630_v23 = vadd.f32 %v1196_v58, %v467_v19  ;;  %v429_v24 = vpop.f32.mrb[9].mxu0  ;;  %v469_v25 = vpop.f32.mrb[9].mxu1 }
 0x127   :  { %v650_v5 = vld [vmem:[%s1325_s3 + $0x60] sm:$0xff]  ;;  %v651_v13 = vld [vmem:[%s1325_s3 + $0x68] sm:$0xff]  ;;  %v662_v14 = vunpack.c.l.bf16 %v642_v4  ;;  %v663_v20 = vunpack.c.h.bf16 %v642_v4  ;;  %v664_v26 = vunpack.c.l.bf16 %v643_v12  ;;  %v615_v28 = vadd.f32 %v1198_v59, %v429_v24  ;;  %v431_v30 = vpop.f32.mrb[10].mxu0  ;;  %v471_v31 = vpop.f32.mrb[10].mxu1 }
 0x128   :  { %v678_v15 = vunpack.c.l.bf16 %v650_v5  ;;  %816 = vst [vmem:[%s1326_s4 + $0x10] sm:$0xff] %v900_v8  ;;  %824 = vst [vmem:[%s1326_s4 + $0x50] sm:$0xff] %v908_v9  ;;  %v679_v21 = vunpack.c.h.bf16 %v650_v5  ;;  %v680_v27 = vunpack.c.l.bf16 %v651_v13  ;;  %v631_v29 = vadd.f32 %v1198_v59, %v469_v25  ;;  %v433_v38 = vpop.f32.mrb[11].mxu0  ;;  %v473_v39 = vpop.f32.mrb[11].mxu1 }
 0x129   :  { %817 = vst [vmem:[%s1326_s4 + $0x18] sm:$0xff] %v901_v16  ;;  %825 = vst [vmem:[%s1326_s4 + $0x58] sm:$0xff] %v909_v17  ;;  %v665_v32 = vunpack.c.h.bf16 %v643_v12  ;;  %v681_v33 = vunpack.c.h.bf16 %v651_v13  ;;  %v694_v34 = vadd.f32 %v662_v14, %v614_v22  ;;  %v616_v36 = vadd.f32 %v1196_v58, %v431_v30 }
 0x12a   :  { %v710_v35 = vadd.f32 %v678_v15, %v630_v23  ;;  %v632_v37 = vadd.f32 %v1196_v58, %v471_v31  ;;  %v695_v40 = vadd.f32 %v663_v20, %v615_v28  ;;  %v711_v41 = vadd.f32 %v679_v21, %v631_v29 }
 0x12b   :  { %v617_v42 = vadd.f32 %v1198_v59, %v433_v38  ;;  %v633_v43 = vadd.f32 %v1198_v59, %v473_v39  ;;  %v696_v46 = vadd.f32 %v664_v26, %v616_v36 }
 0x12c   :  { %v712_v47 = vadd.f32 %v680_v27, %v632_v37  ;;  %v902_v48 = vpack.c.bf16 %v695_v40, %v694_v34  ;;  %v910_v49 = vpack.c.bf16 %v711_v41, %v710_v35 }
 0x12d   :  { %v697_v50 = vadd.f32 %v665_v32, %v617_v42  ;;  %v713_v51 = vadd.f32 %v681_v33, %v633_v43  ;;  %v437_v60 = vpop.f32.mrb[12].mxu0  ;;  %v477_v61 = vpop.f32.mrb[12].mxu1 }
 0x12e   :  { %v618_v0 = vadd.f32 %v1196_v58, %v437_v60  ;;  %v634_v1 = vadd.f32 %v1196_v58, %v477_v61  ;;  %v439_v2 = vpop.f32.mrb[13].mxu0  ;;  %v479_v3 = vpop.f32.mrb[13].mxu1 }
 0x12f   :  { %v903_v56 = vpack.c.bf16 %v697_v50, %v696_v46  ;;  %v911_v57 = vpack.c.bf16 %v713_v51, %v712_v47  ;;  %v619_v6 = vadd.f32 %v1198_v59, %v439_v2  ;;  %v635_v7 = vadd.f32 %v1198_v59, %v479_v3  ;;  %v441_v8 = vpop.f32.mrb[14].mxu0  ;;  %v481_v9 = vpop.f32.mrb[14].mxu1 }
 0x130   :  { %v644_v44 = vld [vmem:[%s1325_s3 + $0x30] sm:$0xff]  ;;  %v645_v52 = vld [vmem:[%s1325_s3 + $0x38] sm:$0xff]  ;;  %v620_v14 = vadd.f32 %v1196_v58, %v441_v8  ;;  %v636_v15 = vadd.f32 %v1196_v58, %v481_v9  ;;  %v443_v16 = vpop.f32.mrb[15].mxu0  ;;  %v483_v17 = vpop.f32.mrb[15].mxu1 }
 0x131   :  { %v652_v45 = vld [vmem:[%s1325_s3 + $0x70] sm:$0xff]  ;;  %v653_v53 = vld [vmem:[%s1325_s3 + $0x78] sm:$0xff]  ;;  %v666_v54 = vunpack.c.l.bf16 %v644_v44  ;;  %v667_v62 = vunpack.c.h.bf16 %v644_v44  ;;  %v668_v4 = vunpack.c.l.bf16 %v645_v52  ;;  %v669_v10 = vunpack.c.h.bf16 %v645_v52 }
 0x132   :  { %v682_v55 = vunpack.c.l.bf16 %v652_v45  ;;  %818 = vst [vmem:[%s1326_s4 + $0x20] sm:$0xff] %v902_v48  ;;  %826 = vst [vmem:[%s1326_s4 + $0x60] sm:$0xff] %v910_v49  ;;  %v683_v63 = vunpack.c.h.bf16 %v652_v45  ;;  %v684_v5 = vunpack.c.l.bf16 %v653_v53  ;;  %v685_v11 = vunpack.c.h.bf16 %v653_v53 }
 0x133   :  { %819 = vst [vmem:[%s1326_s4 + $0x28] sm:$0xff] %v903_v56  ;;  %827 = vst [vmem:[%s1326_s4 + $0x68] sm:$0xff] %v911_v57  ;;  %v698_v12 = vadd.f32 %v666_v54, %v618_v0  ;;  %v699_v18 = vadd.f32 %v667_v62, %v619_v6  ;;  %v621_v20 = vadd.f32 %v1198_v59, %v443_v16 }
 0x134   :  { %v714_v13 = vadd.f32 %v682_v55, %v634_v1  ;;  %v715_v19 = vadd.f32 %v683_v63, %v635_v7  ;;  %v637_v21 = vadd.f32 %v1198_v59, %v483_v17  ;;  %v700_v22 = vadd.f32 %v668_v4, %v620_v14 }
 0x135   :  { %v716_v23 = vadd.f32 %v684_v5, %v636_v15  ;;  %v904_v24 = vpack.c.bf16 %v699_v18, %v698_v12  ;;  %v701_v26 = vadd.f32 %v669_v10, %v621_v20 }
 0x136   :  { %v912_v25 = vpack.c.bf16 %v715_v19, %v714_v13  ;;  %v717_v27 = vadd.f32 %v685_v11, %v637_v21 }
 0x137   :  { %820 = vst [vmem:[%s1326_s4 + $0x30] sm:$0xff] %v904_v24  ;;  %v905_v58 = vpack.c.bf16 %v701_v26, %v700_v22 }
 0x138   :  { %828 = vst [vmem:[%s1326_s4 + $0x70] sm:$0xff] %v912_v25  ;;  %v913_v28 = vpack.c.bf16 %v717_v27, %v716_v23 }
 0x139   :  { %821 = vst [vmem:[%s1326_s4 + $0x38] sm:$0xff] %v905_v58 }
 0x13a   :  { %829 = vst [vmem:[%s1326_s4 + $0x78] sm:$0xff] %v913_v28 }

// kernel: gpt_forward.14
= control target key start
LH: loop header
LB: loop body
LE: loop exit
PB: predicated region body
PF: predicated region fallthrough
CT: control target
= control target key end

     0   :  { %s3018_s18 = smov 0   ;;  %s3020_s19 = smov 0   ;;  %s4549_s0 = inlined_call_operand.vmem [shape: bf16[128,256], index: 0, kind: input, shape index: {}]   ;;  %s4550_s1 = inlined_call_operand.vmem [shape: f32[1,256], index: 1, kind: input, shape index: {}]   ;;  %s4551_s2 = inlined_call_operand.vmem [shape: f32[1,256], index: 2, kind: input, shape index: {}]   ;;  %s4552_s3 = inlined_call_operand.vmem [shape: bf16[256,1024], index: 3, kind: input, shape index: {}]   ;;  %s4553_s4 = inlined_call_operand.vmem [shape: bf16[1,1024], index: 4, kind: input, shape index: {}]   ;;  %s4554_s5 = inlined_call_operand.vmem [shape: bf16[128,1024], index: 5, kind: output, shape index: {}]  }
   0x1   :  { %s3022_s20 = smov 0   ;;  %s3024_s21 = smov 0  }
   0x2   :  { %s3026_s22 = smov 0  }
   0x3 LB: > { %s24_s23 = sadd.s32 1, %s2982_s21  ;;  %s2504_s24 = sadd.s32 4294967295, %s2986_s22   ;;  %s2986_s22 = sphi %s3026_s22, %s15_s22   ;;  %s2982_s21 = sphi %s3024_s21, %s4575_s21   ;;  %s2978_s20 = sphi %s3022_s20, %s4574_s20   ;;  %s2974_s19 = sphi %s3020_s19, %s4573_s19   ;;  %s2970_s18 = sphi %s3018_s18, %s4572_s18  }
   0x4   : > { %p25_p0 = scmp.ge.s32.totalorder %s24_s23, 2  ;;  %p109_p1 = scmp.ne.s32.totalorder %s2974_s19, %s2970_s18 }
   0x5   : > { %p110_p2 = scmp.eq.s32.totalorder %s2986_s22, 0  ;;  %p167_p4 = scmp.eq.s32.totalorder %s2504_s24, 1 }
   0x6   : > { %s4577_s23 = smov (%p25_p0, %s24_s23), 0  ;;  %s102_s26 = sadd.s32 1, %s2974_s19 }
   0x7   : > { %p111_p3 = por %p110_p2, %p109_p1  ;;  %s99_s25 = ssub.s32 %s2982_s21, %s4577_s23 }
   0x8   : > { %p100_p5 = scmp.eq.s32.totalorder %s99_s25, 0  ;;  %p3053_p6 = por %p167_p4, %p109_p1 }
   0x9   : > { %p2508_p7 = scmp.ge.s32.totalorder %s2986_s22, 2 }
   0xa   : > { %s3058_s28 = scalar_select %p100_p5, %s2974_s19, %s102_s26  }
   0xb   : > { %205 = sbr.rel (%p2508_p7) target bundleno = 54 (0x36), region = 28 }
  0x12   : > { %208 = sbr.rel (!%p111_p3) target bundleno = 54 (0x36), region = 32  ;;  %s210_s29 = sand.u32 (%p111_p3), 1, %s2974_s19  }
  0x13   : > { %s2618_s30 = sshll.u32 (%p111_p3), %s2982_s21, 4  ;;  %s2509_s6 = sshll.u32 (%p111_p3), %s210_s29, 9 }
  0x14   : > { %s3066_s9 = scalar_lea.vmem (%p111_p3), %s4552_s3, %s2618_s30  ;;  %s3071_s10 = scalar_lea.vmem (%p111_p3), [#allocation3], %s2509_s6 }
  0x15   : > { %v228_v0 = vld [vmem:[%s3066_s9] sm:$0xff] (%p111_p3)  ;;  %v230_v1 = vld [vmem:[%s3066_s9 + $0x8] sm:$0xff] (%p111_p3) }
  0x16   : > { %v232_v2 = vld [vmem:[%s3066_s9 + $0x20] sm:$0xff] (%p111_p3)  ;;  %229 = vst [vmem:[%s3071_s10] sm:$0xff] (%p111_p3), %v228_v0  ;;  %231 = vst [vmem:[%s3071_s10 + $0x8] sm:$0xff] (%p111_p3), %v230_v1  ;;  %v234_v3 = vld [vmem:[%s3066_s9 + $0x28] sm:$0xff] (%p111_p3) }
  0x17   : > { %233 = vst [vmem:[%s3071_s10 + $0x10] sm:$0xff] (%p111_p3), %v232_v2  ;;  %v236_v4 = vld [vmem:[%s3066_s9 + $0x40] sm:$0xff] (%p111_p3)  ;;  %v238_v5 = vld [vmem:[%s3066_s9 + $0x48] sm:$0xff] (%p111_p3)  ;;  %235 = vst [vmem:[%s3071_s10 + $0x18] sm:$0xff] (%p111_p3), %v234_v3 }
  0x18   : > { %237 = vst [vmem:[%s3071_s10 + $0x20] sm:$0xff] (%p111_p3), %v236_v4  ;;  %239 = vst [vmem:[%s3071_s10 + $0x28] sm:$0xff] (%p111_p3), %v238_v5  ;;  %v240_v6 = vld [vmem:[%s3066_s9 + $0x60] sm:$0xff] (%p111_p3)  ;;  %v242_v7 = vld [vmem:[%s3066_s9 + $0x68] sm:$0xff] (%p111_p3) }
  0x19   : > { %v244_v8 = vld [vmem:[%s3066_s9 + $0x80] sm:$0xff]  ;;  %241 = vst [vmem:[%s3071_s10 + $0x30] sm:$0xff] %v240_v6  ;;  %243 = vst [vmem:[%s3071_s10 + $0x38] sm:$0xff] %v242_v7  ;;  %v246_v9 = vld [vmem:[%s3066_s9 + $0x88] sm:$0xff] }
  0x1a   : > { %245 = vst [vmem:[%s3071_s10 + $0x40] sm:$0xff] %v244_v8  ;;  %v248_v10 = vld [vmem:[%s3066_s9 + $0xa0] sm:$0xff]  ;;  %v250_v11 = vld [vmem:[%s3066_s9 + $0xa8] sm:$0xff]  ;;  %247 = vst [vmem:[%s3071_s10 + $0x48] sm:$0xff] %v246_v9 }
  0x1b   : > { %249 = vst [vmem:[%s3071_s10 + $0x50] sm:$0xff] %v248_v10  ;;  %251 = vst [vmem:[%s3071_s10 + $0x58] sm:$0xff] %v250_v11  ;;  %v252_v12 = vld [vmem:[%s3066_s9 + $0xc0] sm:$0xff]  ;;  %v254_v13 = vld [vmem:[%s3066_s9 + $0xc8] sm:$0xff] }
  0x1c   : > { %v256_v14 = vld [vmem:[%s3066_s9 + $0xe0] sm:$0xff]  ;;  %253 = vst [vmem:[%s3071_s10 + $0x60] sm:$0xff] %v252_v12  ;;  %255 = vst [vmem:[%s3071_s10 + $0x68] sm:$0xff] %v254_v13  ;;  %v258_v15 = vld [vmem:[%s3066_s9 + $0xe8] sm:$0xff] }
  0x1d   : > { %257 = vst [vmem:[%s3071_s10 + $0x70] sm:$0xff] %v256_v14  ;;  %v260_v16 = vld [vmem:[%s3066_s9 + $0x100] sm:$0xff]  ;;  %v262_v17 = vld [vmem:[%s3066_s9 + $0x108] sm:$0xff]  ;;  %259 = vst [vmem:[%s3071_s10 + $0x78] sm:$0xff] %v258_v15 }
  0x1e   : > { %261 = vst [vmem:[%s3071_s10 + $0x80] sm:$0xff] %v260_v16  ;;  %263 = vst [vmem:[%s3071_s10 + $0x88] sm:$0xff] %v262_v17  ;;  %v264_v18 = vld [vmem:[%s3066_s9 + $0x120] sm:$0xff]  ;;  %v266_v19 = vld [vmem:[%s3066_s9 + $0x128] sm:$0xff] }
  0x1f   : > { %v268_v20 = vld [vmem:[%s3066_s9 + $0x140] sm:$0xff]  ;;  %265 = vst [vmem:[%s3071_s10 + $0x90] sm:$0xff] %v264_v18  ;;  %267 = vst [vmem:[%s3071_s10 + $0x98] sm:$0xff] %v266_v19  ;;  %v270_v21 = vld [vmem:[%s3066_s9 + $0x148] sm:$0xff] }
  0x20   : > { %269 = vst [vmem:[%s3071_s10 + $0xa0] sm:$0xff] %v268_v20  ;;  %v272_v22 = vld [vmem:[%s3066_s9 + $0x160] sm:$0xff]  ;;  %v274_v23 = vld [vmem:[%s3066_s9 + $0x168] sm:$0xff]  ;;  %271 = vst [vmem:[%s3071_s10 + $0xa8] sm:$0xff] %v270_v21 }
  0x21   : > { %273 = vst [vmem:[%s3071_s10 + $0xb0] sm:$0xff] %v272_v22  ;;  %275 = vst [vmem:[%s3071_s10 + $0xb8] sm:$0xff] %v274_v23  ;;  %v276_v24 = vld [vmem:[%s3066_s9 + $0x180] sm:$0xff]  ;;  %v278_v25 = vld [vmem:[%s3066_s9 + $0x188] sm:$0xff] }
  0x22   : > { %v280_v26 = vld [vmem:[%s3066_s9 + $0x1a0] sm:$0xff]  ;;  %277 = vst [vmem:[%s3071_s10 + $0xc0] sm:$0xff] %v276_v24  ;;  %279 = vst [vmem:[%s3071_s10 + $0xc8] sm:$0xff] %v278_v25  ;;  %v282_v27 = vld [vmem:[%s3066_s9 + $0x1a8] sm:$0xff] }
  0x23   : > { %281 = vst [vmem:[%s3071_s10 + $0xd0] sm:$0xff] %v280_v26  ;;  %v284_v28 = vld [vmem:[%s3066_s9 + $0x1c0] sm:$0xff]  ;;  %v286_v29 = vld [vmem:[%s3066_s9 + $0x1c8] sm:$0xff]  ;;  %283 = vst [vmem:[%s3071_s10 + $0xd8] sm:$0xff] %v282_v27 }
  0x24   : > { %285 = vst [vmem:[%s3071_s10 + $0xe0] sm:$0xff] %v284_v28  ;;  %287 = vst [vmem:[%s3071_s10 + $0xe8] sm:$0xff] %v286_v29  ;;  %v288_v30 = vld [vmem:[%s3066_s9 + $0x1e0] sm:$0xff]  ;;  %v290_v31 = vld [vmem:[%s3066_s9 + $0x1e8] sm:$0xff] }
  0x25   : > { %v292_v32 = vld [vmem:[%s3066_s9 + $0x200] sm:$0xff]  ;;  %289 = vst [vmem:[%s3071_s10 + $0xf0] sm:$0xff] %v288_v30  ;;  %291 = vst [vmem:[%s3071_s10 + $0xf8] sm:$0xff] %v290_v31  ;;  %v294_v33 = vld [vmem:[%s3066_s9 + $0x208] sm:$0xff] }
  0x26   : > { %293 = vst [vmem:[%s3071_s10 + $0x100] sm:$0xff] %v292_v32  ;;  %v296_v34 = vld [vmem:[%s3066_s9 + $0x220] sm:$0xff]  ;;  %v298_v35 = vld [vmem:[%s3066_s9 + $0x228] sm:$0xff]  ;;  %295 = vst [vmem:[%s3071_s10 + $0x108] sm:$0xff] %v294_v33 }
  0x27   : > { %297 = vst [vmem:[%s3071_s10 + $0x110] sm:$0xff] %v296_v34  ;;  %299 = vst [vmem:[%s3071_s10 + $0x118] sm:$0xff] %v298_v35  ;;  %v300_v36 = vld [vmem:[%s3066_s9 + $0x240] sm:$0xff]  ;;  %v302_v37 = vld [vmem:[%s3066_s9 + $0x248] sm:$0xff] }
  0x28   : > { %v304_v38 = vld [vmem:[%s3066_s9 + $0x260] sm:$0xff]  ;;  %301 = vst [vmem:[%s3071_s10 + $0x120] sm:$0xff] %v300_v36  ;;  %303 = vst [vmem:[%s3071_s10 + $0x128] sm:$0xff] %v302_v37  ;;  %v306_v39 = vld [vmem:[%s3066_s9 + $0x268] sm:$0xff] }
  0x29   : > { %305 = vst [vmem:[%s3071_s10 + $0x130] sm:$0xff] %v304_v38  ;;  %v308_v40 = vld [vmem:[%s3066_s9 + $0x280] sm:$0xff]  ;;  %v310_v41 = vld [vmem:[%s3066_s9 + $0x288] sm:$0xff]  ;;  %307 = vst [vmem:[%s3071_s10 + $0x138] sm:$0xff] %v306_v39 }
  0x2a   : > { %309 = vst [vmem:[%s3071_s10 + $0x140] sm:$0xff] %v308_v40  ;;  %311 = vst [vmem:[%s3071_s10 + $0x148] sm:$0xff] %v310_v41  ;;  %v312_v42 = vld [vmem:[%s3066_s9 + $0x2a0] sm:$0xff]  ;;  %v314_v43 = vld [vmem:[%s3066_s9 + $0x2a8] sm:$0xff] }
  0x2b   : > { %v316_v44 = vld [vmem:[%s3066_s9 + $0x2c0] sm:$0xff]  ;;  %313 = vst [vmem:[%s3071_s10 + $0x150] sm:$0xff] %v312_v42  ;;  %315 = vst [vmem:[%s3071_s10 + $0x158] sm:$0xff] %v314_v43  ;;  %v318_v45 = vld [vmem:[%s3066_s9 + $0x2c8] sm:$0xff] }
  0x2c   : > { %317 = vst [vmem:[%s3071_s10 + $0x160] sm:$0xff] %v316_v44  ;;  %v320_v46 = vld [vmem:[%s3066_s9 + $0x2e0] sm:$0xff]  ;;  %v322_v47 = vld [vmem:[%s3066_s9 + $0x2e8] sm:$0xff]  ;;  %319 = vst [vmem:[%s3071_s10 + $0x168] sm:$0xff] %v318_v45 }
  0x2d   : > { %321 = vst [vmem:[%s3071_s10 + $0x170] sm:$0xff] %v320_v46  ;;  %323 = vst [vmem:[%s3071_s10 + $0x178] sm:$0xff] %v322_v47  ;;  %v324_v48 = vld [vmem:[%s3066_s9 + $0x300] sm:$0xff]  ;;  %v326_v49 = vld [vmem:[%s3066_s9 + $0x308] sm:$0xff] }
  0x2e   : > { %v328_v50 = vld [vmem:[%s3066_s9 + $0x320] sm:$0xff]  ;;  %325 = vst [vmem:[%s3071_s10 + $0x180] sm:$0xff] %v324_v48  ;;  %327 = vst [vmem:[%s3071_s10 + $0x188] sm:$0xff] %v326_v49  ;;  %v330_v51 = vld [vmem:[%s3066_s9 + $0x328] sm:$0xff] }
  0x2f   : > { %329 = vst [vmem:[%s3071_s10 + $0x190] sm:$0xff] %v328_v50  ;;  %v332_v52 = vld [vmem:[%s3066_s9 + $0x340] sm:$0xff]  ;;  %v334_v53 = vld [vmem:[%s3066_s9 + $0x348] sm:$0xff]  ;;  %331 = vst [vmem:[%s3071_s10 + $0x198] sm:$0xff] %v330_v51 }
  0x30   : > { %333 = vst [vmem:[%s3071_s10 + $0x1a0] sm:$0xff] %v332_v52  ;;  %335 = vst [vmem:[%s3071_s10 + $0x1a8] sm:$0xff] %v334_v53  ;;  %v336_v54 = vld [vmem:[%s3066_s9 + $0x360] sm:$0xff]  ;;  %v338_v55 = vld [vmem:[%s3066_s9 + $0x368] sm:$0xff] }
  0x31   : > { %v340_v56 = vld [vmem:[%s3066_s9 + $0x380] sm:$0xff]  ;;  %337 = vst [vmem:[%s3071_s10 + $0x1b0] sm:$0xff] %v336_v54  ;;  %339 = vst [vmem:[%s3071_s10 + $0x1b8] sm:$0xff] %v338_v55  ;;  %v342_v57 = vld [vmem:[%s3066_s9 + $0x388] sm:$0xff] }
  0x32   : > { %341 = vst [vmem:[%s3071_s10 + $0x1c0] sm:$0xff] %v340_v56  ;;  %v344_v58 = vld [vmem:[%s3066_s9 + $0x3a0] sm:$0xff]  ;;  %v346_v59 = vld [vmem:[%s3066_s9 + $0x3a8] sm:$0xff]  ;;  %343 = vst [vmem:[%s3071_s10 + $0x1c8] sm:$0xff] %v342_v57 }
  0x33   : > { %345 = vst [vmem:[%s3071_s10 + $0x1d0] sm:$0xff] %v344_v58  ;;  %347 = vst [vmem:[%s3071_s10 + $0x1d8] sm:$0xff] %v346_v59  ;;  %v348_v60 = vld [vmem:[%s3066_s9 + $0x3c0] sm:$0xff]  ;;  %v350_v61 = vld [vmem:[%s3066_s9 + $0x3c8] sm:$0xff] }
  0x34   : > { %v352_v62 = vld [vmem:[%s3066_s9 + $0x3e0] sm:$0xff]  ;;  %349 = vst [vmem:[%s3071_s10 + $0x1e0] sm:$0xff] %v348_v60  ;;  %351 = vst [vmem:[%s3071_s10 + $0x1e8] sm:$0xff] %v350_v61  ;;  %v354_v63 = vld [vmem:[%s3066_s9 + $0x3e8] sm:$0xff] }
  0x35   : > { %353 = vst [vmem:[%s3071_s10 + $0x1f0] sm:$0xff] %v352_v62  ;;  %355 = vst [vmem:[%s3071_s10 + $0x1f8] sm:$0xff] %v354_v63 }
  0x36 PF: > { %p2512_p8 = scmp.ge.s32.totalorder %s2986_s22, 1  ;;  %p368_p9 = scmp.lt.s32.totalorder %s2986_s22, 3 }
  0x38   : > { %p369_p10 = pnand %p2512_p8, %p368_p9 }
  0x3a   : > { %372 = sbr.rel (%p369_p10) target bundleno = 897 (0x381), region = 59 }
  0x41   : > { %s375_s11 = sand.u32 1, %s2970_s18   ;;  %s2515_s12 = sshll.u32 %s2978_s20, 2 }
  0x42   : > { %s2513_s13 = sshll.u32 %s375_s11, 9  ;;  %s2514_s14 = sshll.u32 %s375_s11, 8 }
  0x43   : > { %p420_p11 = scmp.lt.s32.totalorder %s2515_s12, 7  ;;  %s3208_s24 = scalar_lea.vmem [#allocation3], %s2513_s13 }
  0x44   : > { %s3210_s25 = scalar_lea.vmem [#allocation4], %s2514_s14  ;;  %p2516_p12 = scmp.ne.s32.totalorder %s2978_s20, 0 }
  0x45   : > { %s4579_s12 = smov (!%p420_p11, %s2515_s12), 7  ;;  %v3216_v0 = vld [vmem:[%s4549_s0] sm:$0xff] (!%p2516_p12)  ;;  %v3221_v1 = vld [vmem:[%s4549_s0 + $0x10] sm:$0xff] (!%p2516_p12)  ;;  %v3226_v2 = vld [vmem:[%s4549_s0 + $0x8] sm:$0xff] (!%p2516_p12) }
  0x46   : > { %s422_s17 = scalar_lea.vmem %s4553_s4, %s4579_s12  ;;  %429 = sbr.rel (%p2516_p12) target bundleno = 429 (0x1ad), region = 67  ;;  %v446_v3 = vunpack.c.l.bf16 (!%p2516_p12), %v3216_v0  ;;  %v447_v4 = vunpack.c.h.bf16 (!%p2516_p12), %v3216_v0  ;;  %v450_v5 = vunpack.c.l.bf16 (!%p2516_p12), %v3221_v1  ;;  %v451_v6 = vunpack.c.h.bf16 (!%p2516_p12), %v3221_v1  ;;  %v3235_v7 = vld [vmem:[%s4549_s0 + $0x18] sm:$0xff] (!%p2516_p12)  ;;  %v3240_v8 = vld [vmem:[%s4549_s0 + $0x20] sm:$0xff] (!%p2516_p12)  ;;  %v3249_v13 = vld [vmem:[%s4549_s0 + $0x28] sm:$0xff] (!%p2516_p12) }
  0x47   : > { %v448_v9 = vunpack.c.l.bf16 (!%p2516_p12), %v3226_v2  ;;  %v449_v10 = vunpack.c.h.bf16 (!%p2516_p12), %v3226_v2  ;;  %v452_v11 = vunpack.c.l.bf16 (!%p2516_p12), %v3235_v7  ;;  %v453_v12 = vunpack.c.h.bf16 (!%p2516_p12), %v3235_v7  ;;  %v3274_v22 = vld [vmem:[%s4549_s0 + $0x30] sm:$0xff] (!%p2516_p12)  ;;  %v3279_v23 = vld [vmem:[%s4549_s0 + $0x38] sm:$0xff] (!%p2516_p12)  ;;  %v3296_v30 = vld [vmem:[%s4549_s0 + $0x40] sm:$0xff] (!%p2516_p12) }
  0x48   : > { %v478_v14 = vadd.f32 (!%p2516_p12), %v447_v4, %v446_v3  ;;  %v484_v15 = vadd.f32 (!%p2516_p12), %v451_v6, %v450_v5  ;;  %v454_v16 = vunpack.c.l.bf16 (!%p2516_p12), %v3240_v8  ;;  %v455_v17 = vunpack.c.h.bf16 (!%p2516_p12), %v3240_v8  ;;  %v3301_v31 = vld [vmem:[%s4549_s0 + $0x48] sm:$0xff] (!%p2516_p12)  ;;  %v3318_v38 = vld [vmem:[%s4549_s0 + $0x50] sm:$0xff] (!%p2516_p12)  ;;  %v3323_v39 = vld [vmem:[%s4549_s0 + $0x58] sm:$0xff] (!%p2516_p12) }
  0x49   : > { %v481_v18 = vadd.f32 (!%p2516_p12), %v449_v10, %v448_v9  ;;  %v487_v19 = vadd.f32 (!%p2516_p12), %v453_v12, %v452_v11  ;;  %v456_v20 = vunpack.c.l.bf16 (!%p2516_p12), %v3249_v13  ;;  %v457_v21 = vunpack.c.h.bf16 (!%p2516_p12), %v3249_v13  ;;  %v3340_v46 = vld [vmem:[%s4549_s0 + $0x60] sm:$0xff] (!%p2516_p12)  ;;  %v3345_v47 = vld [vmem:[%s4549_s0 + $0x68] sm:$0xff] (!%p2516_p12)  ;;  %v3362_v54 = vld [vmem:[%s4549_s0 + $0x70] sm:$0xff] (!%p2516_p12) }
  0x4a   : > { %479 = vadd.xlane.f32.xlu0 (!%p2516_p12), %v478_v14  ;;  %485 = vadd.xlane.f32.xlu1 (!%p2516_p12), %v484_v15  ;;  %v490_v24 = vadd.f32 (!%p2516_p12), %v455_v17, %v454_v16  ;;  %v458_v25 = vunpack.c.l.bf16 (!%p2516_p12), %v3274_v22  ;;  %v459_v27 = vunpack.c.h.bf16 (!%p2516_p12), %v3274_v22  ;;  %v460_v28 = vunpack.c.l.bf16 (!%p2516_p12), %v3279_v23  ;;  %v3367_v55 = vld [vmem:[%s4549_s0 + $0x78] sm:$0xff] (!%p2516_p12) }
  0x4b   : > { %v493_v26 = vadd.f32 (!%p2516_p12), %v457_v21, %v456_v20  ;;  %v461_v29 = vunpack.c.h.bf16 (!%p2516_p12), %v3279_v23  ;;  %v462_v32 = vunpack.c.l.bf16 (!%p2516_p12), %v3296_v30  ;;  %v463_v33 = vunpack.c.h.bf16 (!%p2516_p12), %v3296_v30 }
  0x4c   : > { %v496_v34 = vadd.f32 (!%p2516_p12), %v459_v27, %v458_v25  ;;  %v464_v36 = vunpack.c.l.bf16 (!%p2516_p12), %v3301_v31  ;;  %v465_v37 = vunpack.c.h.bf16 (!%p2516_p12), %v3301_v31  ;;  %v466_v41 = vunpack.c.l.bf16 (!%p2516_p12), %v3318_v38 }
  0x4d   : > { %v499_v35 = vadd.f32 %v461_v29, %v460_v28  ;;  %v502_v40 = vadd.f32 %v463_v33, %v462_v32  ;;  %v467_v43 = vunpack.c.h.bf16 %v3318_v38  ;;  %v468_v44 = vunpack.c.l.bf16 %v3323_v39 }
  0x4e   : > { %482 = vadd.xlane.f32.xlu0 %v481_v18  ;;  %488 = vadd.xlane.f32.xlu1 %v487_v19  ;;  %v505_v42 = vadd.f32 %v465_v37, %v464_v36  ;;  %v469_v45 = vunpack.c.h.bf16 %v3323_v39  ;;  %v470_v48 = vunpack.c.l.bf16 %v3340_v46  ;;  %v471_v49 = vunpack.c.h.bf16 %v3340_v46 }
  0x4f   : > { %v508_v50 = vadd.f32 %v467_v43, %v466_v41  ;;  %v472_v52 = vunpack.c.l.bf16 %v3345_v47  ;;  %v473_v53 = vunpack.c.h.bf16 %v3345_v47  ;;  %v474_v57 = vunpack.c.l.bf16 %v3362_v54 }
  0x50   : > { %v511_v51 = vadd.f32 %v469_v45, %v468_v44  ;;  %v514_v56 = vadd.f32 %v471_v49, %v470_v48  ;;  %v475_v59 = vunpack.c.h.bf16 %v3362_v54  ;;  %v476_v60 = vunpack.c.l.bf16 %v3367_v55 }
  0x51   : > { %v517_v58 = vadd.f32 %v473_v53, %v472_v52  ;;  %v477_v61 = vunpack.c.h.bf16 %v3367_v55 }
  0x52   : > { %491 = vadd.xlane.f32.xlu0 %v490_v24  ;;  %494 = vadd.xlane.f32.xlu1 %v493_v26  ;;  %v520_v62 = vadd.f32 %v475_v59, %v474_v57 }
  0x53   : > { %v523_v63 = vadd.f32 %v477_v61, %v476_v60 }
  0x56   : > { %497 = vadd.xlane.f32.xlu0 %v496_v34  ;;  %500 = vadd.xlane.f32.xlu1 %v499_v35 }
  0x5a   : > { %503 = vadd.xlane.f32.xlu0 %v502_v40  ;;  %506 = vadd.xlane.f32.xlu1 %v505_v42 }
  0x5e   : > { %509 = vadd.xlane.f32.xlu0 %v508_v50  ;;  %512 = vadd.xlane.f32.xlu1 %v511_v51 }
  0x62   : > { %515 = vadd.xlane.f32.xlu0 %v514_v56  ;;  %518 = vadd.xlane.f32.xlu1 %v517_v58 }
  0x66   : > { %521 = vadd.xlane.f32.xlu0 %v520_v62  ;;  %524 = vadd.xlane.f32.xlu1 %v523_v63 }
  0xd7   : > { %v480_v14 = vpop.xlane.xlu0 %479  ;;  %v486_v15 = vpop.xlane.xlu1 %485 }
  0xd8   : > { %v527_v18 = vmul.f32 0.00390625, %v480_v14  ;;  %v529_v19 = vmul.f32 0.00390625, %v486_v15 }
  0xda   : > { %v3391_v24 = vsub.f32 %v446_v3, %v527_v18  ;;  %v3395_v26 = vsub.f32 %v447_v4, %v527_v18  ;;  %v3399_v34 = vsub.f32 %v450_v5, %v529_v19  ;;  %v3403_v35 = vsub.f32 %v451_v6, %v529_v19 }
  0xdb   : > { %v483_v40 = vpop.xlane.xlu0 %482  ;;  %v489_v42 = vpop.xlane.xlu1 %488 }
  0xdc   : > { %v528_v50 = vmul.f32 0.00390625, %v483_v40  ;;  %v530_v51 = vmul.f32 0.00390625, %v489_v42  ;;  %v575_v3 = vmul.f32 %v3391_v24, %v3391_v24  ;;  %v576_v0 = vmul.f32 %v3395_v26, %v3395_v26 }
  0xdd   : > { %v579_v4 = vmul.f32 %v3399_v34, %v3399_v34  ;;  %v580_v5 = vmul.f32 %v3403_v35, %v3403_v35 }
  0xde   : > { %v3415_v1 = vsub.f32 %v448_v9, %v528_v50  ;;  %v3419_v6 = vsub.f32 %v449_v10, %v528_v50  ;;  %v3423_v56 = vsub.f32 %v452_v11, %v530_v51  ;;  %v3427_v58 = vsub.f32 %v453_v12, %v530_v51 }
  0xdf   : > { %v492_v62 = vpop.xlane.xlu0 %491  ;;  %v607_v63 = vadd.f32 %v576_v0, %v575_v3  ;;  %v495_v14 = vpop.xlane.xlu1 %494  ;;  %v613_v10 = vadd.f32 %v580_v5, %v579_v4 }
  0xe0   : > { %v531_v15 = vmul.f32 0.00390625, %v492_v62  ;;  %v532_v18 = vmul.f32 0.00390625, %v495_v14  ;;  %v577_v9 = vmul.f32 %v3415_v1, %v3415_v1  ;;  %v578_v2 = vmul.f32 %v3419_v6, %v3419_v6 }
  0xe1   : > { %608 = vadd.xlane.f32.xlu0 %v607_v63  ;;  %v581_v11 = vmul.f32 %v3423_v56, %v3423_v56  ;;  %v582_v7 = vmul.f32 %v3427_v58, %v3427_v58 }
  0xe2   : > { %v3439_v12 = vsub.f32 %v454_v16, %v531_v15  ;;  %v3443_v19 = vsub.f32 %v455_v17, %v531_v15  ;;  %v3447_v40 = vsub.f32 %v456_v20, %v532_v18  ;;  %v3451_v42 = vsub.f32 %v457_v21, %v532_v18 }
  0xe3   : > { %v498_v50 = vpop.xlane.xlu0 %497  ;;  %v610_v51 = vadd.f32 %v578_v2, %v577_v9  ;;  %v501_v3 = vpop.xlane.xlu1 %500  ;;  %v616_v17 = vadd.f32 %v582_v7, %v581_v11 }
  0xe4   : > { %v533_v0 = vmul.f32 0.00390625, %v498_v50  ;;  %v534_v4 = vmul.f32 0.00390625, %v501_v3  ;;  %v583_v16 = vmul.f32 %v3439_v12, %v3439_v12  ;;  %v584_v8 = vmul.f32 %v3443_v19, %v3443_v19 }
  0xe5   : > { %614 = vadd.xlane.f32.xlu0 %v613_v10  ;;  %611 = vadd.xlane.f32.xlu1 %v610_v51  ;;  %v585_v20 = vmul.f32 %v3447_v40, %v3447_v40  ;;  %v586_v13 = vmul.f32 %v3451_v42, %v3451_v42 }
  0xe6   : > { %v3463_v21 = vsub.f32 %v458_v25, %v533_v0  ;;  %v3467_v5 = vsub.f32 %v459_v27, %v533_v0  ;;  %v3471_v62 = vsub.f32 %v460_v28, %v534_v4  ;;  %v3475_v63 = vsub.f32 %v461_v29, %v534_v4 }
  0xe7   : > { %v504_v14 = vpop.xlane.xlu0 %503  ;;  %v619_v15 = vadd.f32 %v584_v8, %v583_v16  ;;  %v507_v18 = vpop.xlane.xlu1 %506  ;;  %v622_v27 = vadd.f32 %v586_v13, %v585_v20 }
  0xe8   : > { %v535_v9 = vmul.f32 0.00390625, %v504_v14  ;;  %v536_v2 = vmul.f32 0.00390625, %v507_v18  ;;  %v587_v25 = vmul.f32 %v3463_v21, %v3463_v21  ;;  %v588_v22 = vmul.f32 %v3467_v5, %v3467_v5 }
  0xe9   : > { %617 = vadd.xlane.f32.xlu1 %v616_v17  ;;  %620 = vadd.xlane.f32.xlu0 %v619_v15  ;;  %v589_v28 = vmul.f32 %v3471_v62, %v3471_v62  ;;  %v590_v23 = vmul.f32 %v3475_v63, %v3475_v63 }
  0xea   : > { %v3487_v29 = vsub.f32 %v462_v32, %v535_v9  ;;  %v3491_v10 = vsub.f32 %v463_v33, %v535_v9  ;;  %v3495_v11 = vsub.f32 %v464_v36, %v536_v2  ;;  %v3499_v7 = vsub.f32 %v465_v37, %v536_v2 }
  0xeb   : > { %v510_v50 = vpop.xlane.xlu0 %509  ;;  %v625_v51 = vadd.f32 %v588_v22, %v587_v25  ;;  %v513_v3 = vpop.xlane.xlu1 %512  ;;  %v628_v33 = vadd.f32 %v590_v23, %v589_v28 }
  0xec   : > { %v537_v0 = vmul.f32 0.00390625, %v510_v50  ;;  %v538_v4 = vmul.f32 0.00390625, %v513_v3  ;;  %v591_v32 = vmul.f32 %v3487_v29, %v3487_v29  ;;  %v592_v30 = vmul.f32 %v3491_v10, %v3491_v10 }
  0xed   : > { %623 = vadd.xlane.f32.xlu1 %v622_v27  ;;  %626 = vadd.xlane.f32.xlu0 %v625_v51  ;;  %v593_v36 = vmul.f32 %v3495_v11, %v3495_v11  ;;  %v594_v31 = vmul.f32 %v3499_v7, %v3499_v7 }
  0xee   : > { %v3511_v37 = vsub.f32 %v466_v41, %v537_v0  ;;  %v3515_v16 = vsub.f32 %v467_v43, %v537_v0  ;;  %v3519_v8 = vsub.f32 %v468_v44, %v538_v4  ;;  %v3523_v17 = vsub.f32 %v469_v45, %v538_v4 }
  0xef   : > { %v516_v20 = vpop.xlane.xlu0 %515  ;;  %v631_v13 = vadd.f32 %v592_v30, %v591_v32  ;;  %v519_v14 = vpop.xlane.xlu1 %518  ;;  %v634_v43 = vadd.f32 %v594_v31, %v593_v36  ;;  %v737_v36 = vlaneseq }
  0xf0   : > { %v539_v15 = vmul.f32 0.00390625, %v516_v20  ;;  %v540_v18 = vmul.f32 0.00390625, %v519_v14  ;;  %v595_v41 = vmul.f32 %v3511_v37, %v3511_v37  ;;  %v596_v38 = vmul.f32 %v3515_v16, %v3515_v16 }
  0xf1   : > { %629 = vadd.xlane.f32.xlu1 %v628_v33  ;;  %632 = vadd.xlane.f32.xlu0 %v631_v13  ;;  %v597_v44 = vmul.f32 %v3519_v8, %v3519_v8  ;;  %v598_v39 = vmul.f32 %v3523_v17, %v3523_v17 }
  0xf2   : > { %v3535_v45 = vsub.f32 %v470_v48, %v539_v15  ;;  %v3539_v9 = vsub.f32 %v471_v49, %v539_v15  ;;  %v3543_v2 = vsub.f32 %v472_v52, %v540_v18  ;;  %v3547_v25 = vsub.f32 %v473_v53, %v540_v18 }
  0xf3   : > { %v522_v22 = vpop.xlane.xlu0 %521  ;;  %v637_v27 = vadd.f32 %v596_v38, %v595_v41  ;;  %v525_v28 = vpop.xlane.xlu1 %524  ;;  %v640_v49 = vadd.f32 %v598_v39, %v597_v44  ;;  %v738_v18 = vshrl.u32 %v737_v36, 7 }
  0xf4   : > { %v541_v23 = vmul.f32 0.00390625, %v522_v22  ;;  %v542_v50 = vmul.f32 0.00390625, %v525_v28  ;;  %v599_v48 = vmul.f32 %v3535_v45, %v3535_v45  ;;  %v600_v46 = vmul.f32 %v3539_v9, %v3539_v9 }
  0xf5   : > { %635 = vadd.xlane.f32.xlu1 %v634_v43  ;;  %638 = vadd.xlane.f32.xlu0 %v637_v27  ;;  %v601_v52 = vmul.f32 %v3543_v2, %v3543_v2  ;;  %v602_v47 = vmul.f32 %v3547_v25, %v3547_v25  ;;  %v739_v27 = vsub.s32 0, %v738_v18  ;;  %v743_v28 = vsub.s32 1, %v738_v18 }
  0xf6   : > { %v3559_v53 = vsub.f32 %v474_v57, %v541_v23  ;;  %v3563_v51 = vsub.f32 %v475_v59, %v541_v23  ;;  %v3567_v3 = vsub.f32 %v476_v60, %v542_v50  ;;  %v3571_v0 = vsub.f32 %v477_v61, %v542_v50  ;;  %v735_v23 = vld [vmem:[%s4550_s1] sm:$0x3] }
  0xf7   : > { %v643_v4 = vadd.f32 %v600_v46, %v599_v48  ;;  %v646_v54 = vadd.f32 %v602_v47, %v601_v52  ;;  %v779_v52 = vld [vmem:[%s4551_s2] sm:$0x3] }
  0xf8   : > { %v603_v32 = vmul.f32 %v3559_v53, %v3559_v53  ;;  %v604_v57 = vmul.f32 %v3563_v51, %v3563_v51  ;;  %v605_v59 = vmul.f32 %v3567_v3, %v3567_v3  ;;  %v606_v60 = vmul.f32 %v3571_v0, %v3571_v0 }
  0xf9   : > { %641 = vadd.xlane.f32.xlu1 %v640_v49  ;;  %644 = vadd.xlane.f32.xlu0 %v643_v4 }
  0xfa   : > { %v649_v30 = vadd.f32 %v604_v57, %v603_v32  ;;  %v652_v55 = vadd.f32 %v606_v60, %v605_v59  ;;  %v3587_v32 = vrot.slane %v735_v23, %v739_v27  ;;  %v3589_v57 = vrot.slane %v735_v23, %v743_v28 }
  0xfd   : > { %647 = vadd.xlane.f32.xlu1 %v646_v54  ;;  %650 = vadd.xlane.f32.xlu0 %v649_v30  ;;  %v3591_v30 = vrot.slane %v779_v52, %v739_v27 }
 0x101   : > { %653 = vadd.xlane.f32.xlu1 %v652_v55 }
 0x16e   : > { %v609_v61 = vpop.xlane.xlu0 %608 }
 0x16f   : > { %v655_v33 = vmul.f32 0.00390625, %v609_v61 }
 0x171   : > { %v671_v31 = vadd.f32 1e-05, %v655_v33 }
 0x172   : > { %v612_v20 = vpop.xlane.xlu1 %611  ;;  %v615_v13 = vpop.xlane.xlu0 %614 }
 0x173   : > { %2692 = vrsqrt.f32 %v671_v31  ;;  %v656_v14 = vmul.f32 0.00390625, %v612_v20  ;;  %v657_v15 = vmul.f32 0.00390625, %v615_v13  ;;  %v3595_v13 = vrot.slane %v779_v52, %v743_v28 }
 0x175   : > { %v672_v41 = vadd.f32 1e-05, %v656_v14  ;;  %v673_v38 = vadd.f32 1e-05, %v657_v15 }
 0x176   : > { %v618_v43 = vpop.xlane.xlu1 %617  ;;  %v621_v44 = vpop.xlane.xlu0 %620 }
 0x177   : > { %2694 = vrsqrt.f32 %v672_v41  ;;  %v658_v39 = vmul.f32 0.00390625, %v618_v43  ;;  %v659_v22 = vmul.f32 0.00390625, %v621_v44 }
 0x178   : > { %2696 = vrsqrt.f32 %v673_v38 }
 0x179   : > { %v674_v50 = vadd.f32 1e-05, %v658_v39  ;;  %v675_v48 = vadd.f32 1e-05, %v659_v22 }
 0x17a   : > { %v624_v46 = vpop.xlane.xlu1 %623  ;;  %v627_v49 = vpop.xlane.xlu0 %626 }
 0x17b   : > { %2698 = vrsqrt.f32 %v674_v50  ;;  %v660_v47 = vmul.f32 0.00390625, %v624_v46  ;;  %v661_v4 = vmul.f32 0.00390625, %v627_v49 }
 0x17c   : > { %2700 = vrsqrt.f32 %v675_v48 }
 0x17d   : > { %v2693_v54 = vpop.eup %2692  ;;  %v676_v59 = vadd.f32 1e-05, %v660_v47  ;;  %v677_v60 = vadd.f32 1e-05, %v661_v4 }
 0x17e   : > { %v703_v55 = vmul.f32 %v2693_v54, %v3391_v24  ;;  %v704_v61 = vmul.f32 %v2693_v54, %v3395_v26  ;;  %v630_v33 = vpop.xlane.xlu1 %629  ;;  %v633_v36 = vpop.xlane.xlu0 %632 }
 0x17f   : > { %2702 = vrsqrt.f32 %v676_v59  ;;  %v662_v31 = vmul.f32 0.00390625, %v630_v33  ;;  %v663_v20 = vmul.f32 0.00390625, %v633_v36 }
 0x180   : > { %v747_v14 = vmul.f32 %v3587_v32, %v703_v55  ;;  %v748_v15 = vmul.f32 %v3589_v57, %v704_v61  ;;  %2704 = vrsqrt.f32 %v677_v60 }
 0x181   : > { %v2695_v18 = vpop.eup %2694  ;;  %v678_v41 = vadd.f32 1e-05, %v662_v31  ;;  %v679_v38 = vadd.f32 1e-05, %v663_v20 }
 0x182   : > { %v2697_v43 = vpop.eup %2696  ;;  %v791_v24 = vadd.f32 %v3591_v30, %v747_v14  ;;  %v705_v26 = vmul.f32 %v2695_v18, %v3415_v1  ;;  %v706_v44 = vmul.f32 %v2695_v18, %v3419_v6  ;;  %v636_v39 = vpop.xlane.xlu1 %635  ;;  %v792_v50 = vadd.f32 %v3595_v13, %v748_v15 }
 0x183   : > { %v639_v22 = vpop.xlane.xlu0 %638  ;;  %v707_v27 = vmul.f32 %v2697_v43, %v3399_v34  ;;  %v708_v28 = vmul.f32 %v2697_v43, %v3403_v35  ;;  %2706 = vrsqrt.f32 %v678_v41  ;;  %v664_v23 = vmul.f32 0.00390625, %v636_v39 }
 0x184   : > { %v749_v48 = vmul.f32 %v3587_v32, %v705_v26  ;;  %v750_v46 = vmul.f32 %v3589_v57, %v706_v44  ;;  %2708 = vrsqrt.f32 %v679_v38  ;;  %v665_v47 = vmul.f32 0.00390625, %v639_v22 }
 0x185   : > { %v2699_v49 = vpop.eup %2698  ;;  %v751_v1 = vmul.f32 %v3587_v32, %v707_v27  ;;  %v752_v6 = vmul.f32 %v3589_v57, %v708_v28  ;;  %v680_v52 = vadd.f32 1e-05, %v664_v23 }
 0x186   : > { %v2701_v4 = vpop.eup %2700  ;;  %v793_v34 = vadd.f32 %v3591_v30, %v749_v48  ;;  %v794_v35 = vadd.f32 %v3595_v13, %v750_v46  ;;  %v709_v54 = vmul.f32 %v2699_v49, %v3423_v56  ;;  %v710_v59 = vmul.f32 %v2699_v49, %v3427_v58  ;;  %v642_v60 = vpop.xlane.xlu1 %641 }
 0x187   : > { %v795_v55 = vadd.f32 %v3591_v30, %v751_v1  ;;  %v796_v61 = vadd.f32 %v3595_v13, %v752_v6  ;;  %v711_v33 = vmul.f32 %v2701_v4, %v3439_v12  ;;  %v712_v36 = vmul.f32 %v2701_v4, %v3443_v19  ;;  %v645_v38 = vpop.xlane.xlu0 %644 }
 0x188   : > { %v823_v31 = vpack.c.bf16 %v793_v34, %v791_v24  ;;  %v824_v20 = vpack.c.bf16 %v794_v35, %v792_v50  ;;  %v753_v14 = vmul.f32 %v3587_v32, %v709_v54  ;;  %v754_v15 = vmul.f32 %v3589_v57, %v710_v59 }
 0x189   : > { %v2703_v18 = vpop.eup %2702  ;;  %v755_v56 = vmul.f32 %v3587_v32, %v711_v33  ;;  %v756_v58 = vmul.f32 %v3589_v57, %v712_v36  ;;  %2710 = vrsqrt.f32 %v680_v52  ;;  %v681_v41 = vadd.f32 1e-05, %v665_v47 }
 0x18a   : > { %v2705_v43 = vpop.eup %2704  ;;  %839 = vst [vmem:[#allocation2] sm:$0xff] %v823_v31  ;;  %840 = vst [vmem:[#allocation2 + $0x8] sm:$0xff] %v824_v20  ;;  %v797_v12 = vadd.f32 %v3591_v30, %v753_v14  ;;  %v798_v19 = vadd.f32 %v3595_v13, %v754_v15  ;;  %v713_v24 = vmul.f32 %v2703_v18, %v3447_v40  ;;  %v648_v46 = vpop.xlane.xlu1 %647  ;;  %v666_v1 = vmul.f32 0.00390625, %v642_v60 }
 0x18b   : > { %v714_v26 = vmul.f32 %v2703_v18, %v3451_v42  ;;  %v799_v44 = vadd.f32 %v3591_v30, %v755_v56  ;;  %v800_v39 = vadd.f32 %v3595_v13, %v756_v58  ;;  %v715_v22 = vmul.f32 %v2705_v43, %v3463_v21  ;;  %v651_v35 = vpop.xlane.xlu0 %650 }
 0x18c   : > { %v716_v27 = vmul.f32 %v2705_v43, %v3467_v5  ;;  %v825_v28 = vpack.c.bf16 %v797_v12, %v795_v55  ;;  %v826_v23 = vpack.c.bf16 %v798_v19, %v796_v61  ;;  %v757_v50 = vmul.f32 %v3587_v32, %v713_v24 }
 0x18d   : > { %v758_v48 = vmul.f32 %v3589_v57, %v714_v26  ;;  %v2707_v49 = vpop.eup %2706  ;;  %v759_v40 = vmul.f32 %v3587_v32, %v715_v22  ;;  %2712 = vrsqrt.f32 %v681_v41  ;;  %v682_v36 = vadd.f32 1e-05, %v666_v1 }
 0x18e   : > { %v760_v42 = vmul.f32 %v3589_v57, %v716_v27  ;;  %v2709_v6 = vpop.eup %2708  ;;  %841 = vst [vmem:[#allocation2 + $0x10] sm:$0xff] %v825_v28  ;;  %842 = vst [vmem:[#allocation2 + $0x18] sm:$0xff] %v826_v23  ;;  %v801_v21 = vadd.f32 %v3591_v30, %v757_v50  ;;  %v717_v52 = vmul.f32 %v2707_v49, %v3471_v62  ;;  %v667_v31 = vmul.f32 0.00390625, %v645_v38  ;;  %v654_v20 = vpop.xlane.xlu1 %653 }
 0x18f   : > { %v802_v5 = vadd.f32 %v3595_v13, %v758_v48  ;;  %v718_v47 = vmul.f32 %v2707_v49, %v3475_v63  ;;  %v719_v4 = vmul.f32 %v2709_v6, %v3487_v29  ;;  %v720_v34 = vmul.f32 %v2709_v6, %v3491_v10 }
 0x190   : > { %v827_v54 = vpack.c.bf16 %v801_v21, %v799_v44  ;;  %v761_v60 = vmul.f32 %v3587_v32, %v717_v52  ;;  %v803_v61 = vadd.f32 %v3591_v30, %v759_v40  ;;  %v804_v33 = vadd.f32 %v3595_v13, %v760_v42 }
 0x191   : > { %v828_v59 = vpack.c.bf16 %v802_v5, %v800_v39  ;;  %v762_v55 = vmul.f32 %v3589_v57, %v718_v47  ;;  %v668_v29 = vmul.f32 0.00390625, %v648_v46  ;;  %v669_v10 = vmul.f32 0.00390625, %v651_v35 }
 0x192   : > { %843 = vst [vmem:[#allocation2 + $0x20] sm:$0xff] %v827_v54  ;;  %v805_v62 = vadd.f32 %v3591_v30, %v761_v60  ;;  %v763_v15 = vmul.f32 %v3587_v32, %v719_v4  ;;  %v764_v18 = vmul.f32 %v3589_v57, %v720_v34  ;;  %2714 = vrsqrt.f32 %v682_v36 }
 0x193   : > { %844 = vst [vmem:[#allocation2 + $0x28] sm:$0xff] %v828_v59  ;;  %v806_v63 = vadd.f32 %v3595_v13, %v762_v55  ;;  %v2711_v14 = vpop.eup %2710  ;;  %v683_v56 = vadd.f32 1e-05, %v667_v31  ;;  %v684_v12 = vadd.f32 1e-05, %v668_v29  ;;  %v670_v24 = vmul.f32 0.00390625, %v654_v20 }
 0x194   : > { %v829_v58 = vpack.c.bf16 %v805_v62, %v803_v61  ;;  %v721_v38 = vmul.f32 %v2711_v14, %v3495_v11  ;;  %v722_v43 = vmul.f32 %v2711_v14, %v3499_v7  ;;  %v685_v19 = vadd.f32 1e-05, %v669_v10 }
 0x195   : > { %v830_v41 = vpack.c.bf16 %v806_v63, %v804_v33  ;;  %2716 = vrsqrt.f32 %v683_v56  ;;  %v686_v22 = vadd.f32 1e-05, %v670_v24  ;;  %v807_v27 = vadd.f32 %v3591_v30, %v763_v15 }
 0x196   : > { %845 = vst [vmem:[#allocation2 + $0x30] sm:$0xff] %v829_v58  ;;  %v765_v26 = vmul.f32 %v3587_v32, %v721_v38  ;;  %v766_v44 = vmul.f32 %v3589_v57, %v722_v43  ;;  %2718 = vrsqrt.f32 %v684_v12  ;;  %v808_v28 = vadd.f32 %v3595_v13, %v764_v18 }
 0x197   : > { %846 = vst [vmem:[#allocation2 + $0x38] sm:$0xff] %v830_v41  ;;  %v2713_v39 = vpop.eup %2712  ;;  %2720 = vrsqrt.f32 %v685_v19 }
 0x198   : > { %v809_v11 = vadd.f32 %v3591_v30, %v765_v26  ;;  %v810_v7 = vadd.f32 %v3595_v13, %v766_v44  ;;  %v723_v23 = vmul.f32 %v2713_v39, %v3511_v37  ;;  %v724_v50 = vmul.f32 %v2713_v39, %v3515_v16 }
 0x199   : > { %2722 = vrsqrt.f32 %v686_v22 }
 0x19a   : > { %v831_v48 = vpack.c.bf16 %v809_v11, %v807_v27  ;;  %v832_v46 = vpack.c.bf16 %v810_v7, %v808_v28  ;;  %v767_v40 = vmul.f32 %v3587_v32, %v723_v23  ;;  %v768_v42 = vmul.f32 %v3589_v57, %v724_v50 }
 0x19c   : > { %847 = vst [vmem:[#allocation2 + $0x40] sm:$0xff] %v831_v48  ;;  %848 = vst [vmem:[#allocation2 + $0x48] sm:$0xff] %v832_v46  ;;  %v2715_v49 = vpop.eup %2714  ;;  %v811_v4 = vadd.f32 %v3591_v30, %v767_v40  ;;  %v812_v34 = vadd.f32 %v3595_v13, %v768_v42 }
 0x19d   : > { %v725_v1 = vmul.f32 %v2715_v49, %v3519_v8  ;;  %v726_v6 = vmul.f32 %v2715_v49, %v3523_v17 }
 0x19f   : > { %v2717_v21 = vpop.eup %2716  ;;  %v769_v37 = vmul.f32 %v3587_v32, %v725_v1  ;;  %v770_v16 = vmul.f32 %v3589_v57, %v726_v6 }
 0x1a0   : > { %v727_v5 = vmul.f32 %v2717_v21, %v3535_v45  ;;  %v728_v52 = vmul.f32 %v2717_v21, %v3539_v9  ;;  %v2719_v47 = vpop.eup %2718 }
 0x1a1   : > { %v813_v35 = vadd.f32 %v3591_v30, %v769_v37  ;;  %v814_v8 = vadd.f32 %v3595_v13, %v770_v16  ;;  %v2721_v59 = vpop.eup %2720  ;;  %v729_v60 = vmul.f32 %v2719_v47, %v3543_v2  ;;  %v730_v45 = vmul.f32 %v2719_v47, %v3547_v25 }
 0x1a2   : > { %v771_v17 = vmul.f32 %v3587_v32, %v727_v5  ;;  %v772_v54 = vmul.f32 %v3589_v57, %v728_v52  ;;  %v731_v31 = vmul.f32 %v2721_v59, %v3559_v53  ;;  %v732_v62 = vmul.f32 %v2721_v59, %v3563_v51 }
 0x1a3   : > { %v833_v55 = vpack.c.bf16 %v813_v35, %v811_v4  ;;  %v834_v9 = vpack.c.bf16 %v814_v8, %v812_v34  ;;  %v2723_v61 = vpop.eup %2722  ;;  %v773_v33 = vmul.f32 %v3587_v32, %v729_v60  ;;  %v774_v36 = vmul.f32 %v3589_v57, %v730_v45 }
 0x1a4   : > { %v815_v63 = vadd.f32 %v3591_v30, %v771_v17  ;;  %v816_v29 = vadd.f32 %v3595_v13, %v772_v54  ;;  %v733_v2 = vmul.f32 %v2723_v61, %v3567_v3  ;;  %v734_v25 = vmul.f32 %v2723_v61, %v3571_v0 }
 0x1a5   : > { %849 = vst [vmem:[#allocation2 + $0x50] sm:$0xff] %v833_v55  ;;  %850 = vst [vmem:[#allocation2 + $0x58] sm:$0xff] %v834_v9  ;;  %v817_v10 = vadd.f32 %v3591_v30, %v773_v33  ;;  %v818_v20 = vadd.f32 %v3595_v13, %v774_v36  ;;  %v775_v14 = vmul.f32 %v3587_v32, %v731_v31 }
 0x1a6   : > { %v776_v53 = vmul.f32 %v3589_v57, %v732_v62  ;;  %v777_v51 = vmul.f32 %v3587_v32, %v733_v2  ;;  %v778_v15 = vmul.f32 %v3589_v57, %v734_v25 }
 0x1a7   : > { %v835_v18 = vpack.c.bf16 %v817_v10, %v815_v63  ;;  %v836_v56 = vpack.c.bf16 %v818_v20, %v816_v29  ;;  %v819_v58 = vadd.f32 %v3591_v30, %v775_v14 }
 0x1a8   : > { %v820_v3 = vadd.f32 %v3595_v13, %v776_v53  ;;  %v821_v0 = vadd.f32 %v3591_v30, %v777_v51  ;;  %v822_v41 = vadd.f32 %v3595_v13, %v778_v15 }
 0x1a9   : > { %851 = vst [vmem:[#allocation2 + $0x60] sm:$0xff] %v835_v18  ;;  %852 = vst [vmem:[#allocation2 + $0x68] sm:$0xff] %v836_v56 }
 0x1aa   : > { %v837_v38 = vpack.c.bf16 %v821_v0, %v819_v58  ;;  %v838_v43 = vpack.c.bf16 %v822_v41, %v820_v3 }
 0x1ac   : > { %853 = vst [vmem:[#allocation2 + $0x70] sm:$0xff] %v837_v38  ;;  %854 = vst [vmem:[#allocation2 + $0x78] sm:$0xff] %v838_v43 }
 0x1ad PF: > { %v2724_v32 = vld [vmem:[%s3208_s24 + $0x4] ss:$16 sps:$4 sm:$0xff]   ;;  %v2726_v57 = vld [vmem:[%s3208_s24 + $0xc] ss:$16 sps:$4 sm:$0xff]   ;;  %v2728_v30 = vld [vmem:[%s3208_s24] ss:$16 sps:$4 sm:$0xff]  }
 0x1ae   : > { %1294 = vmatprep.subr.bf16.mxu0 %v2724_v32  ;;  %v2729_v13 = vld [vmem:[%s3208_s24 + $0x8] ss:$16 sps:$4 sm:$0xff]   ;;  %1407 = vmatprep.subr.bf16.mxu1 %v2726_v57  ;;  %v2730_v12 = vld [vmem:[%s3208_s24 + $0x24] ss:$16 sps:$4 sm:$0xff]   ;;  %v2732_v19 = vld [vmem:[%s3208_s24 + $0x2c] ss:$16 sps:$4 sm:$0xff]  }
 0x1af   : > { %1295 = vmatpush1.bf16.msra.mxu0 %v2728_v30  ;;  %1408 = vmatpush1.bf16.msra.mxu1 %v2729_v13  ;;  %v2734_v24 = vld [vmem:[%s3208_s24 + $0x20] ss:$16 sps:$4 sm:$0xff]   ;;  %v2735_v26 = vld [vmem:[%s3208_s24 + $0x28] ss:$16 sps:$4 sm:$0xff]   ;;  %v2736_v44 = vld [vmem:[%s3208_s24 + $0x44] ss:$16 sps:$4 sm:$0xff]  }
 0x1b0   : > { %1296 = vmatprep.subr.bf16.mxu0 %v2730_v12  ;;  %1409 = vmatprep.subr.bf16.mxu1 %v2732_v19  ;;  %v2738_v39 = vld [vmem:[%s3208_s24 + $0x4c] ss:$16 sps:$4 sm:$0xff]   ;;  %v2740_v22 = vld [vmem:[%s3208_s24 + $0x40] ss:$16 sps:$4 sm:$0xff]   ;;  %v2741_v27 = vld [vmem:[%s3208_s24 + $0x48] ss:$16 sps:$4 sm:$0xff]  }
 0x1b1   : > { %v2742_v28 = vld [vmem:[%s3208_s24 + $0x64] ss:$16 sps:$4 sm:$0xff]   ;;  %v2744_v11 = vld [vmem:[%s3208_s24 + $0x6c] ss:$16 sps:$4 sm:$0xff]   ;;  %v2746_v7 = vld [vmem:[%s3208_s24 + $0x60] ss:$16 sps:$4 sm:$0xff]  }
 0x1b2   : > { %v2747_v23 = vld [vmem:[%s3208_s24 + $0x68] ss:$16 sps:$4 sm:$0xff]   ;;  %v2748_v50 = vld [vmem:[%s3208_s24 + $0x84] ss:$16 sps:$4 sm:$0xff]   ;;  %v2750_v48 = vld [vmem:[%s3208_s24 + $0x8c] ss:$16 sps:$4 sm:$0xff]  }
 0x1b3   : > { %1297 = vmatpush1.bf16.msra.mxu0 %v2734_v24  ;;  %1410 = vmatpush1.bf16.msra.mxu1 %v2735_v26  ;;  %v2752_v46 = vld [vmem:[%s3208_s24 + $0x80] ss:$16 sps:$4 sm:$0xff]   ;;  %v2753_v49 = vld [vmem:[%s3208_s24 + $0x88] ss:$16 sps:$4 sm:$0xff]   ;;  %v2754_v40 = vld [vmem:[%s3208_s24 + $0xa4] ss:$16 sps:$4 sm:$0xff]  }
 0x1b4   : > { %1298 = vmatprep.subr.bf16.mxu0 %v2736_v44  ;;  %1411 = vmatprep.subr.bf16.mxu1 %v2738_v39  ;;  %v2756_v42 = vld [vmem:[%s3208_s24 + $0xac] ss:$16 sps:$4 sm:$0xff]   ;;  %v2758_v1 = vld [vmem:[%s3208_s24 + $0xa0] ss:$16 sps:$4 sm:$0xff]   ;;  %v2759_v6 = vld [vmem:[%s3208_s24 + $0xa8] ss:$16 sps:$4 sm:$0xff]  }
 0x1b5   : > { %v2760_v21 = vld [vmem:[%s3208_s24 + $0xc4] ss:$16 sps:$4 sm:$0xff]   ;;  %v2762_v37 = vld [vmem:[%s3208_s24 + $0xcc] ss:$16 sps:$4 sm:$0xff]   ;;  %v2764_v16 = vld [vmem:[%s3208_s24 + $0xc0] ss:$16 sps:$4 sm:$0xff]  }
 0x1b6   : > { %v2765_v5 = vld [vmem:[%s3208_s24 + $0xc8] ss:$16 sps:$4 sm:$0xff]   ;;  %v2766_v52 = vld [vmem:[%s3208_s24 + $0xe4] ss:$16 sps:$4 sm:$0xff]   ;;  %v2768_v47 = vld [vmem:[%s3208_s24 + $0xec] ss:$16 sps:$4 sm:$0xff]  }
 0x1b7   : > { %1299 = vmatpush1.bf16.msra.mxu0 %v2740_v22  ;;  %1412 = vmatpush1.bf16.msra.mxu1 %v2741_v27  ;;  %v2770_v4 = vld [vmem:[%s3208_s24 + $0xe0] ss:$16 sps:$4 sm:$0xff]   ;;  %v2771_v34 = vld [vmem:[%s3208_s24 + $0xe8] ss:$16 sps:$4 sm:$0xff]   ;;  %v2772_v35 = vld [vmem:[%s3208_s24 + $0x104] ss:$16 sps:$4 sm:$0xff]  }
 0x1b8   : > { %1300 = vmatprep.subr.bf16.mxu0 %v2742_v28  ;;  %1413 = vmatprep.subr.bf16.mxu1 %v2744_v11  ;;  %v2774_v8 = vld [vmem:[%s3208_s24 + $0x10c] ss:$16 sps:$4 sm:$0xff]   ;;  %v2776_v17 = vld [vmem:[%s3208_s24 + $0x100] ss:$16 sps:$4 sm:$0xff]   ;;  %v2777_v54 = vld [vmem:[%s3208_s24 + $0x108] ss:$16 sps:$4 sm:$0xff]  }
 0x1b9   : > { %v2778_v59 = vld [vmem:[%s3208_s24 + $0x124] ss:$16 sps:$4 sm:$0xff]   ;;  %v2780_v60 = vld [vmem:[%s3208_s24 + $0x12c] ss:$16 sps:$4 sm:$0xff]   ;;  %v2782_v45 = vld [vmem:[%s3208_s24 + $0x120] ss:$16 sps:$4 sm:$0xff]  }
 0x1ba   : > { %v2783_v55 = vld [vmem:[%s3208_s24 + $0x128] ss:$16 sps:$4 sm:$0xff]   ;;  %v2784_v9 = vld [vmem:[%s3208_s24 + $0x144] ss:$16 sps:$4 sm:$0xff]   ;;  %v2786_v61 = vld [vmem:[%s3208_s24 + $0x14c] ss:$16 sps:$4 sm:$0xff]  }
 0x1bb   : > { %1301 = vmatpush1.bf16.msra.mxu0 %v2746_v7  ;;  %1414 = vmatpush1.bf16.msra.mxu1 %v2747_v23  ;;  %v2788_v33 = vld [vmem:[%s3208_s24 + $0x140] ss:$16 sps:$4 sm:$0xff]   ;;  %v2789_v36 = vld [vmem:[%s3208_s24 + $0x148] ss:$16 sps:$4 sm:$0xff]   ;;  %v2790_v31 = vld [vmem:[%s3208_s24 + $0x164] ss:$16 sps:$4 sm:$0xff]  }
 0x1bc   : > { %1302 = vmatprep.subr.bf16.mxu0 %v2748_v50  ;;  %1415 = vmatprep.subr.bf16.mxu1 %v2750_v48  ;;  %v2792_v62 = vld [vmem:[%s3208_s24 + $0x16c] ss:$16 sps:$4 sm:$0xff]   ;;  %v2794_v29 = vld [vmem:[%s3208_s24 + $0x160] ss:$16 sps:$4 sm:$0xff]   ;;  %v2795_v2 = vld [vmem:[%s3208_s24 + $0x168] ss:$16 sps:$4 sm:$0xff]   ;;  %v938_v50 = vlaneseq }
 0x1bd   : > { %v856_v63 = vld [vmem:[#allocation2 + $0x8] sm:$0xff]  ;;  %v2796_v25 = vld [vmem:[%s3208_s24 + $0x184] ss:$16 sps:$4 sm:$0xff]   ;;  %v2800_v20 = vld [vmem:[%s3208_s24 + $0x180] ss:$16 sps:$4 sm:$0xff]   ;;  %s2651_s12 = sshll.u32 (%p3053_p6), %s2978_s20, 4 }
 0x1be   : > { %1326 = vmatprep.mubr.bf16.mxu0 %v856_v63  ;;  %1439 = vmatprep.mubr.bf16.mxu1 %v856_v63  ;;  %v2798_v10 = vld [vmem:[%s3208_s24 + $0x18c] ss:$16 sps:$4 sm:$0xff]   ;;  %v2801_v14 = vld [vmem:[%s3208_s24 + $0x188] ss:$16 sps:$4 sm:$0xff]   ;;  %v2802_v53 = vld [vmem:[%s3208_s24 + $0x1a4] ss:$16 sps:$4 sm:$0xff]   ;;  %s4471_s13 = scalar_lea.vmem (%p3053_p6), %s4554_s5, %s2651_s12 }
 0x1bf   : > { %1303 = vmatpush1.bf16.msra.mxu0 %v2752_v46  ;;  %1416 = vmatpush1.bf16.msra.mxu1 %v2753_v49  ;;  %v2804_v51 = vld [vmem:[%s3208_s24 + $0x1ac] ss:$16 sps:$4 sm:$0xff]   ;;  %v2806_v15 = vld [vmem:[%s3208_s24 + $0x1a0] ss:$16 sps:$4 sm:$0xff]   ;;  %v2807_v18 = vld [vmem:[%s3208_s24 + $0x1a8] ss:$16 sps:$4 sm:$0xff]  }
 0x1c0   : > { %1304 = vmatprep.subr.bf16.mxu0 %v2754_v40  ;;  %1417 = vmatprep.subr.bf16.mxu1 %v2756_v42  ;;  %v2808_v56 = vld [vmem:[%s3208_s24 + $0x1c4] ss:$16 sps:$4 sm:$0xff]   ;;  %v2810_v58 = vld [vmem:[%s3208_s24 + $0x1cc] ss:$16 sps:$4 sm:$0xff]   ;;  %v2812_v3 = vld [vmem:[%s3208_s24 + $0x1c0] ss:$16 sps:$4 sm:$0xff]  }
 0x1c1   : > { %v2813_v0 = vld [vmem:[%s3208_s24 + $0x1c8] ss:$16 sps:$4 sm:$0xff]   ;;  %v2814_v41 = vld [vmem:[%s3208_s24 + $0x1e4] ss:$16 sps:$4 sm:$0xff]   ;;  %v2816_v38 = vld [vmem:[%s3208_s24 + $0x1ec] ss:$16 sps:$4 sm:$0xff]  }
 0x1c2   : > { %v2818_v43 = vld [vmem:[%s3208_s24 + $0x1e0] ss:$16 sps:$4 sm:$0xff]   ;;  %v2819_v32 = vld [vmem:[%s3208_s24 + $0x1e8] ss:$16 sps:$4 sm:$0xff]   ;;  %v939_v48 = vshrl.u32 %v938_v50, 7 }
 0x1c3   : > { %1305 = vmatpush1.bf16.msra.mxu0 %v2758_v1  ;;  %1418 = vmatpush1.bf16.msra.mxu1 %v2759_v6  ;;  %v855_v57 = vld [vmem:[#allocation2] sm:$0xff]  ;;  %v858_v30 = vld [vmem:[#allocation2 + $0x18] sm:$0xff]  ;;  %v857_v13 = vld [vmem:[#allocation2 + $0x10] sm:$0xff] }
 0x1c4   : > { %1306 = vmatprep.subr.bf16.mxu0 %v2760_v21  ;;  %1419 = vmatprep.subr.bf16.mxu1 %v2762_v37  ;;  %v860_v12 = vld [vmem:[#allocation2 + $0x28] sm:$0xff]  ;;  %v859_v19 = vld [vmem:[#allocation2 + $0x20] sm:$0xff]  ;;  %v862_v24 = vld [vmem:[#allocation2 + $0x38] sm:$0xff]  ;;  %v940_v40 = vsub.s32 0, %v939_v48  ;;  %v948_v42 = vsub.s32 4, %v939_v48  ;;  %v944_v1 = vsub.s32 2, %v939_v48 }
 0x1c5   : > { %v861_v26 = vld [vmem:[#allocation2 + $0x30] sm:$0xff]  ;;  %v864_v44 = vld [vmem:[#allocation2 + $0x48] sm:$0xff]  ;;  %v863_v39 = vld [vmem:[#allocation2 + $0x40] sm:$0xff]  ;;  %v952_v6 = vsub.s32 6, %v939_v48 }
 0x1c6   : > { %v866_v22 = vld [vmem:[#allocation2 + $0x58] sm:$0xff]  ;;  %v865_v27 = vld [vmem:[#allocation2 + $0x50] sm:$0xff]  ;;  %v868_v28 = vld [vmem:[#allocation2 + $0x68] sm:$0xff] }
 0x1c7   : > { %1307 = vmatpush1.bf16.msra.mxu0 %v2764_v16  ;;  %1420 = vmatpush1.bf16.msra.mxu1 %v2765_v5  ;;  %v867_v11 = vld [vmem:[#allocation2 + $0x60] sm:$0xff]  ;;  %v870_v7 = vld [vmem:[#allocation2 + $0x78] sm:$0xff]  ;;  %v869_v23 = vld [vmem:[#allocation2 + $0x70] sm:$0xff] }
 0x1c8   : > { %1308 = vmatprep.subr.bf16.mxu0 %v2766_v52  ;;  %1421 = vmatprep.subr.bf16.mxu1 %v2768_v47  ;;  %v935_v46 = vld [vmem:[%s422_s17] sm:$0xf] }
 0x1c9   : > { %v936_v49 = vunpack.c.l.bf16 %v935_v46 }
 0x1cb   : > { %1309 = vmatpush1.bf16.msra.mxu0 %v2770_v4  ;;  %1422 = vmatpush1.bf16.msra.mxu1 %v2771_v34  ;;  %v941_v21 = vrot.slane %v936_v49, %v940_v40  ;;  %v949_v37 = vrot.slane %v936_v49, %v948_v42  ;;  %v945_v16 = vrot.slane %v936_v49, %v944_v1 }
 0x1cc   : > { %1310 = vmatprep.subr.bf16.mxu0 %v2772_v35  ;;  %1423 = vmatprep.subr.bf16.mxu1 %v2774_v8  ;;  %v953_v5 = vrot.slane %v936_v49, %v952_v6 }
 0x1cd   : > { %v3760_v52 = vrot.slane %v941_v21, %v940_v40  ;;  %v3762_v47 = vrot.slane %v949_v37, %v940_v40  ;;  %v3764_v4 = vrot.slane %v945_v16, %v940_v40 }
 0x1ce   : > { %v3766_v34 = vrot.slane %v953_v5, %v940_v40 }
 0x1cf   : > { %1311 = vmatpush1.bf16.msra.mxu0 %v2776_v17  ;;  %1424 = vmatpush1.bf16.msra.mxu1 %v2777_v54 }
 0x1d0   : > { %1312 = vmatprep.subr.bf16.mxu0 %v2778_v59  ;;  %1425 = vmatprep.subr.bf16.mxu1 %v2780_v60 }
 0x1d3   : > { %1313 = vmatpush1.bf16.msra.mxu0 %v2782_v45  ;;  %1426 = vmatpush1.bf16.msra.mxu1 %v2783_v55 }
 0x1d4   : > { %1314 = vmatprep.subr.bf16.mxu0 %v2784_v9  ;;  %1427 = vmatprep.subr.bf16.mxu1 %v2786_v61 }
 0x1d7   : > { %1315 = vmatpush1.bf16.msra.mxu0 %v2788_v33  ;;  %1428 = vmatpush1.bf16.msra.mxu1 %v2789_v36 }
 0x1d8   : > { %1316 = vmatprep.subr.bf16.mxu0 %v2790_v31  ;;  %1429 = vmatprep.subr.bf16.mxu1 %v2792_v62 }
 0x1db   : > { %1317 = vmatpush1.bf16.msra.mxu0 %v2794_v29  ;;  %1430 = vmatpush1.bf16.msra.mxu1 %v2795_v2 }
 0x1dc   : > { %1318 = vmatprep.subr.bf16.mxu0 %v2796_v25  ;;  %1431 = vmatprep.subr.bf16.mxu1 %v2798_v10 }
 0x1df   : > { %1319 = vmatpush1.bf16.msra.mxu0 %v2800_v20  ;;  %1432 = vmatpush1.bf16.msra.mxu1 %v2801_v14 }
 0x1e0   : > { %1320 = vmatprep.subr.bf16.mxu0 %v2802_v53  ;;  %1433 = vmatprep.subr.bf16.mxu1 %v2804_v51 }
 0x1e3   : > { %1321 = vmatpush1.bf16.msra.mxu0 %v2806_v15  ;;  %1434 = vmatpush1.bf16.msra.mxu1 %v2807_v18 }
 0x1e4   : > { %1322 = vmatprep.subr.bf16.mxu0 %v2808_v56  ;;  %1435 = vmatprep.subr.bf16.mxu1 %v2810_v58 }
 0x1e7   : > { %1323 = vmatpush1.bf16.msra.mxu0 %v2812_v3  ;;  %1436 = vmatpush1.bf16.msra.mxu1 %v2813_v0 }
 0x1e8   : > { %1324 = vmatprep.subr.bf16.mxu0 %v2814_v41  ;;  %1437 = vmatprep.subr.bf16.mxu1 %v2816_v38 }
 0x1eb   : > { %1325 = vmatpush1.bf16.msra.mxu0 %v2818_v43  ;;  %1438 = vmatpush1.bf16.msra.mxu1 %v2819_v32 }
 0x1ee   : > { %1327 = vmatmul.mubr.bf16.vlgmr.msra.gmra.mrb[0].mxu0 %v855_v57  ;;  %1440 = vmatmul.mubr.bf16.vlgmr.msra.gmra.mrb[0].mxu1 %v855_v57 }
 0x1ef   : > { %1336 = vmatprep.mubr.bf16.mxu0 %v858_v30  ;;  %1449 = vmatprep.mubr.bf16.mxu1 %v858_v30 }
 0x1f6   : > { %1337 = vmatmul.mubr.bf16.gmra.mrb[4].mxu0 %v857_v13  ;;  %1450 = vmatmul.mubr.bf16.gmra.mrb[4].mxu1 %v857_v13 }
 0x1f7   : > { %1346 = vmatprep.mubr.bf16.mxu0 %v860_v12  ;;  %1459 = vmatprep.mubr.bf16.mxu1 %v860_v12 }
 0x1fe   : > { %1347 = vmatmul.mubr.bf16.gmra.mrb[8].mxu0 %v859_v19  ;;  %1460 = vmatmul.mubr.bf16.gmra.mrb[8].mxu1 %v859_v19 }
 0x1ff   : > { %1356 = vmatprep.mubr.bf16.mxu0 %v862_v24  ;;  %1469 = vmatprep.mubr.bf16.mxu1 %v862_v24 }
 0x206   : > { %1357 = vmatmul.mubr.bf16.gmra.mrb[12].mxu0 %v861_v26  ;;  %1470 = vmatmul.mubr.bf16.gmra.mrb[12].mxu1 %v861_v26 }
 0x207   : > { %1366 = vmatprep.mubr.bf16.mxu0 %v864_v44  ;;  %1479 = vmatprep.mubr.bf16.mxu1 %v864_v44 }
 0x20e   : > { %1367 = vmatmul.mubr.bf16.gmra.mrb[16].mxu0 %v863_v39  ;;  %1480 = vmatmul.mubr.bf16.gmra.mrb[16].mxu1 %v863_v39 }
 0x20f   : > { %1376 = vmatprep.mubr.bf16.mxu0 %v866_v22  ;;  %1489 = vmatprep.mubr.bf16.mxu1 %v866_v22 }
 0x216   : > { %1377 = vmatmul.mubr.bf16.gmra.mrb[20].mxu0 %v865_v27  ;;  %1490 = vmatmul.mubr.bf16.gmra.mrb[20].mxu1 %v865_v27 }
 0x217   : > { %1386 = vmatprep.mubr.bf16.mxu0 %v868_v28  ;;  %1499 = vmatprep.mubr.bf16.mxu1 %v868_v28 }
 0x21e   : > { %1387 = vmatmul.mubr.bf16.gmra.mrb[24].mxu0 %v867_v11  ;;  %1500 = vmatmul.mubr.bf16.gmra.mrb[24].mxu1 %v867_v11 }
 0x21f   : > { %1396 = vmatprep.mubr.bf16.mxu0 %v870_v7  ;;  %1509 = vmatprep.mubr.bf16.mxu1 %v870_v7 }
 0x226   : > { %1397 = vmatmul.mubr.bf16.gmra.mrb[28].mxu0 %v869_v23  ;;  %1510 = vmatmul.mubr.bf16.gmra.mrb[28].mxu1 %v869_v23 }
 0x2c1   : > { %v1328_v35 = vpop.f32.mrb[0].mxu0  ;;  %v1441_v8 = vpop.f32.mrb[0].mxu1 }
 0x2c2   : > { %v1329_v17 = vadd.f32 %v1328_v35, %v3760_v52  ;;  %v1442_v54 = vadd.f32 %v1441_v8, %v3762_v47  ;;  %v1330_v59 = vpop.f32.mrb[1].mxu0  ;;  %v1443_v60 = vpop.f32.mrb[1].mxu1 }
 0x2c3   : > { %v3771_v45 = vadd.f32 %v1330_v59, %v3764_v4  ;;  %v3774_v55 = vadd.f32 %v1443_v60, %v3766_v34  ;;  %v1332_v9 = vpop.f32.mrb[2].mxu0  ;;  %v1445_v61 = vpop.f32.mrb[2].mxu1 }
 0x2c4   : > { %v1584_v33 = vmul.f32 0.044715, %v1329_v17  ;;  %v1586_v36 = vmul.f32 0.044715, %v1442_v54  ;;  %v3779_v2 = vadd.f32 %v1332_v9, %v3760_v52  ;;  %v3782_v25 = vadd.f32 %v1445_v61, %v3762_v47  ;;  %v1334_v10 = vpop.f32.mrb[3].mxu0  ;;  %v1447_v20 = vpop.f32.mrb[3].mxu1 }
 0x2c5   : > { %v1585_v31 = vmul.f32 0.044715, %v3771_v45  ;;  %v1587_v62 = vmul.f32 0.044715, %v3774_v55  ;;  %v3787_v51 = vadd.f32 %v1334_v10, %v3764_v4  ;;  %v3795_v30 = vadd.f32 %v1447_v20, %v3766_v34 }
 0x2c6   : > { %v1648_v63 = vmul.f32 %v1584_v33, %v1329_v17  ;;  %v1650_v29 = vmul.f32 %v1586_v36, %v1442_v54  ;;  %v1588_v56 = vmul.f32 0.044715, %v3779_v2  ;;  %v1590_v0 = vmul.f32 0.044715, %v3782_v25 }
 0x2c7   : > { %v1649_v14 = vmul.f32 %v1585_v31, %v3771_v45  ;;  %v1651_v53 = vmul.f32 %v1587_v62, %v3774_v55  ;;  %v1589_v44 = vmul.f32 0.044715, %v3787_v51  ;;  %v3803_v27 = vmul.f32 0.5, %v1329_v17 }
 0x2c8   : > { %v1712_v15 = vmul.f32 %v1648_v63, %v1329_v17  ;;  %v1714_v18 = vmul.f32 %v1650_v29, %v1442_v54  ;;  %v1652_v57 = vmul.f32 %v1588_v56, %v3779_v2  ;;  %v1654_v26 = vmul.f32 %v1590_v0, %v3782_v25 }
 0x2c9   : > { %v1713_v58 = vmul.f32 %v1649_v14, %v3771_v45  ;;  %v1715_v3 = vmul.f32 %v1651_v53, %v3774_v55  ;;  %v1338_v41 = vpop.f32.mrb[4].mxu0  ;;  %v1451_v38 = vpop.f32.mrb[4].mxu1  ;;  %v1653_v49 = vmul.f32 %v1589_v44, %v3787_v51  ;;  %v1591_v1 = vmul.f32 0.044715, %v3795_v30 }
 0x2ca   : > { %v1776_v43 = vadd.f32 %v1712_v15, %v1329_v17  ;;  %v1778_v32 = vadd.f32 %v1714_v18, %v1442_v54  ;;  %v1340_v13 = vpop.f32.mrb[5].mxu0  ;;  %v1453_v12 = vpop.f32.mrb[5].mxu1  ;;  %v1716_v7 = vmul.f32 %v1652_v57, %v3779_v2  ;;  %v1718_v46 = vmul.f32 %v1654_v26, %v3782_v25 }
 0x2cb   : > { %v1777_v19 = vadd.f32 %v1713_v58, %v3771_v45  ;;  %v1779_v24 = vadd.f32 %v1715_v3, %v3774_v55  ;;  %v1342_v39 = vpop.f32.mrb[6].mxu0  ;;  %v3801_v22 = vpop.f32.mrb[6].mxu1  ;;  %v3815_v6 = vadd.f32 %v1338_v41, %v3760_v52  ;;  %v1717_v37 = vmul.f32 %v1653_v49, %v3787_v51 }
 0x2cc   : > { %v1840_v28 = vmul.f32 0.7978846, %v1776_v43  ;;  %v1842_v11 = vmul.f32 0.7978846, %v1778_v32  ;;  %v3806_v23 = vpop.f32.mrb[7].mxu0  ;;  %v3810_v40 = vpop.f32.mrb[7].mxu1  ;;  %v1780_v42 = vadd.f32 %v1716_v7, %v3779_v2  ;;  %v1782_v21 = vadd.f32 %v1718_v46, %v3782_v25 }
 0x2cd   : > { %v1841_v50 = vmul.f32 0.7978846, %v1777_v19  ;;  %v1843_v48 = vmul.f32 0.7978846, %v1779_v24  ;;  %v3820_v16 = vadd.f32 %v1451_v38, %v3762_v47  ;;  %v3822_v5 = vmul.f32 0.5, %v1442_v54 }
 0x2ce   : > { %2820 = vtanh.f32 %v1840_v28  ;;  %v1844_v35 = vmul.f32 0.7978846, %v1780_v42  ;;  %v1655_v8 = vmul.f32 %v1591_v1, %v3795_v30  ;;  %v1846_v17 = vmul.f32 0.7978846, %v1782_v21 }
 0x2cf   : > { %2822 = vtanh.f32 %v1842_v11  ;;  %v1781_v59 = vadd.f32 %v1717_v37, %v3787_v51  ;;  %v1592_v60 = vmul.f32 0.044715, %v3815_v6  ;;  %v3832_v33 = vmul.f32 0.5, %v3771_v45 }
 0x2d0   : > { %2824 = vtanh.f32 %v1841_v50  ;;  %v1719_v54 = vmul.f32 %v1655_v8, %v3795_v30  ;;  %v1594_v36 = vmul.f32 0.044715, %v3820_v16  ;;  %v3842_v10 = vadd.f32 %v1340_v13, %v3764_v4 }
 0x2d1   : > { %2826 = vtanh.f32 %v1843_v48  ;;  %v3827_v9 = vpop.f32.mrb[8].mxu0  ;;  %v3829_v61 = vpop.f32.mrb[8].mxu1  ;;  %v1845_v63 = vmul.f32 0.7978846, %v1781_v59  ;;  %v1656_v29 = vmul.f32 %v1592_v60, %v3815_v6  ;;  %v3851_v15 = vadd.f32 %v1453_v12, %v3766_v34 }
 0x2d2   : > { %2828 = vtanh.f32 %v1844_v35  ;;  %v3836_v31 = vpop.f32.mrb[9].mxu0  ;;  %v3838_v62 = vpop.f32.mrb[9].mxu1  ;;  %v1783_v14 = vadd.f32 %v1719_v54, %v3795_v30  ;;  %v1658_v53 = vmul.f32 %v1594_v36, %v3820_v16  ;;  %v3854_v18 = vadd.f32 %v1342_v39, %v3760_v52 }
 0x2d3   : > { %2830 = vtanh.f32 %v1846_v17  ;;  %v3844_v20 = vpop.f32.mrb[10].mxu0  ;;  %v3846_v45 = vpop.f32.mrb[10].mxu1  ;;  %v1523_v3 = vmul.f32 0.5, %v3774_v55  ;;  %v1720_v0 = vmul.f32 %v1656_v29, %v3815_v6  ;;  %v1593_v41 = vmul.f32 0.044715, %v3842_v10 }
 0x2d4   : > { %v3856_v56 = vpop.f32.mrb[11].mxu0  ;;  %v3858_v58 = vpop.f32.mrb[11].mxu1  ;;  %2832 = vtanh.f32 %v1845_v63  ;;  %v1524_v38 = vmul.f32 0.5, %v3779_v2  ;;  %v1847_v43 = vmul.f32 0.7978846, %v1783_v14  ;;  %v1722_v32 = vmul.f32 %v1658_v53, %v3820_v16 }
 0x2d5   : > { %v1595_v57 = vmul.f32 0.044715, %v3851_v15  ;;  %v3867_v13 = vmul.f32 0.5, %v3782_v25  ;;  %v1784_v12 = vadd.f32 %v1720_v0, %v3815_v6  ;;  %v1657_v19 = vmul.f32 %v1593_v41, %v3842_v10 }
 0x2d6   : > { %v1596_v55 = vmul.f32 0.044715, %v3854_v18  ;;  %v1525_v26 = vmul.f32 0.5, %v3787_v51  ;;  %2834 = vtanh.f32 %v1847_v43  ;;  %v1786_v2 = vadd.f32 %v1722_v32, %v3820_v16 }
 0x2d7   : > { %v1659_v44 = vmul.f32 %v1595_v57, %v3851_v15  ;;  %v1848_v11 = vmul.f32 0.7978846, %v1784_v12  ;;  %v1721_v25 = vmul.f32 %v1657_v19, %v3842_v10  ;;  %v3884_v1 = vadd.f32 %v3801_v22, %v3762_v47 }
 0x2d8   : > { %v2821_v24 = vpop.eup %2820  ;;  %v1660_v7 = vmul.f32 %v1596_v55, %v3854_v18  ;;  %v1850_v42 = vmul.f32 0.7978846, %v1786_v2  ;;  %v1527_v12 = vmul.f32 0.5, %v3795_v30  ;;  %v3911_v30 = vadd.f32 %v3806_v23, %v3764_v4 }
 0x2d9   : > { %v2823_v39 = vpop.eup %2822  ;;  %v1968_v28 = vadd.f32 1.0, %v2821_v24  ;;  %v3877_v50 = vpop.f32.mrb[12].mxu0  ;;  %v1723_v51 = vmul.f32 %v1659_v44, %v3851_v15  ;;  %2836 = vtanh.f32 %v1848_v11  ;;  %v1785_v59 = vadd.f32 %v1721_v25, %v3842_v10 }
 0x2da   : > { %v3879_v48 = vpop.f32.mrb[12].mxu1  ;;  %v2825_v46 = vpop.eup %2824  ;;  %v1970_v49 = vadd.f32 1.0, %v2823_v39  ;;  %2838 = vtanh.f32 %v1850_v42  ;;  %v1724_v32 = vmul.f32 %v1660_v7, %v3854_v18  ;;  %v1598_v19 = vmul.f32 0.044715, %v3884_v1 }
 0x2db   : > { %v3886_v21 = vpop.f32.mrb[13].mxu0  ;;  %v3888_v37 = vpop.f32.mrb[13].mxu1  ;;  %v2032_v8 = vmul.f32 %v1968_v28, %v3803_v27  ;;  %v1969_v17 = vadd.f32 1.0, %v2825_v46  ;;  %v1787_v29 = vadd.f32 %v1723_v51, %v3851_v15  ;;  %v1849_v43 = vmul.f32 0.7978846, %v1785_v59 }
 0x2dc   : > { %v2827_v35 = vpop.eup %2826  ;;  %v3892_v60 = vpop.f32.mrb[14].mxu0  ;;  %v2034_v63 = vmul.f32 %v1970_v49, %v3822_v5  ;;  %v1788_v44 = vadd.f32 %v1724_v32, %v3854_v18  ;;  %v3915_v25 = vadd.f32 %v3810_v40, %v3766_v34  ;;  %v1528_v42 = vmul.f32 0.5, %v3815_v6 }
 0x2dd   : > { %v3894_v54 = vpop.f32.mrb[14].mxu1  ;;  %v2829_v36 = vpop.eup %2828  ;;  %v1971_v22 = vadd.f32 1.0, %v2827_v35  ;;  %v2033_v0 = vmul.f32 %v1969_v17, %v3832_v33  ;;  %v1851_v5 = vmul.f32 0.7978846, %v1787_v29  ;;  %2840 = vtanh.f32 %v1849_v43 }
 0x2de   : > { %v3898_v14 = vpop.f32.mrb[15].mxu0  ;;  %v3900_v53 = vpop.f32.mrb[15].mxu1  ;;  %v1972_v41 = vadd.f32 1.0, %v2829_v36  ;;  %v1852_v11 = vmul.f32 0.7978846, %v1788_v44  ;;  %v1530_v51 = vmul.f32 0.5, %v3820_v16  ;;  %v3926_v35 = vadd.f32 %v3827_v9, %v3760_v52 }
 0x2df   : > { %v2831_v27 = vpop.eup %2830  ;;  %v2035_v57 = vmul.f32 %v1971_v22, %v1523_v3  ;;  %v2619_v24 = vpack.c.bf16 %v2033_v0, %v2032_v8  ;;  %2842 = vtanh.f32 %v1851_v5  ;;  %v1662_v3 = vmul.f32 %v1598_v19, %v3884_v1 }
 0x2e0   : > { %v2833_v55 = vpop.eup %2832  ;;  %v1974_v2 = vadd.f32 1.0, %v2831_v27  ;;  %v2036_v33 = vmul.f32 %v1972_v41, %v1524_v38  ;;  %v1529_v59 = vmul.f32 0.5, %v3842_v10  ;;  %v1597_v9 = vmul.f32 0.044715, %v3911_v30 }
 0x2e1   : > { %v2620_v39 = vpack.c.bf16 %v2035_v57, %v2034_v63  ;;  %v1973_v28 = vadd.f32 1.0, %v2833_v55  ;;  %2288 = vst [vmem:[%s3210_s25] sm:$0xff] %v2619_v24  ;;  %v3917_v7 = vpop.f32.mrb[16].mxu0  ;;  %v3919_v46 = vpop.f32.mrb[16].mxu1  ;;  %v1599_v63 = vmul.f32 0.044715, %v3915_v25  ;;  %v3943_v22 = vadd.f32 %v3829_v61, %v3762_v47 }
 0x2e2   : > { %v2835_v49 = vpop.eup %2834  ;;  %v3928_v23 = vpop.f32.mrb[17].mxu0  ;;  %v2038_v40 = vmul.f32 %v1974_v2, %v3867_v13  ;;  %2844 = vtanh.f32 %v1852_v11  ;;  %v1600_v0 = vmul.f32 0.044715, %v3926_v35  ;;  %v1661_v57 = vmul.f32 %v1597_v9, %v3911_v30 }
 0x2e3   : > { %2289 = vst [vmem:[%s3210_s25 + $0x8] sm:$0xff] %v2620_v39  ;;  %v2037_v38 = vmul.f32 %v1973_v28, %v1525_v26  ;;  %v3930_v8 = vpop.f32.mrb[17].mxu1  ;;  %v1975_v17 = vadd.f32 1.0, %v2835_v49  ;;  %v1726_v26 = vmul.f32 %v1662_v3, %v3884_v1  ;;  %v3935_v36 = vpop.f32.mrb[18].mxu0  ;;  %v1663_v61 = vmul.f32 %v1599_v63, %v3915_v25 }
 0x2e4   : > { %v3937_v6 = vpop.f32.mrb[18].mxu1  ;;  %v3945_v13 = vpop.f32.mrb[19].mxu0  ;;  %v3956_v5 = vadd.f32 %v3836_v31, %v3764_v4  ;;  %v1664_v24 = vmul.f32 %v1600_v0, %v3926_v35  ;;  %v1531_v2 = vmul.f32 0.5, %v3851_v15  ;;  %v1725_v44 = vmul.f32 %v1661_v57, %v3911_v30 }
 0x2e5   : > { %v2621_v16 = vpack.c.bf16 %v2037_v38, %v2036_v33  ;;  %v2837_v29 = vpop.eup %2836  ;;  %v2039_v10 = vmul.f32 %v1975_v17, %v1527_v12  ;;  %v1790_v27 = vadd.f32 %v1726_v26, %v3884_v1  ;;  %v3949_v41 = vpop.f32.mrb[19].mxu1  ;;  %v1727_v39 = vmul.f32 %v1663_v61, %v3915_v25 }
 0x2e6   : > { %v2839_v43 = vpop.eup %2838  ;;  %v1976_v32 = vadd.f32 1.0, %v2837_v29  ;;  %v1602_v33 = vmul.f32 0.044715, %v3943_v22  ;;  %v1728_v31 = vmul.f32 %v1664_v24, %v3926_v35  ;;  %v1789_v15 = vadd.f32 %v1725_v44, %v3911_v30 }
 0x2e7   : > { %2290 = vst [vmem:[%s3210_s25 + $0x10] sm:$0xff] %v2621_v16  ;;  %v2622_v12 = vpack.c.bf16 %v2039_v10, %v2038_v40  ;;  %v1978_v19 = vadd.f32 1.0, %v2839_v43  ;;  %v1854_v55 = vmul.f32 0.7978846, %v1790_v27  ;;  %v2841_v28 = vpop.eup %2840  ;;  %v1791_v26 = vadd.f32 %v1727_v39, %v3915_v25 }
 0x2e8   : > { %v2040_v11 = vmul.f32 %v1976_v32, %v1528_v42  ;;  %v1977_v17 = vadd.f32 1.0, %v2841_v28  ;;  %v1666_v16 = vmul.f32 %v1602_v33, %v3943_v22  ;;  %v1601_v29 = vmul.f32 0.044715, %v3956_v5 }
 0x2e9   : > { %2291 = vst [vmem:[%s3210_s25 + $0x18] sm:$0xff] %v2622_v12  ;;  %v2042_v3 = vmul.f32 %v1978_v19, %v1530_v51  ;;  %2846 = vtanh.f32 %v1854_v55  ;;  %v3965_v49 = vpop.f32.mrb[20].mxu0  ;;  %v3967_v38 = vpop.f32.mrb[20].mxu1  ;;  %v1792_v51 = vadd.f32 %v1728_v31, %v3926_v35  ;;  %v3980_v10 = vadd.f32 %v3838_v62, %v3766_v34 }
 0x2ea   : > { %v2843_v40 = vpop.eup %2842  ;;  %v3972_v9 = vpop.f32.mrb[21].mxu0  ;;  %v2041_v43 = vmul.f32 %v1977_v17, %v1529_v59  ;;  %v1853_v32 = vmul.f32 0.7978846, %v1789_v15  ;;  %v1855_v57 = vmul.f32 0.7978846, %v1791_v26  ;;  %v1730_v61 = vmul.f32 %v1666_v16, %v3943_v22 }
 0x2eb   : > { %v3974_v63 = vpop.f32.mrb[21].mxu1  ;;  %v1979_v42 = vadd.f32 1.0, %v2843_v40  ;;  %v3982_v27 = vpop.f32.mrb[22].mxu0  ;;  %v1532_v24 = vmul.f32 0.5, %v3854_v18  ;;  %v1856_v44 = vmul.f32 0.7978846, %v1792_v51  ;;  %v1665_v62 = vmul.f32 %v1601_v29, %v3956_v5 }
 0x2ec   : > { %v3984_v0 = vpop.f32.mrb[22].mxu1  ;;  %v3987_v12 = vpop.f32.mrb[23].mxu0  ;;  %v2623_v39 = vpack.c.bf16 %v2041_v43, %v2040_v11  ;;  %v1534_v33 = vmul.f32 0.5, %v3884_v1  ;;  %2848 = vtanh.f32 %v1853_v32  ;;  %v1794_v59 = vadd.f32 %v1730_v61, %v3943_v22 }
 0x2ed   : > { %v3989_v19 = vpop.f32.mrb[23].mxu1  ;;  %v2043_v55 = vmul.f32 %v1979_v42, %v1531_v2  ;;  %v2845_v28 = vpop.eup %2844  ;;  %2850 = vtanh.f32 %v1855_v57  ;;  %v1729_v40 = vmul.f32 %v1665_v62, %v3956_v5  ;;  %v1603_v17 = vmul.f32 0.044715, %v3980_v10 }
 0x2ee   : > { %2292 = vst [vmem:[%s3210_s25 + $0x20] sm:$0xff] %v2623_v39  ;;  %v1533_v18 = vmul.f32 0.5, %v3911_v30  ;;  %2852 = vtanh.f32 %v1856_v44  ;;  %v1858_v2 = vmul.f32 0.7978846, %v1794_v59  ;;  %v4001_v11 = vadd.f32 %v3844_v20, %v3760_v52 }
 0x2ef   : > { %v2624_v31 = vpack.c.bf16 %v2043_v55, %v2042_v3  ;;  %v1793_v1 = vadd.f32 %v1729_v40, %v3956_v5  ;;  %v1667_v15 = vmul.f32 %v1603_v17, %v3980_v10  ;;  %v4008_v3 = vadd.f32 %v3846_v45, %v3762_v47 }
 0x2f0   : > { %v4012_v26 = vadd.f32 %v3856_v56, %v3764_v4  ;;  %v1980_v42 = vadd.f32 1.0, %v2845_v28  ;;  %2854 = vtanh.f32 %v1858_v2  ;;  %v1604_v20 = vmul.f32 0.044715, %v4001_v11 }
 0x2f1   : > { %2293 = vst [vmem:[%s3210_s25 + $0x28] sm:$0xff] %v2624_v31  ;;  %v4014_v30 = vpop.f32.mrb[24].mxu0  ;;  %v4016_v16 = vpop.f32.mrb[24].mxu1  ;;  %v4021_v51 = vadd.f32 %v3858_v58, %v3766_v34  ;;  %v1535_v56 = vmul.f32 0.5, %v3915_v25  ;;  %v1857_v32 = vmul.f32 0.7978846, %v1793_v1  ;;  %v1731_v57 = vmul.f32 %v1667_v15, %v3980_v10 }
 0x2f2   : > { %v4023_v29 = vpop.f32.mrb[25].mxu0  ;;  %v4025_v45 = vpop.f32.mrb[25].mxu1  ;;  %v1606_v61 = vmul.f32 0.044715, %v4008_v3  ;;  %v1536_v62 = vmul.f32 0.5, %v3926_v35  ;;  %v1668_v58 = vmul.f32 %v1604_v20, %v4001_v11  ;;  %v4040_v25 = vmul.f32 0.5, %v3943_v22 }
 0x2f3   : > { %v2847_v43 = vpop.eup %2846  ;;  %v4030_v55 = vpop.f32.mrb[26].mxu0  ;;  %v1605_v39 = vmul.f32 0.044715, %v4012_v26  ;;  %2856 = vtanh.f32 %v1857_v32  ;;  %v1795_v31 = vadd.f32 %v1731_v57, %v3980_v10  ;;  %v2044_v2 = vmul.f32 %v1980_v42, %v1532_v24 }
 0x2f4   : > { %4556 = vst [vmem:[#allocation5_spill] sm:$0xff] %v4030_v55  ;;  %v1982_v44 = vadd.f32 1.0, %v2847_v43  ;;  %v4035_v59 = vpop.f32.mrb[26].mxu1  ;;  %v4037_v28 = vpop.f32.mrb[27].mxu0  ;;  %v1670_v40 = vmul.f32 %v1606_v61, %v4008_v3  ;;  %v1732_v35 = vmul.f32 %v1668_v58, %v4001_v11  ;;  %v1607_v15 = vmul.f32 0.044715, %v4021_v51 }
 0x2f5   : > { %4557 = vst [vmem:[#allocation6_spill] sm:$0xff] %v4035_v59  ;;  %4558 = vst [vmem:[#allocation7_spill] sm:$0xff] %v4037_v28  ;;  %v4044_v17 = vpop.f32.mrb[27].mxu1  ;;  %v1669_v1 = vmul.f32 %v1605_v39, %v4012_v26  ;;  %v1859_v43 = vmul.f32 0.7978846, %v1795_v31  ;;  %v4052_v22 = vadd.f32 %v3877_v50, %v3760_v52  ;;  %v4059_v42 = vadd.f32 %v3879_v48, %v3762_v47 }
 0x2f6   : > { %4559 = vst [vmem:[#allocation8_spill] sm:$0xff] %v4044_v17  ;;  %v2046_v20 = vmul.f32 %v1982_v44, %v1534_v33  ;;  %v1734_v28 = vmul.f32 %v1670_v40, %v4008_v3  ;;  %v2849_v32 = vpop.eup %2848  ;;  %v1796_v57 = vadd.f32 %v1732_v35, %v4001_v11  ;;  %v1671_v24 = vmul.f32 %v1607_v15, %v4021_v51 }
 0x2f7   : > { %v1733_v61 = vmul.f32 %v1669_v1, %v4012_v26  ;;  %v2851_v58 = vpop.eup %2850  ;;  %v1981_v33 = vadd.f32 1.0, %v2849_v32  ;;  %2858 = vtanh.f32 %v1859_v43  ;;  %v4064_v50 = vadd.f32 %v3886_v21, %v3764_v4 }
 0x2f8   : > { %v1798_v44 = vadd.f32 %v1734_v28, %v4008_v3  ;;  %v2853_v40 = vpop.eup %2852  ;;  %v1983_v35 = vadd.f32 1.0, %v2851_v58  ;;  %v1860_v1 = vmul.f32 0.7978846, %v1796_v57  ;;  %v1735_v48 = vmul.f32 %v1671_v24, %v4021_v51 }
 0x2f9   : > { %v4066_v39 = vpop.f32.mrb[28].mxu0  ;;  %v4068_v31 = vpop.f32.mrb[28].mxu1  ;;  %v1797_v15 = vadd.f32 %v1733_v61, %v4012_v26  ;;  %v2045_v28 = vmul.f32 %v1981_v33, %v1533_v18  ;;  %v1984_v32 = vadd.f32 1.0, %v2853_v40  ;;  %v1608_v21 = vmul.f32 0.044715, %v4052_v22 }
 0x2fa   : > { %4560 = vst [vmem:[#allocation9_spill] sm:$0xff] %v4066_v39  ;;  %4561 = vst [vmem:[#allocation10_spill] sm:$0xff] %v4068_v31  ;;  %v4072_v17 = vpop.f32.mrb[29].mxu0  ;;  %v4074_v43 = vpop.f32.mrb[29].mxu1  ;;  %v1862_v59 = vmul.f32 0.7978846, %v1798_v44  ;;  %v2047_v31 = vmul.f32 %v1983_v35, %v1535_v56  ;;  %2860 = vtanh.f32 %v1860_v1  ;;  %v1799_v61 = vadd.f32 %v1735_v48, %v4021_v51 }
 0x2fb   : > { %4562 = vst [vmem:[#allocation11_spill] sm:$0xff] %v4074_v43  ;;  %v4077_v55 = vpop.f32.mrb[30].mxu0  ;;  %v2855_v39 = vpop.eup %2854  ;;  %v1861_v57 = vmul.f32 0.7978846, %v1797_v15  ;;  %v2625_v43 = vpack.c.bf16 %v2045_v28, %v2044_v2  ;;  %v1537_v18 = vmul.f32 0.5, %v3956_v5  ;;  %v1539_v33 = vmul.f32 0.5, %v3980_v10 }
 0x2fc   : > { %v4080_v58 = vpop.f32.mrb[30].mxu1  ;;  %v4082_v24 = vpop.f32.mrb[31].mxu0  ;;  %2862 = vtanh.f32 %v1862_v59  ;;  %v2626_v40 = vpack.c.bf16 %v2047_v31, %v2046_v20  ;;  %v1863_v56 = vmul.f32 0.7978846, %v1799_v61  ;;  %v1672_v35 = vmul.f32 %v1608_v21, %v4052_v22 }
 0x2fd   : > { %4563 = vst [vmem:[#allocation12_spill] sm:$0xff] %v4082_v24  ;;  %v4086_v44 = vpop.f32.mrb[31].mxu1  ;;  %2864 = vtanh.f32 %v1861_v57  ;;  %v2857_v1 = vpop.eup %2856  ;;  %2294 = vst [vmem:[%s3210_s25 + $0x30] sm:$0xff] %v2625_v43  ;;  %v2048_v15 = vmul.f32 %v1984_v32, %v1536_v62  ;;  %v1986_v48 = vadd.f32 1.0, %v2855_v39  ;;  %v1540_v24 = vmul.f32 0.5, %v4001_v11 }
 0x2fe   : > { %v1610_v2 = vmul.f32 0.044715, %v4059_v42  ;;  %2295 = vst [vmem:[%s3210_s25 + $0x38] sm:$0xff] %v2626_v40  ;;  %v1985_v5 = vadd.f32 1.0, %v2857_v1  ;;  %2866 = vtanh.f32 %v1863_v56  ;;  %v1736_v10 = vmul.f32 %v1672_v35, %v4052_v22 }
 0x2ff   : > { %v1609_v59 = vmul.f32 0.044715, %v4064_v50  ;;  %v1542_v20 = vmul.f32 0.5, %v4008_v3  ;;  %v4099_v43 = vadd.f32 %v3888_v37, %v3766_v34  ;;  %v4103_v11 = vadd.f32 %v3892_v60, %v3760_v52 }
 0x300   : > { %v1674_v31 = vmul.f32 %v1610_v2, %v4059_v42  ;;  %v2049_v62 = vmul.f32 %v1985_v5, %v1537_v18  ;;  %v1800_v39 = vadd.f32 %v1736_v10, %v4052_v22  ;;  %v4109_v32 = vadd.f32 %v3894_v54, %v3762_v47 }
 0x301   : > { %v1673_v28 = vmul.f32 %v1609_v59, %v4064_v50  ;;  %v2859_v3 = vpop.eup %2858  ;;  %v2050_v21 = vmul.f32 %v1986_v48, %v4040_v25  ;;  %v1541_v37 = vmul.f32 0.5, %v4012_v26  ;;  %v1611_v60 = vmul.f32 0.044715, %v4099_v43 }
 0x302   : > { %v1738_v57 = vmul.f32 %v1674_v31, %v4059_v42  ;;  %v2627_v61 = vpack.c.bf16 %v2049_v62, %v2048_v15  ;;  %v1987_v18 = vadd.f32 1.0, %v2859_v3  ;;  %v1864_v40 = vmul.f32 0.7978846, %v1800_v39 }
 0x303   : > { %v1737_v56 = vmul.f32 %v1673_v28, %v4064_v50  ;;  %v1675_v1 = vmul.f32 %v1611_v60, %v4099_v43  ;;  %v1612_v54 = vmul.f32 0.044715, %v4103_v11  ;;  %v4121_v25 = vadd.f32 %v3898_v14, %v3764_v4 }
 0x304   : > { %v1802_v35 = vadd.f32 %v1738_v57, %v4059_v42  ;;  %v2861_v26 = vpop.eup %2860  ;;  %2296 = vst [vmem:[%s3210_s25 + $0x40] sm:$0xff] %v2627_v61  ;;  %v2051_v48 = vmul.f32 %v1987_v18, %v1539_v33  ;;  %2868 = vtanh.f32 %v1864_v40  ;;  %v1614_v2 = vmul.f32 0.044715, %v4109_v32 }
 0x305   : > { %v1801_v15 = vadd.f32 %v1737_v56, %v4064_v50  ;;  %v1988_v10 = vadd.f32 1.0, %v2861_v26  ;;  %v1739_v31 = vmul.f32 %v1675_v1, %v4099_v43  ;;  %v1676_v62 = vmul.f32 %v1612_v54, %v4103_v11 }
 0x306   : > { %v2863_v5 = vpop.eup %2862  ;;  %v1866_v59 = vmul.f32 0.7978846, %v1802_v35  ;;  %v2628_v28 = vpack.c.bf16 %v2051_v48, %v2050_v21  ;;  %v1678_v57 = vmul.f32 %v1614_v2, %v4109_v32  ;;  %v1543_v40 = vmul.f32 0.5, %v4021_v51 }
 0x307   : > { %v2865_v39 = vpop.eup %2864  ;;  %v1990_v14 = vadd.f32 1.0, %v2863_v5  ;;  %v1865_v3 = vmul.f32 0.7978846, %v1801_v15  ;;  %v2052_v33 = vmul.f32 %v1988_v10, %v1540_v24  ;;  %v1803_v61 = vadd.f32 %v1739_v31, %v4099_v43 }
 0x308   : > { %v1989_v60 = vadd.f32 1.0, %v2865_v39  ;;  %2870 = vtanh.f32 %v1866_v59  ;;  %v2867_v18 = vpop.eup %2866  ;;  %2297 = vst [vmem:[%s3210_s25 + $0x48] sm:$0xff] %v2628_v28  ;;  %v1740_v56 = vmul.f32 %v1676_v62, %v4103_v11  ;;  %v1742_v35 = vmul.f32 %v1678_v57, %v4109_v32 }
 0x309   : > { %2872 = vtanh.f32 %v1865_v3  ;;  %v2054_v1 = vmul.f32 %v1990_v14, %v1542_v20  ;;  %v1991_v54 = vadd.f32 1.0, %v2867_v18  ;;  %v1867_v26 = vmul.f32 0.7978846, %v1803_v61 }
 0x30a   : > { %v2053_v21 = vmul.f32 %v1989_v60, %v1541_v37  ;;  %v1804_v24 = vadd.f32 %v1740_v56, %v4103_v11  ;;  %v1806_v48 = vadd.f32 %v1742_v35, %v4109_v32  ;;  %v1613_v15 = vmul.f32 0.044715, %v4121_v25 }
 0x30b   : > { %v4139_v2 = vadd.f32 %v3900_v53, %v3766_v34  ;;  %v2055_v5 = vmul.f32 %v1991_v54, %v1543_v40  ;;  %2874 = vtanh.f32 %v1867_v26  ;;  %v4143_v20 = vadd.f32 %v3917_v7, %v3760_v52 }
 0x30c   : > { %v2629_v51 = vpack.c.bf16 %v2053_v21, %v2052_v33  ;;  %v1544_v37 = vmul.f32 0.5, %v4052_v22  ;;  %v1868_v10 = vmul.f32 0.7978846, %v1804_v24  ;;  %v1870_v59 = vmul.f32 0.7978846, %v1806_v48 }
 0x30d   : > { %v1677_v31 = vmul.f32 %v1613_v15, %v4121_v25  ;;  %v2630_v62 = vpack.c.bf16 %v2055_v5, %v2054_v1  ;;  %v1546_v39 = vmul.f32 0.5, %v4059_v42  ;;  %v1615_v53 = vmul.f32 0.044715, %v4139_v2 }
 0x30e   : > { %2298 = vst [vmem:[%s3210_s25 + $0x50] sm:$0xff] %v2629_v51  ;;  %v1616_v28 = vmul.f32 0.044715, %v4143_v20  ;;  %v2869_v14 = vpop.eup %2868  ;;  %2876 = vtanh.f32 %v1868_v10  ;;  %v1482_v7 = vadd.f32 %v3919_v46, %v3762_v47  ;;  %v4156_v22 = vadd.f32 %v3928_v23, %v3764_v4 }
 0x30f   : > { %v1741_v3 = vmul.f32 %v1677_v31, %v4121_v25  ;;  %2299 = vst [vmem:[%s3210_s25 + $0x58] sm:$0xff] %v2630_v62  ;;  %v1992_v57 = vadd.f32 1.0, %v2869_v14  ;;  %v1545_v33 = vmul.f32 0.5, %v4064_v50  ;;  %v1679_v42 = vmul.f32 %v1615_v53, %v4139_v2 }
 0x310   : > { %v1680_v60 = vmul.f32 %v1616_v28, %v4143_v20  ;;  %v1547_v61 = vmul.f32 0.5, %v4099_v43  ;;  %2878 = vtanh.f32 %v1870_v59  ;;  %v1618_v40 = vmul.f32 0.044715, %v1482_v7 }
 0x311   : > { %v1805_v18 = vadd.f32 %v1741_v3, %v4121_v25  ;;  %v2056_v46 = vmul.f32 %v1992_v57, %v1544_v37  ;;  %v1743_v35 = vmul.f32 %v1679_v42, %v4139_v2  ;;  %v1617_v1 = vmul.f32 0.044715, %v4156_v22 }
 0x312   : > { %v2871_v56 = vpop.eup %2870  ;;  %v1744_v23 = vmul.f32 %v1680_v60, %v4143_v20  ;;  %v1682_v26 = vmul.f32 %v1618_v40, %v1482_v7  ;;  %v4169_v24 = vadd.f32 %v3930_v8, %v3766_v34  ;;  %v1548_v37 = vmul.f32 0.5, %v4103_v11 }
 0x313   : > { %v2873_v21 = vpop.eup %2872  ;;  %v1994_v50 = vadd.f32 1.0, %v2871_v56  ;;  %v1869_v54 = vmul.f32 0.7978846, %v1805_v18  ;;  %v1807_v48 = vadd.f32 %v1743_v35, %v4139_v2  ;;  %v1681_v51 = vmul.f32 %v1617_v1, %v4156_v22 }
 0x314   : > { %v1993_v43 = vadd.f32 1.0, %v2873_v21  ;;  %v1808_v15 = vadd.f32 %v1744_v23, %v4143_v20  ;;  %v1746_v10 = vmul.f32 %v1682_v26, %v1482_v7  ;;  %v1619_v3 = vmul.f32 0.044715, %v4169_v24 }
 0x315   : > { %v2058_v5 = vmul.f32 %v1994_v50, %v1546_v39  ;;  %2880 = vtanh.f32 %v1869_v54  ;;  %v2875_v59 = vpop.eup %2874  ;;  %v1871_v62 = vmul.f32 0.7978846, %v1807_v48  ;;  %v1745_v8 = vmul.f32 %v1681_v51, %v4156_v22 }
 0x316   : > { %v2057_v31 = vmul.f32 %v1993_v43, %v1545_v33  ;;  %v1872_v53 = vmul.f32 0.7978846, %v1808_v15  ;;  %v1995_v28 = vadd.f32 1.0, %v2875_v59  ;;  %v1810_v14 = vadd.f32 %v1746_v10, %v1482_v7 }
 0x317   : > { %v4179_v57 = vadd.f32 %v3935_v36, %v3760_v52  ;;  %2882 = vtanh.f32 %v1871_v62  ;;  %v1809_v11 = vadd.f32 %v1745_v8, %v4156_v22  ;;  %v4184_v33 = vadd.f32 %v3937_v6, %v3762_v47 }
 0x318   : > { %v2631_v39 = vpack.c.bf16 %v2057_v31, %v2056_v46  ;;  %v2877_v42 = vpop.eup %2876  ;;  %v2059_v60 = vmul.f32 %v1995_v28, %v1547_v61  ;;  %2884 = vtanh.f32 %v1872_v53  ;;  %v1874_v18 = vmul.f32 0.7978846, %v1810_v14 }
 0x319   : > { %v1683_v40 = vmul.f32 %v1619_v3, %v4169_v24  ;;  %v1550_v56 = vmul.f32 0.5, %v4109_v32  ;;  %v1549_v36 = vmul.f32 0.5, %v4121_v25  ;;  %v1873_v46 = vmul.f32 0.7978846, %v1809_v11 }
 0x31a   : > { %2300 = vst [vmem:[%s3210_s25 + $0x60] sm:$0xff] %v2631_v39  ;;  %v1620_v35 = vmul.f32 0.044715, %v4179_v57  ;;  %v2879_v23 = vpop.eup %2878  ;;  %v2632_v1 = vpack.c.bf16 %v2059_v60, %v2058_v5  ;;  %v1551_v6 = vmul.f32 0.5, %v4139_v2  ;;  %2886 = vtanh.f32 %v1874_v18 }
 0x31b   : > { %v1747_v61 = vmul.f32 %v1683_v40, %v4169_v24  ;;  %v1996_v21 = vadd.f32 1.0, %v2877_v42  ;;  %v1552_v50 = vmul.f32 0.5, %v4143_v20  ;;  %2888 = vtanh.f32 %v1873_v46 }
 0x31c   : > { %v1684_v54 = vmul.f32 %v1620_v35, %v4179_v57  ;;  %2301 = vst [vmem:[%s3210_s25 + $0x68] sm:$0xff] %v2632_v1  ;;  %v4196_v32 = vmul.f32 0.5, %v1482_v7  ;;  %v1622_v26 = vmul.f32 0.044715, %v4184_v33  ;;  %v4202_v43 = vadd.f32 %v3945_v13, %v3764_v4 }
 0x31d   : > { %v1811_v25 = vadd.f32 %v1747_v61, %v4169_v24  ;;  %v1553_v2 = vmul.f32 0.5, %v4156_v22  ;;  %v4208_v20 = vadd.f32 %v3949_v41, %v3766_v34  ;;  %v4212_v7 = vadd.f32 %v3965_v49, %v3760_v52 }
 0x31e   : > { %v1748_v48 = vmul.f32 %v1684_v54, %v4179_v57  ;;  %v1998_v51 = vadd.f32 1.0, %v2879_v23  ;;  %v1686_v10 = vmul.f32 %v1622_v26, %v4184_v33  ;;  %v1621_v13 = vmul.f32 0.044715, %v4202_v43 }
 0x31f   : > { %v2881_v15 = vpop.eup %2880  ;;  %v1875_v5 = vmul.f32 0.7978846, %v1811_v25  ;;  %v2060_v59 = vmul.f32 %v1996_v21, %v1548_v37  ;;  %v1623_v62 = vmul.f32 0.044715, %v4208_v20  ;;  %v4222_v49 = vadd.f32 %v3967_v38, %v3762_v47 }
 0x320   : > { %v1997_v31 = vadd.f32 1.0, %v2881_v15  ;;  %v1812_v22 = vadd.f32 %v1748_v48, %v4179_v57  ;;  %v1750_v41 = vmul.f32 %v1686_v10, %v4184_v33  ;;  %v1685_v53 = vmul.f32 %v1621_v13, %v4202_v43 }
 0x321   : > { %2890 = vtanh.f32 %v1875_v5  ;;  %v2883_v8 = vpop.eup %2882  ;;  %v1687_v3 = vmul.f32 %v1623_v62, %v4208_v20  ;;  %v1624_v37 = vmul.f32 0.044715, %v4212_v7  ;;  %v2062_v11 = vmul.f32 %v1998_v51, %v1550_v56 }
 0x322   : > { %v2061_v28 = vmul.f32 %v1997_v31, %v1549_v36  ;;  %v1876_v14 = vmul.f32 0.7978846, %v1812_v22  ;;  %v2885_v39 = vpop.eup %2884  ;;  %v1999_v42 = vadd.f32 1.0, %v2883_v8  ;;  %v1814_v60 = vadd.f32 %v1750_v41, %v4184_v33 }
 0x323   : > { %v1749_v18 = vmul.f32 %v1685_v53, %v4202_v43  ;;  %v2000_v46 = vadd.f32 1.0, %v2885_v39  ;;  %v1751_v38 = vmul.f32 %v1687_v3, %v4208_v20  ;;  %v1688_v61 = vmul.f32 %v1624_v37, %v4212_v7 }
 0x324   : > { %v2633_v40 = vpack.c.bf16 %v2061_v28, %v2060_v59  ;;  %2892 = vtanh.f32 %v1876_v14  ;;  %v2887_v35 = vpop.eup %2886  ;;  %v2063_v36 = vmul.f32 %v1999_v42, %v1551_v6  ;;  %v1878_v23 = vmul.f32 0.7978846, %v1814_v60 }
 0x325   : > { %v1813_v1 = vadd.f32 %v1749_v18, %v4202_v43  ;;  %v2889_v21 = vpop.eup %2888  ;;  %v2064_v56 = vmul.f32 %v2000_v46, %v1552_v50  ;;  %v2002_v54 = vadd.f32 1.0, %v2887_v35  ;;  %v1815_v25 = vadd.f32 %v1751_v38, %v4208_v20 }
 0x326   : > { %2302 = vst [vmem:[%s3210_s25 + $0x70] sm:$0xff] %v2633_v40  ;;  %v1626_v26 = vmul.f32 0.044715, %v4222_v49  ;;  %v2634_v48 = vpack.c.bf16 %v2063_v36, %v2062_v11  ;;  %v2001_v15 = vadd.f32 1.0, %v2889_v21  ;;  %2894 = vtanh.f32 %v1878_v23 }
 0x327   : > { %v1877_v51 = vmul.f32 0.7978846, %v1813_v1  ;;  %v1555_v6 = vmul.f32 0.5, %v4169_v24  ;;  %v1879_v5 = vmul.f32 0.7978846, %v1815_v25  ;;  %v1752_v10 = vmul.f32 %v1688_v61, %v4212_v7 }
 0x328   : > { %v1690_v13 = vmul.f32 %v1626_v26, %v4222_v49  ;;  %2303 = vst [vmem:[%s3210_s25 + $0x78] sm:$0xff] %v2634_v48  ;;  %v2065_v59 = vmul.f32 %v2001_v15, %v1553_v2  ;;  %v4240_v50 = vadd.f32 %v3972_v9, %v3764_v4  ;;  %v4244_v31 = vadd.f32 %v3974_v63, %v3766_v34 }
 0x329   : > { %2896 = vtanh.f32 %v1877_v51  ;;  %v1816_v24 = vadd.f32 %v1752_v10, %v4212_v7  ;;  %v4250_v62 = vadd.f32 %v3982_v27, %v3760_v52  ;;  %v2066_v41 = vmul.f32 %v2002_v54, %v4196_v32 }
 0x32a   : > { %2898 = vtanh.f32 %v1879_v5  ;;  %v1754_v22 = vmul.f32 %v1690_v13, %v4222_v49  ;;  %v2635_v53 = vpack.c.bf16 %v2065_v59, %v2064_v56  ;;  %v1556_v9 = vmul.f32 0.5, %v4179_v57 }
 0x32b   : > { %v2891_v2 = vpop.eup %2890  ;;  %v1625_v8 = vmul.f32 0.044715, %v4240_v50  ;;  %v1880_v63 = vmul.f32 0.7978846, %v1816_v24  ;;  %v1627_v3 = vmul.f32 0.044715, %v4244_v31  ;;  %v4263_v32 = vadd.f32 %v3984_v0, %v3762_v47 }
 0x32c   : > { %v2003_v28 = vadd.f32 1.0, %v2891_v2  ;;  %v1818_v14 = vadd.f32 %v1754_v22, %v4222_v49  ;;  %2304 = vst [vmem:[%s3210_s25 + $0x80] sm:$0xff] %v2635_v53  ;;  %v1558_v37 = vmul.f32 0.5, %v4184_v33  ;;  %v1628_v39 = vmul.f32 0.044715, %v4250_v62 }
 0x32d   : > { %v1689_v27 = vmul.f32 %v1625_v8, %v4240_v50  ;;  %2900 = vtanh.f32 %v1880_v63  ;;  %v1691_v60 = vmul.f32 %v1627_v3, %v4244_v31  ;;  %v1557_v40 = vmul.f32 0.5, %v4202_v43 }
 0x32e   : > { %v2893_v57 = vpop.eup %2892  ;;  %v2067_v11 = vmul.f32 %v2003_v28, %v1555_v6  ;;  %v1882_v42 = vmul.f32 0.7978846, %v1818_v14  ;;  %v1692_v46 = vmul.f32 %v1628_v39, %v4250_v62  ;;  %v1630_v0 = vmul.f32 0.044715, %v4263_v32 }
 0x32f   : > { %v2004_v18 = vadd.f32 1.0, %v2893_v57  ;;  %v1753_v33 = vmul.f32 %v1689_v27, %v4240_v50  ;;  %v1755_v35 = vmul.f32 %v1691_v60, %v4244_v31  ;;  %v1559_v23 = vmul.f32 0.5, %v4208_v20 }
 0x330   : > { %v2636_v38 = vpack.c.bf16 %v2067_v11, %v2066_v41  ;;  %2902 = vtanh.f32 %v1882_v42  ;;  %v2895_v36 = vpop.eup %2894  ;;  %v1756_v61 = vmul.f32 %v1692_v46, %v4250_v62  ;;  %v4276_v43 = vadd.f32 %v3987_v12, %v3764_v4 }
 0x331   : > { %v1817_v1 = vadd.f32 %v1753_v33, %v4240_v50  ;;  %v2068_v21 = vmul.f32 %v2004_v18, %v1556_v9  ;;  %v2006_v56 = vadd.f32 1.0, %v2895_v36  ;;  %v1819_v54 = vadd.f32 %v1755_v35, %v4244_v31 }
 0x332   : > { %2305 = vst [vmem:[%s3210_s25 + $0x88] sm:$0xff] %v2636_v38  ;;  %v1694_v25 = vmul.f32 %v1630_v0, %v4263_v32  ;;  %v1820_v15 = vadd.f32 %v1756_v61, %v4250_v62  ;;  %v1629_v20 = vmul.f32 0.044715, %v4276_v43  ;;  %v4285_v51 = vadd.f32 %v3989_v19, %v3766_v34  ;;  %v4564_v0 = vld [vmem:[#allocation5_spill] sm:$0xff] }
 0x333   : > { %v2897_v26 = vpop.eup %2896  ;;  %v1881_v48 = vmul.f32 0.7978846, %v1817_v1  ;;  %v2070_v12 = vmul.f32 %v2006_v56, %v1558_v37  ;;  %v1883_v10 = vmul.f32 0.7978846, %v1819_v54  ;;  %v1560_v41 = vmul.f32 0.5, %v4212_v7 }
 0x334   : > { %v2899_v6 = vpop.eup %2898  ;;  %v2005_v5 = vadd.f32 1.0, %v2897_v26  ;;  %v1758_v13 = vmul.f32 %v1694_v25, %v4263_v32  ;;  %v1884_v24 = vmul.f32 0.7978846, %v1820_v15  ;;  %v1693_v22 = vmul.f32 %v1629_v20, %v4276_v43 }
 0x335   : > { %v2007_v59 = vadd.f32 1.0, %v2899_v6  ;;  %2904 = vtanh.f32 %v1881_v48  ;;  %v1631_v8 = vmul.f32 0.044715, %v4285_v51  ;;  %v4295_v3 = vadd.f32 %v4014_v30, %v3760_v52 }
 0x336   : > { %v2069_v2 = vmul.f32 %v2005_v5, %v1557_v40  ;;  %2906 = vtanh.f32 %v1883_v10  ;;  %v1822_v53 = vadd.f32 %v1758_v13, %v4263_v32  ;;  %v1757_v9 = vmul.f32 %v1693_v22, %v4276_v43 }
 0x337   : > { %v2071_v19 = vmul.f32 %v2007_v59, %v1559_v23  ;;  %2908 = vtanh.f32 %v1884_v24  ;;  %v2901_v28 = vpop.eup %2900  ;;  %v4299_v7 = vadd.f32 %v4016_v16, %v3762_v47  ;;  %v1562_v27 = vmul.f32 0.5, %v4222_v49 }
 0x338   : > { %v2637_v63 = vpack.c.bf16 %v2069_v2, %v2068_v21  ;;  %v1886_v14 = vmul.f32 0.7978846, %v1822_v53  ;;  %v1821_v39 = vadd.f32 %v1757_v9, %v4276_v43  ;;  %v1695_v57 = vmul.f32 %v1631_v8, %v4285_v51 }
 0x339   : > { %v2638_v37 = vpack.c.bf16 %v2071_v19, %v2070_v12  ;;  %v1561_v42 = vmul.f32 0.5, %v4240_v50  ;;  %v1563_v60 = vmul.f32 0.5, %v4244_v31  ;;  %v1632_v30 = vmul.f32 0.044715, %v4295_v3 }
 0x33a   : > { %v2903_v11 = vpop.eup %2902  ;;  %2306 = vst [vmem:[%s3210_s25 + $0x90] sm:$0xff] %v2637_v63  ;;  %2910 = vtanh.f32 %v1886_v14  ;;  %v2008_v18 = vadd.f32 1.0, %v2901_v28  ;;  %v1885_v40 = vmul.f32 0.7978846, %v1821_v39  ;;  %v1759_v33 = vmul.f32 %v1695_v57, %v4285_v51  ;;  %v4565_v39 = vld [vmem:[#allocation6_spill] sm:$0xff] }
 0x33b   : > { %2307 = vst [vmem:[%s3210_s25 + $0x98] sm:$0xff] %v2638_v37  ;;  %v2010_v16 = vadd.f32 1.0, %v2903_v11  ;;  %v1696_v49 = vmul.f32 %v1632_v30, %v4295_v3  ;;  %v1634_v46 = vmul.f32 0.044715, %v4299_v7  ;;  %v4314_v38 = vadd.f32 %v4023_v29, %v3764_v4  ;;  %v4566_v11 = vld [vmem:[#allocation7_spill] sm:$0xff] }
 0x33c   : > { %v4318_v50 = vadd.f32 %v4025_v45, %v3766_v34  ;;  %v1564_v31 = vmul.f32 0.5, %v4250_v62  ;;  %2912 = vtanh.f32 %v1885_v40  ;;  %v1823_v35 = vadd.f32 %v1759_v33, %v4285_v51  ;;  %v4567_v40 = vld [vmem:[#allocation8_spill] sm:$0xff] }
 0x33d   : > { %v4324_v36 = vadd.f32 %v4564_v0, %v3760_v52  ;;  %v1566_v23 = vmul.f32 0.5, %v4263_v32  ;;  %v1760_v1 = vmul.f32 %v1696_v49, %v4295_v3  ;;  %v1698_v29 = vmul.f32 %v1634_v46, %v4299_v7 }
 0x33e   : > { %v1633_v61 = vmul.f32 0.044715, %v4314_v38  ;;  %v2072_v45 = vmul.f32 %v2008_v18, %v1560_v41  ;;  %v2074_v56 = vmul.f32 %v2010_v16, %v1562_v27  ;;  %v1887_v54 = vmul.f32 0.7978846, %v1823_v35 }
 0x33f   : > { %v2905_v21 = vpop.eup %2904  ;;  %v1635_v62 = vmul.f32 0.044715, %v4318_v50  ;;  %v1824_v48 = vadd.f32 %v1760_v1, %v4295_v3  ;;  %v1762_v15 = vmul.f32 %v1698_v29, %v4299_v7  ;;  %v1636_v5 = vmul.f32 0.044715, %v4324_v36 }
 0x340   : > { %v2907_v25 = vpop.eup %2906  ;;  %v2009_v26 = vadd.f32 1.0, %v2905_v21  ;;  %v1697_v32 = vmul.f32 %v1633_v61, %v4314_v38  ;;  %2914 = vtanh.f32 %v1887_v54  ;;  %v1565_v13 = vmul.f32 0.5, %v4276_v43 }
 0x341   : > { %v2909_v20 = vpop.eup %2908  ;;  %v2011_v6 = vadd.f32 1.0, %v2907_v25  ;;  %v1699_v12 = vmul.f32 %v1635_v62, %v4318_v50  ;;  %v1888_v59 = vmul.f32 0.7978846, %v1824_v48  ;;  %v1826_v24 = vadd.f32 %v1762_v15, %v4299_v7  ;;  %v4568_v62 = vld [vmem:[#allocation9_spill] sm:$0xff] }
 0x342   : > { %v2073_v10 = vmul.f32 %v2009_v26, %v1561_v42  ;;  %v1761_v2 = vmul.f32 %v1697_v32, %v4314_v38  ;;  %v1700_v53 = vmul.f32 %v1636_v5, %v4324_v36  ;;  %v2012_v8 = vadd.f32 1.0, %v2909_v20 }
 0x343   : > { %v2075_v22 = vmul.f32 %v2011_v6, %v1563_v60  ;;  %v1763_v41 = vmul.f32 %v1699_v12, %v4318_v50  ;;  %2916 = vtanh.f32 %v1888_v59  ;;  %v1890_v28 = vmul.f32 0.7978846, %v1826_v24 }
 0x344   : > { %v2911_v19 = vpop.eup %2910  ;;  %v2639_v9 = vpack.c.bf16 %v2073_v10, %v2072_v45  ;;  %v1825_v43 = vadd.f32 %v1761_v2, %v4314_v38  ;;  %v1764_v27 = vmul.f32 %v1700_v53, %v4324_v36  ;;  %v4347_v57 = vadd.f32 %v4565_v39, %v3762_v47 }
 0x345   : > { %v2640_v63 = vpack.c.bf16 %v2075_v22, %v2074_v56  ;;  %v2014_v14 = vadd.f32 1.0, %v2911_v19  ;;  %v1827_v37 = vadd.f32 %v1763_v41, %v4318_v50  ;;  %2918 = vtanh.f32 %v1890_v28 }
 0x346   : > { %2308 = vst [vmem:[%s3210_s25 + $0xa0] sm:$0xff] %v2639_v9  ;;  %v4351_v42 = vadd.f32 %v4566_v11, %v3764_v4  ;;  %v2913_v60 = vpop.eup %2912  ;;  %v1567_v30 = vmul.f32 0.5, %v4285_v51  ;;  %v1889_v18 = vmul.f32 0.7978846, %v1825_v43  ;;  %v4357_v33 = vadd.f32 %v4567_v40, %v3766_v34 }
 0x347   : > { %2309 = vst [vmem:[%s3210_s25 + $0xa8] sm:$0xff] %v2640_v63  ;;  %v1891_v16 = vmul.f32 0.7978846, %v1827_v37  ;;  %v2076_v49 = vmul.f32 %v2012_v8, %v1564_v31  ;;  %v2013_v46 = vadd.f32 1.0, %v2913_v60  ;;  %v1828_v35 = vadd.f32 %v1764_v27, %v4324_v36 }
 0x348   : > { %v1638_v0 = vmul.f32 0.044715, %v4347_v57  ;;  %v2078_v1 = vmul.f32 %v2014_v14, %v1566_v23  ;;  %v1568_v29 = vmul.f32 0.5, %v4295_v3  ;;  %2920 = vtanh.f32 %v1889_v18  ;;  %v4569_v3 = vld [vmem:[#allocation10_spill] sm:$0xff] }
 0x349   : > { %v1637_v61 = vmul.f32 0.044715, %v4351_v42  ;;  %v2077_v21 = vmul.f32 %v2013_v46, %v1565_v13  ;;  %2922 = vtanh.f32 %v1891_v16  ;;  %v1892_v51 = vmul.f32 0.7978846, %v1828_v35 }
 0x34a   : > { %v1702_v45 = vmul.f32 %v1638_v0, %v4347_v57  ;;  %v2915_v56 = vpop.eup %2914  ;;  %v1639_v54 = vmul.f32 0.044715, %v4357_v33  ;;  %v4368_v25 = vadd.f32 %v4568_v62, %v3760_v52  ;;  %v4372_v23 = vadd.f32 %v4569_v3, %v3762_v47 }
 0x34b   : > { %v1701_v31 = vmul.f32 %v1637_v61, %v4351_v42  ;;  %v2641_v26 = vpack.c.bf16 %v2077_v21, %v2076_v49  ;;  %v2015_v48 = vadd.f32 1.0, %v2915_v56  ;;  %2924 = vtanh.f32 %v1892_v51  ;;  %v4570_v49 = vld [vmem:[#allocation11_spill] sm:$0xff] }
 0x34c   : > { %v1766_v15 = vmul.f32 %v1702_v45, %v4347_v57  ;;  %v1570_v32 = vmul.f32 0.5, %v4299_v7  ;;  %v1703_v6 = vmul.f32 %v1639_v54, %v4357_v33  ;;  %v1640_v12 = vmul.f32 0.044715, %v4368_v25 }
 0x34d   : > { %v1765_v20 = vmul.f32 %v1701_v31, %v4351_v42  ;;  %v2917_v5 = vpop.eup %2916  ;;  %2310 = vst [vmem:[%s3210_s25 + $0xb0] sm:$0xff] %v2641_v26  ;;  %v2079_v10 = vmul.f32 %v2015_v48, %v1567_v30  ;;  %v1569_v13 = vmul.f32 0.5, %v4314_v38  ;;  %v1642_v24 = vmul.f32 0.044715, %v4372_v23 }
 0x34e   : > { %v1830_v59 = vadd.f32 %v1766_v15, %v4347_v57  ;;  %v2016_v22 = vadd.f32 1.0, %v2917_v5  ;;  %v1767_v7 = vmul.f32 %v1703_v6, %v4357_v33  ;;  %v1704_v41 = vmul.f32 %v1640_v12, %v4368_v25 }
 0x34f   : > { %v1829_v2 = vadd.f32 %v1765_v20, %v4351_v42  ;;  %v2919_v53 = vpop.eup %2918  ;;  %v2642_v19 = vpack.c.bf16 %v2079_v10, %v2078_v1  ;;  %v1706_v8 = vmul.f32 %v1642_v24, %v4372_v23  ;;  %v4389_v38 = vadd.f32 %v4072_v17, %v3764_v4  ;;  %v4571_v20 = vld [vmem:[#allocation12_spill] sm:$0xff] }
 0x350   : > { %v1894_v9 = vmul.f32 0.7978846, %v1830_v59  ;;  %v2018_v28 = vadd.f32 1.0, %v2919_v53  ;;  %v1571_v63 = vmul.f32 0.5, %v4318_v50  ;;  %v1831_v43 = vadd.f32 %v1767_v7, %v4357_v33 }
 0x351   : > { %v1893_v14 = vmul.f32 0.7978846, %v1829_v2  ;;  %2311 = vst [vmem:[%s3210_s25 + $0xb8] sm:$0xff] %v2642_v19  ;;  %v2080_v37 = vmul.f32 %v2016_v22, %v1568_v29  ;;  %v1768_v27 = vmul.f32 %v1704_v41, %v4368_v25  ;;  %v1770_v39 = vmul.f32 %v1706_v8, %v4372_v23 }
 0x352   : > { %2926 = vtanh.f32 %v1894_v9  ;;  %v2921_v11 = vpop.eup %2920  ;;  %v2082_v60 = vmul.f32 %v2018_v28, %v1570_v32  ;;  %v1895_v30 = vmul.f32 0.7978846, %v1831_v43  ;;  %v1641_v17 = vmul.f32 0.044715, %v4389_v38 }
 0x353   : > { %2928 = vtanh.f32 %v1893_v14  ;;  %v2923_v18 = vpop.eup %2922  ;;  %v2017_v16 = vadd.f32 1.0, %v2921_v11  ;;  %v1832_v50 = vadd.f32 %v1768_v27, %v4368_v25  ;;  %v1834_v40 = vadd.f32 %v1770_v39, %v4372_v23 }
 0x354   : > { %v4401_v46 = vadd.f32 %v4570_v49, %v3766_v34  ;;  %v2019_v35 = vadd.f32 1.0, %v2923_v18  ;;  %2930 = vtanh.f32 %v1895_v30  ;;  %v1705_v0 = vmul.f32 %v1641_v17, %v4389_v38 }
 0x355   : > { %v4406_v1 = vadd.f32 %v4077_v55, %v3760_v52  ;;  %v2925_v29 = vpop.eup %2924  ;;  %v2081_v61 = vmul.f32 %v2017_v16, %v1569_v13  ;;  %v1896_v21 = vmul.f32 0.7978846, %v1832_v50  ;;  %v1898_v54 = vmul.f32 0.7978846, %v1834_v40 }
 0x356   : > { %v2083_v51 = vmul.f32 %v2019_v35, %v1571_v63  ;;  %v1769_v45 = vmul.f32 %v1705_v0, %v4389_v38  ;;  %v1643_v56 = vmul.f32 0.044715, %v4401_v46  ;;  %v1572_v26 = vmul.f32 0.5, %v4324_v36 }
 0x357   : > { %v2643_v31 = vpack.c.bf16 %v2081_v61, %v2080_v37  ;;  %2932 = vtanh.f32 %v1896_v21  ;;  %v1644_v62 = vmul.f32 0.044715, %v4406_v1  ;;  %v2020_v48 = vadd.f32 1.0, %v2925_v29 }
 0x358   : > { %v2644_v3 = vpack.c.bf16 %v2083_v51, %v2082_v60  ;;  %v1833_v52 = vadd.f32 %v1769_v45, %v4389_v38  ;;  %v1707_v55 = vmul.f32 %v1643_v56, %v4401_v46  ;;  %v4418_v32 = vadd.f32 %v4080_v58, %v3762_v47 }
 0x359   : > { %2312 = vst [vmem:[%s3210_s25 + $0xc0] sm:$0xff] %v2643_v31  ;;  %v1708_v15 = vmul.f32 %v1644_v62, %v4406_v1  ;;  %v4422_v6 = vadd.f32 %v4571_v20, %v3764_v4  ;;  %v1574_v12 = vmul.f32 0.5, %v4347_v57  ;;  %v1573_v36 = vmul.f32 0.5, %v4351_v42 }
 0x35a   : > { %2313 = vst [vmem:[%s3210_s25 + $0xc8] sm:$0xff] %v2644_v3  ;;  %v1897_v5 = vmul.f32 0.7978846, %v1833_v52  ;;  %v4429_v10 = vadd.f32 %v4086_v44, %v3766_v34  ;;  %2934 = vtanh.f32 %v1898_v54  ;;  %v1771_v59 = vmul.f32 %v1707_v55, %v4401_v46 }
 0x35b   : > { %v1772_v47 = vmul.f32 %v1708_v15, %v4406_v1  ;;  %v1646_v58 = vmul.f32 0.044715, %v4418_v32  ;;  %v2084_v24 = vmul.f32 %v2020_v48, %v1572_v26  ;;  %v1645_v57 = vmul.f32 0.044715, %v4422_v6 }
 0x35c   : > { %v2927_v13 = vpop.eup %2926  ;;  %2936 = vtanh.f32 %v1897_v5  ;;  %v1835_v2 = vadd.f32 %v1771_v59, %v4401_v46  ;;  %v1575_v53 = vmul.f32 0.5, %v4357_v33  ;;  %v1647_v9 = vmul.f32 0.044715, %v4429_v10 }
 0x35d   : > { %v2929_v4 = vpop.eup %2928  ;;  %v2022_v22 = vadd.f32 1.0, %v2927_v13  ;;  %v1836_v34 = vadd.f32 %v1772_v47, %v4406_v1  ;;  %v1710_v44 = vmul.f32 %v1646_v58, %v4418_v32  ;;  %v1709_v19 = vmul.f32 %v1645_v57, %v4422_v6 }
 0x35e   : > { %v2021_v42 = vadd.f32 1.0, %v2929_v4  ;;  %v2931_v7 = vpop.eup %2930  ;;  %v1899_v63 = vmul.f32 0.7978846, %v1835_v2  ;;  %v1711_v27 = vmul.f32 %v1647_v9, %v4429_v10  ;;  %v1576_v35 = vmul.f32 0.5, %v4368_v25  ;;  %v2351_v2 = vld [vmem:[%s3210_s25 + $0x18] sm:$0xff] (%p3053_p6)  ;;  %v2365_v9 = vld [vmem:[%s3210_s25 + $0x50] sm:$0xff] (%p3053_p6) }
 0x35f   : > { %v2086_v41 = vmul.f32 %v2022_v22, %v1574_v12  ;;  %v2023_v28 = vadd.f32 1.0, %v2931_v7  ;;  %v1900_v14 = vmul.f32 0.7978846, %v1836_v34  ;;  %v1774_v43 = vmul.f32 %v1710_v44, %v4418_v32  ;;  %v2353_v34 = vld [vmem:[%s3210_s25 + $0x20] sm:$0xff] (%p3053_p6)  ;;  %v2355_v44 = vld [vmem:[%s3210_s25 + $0x28] sm:$0xff] (%p3053_p6)  ;;  %2352 = vst [vmem:[%s4471_s13 + $0x28] sm:$0xff] (%p3053_p6), %v2351_v2 }
 0x360   : > { %v2085_v8 = vmul.f32 %v2021_v42, %v1573_v36  ;;  %v1773_v37 = vmul.f32 %v1709_v19, %v4422_v6  ;;  %2938 = vtanh.f32 %v1899_v63  ;;  %v1775_v16 = vmul.f32 %v1711_v27, %v4429_v10  ;;  %2354 = vst [vmem:[%s4471_s13 + $0x40] sm:$0xff] (%p3053_p6), %v2353_v34  ;;  %2356 = vst [vmem:[%s4471_s13 + $0x48] sm:$0xff] (%p3053_p6), %v2355_v44  ;;  %v2357_v7 = vld [vmem:[%s3210_s25 + $0x30] sm:$0xff] (%p3053_p6)  ;;  %v2363_v19 = vld [vmem:[%s3210_s25 + $0x48] sm:$0xff] (%p3053_p6) }
 0x361   : > { %v2933_v39 = vpop.eup %2932  ;;  %v2087_v60 = vmul.f32 %v2023_v28, %v1575_v53  ;;  %2940 = vtanh.f32 %v1900_v14  ;;  %v1838_v33 = vadd.f32 %v1774_v43, %v4418_v32  ;;  %v1577_v61 = vmul.f32 0.5, %v4389_v38  ;;  %v2361_v53 = vld [vmem:[%s3210_s25 + $0x40] sm:$0xff] (%p3053_p6)  ;;  %2358 = vst [vmem:[%s4471_s13 + $0x60] sm:$0xff] (%p3053_p6), %v2357_v7  ;;  %2364 = vst [vmem:[%s4471_s13 + $0x88] sm:$0xff] (%p3053_p6), %v2363_v19  ;;  %v2371_v63 = vld [vmem:[%s3210_s25 + $0x68] sm:$0xff] (%p3053_p6) }
 0x362   : > { %v2645_v11 = vpack.c.bf16 %v2085_v8, %v2084_v24  ;;  %v1837_v30 = vadd.f32 %v1773_v37, %v4422_v6  ;;  %v2024_v18 = vadd.f32 1.0, %v2933_v39  ;;  %v1839_v0 = vadd.f32 %v1775_v16, %v4429_v10  ;;  %2362 = vst [vmem:[%s4471_s13 + $0x80] sm:$0xff] (%p3053_p6), %v2361_v53  ;;  %v2367_v8 = vld [vmem:[%s3210_s25 + $0x58] sm:$0xff] (%p3053_p6)  ;;  %2366 = vst [vmem:[%s4471_s13 + $0xa0] sm:$0xff] (%p3053_p6), %v2365_v9  ;;  %v2369_v28 = vld [vmem:[%s3210_s25 + $0x60] sm:$0xff] (%p3053_p6) }
 0x363   : > { %v2646_v17 = vpack.c.bf16 %v2087_v60, %v2086_v41  ;;  %v1902_v50 = vmul.f32 0.7978846, %v1838_v33  ;;  %v1578_v54 = vmul.f32 0.5, %v4372_v23  ;;  %v1579_v48 = vmul.f32 0.5, %v4401_v46  ;;  %v2359_v41 = vld [vmem:[%s3210_s25 + $0x38] sm:$0xff] (%p3053_p6)  ;;  %2368 = vst [vmem:[%s4471_s13 + $0xa8] sm:$0xff] (%p3053_p6), %v2367_v8 }
 0x364   : > { %2314 = vst [vmem:[%s3210_s25 + $0xd0] sm:$0xff] %v2645_v11  ;;  %v1901_v40 = vmul.f32 0.7978846, %v1837_v30  ;;  %v2935_v49 = vpop.eup %2934  ;;  %v2088_v21 = vmul.f32 %v2024_v18, %v1576_v35  ;;  %v1903_v45 = vmul.f32 0.7978846, %v1839_v0  ;;  %v1580_v12 = vmul.f32 0.5, %v4406_v1 }
 0x365   : > { %2315 = vst [vmem:[%s3210_s25 + $0xd8] sm:$0xff] %v2646_v17  ;;  %2942 = vtanh.f32 %v1902_v50  ;;  %v2026_v56 = vadd.f32 1.0, %v2935_v49  ;;  %v1582_v13 = vmul.f32 0.5, %v4418_v32  ;;  %v1581_v59 = vmul.f32 0.5, %v4422_v6  ;;  %v2345_v32 = vld [vmem:[%s3210_s25] sm:$0xff] (%p3053_p6)  ;;  %v2347_v6 = vld [vmem:[%s3210_s25 + $0x8] sm:$0xff] (%p3053_p6) }
 0x366   : > { %v2937_v29 = vpop.eup %2936  ;;  %2944 = vtanh.f32 %v1901_v40  ;;  %v1583_v24 = vmul.f32 0.5, %v4429_v10  ;;  %v2349_v10 = vld [vmem:[%s3210_s25 + $0x10] sm:$0xff] (%p3053_p6)  ;;  %2346 = vst [vmem:[%s4471_s13] sm:$0xff] (%p3053_p6), %v2345_v32  ;;  %2348 = vst [vmem:[%s4471_s13 + $0x8] sm:$0xff] (%p3053_p6), %v2347_v6  ;;  %v2375_v43 = vld [vmem:[%s3210_s25 + $0x78] sm:$0xff] (%p3053_p6) }
 0x367   : > { %v2025_v51 = vadd.f32 1.0, %v2937_v29  ;;  %2946 = vtanh.f32 %v1903_v45  ;;  %v2090_v26 = vmul.f32 %v2026_v56, %v1578_v54  ;;  %2350 = vst [vmem:[%s4471_s13 + $0x20] sm:$0xff] (%p3053_p6), %v2349_v10  ;;  %2360 = vst [vmem:[%s4471_s13 + $0x68] sm:$0xff] (%p3053_p6), %v2359_v41  ;;  %v2373_v14 = vld [vmem:[%s3210_s25 + $0x70] sm:$0xff] (%p3053_p6)  ;;  %v2377_v37 = vld [vmem:[%s3210_s25 + $0x80] sm:$0xff] (%p3053_p6) }
 0x368   : > { %2370 = vst [vmem:[%s4471_s13 + $0xc0] sm:$0xff] (%p3053_p6), %v2369_v28  ;;  %2372 = vst [vmem:[%s4471_s13 + $0xc8] sm:$0xff] (%p3053_p6), %v2371_v63  ;;  %v2379_v27 = vld [vmem:[%s3210_s25 + $0x88] sm:$0xff] (%p3053_p6)  ;;  %v2381_v39 = vld [vmem:[%s3210_s25 + $0x90] sm:$0xff] (%p3053_p6) }
 0x369   : > { %v2089_v31 = vmul.f32 %v2025_v51, %v1577_v61  ;;  %2374 = vst [vmem:[%s4471_s13 + $0xe0] sm:$0xff] (%p3053_p6), %v2373_v14  ;;  %2376 = vst [vmem:[%s4471_s13 + $0xe8] sm:$0xff] (%p3053_p6), %v2375_v43  ;;  %v2383_v11 = vld [vmem:[%s3210_s25 + $0x98] sm:$0xff] (%p3053_p6)  ;;  %v2385_v60 = vld [vmem:[%s3210_s25 + $0xa0] sm:$0xff] (%p3053_p6) }
 0x36a   : > { %v2939_v62 = vpop.eup %2938  ;;  %2378 = vst [vmem:[%s4471_s13 + $0x100] sm:$0xff] (%p3053_p6), %v2377_v37  ;;  %2380 = vst [vmem:[%s4471_s13 + $0x108] sm:$0xff] (%p3053_p6), %v2379_v27  ;;  %v2387_v33 = vld [vmem:[%s3210_s25 + $0xa8] sm:$0xff] (%p3053_p6)  ;;  %v2389_v30 = vld [vmem:[%s3210_s25 + $0xb0] sm:$0xff] (%p3053_p6) }
 0x36b   : > { %v2647_v3 = vpack.c.bf16 %v2089_v31, %v2088_v21  ;;  %v2941_v25 = vpop.eup %2940  ;;  %v2027_v52 = vadd.f32 1.0, %v2939_v62  ;;  %2382 = vst [vmem:[%s4471_s13 + $0x120] sm:$0xff] (%p3053_p6), %v2381_v39  ;;  %2384 = vst [vmem:[%s4471_s13 + $0x128] sm:$0xff] (%p3053_p6), %v2383_v11  ;;  %v2391_v17 = vld [vmem:[%s3210_s25 + $0xb8] sm:$0xff] (%p3053_p6)  ;;  %v2393_v18 = vld [vmem:[%s3210_s25 + $0xc0] sm:$0xff] (%p3053_p6) }
 0x36c   : > { %v2028_v55 = vadd.f32 1.0, %v2941_v25  ;;  %2386 = vst [vmem:[%s4471_s13 + $0x140] sm:$0xff] (%p3053_p6), %v2385_v60  ;;  %2388 = vst [vmem:[%s4471_s13 + $0x148] sm:$0xff] (%p3053_p6), %v2387_v33  ;;  %v2395_v16 = vld [vmem:[%s3210_s25 + $0xc8] sm:$0xff] (%p3053_p6)  ;;  %v2397_v50 = vld [vmem:[%s3210_s25 + $0xd0] sm:$0xff] (%p3053_p6) }
 0x36d   : > { %2316 = vst [vmem:[%s3210_s25 + $0xe0] sm:$0xff] %v2647_v3  ;;  %v2091_v38 = vmul.f32 %v2027_v52, %v1579_v48  ;;  %2390 = vst [vmem:[%s4471_s13 + $0x160] sm:$0xff] (%p3053_p6), %v2389_v30  ;;  %v2399_v40 = vld [vmem:[%s3210_s25 + $0xd8] sm:$0xff] (%p3053_p6) }
 0x36e   : > { %v2092_v23 = vmul.f32 %v2028_v55, %v1580_v12  ;;  %2392 = vst [vmem:[%s4471_s13 + $0x168] sm:$0xff] (%p3053_p6), %v2391_v17  ;;  %2394 = vst [vmem:[%s4471_s13 + $0x180] sm:$0xff] (%p3053_p6), %v2393_v18 }
 0x36f   : > { %v2943_v15 = vpop.eup %2942  ;;  %v2648_v20 = vpack.c.bf16 %v2091_v38, %v2090_v26  ;;  %2396 = vst [vmem:[%s4471_s13 + $0x188] sm:$0xff] (%p3053_p6), %v2395_v16  ;;  %2398 = vst [vmem:[%s4471_s13 + $0x1a0] sm:$0xff] (%p3053_p6), %v2397_v50 }
 0x370   : > { %v2945_v36 = vpop.eup %2944  ;;  %v2030_v5 = vadd.f32 1.0, %v2943_v15  ;;  %2400 = vst [vmem:[%s4471_s13 + $0x1a8] sm:$0xff] (%p3053_p6), %v2399_v40 }
 0x371   : > { %2317 = vst [vmem:[%s3210_s25 + $0xe8] sm:$0xff] %v2648_v20  ;;  %v2029_v47 = vadd.f32 1.0, %v2945_v36  ;;  %v2947_v46 = vpop.eup %2946 }
 0x372   : > { %v2094_v58 = vmul.f32 %v2030_v5, %v1582_v13  ;;  %v2031_v22 = vadd.f32 1.0, %v2947_v46  ;;  %2326 = sbr.rel (!%p3053_p6) target bundleno = 897 (0x381), region = 71 }
 0x373   : > { %v2093_v4 = vmul.f32 %v2029_v47, %v1581_v59 }
 0x374   : > { %v2095_v42 = vmul.f32 %v2031_v22, %v1583_v24  ;;  %v2401_v49 = vld [vmem:[%s3210_s25 + $0xe0] sm:$0xff] (%p3053_p6) }
 0x375   : > { %v2649_v57 = vpack.c.bf16 %v2093_v4, %v2092_v23  ;;  %2402 = vst [vmem:[%s4471_s13 + $0x1c0] sm:$0xff] (%p3053_p6), %v2401_v49 }
 0x376   : > { %v2650_v1 = vpack.c.bf16 %v2095_v42, %v2094_v58 }
 0x377   : > { %2318 = vst [vmem:[%s3210_s25 + $0xf0] sm:$0xff] %v2649_v57 }
 0x378   : > { %2319 = vst [vmem:[%s3210_s25 + $0xf8] sm:$0xff] %v2650_v1  ;;  %v2403_v35 = vld [vmem:[%s3210_s25 + $0xe8] sm:$0xff] (%p3053_p6) }
 0x379   : > { %2404 = vst [vmem:[%s4471_s13 + $0x1c8] sm:$0xff] %v2403_v35 }
 0x37e   : > { %v2405_v0 = vld [vmem:[%s3210_s25 + $0xf0] sm:$0xff] }
 0x37f   : > { %v2407_v29 = vld [vmem:[%s3210_s25 + $0xf8] sm:$0xff]  ;;  %2406 = vst [vmem:[%s4471_s13 + $0x1e0] sm:$0xff] %v2405_v0 }
 0x380   : > { %2408 = vst [vmem:[%s4471_s13 + $0x1e8] sm:$0xff] %v2407_v29 }
 0x381 PF: > { %s15_s22 = sadd.s32 1, %s2986_s22   ;;  %s4572_s18 = smov %s2974_s19 }
 0x382   : > { %p12_p13 = scmp.ge.s32.totalorder %s15_s22, 4   ;;  %s4573_s19 = smov %s3058_s28 }
 0x383   : > { %s4574_s20 = smov %s2982_s21  ;;  %s4575_s21 = smov %s4577_s23 }
 0x384   :  { %14 = sbr.rel (!%p12_p13) target bundleno = 3 (0x3), region = 131 }

// kernel: gpt_forward.11
= control target key start
LH: loop header
LB: loop body
LE: loop exit
PB: predicated region body
PF: predicated region fallthrough
CT: control target
= control target key end

     0   :  { %s3325_s0 = inlined_call_operand.vmem [shape: bf16[128,256], index: 0, kind: input, shape index: {}]   ;;  %s3326_s3 = inlined_call_operand.vmem [shape: bf16[256,768], index: 3, kind: input, shape index: {}]   ;;  %s3327_s1 = inlined_call_operand.vmem [shape: f32[1,256], index: 1, kind: input, shape index: {}]   ;;  %s3328_s2 = inlined_call_operand.vmem [shape: f32[1,256], index: 2, kind: input, shape index: {}]   ;;  %s3329_s4 = inlined_call_operand.vmem [shape: bf16[1,768], index: 4, kind: input, shape index: {}]   ;;  %s3330_s5 = inlined_call_operand.vmem [shape: bf16[128,768], index: 5, kind: output, shape index: {}]  }
   0x1   :  { %v2212_v0 = vld [vmem:[%s3325_s0] sm:$0xff]  ;;  %v2217_v1 = vld [vmem:[%s3325_s0 + $0x10] sm:$0xff]  ;;  %v2222_v2 = vld [vmem:[%s3325_s0 + $0x8] sm:$0xff] }
   0x2   :  { %v40_v3 = vunpack.c.l.bf16 %v2212_v0  ;;  %v41_v4 = vunpack.c.h.bf16 %v2212_v0  ;;  %v44_v5 = vunpack.c.l.bf16 %v2217_v1  ;;  %v45_v6 = vunpack.c.h.bf16 %v2217_v1  ;;  %v2231_v7 = vld [vmem:[%s3325_s0 + $0x18] sm:$0xff]  ;;  %v2236_v8 = vld [vmem:[%s3325_s0 + $0x20] sm:$0xff]  ;;  %v2245_v13 = vld [vmem:[%s3325_s0 + $0x28] sm:$0xff] }
   0x3   :  { %v42_v9 = vunpack.c.l.bf16 %v2222_v2  ;;  %v43_v10 = vunpack.c.h.bf16 %v2222_v2  ;;  %v46_v11 = vunpack.c.l.bf16 %v2231_v7  ;;  %v47_v12 = vunpack.c.h.bf16 %v2231_v7  ;;  %v2270_v22 = vld [vmem:[%s3325_s0 + $0x30] sm:$0xff]  ;;  %v2275_v23 = vld [vmem:[%s3325_s0 + $0x38] sm:$0xff]  ;;  %v2292_v30 = vld [vmem:[%s3325_s0 + $0x40] sm:$0xff] }
   0x4   :  { %v72_v14 = vadd.f32 %v41_v4, %v40_v3  ;;  %v78_v15 = vadd.f32 %v45_v6, %v44_v5  ;;  %v48_v16 = vunpack.c.l.bf16 %v2236_v8  ;;  %v49_v17 = vunpack.c.h.bf16 %v2236_v8  ;;  %v2297_v31 = vld [vmem:[%s3325_s0 + $0x48] sm:$0xff]  ;;  %v2314_v38 = vld [vmem:[%s3325_s0 + $0x50] sm:$0xff]  ;;  %v2319_v39 = vld [vmem:[%s3325_s0 + $0x58] sm:$0xff] }
   0x5   :  { %v75_v18 = vadd.f32 %v43_v10, %v42_v9  ;;  %v81_v19 = vadd.f32 %v47_v12, %v46_v11  ;;  %v50_v20 = vunpack.c.l.bf16 %v2245_v13  ;;  %v51_v21 = vunpack.c.h.bf16 %v2245_v13  ;;  %v2336_v46 = vld [vmem:[%s3325_s0 + $0x60] sm:$0xff]  ;;  %v2341_v47 = vld [vmem:[%s3325_s0 + $0x68] sm:$0xff]  ;;  %v2358_v54 = vld [vmem:[%s3325_s0 + $0x70] sm:$0xff] }
   0x6   :  { %73 = vadd.xlane.f32.xlu0 %v72_v14  ;;  %79 = vadd.xlane.f32.xlu1 %v78_v15  ;;  %v84_v24 = vadd.f32 %v49_v17, %v48_v16  ;;  %v52_v25 = vunpack.c.l.bf16 %v2270_v22  ;;  %v53_v27 = vunpack.c.h.bf16 %v2270_v22  ;;  %v54_v28 = vunpack.c.l.bf16 %v2275_v23  ;;  %v2363_v55 = vld [vmem:[%s3325_s0 + $0x78] sm:$0xff]  ;;  %v2005_v15 = vld [vmem:[%s3326_s3 + $0xc] ss:$24 sps:$4 sm:$0xff]  }
   0x7   :  { %v87_v26 = vadd.f32 %v51_v21, %v50_v20  ;;  %v55_v29 = vunpack.c.h.bf16 %v2275_v23  ;;  %v56_v32 = vunpack.c.l.bf16 %v2292_v30  ;;  %v57_v33 = vunpack.c.h.bf16 %v2292_v30  ;;  %v2003_v14 = vld [vmem:[%s3326_s3 + $0x4] ss:$24 sps:$4 sm:$0xff]   ;;  %1213 = vmatprep.subr.bf16.mxu1 %v2005_v15 }
   0x8   :  { %v90_v34 = vadd.f32 %v53_v27, %v52_v25  ;;  %v58_v36 = vunpack.c.l.bf16 %v2297_v31  ;;  %v59_v37 = vunpack.c.h.bf16 %v2297_v31  ;;  %v60_v41 = vunpack.c.l.bf16 %v2314_v38  ;;  %1100 = vmatprep.subr.bf16.mxu0 %v2003_v14  ;;  %v2027_v14 = vld [vmem:[%s3326_s3 + $0xc4] ss:$24 sps:$4 sm:$0xff]  }
   0x9   :  { %v93_v35 = vadd.f32 %v55_v29, %v54_v28  ;;  %v96_v40 = vadd.f32 %v57_v33, %v56_v32  ;;  %v61_v43 = vunpack.c.h.bf16 %v2314_v38  ;;  %v62_v44 = vunpack.c.l.bf16 %v2319_v39  ;;  %v2029_v15 = vld [vmem:[%s3326_s3 + $0xcc] ss:$24 sps:$4 sm:$0xff]  }
   0xa   :  { %76 = vadd.xlane.f32.xlu0 %v75_v18  ;;  %82 = vadd.xlane.f32.xlu1 %v81_v19  ;;  %v99_v42 = vadd.f32 %v59_v37, %v58_v36  ;;  %v63_v45 = vunpack.c.h.bf16 %v2319_v39  ;;  %v64_v48 = vunpack.c.l.bf16 %v2336_v46  ;;  %v65_v49 = vunpack.c.h.bf16 %v2336_v46  ;;  %v2007_v18 = vld [vmem:[%s3326_s3] ss:$24 sps:$4 sm:$0xff]  }
   0xb   :  { %v102_v50 = vadd.f32 %v61_v43, %v60_v41  ;;  %v66_v52 = vunpack.c.l.bf16 %v2341_v47  ;;  %v67_v53 = vunpack.c.h.bf16 %v2341_v47  ;;  %v68_v57 = vunpack.c.l.bf16 %v2358_v54  ;;  %v2008_v19 = vld [vmem:[%s3326_s3 + $0x8] ss:$24 sps:$4 sm:$0xff]   ;;  %1101 = vmatpush1.bf16.msra.mxu0 %v2007_v18 }
   0xc   :  { %v105_v51 = vadd.f32 %v63_v45, %v62_v44  ;;  %v108_v56 = vadd.f32 %v65_v49, %v64_v48  ;;  %v69_v59 = vunpack.c.h.bf16 %v2358_v54  ;;  %v70_v60 = vunpack.c.l.bf16 %v2363_v55  ;;  %1214 = vmatpush1.bf16.msra.mxu1 %v2008_v19  ;;  %v2031_v18 = vld [vmem:[%s3326_s3 + $0xc0] ss:$24 sps:$4 sm:$0xff]  }
   0xd   :  { %v111_v58 = vadd.f32 %v67_v53, %v66_v52  ;;  %v71_v61 = vunpack.c.h.bf16 %v2363_v55  ;;  %v2032_v19 = vld [vmem:[%s3326_s3 + $0xc8] ss:$24 sps:$4 sm:$0xff]   ;;  %v2074_v55 = vld [vmem:[%s3326_s3 + $0x218] ss:$24 sps:$4 sm:$0xff]  }
   0xe   :  { %85 = vadd.xlane.f32.xlu0 %v84_v24  ;;  %88 = vadd.xlane.f32.xlu1 %v87_v26  ;;  %v114_v62 = vadd.f32 %v69_v59, %v68_v57  ;;  %v2009_v24 = vld [vmem:[%s3326_s3 + $0x34] ss:$24 sps:$4 sm:$0xff]   ;;  %v2068_v46 = vld [vmem:[%s3326_s3 + $0x1e8] ss:$24 sps:$4 sm:$0xff]  }
   0xf   :  { %v117_v63 = vadd.f32 %v71_v61, %v70_v60  ;;  %v2011_v26 = vld [vmem:[%s3326_s3 + $0x3c] ss:$24 sps:$4 sm:$0xff]   ;;  %1102 = vmatprep.subr.bf16.mxu0 %v2009_v24 }
  0x10   :  { %1215 = vmatprep.subr.bf16.mxu1 %v2011_v26  ;;  %v2033_v24 = vld [vmem:[%s3326_s3 + $0xf4] ss:$24 sps:$4 sm:$0xff]  }
  0x11   :  { %v2035_v26 = vld [vmem:[%s3326_s3 + $0xfc] ss:$24 sps:$4 sm:$0xff]  }
  0x12   :  { %91 = vadd.xlane.f32.xlu0 %v90_v34  ;;  %94 = vadd.xlane.f32.xlu1 %v93_v35  ;;  %v2013_v34 = vld [vmem:[%s3326_s3 + $0x30] ss:$24 sps:$4 sm:$0xff]  }
  0x13   :  { %v2014_v35 = vld [vmem:[%s3326_s3 + $0x38] ss:$24 sps:$4 sm:$0xff]   ;;  %1103 = vmatpush1.bf16.msra.mxu0 %v2013_v34 }
  0x14   :  { %1216 = vmatpush1.bf16.msra.mxu1 %v2014_v35  ;;  %v2037_v34 = vld [vmem:[%s3326_s3 + $0xf0] ss:$24 sps:$4 sm:$0xff]  }
  0x15   :  { %v2038_v35 = vld [vmem:[%s3326_s3 + $0xf8] ss:$24 sps:$4 sm:$0xff]  }
  0x16   :  { %97 = vadd.xlane.f32.xlu0 %v96_v40  ;;  %100 = vadd.xlane.f32.xlu1 %v99_v42  ;;  %v2015_v40 = vld [vmem:[%s3326_s3 + $0x64] ss:$24 sps:$4 sm:$0xff]  }
  0x17   :  { %v2017_v42 = vld [vmem:[%s3326_s3 + $0x6c] ss:$24 sps:$4 sm:$0xff]   ;;  %1104 = vmatprep.subr.bf16.mxu0 %v2015_v40 }
  0x18   :  { %1217 = vmatprep.subr.bf16.mxu1 %v2017_v42  ;;  %v2039_v40 = vld [vmem:[%s3326_s3 + $0x124] ss:$24 sps:$4 sm:$0xff]  }
  0x19   :  { %v2041_v42 = vld [vmem:[%s3326_s3 + $0x12c] ss:$24 sps:$4 sm:$0xff]  }
  0x1a   :  { %103 = vadd.xlane.f32.xlu0 %v102_v50  ;;  %106 = vadd.xlane.f32.xlu1 %v105_v51  ;;  %v2019_v50 = vld [vmem:[%s3326_s3 + $0x60] ss:$24 sps:$4 sm:$0xff]  }
  0x1b   :  { %v2020_v51 = vld [vmem:[%s3326_s3 + $0x68] ss:$24 sps:$4 sm:$0xff]   ;;  %1105 = vmatpush1.bf16.msra.mxu0 %v2019_v50 }
  0x1c   :  { %1218 = vmatpush1.bf16.msra.mxu1 %v2020_v51  ;;  %v2043_v50 = vld [vmem:[%s3326_s3 + $0x120] ss:$24 sps:$4 sm:$0xff]  }
  0x1d   :  { %v2044_v51 = vld [vmem:[%s3326_s3 + $0x128] ss:$24 sps:$4 sm:$0xff]  }
  0x1e   :  { %109 = vadd.xlane.f32.xlu0 %v108_v56  ;;  %112 = vadd.xlane.f32.xlu1 %v111_v58  ;;  %v2021_v56 = vld [vmem:[%s3326_s3 + $0x94] ss:$24 sps:$4 sm:$0xff]  }
  0x1f   :  { %v2023_v58 = vld [vmem:[%s3326_s3 + $0x9c] ss:$24 sps:$4 sm:$0xff]   ;;  %1106 = vmatprep.subr.bf16.mxu0 %v2021_v56 }
  0x20   :  { %1219 = vmatprep.subr.bf16.mxu1 %v2023_v58  ;;  %v2045_v56 = vld [vmem:[%s3326_s3 + $0x154] ss:$24 sps:$4 sm:$0xff]  }
  0x21   :  { %v2047_v58 = vld [vmem:[%s3326_s3 + $0x15c] ss:$24 sps:$4 sm:$0xff]  }
  0x22   :  { %115 = vadd.xlane.f32.xlu0 %v114_v62  ;;  %118 = vadd.xlane.f32.xlu1 %v117_v63  ;;  %v2025_v62 = vld [vmem:[%s3326_s3 + $0x90] ss:$24 sps:$4 sm:$0xff]  }
  0x23   :  { %v2026_v63 = vld [vmem:[%s3326_s3 + $0x98] ss:$24 sps:$4 sm:$0xff]   ;;  %1107 = vmatpush1.bf16.msra.mxu0 %v2025_v62 }
  0x24   :  { %1220 = vmatpush1.bf16.msra.mxu1 %v2026_v63  ;;  %1108 = vmatprep.subr.bf16.mxu0 %v2027_v14  ;;  %v2049_v62 = vld [vmem:[%s3326_s3 + $0x150] ss:$24 sps:$4 sm:$0xff]   ;;  %v2051_v14 = vld [vmem:[%s3326_s3 + $0x184] ss:$24 sps:$4 sm:$0xff]  }
  0x25   :  { %1221 = vmatprep.subr.bf16.mxu1 %v2029_v15  ;;  %v2050_v63 = vld [vmem:[%s3326_s3 + $0x158] ss:$24 sps:$4 sm:$0xff]   ;;  %v2053_v15 = vld [vmem:[%s3326_s3 + $0x18c] ss:$24 sps:$4 sm:$0xff]  }
  0x27   :  { %1109 = vmatpush1.bf16.msra.mxu0 %v2031_v18  ;;  %v2055_v18 = vld [vmem:[%s3326_s3 + $0x180] ss:$24 sps:$4 sm:$0xff]  }
  0x28   :  { %1222 = vmatpush1.bf16.msra.mxu1 %v2032_v19  ;;  %1110 = vmatprep.subr.bf16.mxu0 %v2033_v24  ;;  %v2056_v19 = vld [vmem:[%s3326_s3 + $0x188] ss:$24 sps:$4 sm:$0xff]   ;;  %v2057_v24 = vld [vmem:[%s3326_s3 + $0x1b4] ss:$24 sps:$4 sm:$0xff]  }
  0x29   :  { %1223 = vmatprep.subr.bf16.mxu1 %v2035_v26  ;;  %v2059_v26 = vld [vmem:[%s3326_s3 + $0x1bc] ss:$24 sps:$4 sm:$0xff]  }
  0x2b   :  { %1111 = vmatpush1.bf16.msra.mxu0 %v2037_v34 }
  0x2c   :  { %1224 = vmatpush1.bf16.msra.mxu1 %v2038_v35  ;;  %1112 = vmatprep.subr.bf16.mxu0 %v2039_v40 }
  0x2d   :  { %1225 = vmatprep.subr.bf16.mxu1 %v2041_v42 }
  0x2f   :  { %1113 = vmatpush1.bf16.msra.mxu0 %v2043_v50 }
  0x30   :  { %1226 = vmatpush1.bf16.msra.mxu1 %v2044_v51  ;;  %1114 = vmatprep.subr.bf16.mxu0 %v2045_v56 }
  0x31   :  { %1227 = vmatprep.subr.bf16.mxu1 %v2047_v58 }
  0x33   :  { %1115 = vmatpush1.bf16.msra.mxu0 %v2049_v62 }
  0x34   :  { %1228 = vmatpush1.bf16.msra.mxu1 %v2050_v63  ;;  %1116 = vmatprep.subr.bf16.mxu0 %v2051_v14 }
  0x35   :  { %1229 = vmatprep.subr.bf16.mxu1 %v2053_v15 }
  0x37   :  { %1117 = vmatpush1.bf16.msra.mxu0 %v2055_v18 }
  0x38   :  { %1230 = vmatpush1.bf16.msra.mxu1 %v2056_v19  ;;  %1118 = vmatprep.subr.bf16.mxu0 %v2057_v24 }
  0x39   :  { %1231 = vmatprep.subr.bf16.mxu1 %v2059_v26 }
  0x93   :  { %v74_v34 = vpop.xlane.xlu0 %73  ;;  %v80_v35 = vpop.xlane.xlu1 %79 }
  0x94   :  { %v121_v40 = vmul.f32 0.00390625, %v74_v34  ;;  %v123_v42 = vmul.f32 0.00390625, %v80_v35 }
  0x96   :  { %v2501_v50 = vsub.f32 %v40_v3, %v121_v40  ;;  %v2505_v51 = vsub.f32 %v41_v4, %v121_v40  ;;  %v2509_v56 = vsub.f32 %v44_v5, %v123_v42  ;;  %v2513_v58 = vsub.f32 %v45_v6, %v123_v42 }
  0x97   :  { %v77_v62 = vpop.xlane.xlu0 %76  ;;  %v83_v63 = vpop.xlane.xlu1 %82 }
  0x98   :  { %v122_v14 = vmul.f32 0.00390625, %v77_v62  ;;  %v124_v15 = vmul.f32 0.00390625, %v83_v63  ;;  %v169_v3 = vmul.f32 %v2501_v50, %v2501_v50  ;;  %v170_v0 = vmul.f32 %v2505_v51, %v2505_v51 }
  0x99   :  { %v173_v4 = vmul.f32 %v2509_v56, %v2509_v56  ;;  %v174_v5 = vmul.f32 %v2513_v58, %v2513_v58 }
  0x9a   :  { %v2525_v1 = vsub.f32 %v42_v9, %v122_v14  ;;  %v2529_v6 = vsub.f32 %v43_v10, %v122_v14  ;;  %v2533_v18 = vsub.f32 %v46_v11, %v124_v15  ;;  %v2537_v19 = vsub.f32 %v47_v12, %v124_v15 }
  0x9b   :  { %v86_v24 = vpop.xlane.xlu0 %85  ;;  %v201_v26 = vadd.f32 %v170_v0, %v169_v3  ;;  %v89_v34 = vpop.xlane.xlu1 %88  ;;  %v207_v10 = vadd.f32 %v174_v5, %v173_v4 }
  0x9c   :  { %v125_v35 = vmul.f32 0.00390625, %v86_v24  ;;  %v126_v40 = vmul.f32 0.00390625, %v89_v34  ;;  %v171_v9 = vmul.f32 %v2525_v1, %v2525_v1  ;;  %v172_v2 = vmul.f32 %v2529_v6, %v2529_v6 }
  0x9d   :  { %202 = vadd.xlane.f32.xlu0 %v201_v26  ;;  %v175_v11 = vmul.f32 %v2533_v18, %v2533_v18  ;;  %v176_v7 = vmul.f32 %v2537_v19, %v2537_v19 }
  0x9e   :  { %v2549_v12 = vsub.f32 %v48_v16, %v125_v35  ;;  %v2553_v42 = vsub.f32 %v49_v17, %v125_v35  ;;  %v2557_v62 = vsub.f32 %v50_v20, %v126_v40  ;;  %v2561_v63 = vsub.f32 %v51_v21, %v126_v40 }
  0x9f   :  { %v92_v14 = vpop.xlane.xlu0 %91  ;;  %v204_v15 = vadd.f32 %v172_v2, %v171_v9  ;;  %v95_v3 = vpop.xlane.xlu1 %94  ;;  %v210_v17 = vadd.f32 %v176_v7, %v175_v11 }
  0xa0   :  { %v127_v0 = vmul.f32 0.00390625, %v92_v14  ;;  %v128_v4 = vmul.f32 0.00390625, %v95_v3  ;;  %v177_v16 = vmul.f32 %v2549_v12, %v2549_v12  ;;  %v178_v8 = vmul.f32 %v2553_v42, %v2553_v42 }
  0xa1   :  { %208 = vadd.xlane.f32.xlu0 %v207_v10  ;;  %205 = vadd.xlane.f32.xlu1 %v204_v15  ;;  %v179_v20 = vmul.f32 %v2557_v62, %v2557_v62  ;;  %v180_v13 = vmul.f32 %v2561_v63, %v2561_v63 }
  0xa2   :  { %v2573_v21 = vsub.f32 %v52_v25, %v127_v0  ;;  %v2577_v5 = vsub.f32 %v53_v27, %v127_v0  ;;  %v2581_v24 = vsub.f32 %v54_v28, %v128_v4  ;;  %v2585_v26 = vsub.f32 %v55_v29, %v128_v4 }
  0xa3   :  { %v98_v34 = vpop.xlane.xlu0 %97  ;;  %v213_v35 = vadd.f32 %v178_v8, %v177_v16  ;;  %v101_v40 = vpop.xlane.xlu1 %100  ;;  %v216_v27 = vadd.f32 %v180_v13, %v179_v20  ;;  %v2061_v20 = vld [vmem:[%s3326_s3 + $0x1b0] ss:$24 sps:$4 sm:$0xff]  }
  0xa4   :  { %v129_v9 = vmul.f32 0.00390625, %v98_v34  ;;  %v130_v2 = vmul.f32 0.00390625, %v101_v40  ;;  %v181_v25 = vmul.f32 %v2573_v21, %v2573_v21  ;;  %v182_v22 = vmul.f32 %v2577_v5, %v2577_v5  ;;  %1119 = vmatpush1.bf16.msra.mxu0 %v2061_v20  ;;  %v2069_v20 = vld [vmem:[%s3326_s3 + $0x214] ss:$24 sps:$4 sm:$0xff]  }
  0xa5   :  { %211 = vadd.xlane.f32.xlu1 %v210_v17  ;;  %214 = vadd.xlane.f32.xlu0 %v213_v35  ;;  %v183_v28 = vmul.f32 %v2581_v24, %v2581_v24  ;;  %v184_v23 = vmul.f32 %v2585_v26, %v2585_v26 }
  0xa6   :  { %v2597_v29 = vsub.f32 %v56_v32, %v129_v9  ;;  %v2601_v10 = vsub.f32 %v57_v33, %v129_v9  ;;  %v2605_v11 = vsub.f32 %v58_v36, %v130_v2  ;;  %v2609_v7 = vsub.f32 %v59_v37, %v130_v2  ;;  %v2063_v2 = vld [vmem:[%s3326_s3 + $0x1e4] ss:$24 sps:$4 sm:$0xff]  }
  0xa7   :  { %v104_v14 = vpop.xlane.xlu0 %103  ;;  %v219_v15 = vadd.f32 %v182_v22, %v181_v25  ;;  %v107_v3 = vpop.xlane.xlu1 %106  ;;  %v222_v33 = vadd.f32 %v184_v23, %v183_v28  ;;  %v2065_v25 = vld [vmem:[%s3326_s3 + $0x1ec] ss:$24 sps:$4 sm:$0xff]   ;;  %1120 = vmatprep.subr.bf16.mxu0 %v2063_v2  ;;  %v2085_v2 = vld [vmem:[%s3326_s3 + $0x270] ss:$24 sps:$4 sm:$0xff]  }
  0xa8   :  { %v131_v0 = vmul.f32 0.00390625, %v104_v14  ;;  %v132_v4 = vmul.f32 0.00390625, %v107_v3  ;;  %v185_v32 = vmul.f32 %v2597_v29, %v2597_v29  ;;  %v186_v30 = vmul.f32 %v2601_v10, %v2601_v10 }
  0xa9   :  { %217 = vadd.xlane.f32.xlu1 %v216_v27  ;;  %220 = vadd.xlane.f32.xlu0 %v219_v15  ;;  %v187_v36 = vmul.f32 %v2605_v11, %v2605_v11  ;;  %v188_v31 = vmul.f32 %v2609_v7, %v2609_v7 }
  0xaa   :  { %v2621_v37 = vsub.f32 %v60_v41, %v131_v0  ;;  %v2625_v16 = vsub.f32 %v61_v43, %v131_v0  ;;  %v2629_v8 = vsub.f32 %v62_v44, %v132_v4  ;;  %v2633_v17 = vsub.f32 %v63_v45, %v132_v4  ;;  %v2062_v41 = vld [vmem:[%s3326_s3 + $0x1b8] ss:$24 sps:$4 sm:$0xff]  }
  0xab   :  { %v110_v13 = vpop.xlane.xlu0 %109  ;;  %v225_v38 = vadd.f32 %v186_v30, %v185_v32  ;;  %v113_v43 = vpop.xlane.xlu1 %112  ;;  %1232 = vmatpush1.bf16.msra.mxu1 %v2062_v41  ;;  %v228_v45 = vadd.f32 %v188_v31, %v187_v36 }
  0xac   :  { %v133_v34 = vmul.f32 0.00390625, %v110_v13  ;;  %v134_v35 = vmul.f32 0.00390625, %v113_v43  ;;  %v189_v44 = vmul.f32 %v2621_v37, %v2621_v37  ;;  %v190_v39 = vmul.f32 %v2625_v16, %v2625_v16  ;;  %1233 = vmatprep.subr.bf16.mxu1 %v2065_v25  ;;  %v2086_v25 = vld [vmem:[%s3326_s3 + $0x278] ss:$24 sps:$4 sm:$0xff]  }
  0xad   :  { %223 = vadd.xlane.f32.xlu1 %v222_v33  ;;  %226 = vadd.xlane.f32.xlu0 %v225_v38  ;;  %v191_v40 = vmul.f32 %v2629_v8, %v2629_v8  ;;  %v192_v9 = vmul.f32 %v2633_v17, %v2633_v17 }
  0xae   :  { %v2657_v22 = vsub.f32 %v64_v48, %v133_v34  ;;  %v2661_v27 = vsub.f32 %v65_v49, %v133_v34  ;;  %v2665_v28 = vsub.f32 %v66_v52, %v134_v35  ;;  %v2669_v23 = vsub.f32 %v67_v53, %v134_v35  ;;  %v2067_v48 = vld [vmem:[%s3326_s3 + $0x1e0] ss:$24 sps:$4 sm:$0xff]   ;;  %v2075_v34 = vld [vmem:[%s3326_s3 + $0x244] ss:$24 sps:$4 sm:$0xff]  }
  0xaf   :  { %v116_v14 = vpop.xlane.xlu0 %115  ;;  %v231_v15 = vadd.f32 %v190_v39, %v189_v44  ;;  %v119_v3 = vpop.xlane.xlu1 %118  ;;  %v234_v0 = vadd.f32 %v192_v9, %v191_v40  ;;  %1121 = vmatpush1.bf16.msra.mxu0 %v2067_v48  ;;  %1234 = vmatpush1.bf16.msra.mxu1 %v2068_v46  ;;  %v2077_v35 = vld [vmem:[%s3326_s3 + $0x24c] ss:$24 sps:$4 sm:$0xff]   ;;  %v2079_v44 = vld [vmem:[%s3326_s3 + $0x240] ss:$24 sps:$4 sm:$0xff]   ;;  %v2083_v9 = vld [vmem:[%s3326_s3 + $0x27c] ss:$24 sps:$4 sm:$0xff]  }
  0xb0   :  { %v135_v49 = vmul.f32 0.00390625, %v116_v14  ;;  %v136_v52 = vmul.f32 0.00390625, %v119_v3  ;;  %v193_v47 = vmul.f32 %v2657_v22, %v2657_v22  ;;  %v194_v53 = vmul.f32 %v2661_v27, %v2661_v27  ;;  %1122 = vmatprep.subr.bf16.mxu0 %v2069_v20  ;;  %v2080_v39 = vld [vmem:[%s3326_s3 + $0x248] ss:$24 sps:$4 sm:$0xff]   ;;  %v2081_v40 = vld [vmem:[%s3326_s3 + $0x274] ss:$24 sps:$4 sm:$0xff]  }
  0xb1   :  { %229 = vadd.xlane.f32.xlu1 %v228_v45  ;;  %232 = vadd.xlane.f32.xlu0 %v231_v15  ;;  %v195_v4 = vmul.f32 %v2665_v28, %v2665_v28  ;;  %v196_v32 = vmul.f32 %v2669_v23, %v2669_v23  ;;  %v2087_v14 = vld [vmem:[%s3326_s3 + $0x2a4] ss:$24 sps:$4 sm:$0xff]   ;;  %v2091_v3 = vld [vmem:[%s3326_s3 + $0x2a0] ss:$24 sps:$4 sm:$0xff]   ;;  %v2093_v46 = vld [vmem:[%s3326_s3 + $0x2d4] ss:$24 sps:$4 sm:$0xff]  }
  0xb2   :  { %v2687_v30 = vsub.f32 %v68_v57, %v135_v49  ;;  %v2691_v33 = vsub.f32 %v69_v59, %v135_v49  ;;  %v2695_v36 = vsub.f32 %v70_v60, %v136_v52  ;;  %v2699_v31 = vsub.f32 %v71_v61, %v136_v52  ;;  %v2071_v57 = vld [vmem:[%s3326_s3 + $0x21c] ss:$24 sps:$4 sm:$0xff]   ;;  %v2073_v59 = vld [vmem:[%s3326_s3 + $0x210] ss:$24 sps:$4 sm:$0xff]   ;;  %v2089_v15 = vld [vmem:[%s3326_s3 + $0x2ac] ss:$24 sps:$4 sm:$0xff]  }
  0xb3   :  { %v237_v54 = vadd.f32 %v194_v53, %v193_v47  ;;  %v240_v41 = vadd.f32 %v196_v32, %v195_v4  ;;  %1235 = vmatprep.subr.bf16.mxu1 %v2071_v57  ;;  %1123 = vmatpush1.bf16.msra.mxu0 %v2073_v59  ;;  %v2092_v48 = vld [vmem:[%s3326_s3 + $0x2a8] ss:$24 sps:$4 sm:$0xff]   ;;  %v2095_v49 = vld [vmem:[%s3326_s3 + $0x2dc] ss:$24 sps:$4 sm:$0xff]   ;;  %v2098_v47 = vld [vmem:[%s3326_s3 + $0x2d8] ss:$24 sps:$4 sm:$0xff]   ;;  %v331_v32 = vlaneseq }
  0xb4   :  { %v197_v60 = vmul.f32 %v2687_v30, %v2687_v30  ;;  %v198_v61 = vmul.f32 %v2691_v33, %v2691_v33  ;;  %v199_v13 = vmul.f32 %v2695_v36, %v2695_v36  ;;  %v200_v38 = vmul.f32 %v2699_v31, %v2699_v31  ;;  %1236 = vmatpush1.bf16.msra.mxu1 %v2074_v55  ;;  %v2097_v52 = vld [vmem:[%s3326_s3 + $0x2d0] ss:$24 sps:$4 sm:$0xff]   ;;  %v2101_v53 = vld [vmem:[%s3326_s3 + $0x14] ss:$24 sps:$4 sm:$0xff]  }
  0xb5   :  { %235 = vadd.xlane.f32.xlu1 %v234_v0  ;;  %238 = vadd.xlane.f32.xlu0 %v237_v54 }
  0xb6   :  { %v243_v43 = vadd.f32 %v198_v61, %v197_v60  ;;  %1124 = vmatprep.subr.bf16.mxu0 %v2075_v34  ;;  %1237 = vmatprep.subr.bf16.mxu1 %v2077_v35  ;;  %v246_v45 = vadd.f32 %v200_v38, %v199_v13  ;;  %v2772_v60 = vshrl.u32 %v331_v32, 7 }
  0xb7   :  { %1125 = vmatpush1.bf16.msra.mxu0 %v2079_v44 }
  0xb8   :  { %1238 = vmatpush1.bf16.msra.mxu1 %v2080_v39  ;;  %1126 = vmatprep.subr.bf16.mxu0 %v2081_v40  ;;  %v337_v35 = vsub.s32 1, %v2772_v60  ;;  %v2776_v44 = vsub.s32 0, %v2772_v60  ;;  %v329_v40 = vld [vmem:[%s3327_s1] sm:$0x3] }
  0xb9   :  { %241 = vadd.xlane.f32.xlu1 %v240_v41  ;;  %244 = vadd.xlane.f32.xlu0 %v243_v43 }
  0xba   :  { %1239 = vmatprep.subr.bf16.mxu1 %v2083_v9 }
  0xbb   :  { %1127 = vmatpush1.bf16.msra.mxu0 %v2085_v2 }
  0xbc   :  { %1240 = vmatpush1.bf16.msra.mxu1 %v2086_v25  ;;  %1128 = vmatprep.subr.bf16.mxu0 %v2087_v14 }
  0xbd   :  { %247 = vadd.xlane.f32.xlu1 %v246_v45  ;;  %1241 = vmatprep.subr.bf16.mxu1 %v2089_v15  ;;  %v2781_v15 = vrot.slane %v329_v40, %v337_v35 }
  0xbf   :  { %1129 = vmatpush1.bf16.msra.mxu0 %v2091_v3 }
  0xc0   :  { %1242 = vmatpush1.bf16.msra.mxu1 %v2092_v48  ;;  %1130 = vmatprep.subr.bf16.mxu0 %v2093_v46  ;;  %v373_v46 = vld [vmem:[%s3328_s2] sm:$0x3] }
  0xc1   :  { %1243 = vmatprep.subr.bf16.mxu1 %v2095_v49  ;;  %v2787_v49 = vrot.slane %v329_v40, %v2776_v44 }
  0xc3   :  { %1131 = vmatpush1.bf16.msra.mxu0 %v2097_v52 }
  0xc4   :  { %1244 = vmatpush1.bf16.msra.mxu1 %v2098_v47  ;;  %1326 = vmatprep.subr.bf16.mxu0 %v2101_v53 }
  0xc5   :  { %1971 = vmatprep.subr.bf16.mxu1 %v2101_v53 }
 0x12a   :  { %v203_v0 = vpop.xlane.xlu0 %202 }
 0x12b   :  { %v249_v4 = vmul.f32 0.00390625, %v203_v0 }
 0x12d   :  { %v265_v20 = vadd.f32 1e-05, %v249_v4 }
 0x12e   :  { %v206_v57 = vpop.xlane.xlu1 %205  ;;  %v209_v54 = vpop.xlane.xlu0 %208 }
 0x12f   :  { %2147 = vrsqrt.f32 %v265_v20  ;;  %v250_v59 = vmul.f32 0.00390625, %v206_v57  ;;  %v251_v55 = vmul.f32 0.00390625, %v209_v54  ;;  %v2792_v57 = vrot.slane %v373_v46, %v337_v35 }
 0x131   :  { %v266_v61 = vadd.f32 1e-05, %v250_v59  ;;  %v267_v41 = vadd.f32 1e-05, %v251_v55 }
 0x132   :  { %v212_v13 = vpop.xlane.xlu1 %211  ;;  %v215_v38 = vpop.xlane.xlu0 %214 }
 0x133   :  { %2149 = vrsqrt.f32 %v266_v61  ;;  %v252_v43 = vmul.f32 0.00390625, %v212_v13  ;;  %v253_v34 = vmul.f32 0.00390625, %v215_v38  ;;  %v2796_v61 = vrot.slane %v373_v46, %v2776_v44 }
 0x134   :  { %2151 = vrsqrt.f32 %v267_v41 }
 0x135   :  { %v268_v39 = vadd.f32 1e-05, %v252_v43  ;;  %v269_v45 = vadd.f32 1e-05, %v253_v34 }
 0x136   :  { %v218_v9 = vpop.xlane.xlu1 %217  ;;  %v221_v2 = vpop.xlane.xlu0 %220 }
 0x137   :  { %2153 = vrsqrt.f32 %v268_v39  ;;  %v254_v25 = vmul.f32 0.00390625, %v218_v9  ;;  %v255_v14 = vmul.f32 0.00390625, %v221_v2 }
 0x138   :  { %2155 = vrsqrt.f32 %v269_v45 }
 0x139   :  { %v2148_v3 = vpop.eup %2147  ;;  %v270_v48 = vadd.f32 1e-05, %v254_v25  ;;  %v271_v4 = vadd.f32 1e-05, %v255_v14 }
 0x13a   :  { %v224_v52 = vpop.xlane.xlu1 %223  ;;  %v298_v47 = vmul.f32 %v2148_v3, %v2505_v51  ;;  %v297_v53 = vmul.f32 %v2148_v3, %v2501_v50  ;;  %v227_v32 = vpop.xlane.xlu0 %226 }
 0x13b   :  { %2157 = vrsqrt.f32 %v270_v48  ;;  %v256_v0 = vmul.f32 0.00390625, %v224_v52  ;;  %v257_v38 = vmul.f32 0.00390625, %v227_v32 }
 0x13c   :  { %v342_v20 = vmul.f32 %v2781_v15, %v298_v47  ;;  %v341_v55 = vmul.f32 %v2787_v49, %v297_v53  ;;  %v2099_v47 = vld [vmem:[%s3326_s3 + $0x10] ss:$24 sps:$4 sm:$0xff]  }
 0x13d   :  { %v2150_v54 = vpop.eup %2149  ;;  %v272_v59 = vadd.f32 1e-05, %v256_v0  ;;  %v273_v46 = vadd.f32 1e-05, %v257_v38  ;;  %v2102_v38 = vld [vmem:[%s3326_s3 + $0x40] ss:$24 sps:$4 sm:$0xff]  }
 0x13e   :  { %v2152_v41 = vpop.eup %2151  ;;  %v230_v13 = vpop.xlane.xlu1 %229  ;;  %v300_v51 = vmul.f32 %v2150_v54, %v2529_v6  ;;  %v299_v50 = vmul.f32 %v2150_v54, %v2525_v1  ;;  %v386_v39 = vadd.f32 %v2792_v57, %v342_v20  ;;  %v385_v2 = vadd.f32 %v2796_v61, %v341_v55 }
 0x13f   :  { %2159 = vrsqrt.f32 %v272_v59  ;;  %v258_v43 = vmul.f32 0.00390625, %v230_v13  ;;  %v302_v34 = vmul.f32 %v2152_v41, %v2513_v58  ;;  %v301_v1 = vmul.f32 %v2152_v41, %v2509_v56  ;;  %v233_v32 = vpop.xlane.xlu0 %232 }
 0x140   :  { %2161 = vrsqrt.f32 %v271_v4  ;;  %v344_v35 = vmul.f32 %v2781_v15, %v300_v51  ;;  %v343_v45 = vmul.f32 %v2787_v49, %v299_v50  ;;  %v259_v51 = vmul.f32 0.00390625, %v233_v32 }
 0x141   :  { %v2154_v40 = vpop.eup %2153  ;;  %v274_v9 = vadd.f32 1e-05, %v258_v43  ;;  %v346_v6 = vmul.f32 %v2781_v15, %v302_v34  ;;  %v345_v20 = vmul.f32 %v2787_v49, %v301_v1 }
 0x142   :  { %v388_v25 = vadd.f32 %v2792_v57, %v344_v35  ;;  %v387_v14 = vadd.f32 %v2796_v61, %v343_v45  ;;  %v304_v58 = vmul.f32 %v2154_v40, %v2537_v19  ;;  %v303_v3 = vmul.f32 %v2154_v40, %v2533_v18  ;;  %v2156_v48 = vpop.eup %2155  ;;  %v236_v52 = vpop.xlane.xlu1 %235  ;;  %v2104_v18 = vld [vmem:[%s3326_s3 + $0x44] ss:$24 sps:$4 sm:$0xff]  }
 0x143   :  { %2163 = vrsqrt.f32 %v274_v9  ;;  %v390_v19 = vadd.f32 %v2792_v57, %v346_v6  ;;  %v260_v59 = vmul.f32 0.00390625, %v236_v52  ;;  %v306_v41 = vmul.f32 %v2156_v48, %v2553_v42  ;;  %v2107_v42 = vld [vmem:[%s3326_s3 + $0x74] ss:$24 sps:$4 sm:$0xff]  }
 0x144   :  { %v2814_v53 = vpack.c.bf16 %v388_v25, %v386_v39  ;;  %v2816_v0 = vpack.c.bf16 %v387_v14, %v385_v2  ;;  %v348_v56 = vmul.f32 %v2781_v15, %v304_v58  ;;  %v347_v54 = vmul.f32 %v2787_v49, %v303_v3  ;;  %v239_v2 = vpop.xlane.xlu0 %238  ;;  %v2105_v58 = vld [vmem:[%s3326_s3 + $0x70] ss:$24 sps:$4 sm:$0xff]  }
 0x145   :  { %v2158_v4 = vpop.eup %2157  ;;  %2165 = vrsqrt.f32 %v273_v46  ;;  %v276_v45 = vadd.f32 1e-05, %v260_v59  ;;  %v389_v40 = vadd.f32 %v2796_v61, %v345_v20  ;;  %v305_v25 = vmul.f32 %v2156_v48, %v2549_v12  ;;  %v2113_v20 = vld [vmem:[%s3326_s3 + $0xd4] ss:$24 sps:$4 sm:$0xff]  }
 0x146   :  { %1132 = vmatprep.mubr.bf16.mxu0 %v2814_v53  ;;  %1245 = vmatprep.mubr.bf16.mxu1 %v2814_v53  ;;  %v392_v55 = vadd.f32 %v2792_v57, %v348_v56  ;;  %v308_v13 = vmul.f32 %v2158_v4, %v2561_v63  ;;  %v391_v43 = vadd.f32 %v2796_v61, %v347_v54  ;;  %v242_v6 = vpop.xlane.xlu1 %241  ;;  %v275_v14 = vadd.f32 1e-05, %v259_v51  ;;  %v2110_v56 = vld [vmem:[%s3326_s3 + $0xa4] ss:$24 sps:$4 sm:$0xff]  }
 0x147   :  { %1133 = vmatmul.mubr.bf16.vlgmr.msra.gmra.mrb[0].mxu0 %v2816_v0  ;;  %1246 = vmatmul.mubr.bf16.vlgmr.msra.gmra.mrb[0].mxu1 %v2816_v0  ;;  %v350_v63 = vmul.f32 %v2781_v15, %v306_v41  ;;  %v307_v9 = vmul.f32 %v2158_v4, %v2557_v62  ;;  %2167 = vrsqrt.f32 %v276_v45  ;;  %v261_v12 = vmul.f32 0.00390625, %v239_v2 }
 0x148   :  { %1327 = vmatpush1.bf16.msra.mxu0 %v2099_v47  ;;  %1987 = vmatpush1.bf16.msra.mxu1 %v2099_v47  ;;  %v2832_v50 = vpack.c.bf16 %v392_v55, %v390_v19  ;;  %v352_v35 = vmul.f32 %v2781_v15, %v308_v13  ;;  %v2852_v3 = vpack.c.bf16 %v391_v43, %v389_v40  ;;  %v262_v48 = vmul.f32 0.00390625, %v242_v6 }
 0x149   :  { %v2160_v34 = vpop.eup %2159  ;;  %1328 = vmatprep.subr.bf16.mxu0 %v2104_v18  ;;  %1972 = vmatprep.subr.bf16.mxu1 %v2104_v18  ;;  %v394_v62 = vadd.f32 %v2792_v57, %v350_v63  ;;  %v351_v52 = vmul.f32 %v2787_v49, %v307_v9  ;;  %v349_v32 = vmul.f32 %v2787_v49, %v305_v25  ;;  %2169 = vrsqrt.f32 %v275_v14  ;;  %v2114_v25 = vld [vmem:[%s3326_s3 + $0x100] ss:$24 sps:$4 sm:$0xff]  }
 0x14a   :  { %v2162_v39 = vpop.eup %2161  ;;  %1142 = vmatprep.mubr.bf16.mxu0 %v2832_v50  ;;  %1255 = vmatprep.mubr.bf16.mxu1 %v2832_v50  ;;  %v396_v1 = vadd.f32 %v2792_v57, %v352_v35  ;;  %v312_v46 = vmul.f32 %v2160_v34, %v2585_v26  ;;  %v311_v55 = vmul.f32 %v2160_v34, %v2581_v24  ;;  %v277_v41 = vadd.f32 1e-05, %v261_v12  ;;  %v248_v51 = vpop.xlane.xlu1 %247  ;;  %v2111_v35 = vld [vmem:[%s3326_s3 + $0xd0] ss:$24 sps:$4 sm:$0xff]  }
 0x14b   :  { %v310_v47 = vmul.f32 %v2162_v39, %v2577_v5  ;;  %v2108_v5 = vld [vmem:[%s3326_s3 + $0xa0] ss:$24 sps:$4 sm:$0xff]   ;;  %v395_v54 = vadd.f32 %v2796_v61, %v351_v52  ;;  %v278_v13 = vadd.f32 1e-05, %v262_v48  ;;  %v245_v34 = vpop.xlane.xlu0 %244 }
 0x14c   :  { %1329 = vmatpush1.bf16.msra.mxu0 %v2102_v38  ;;  %1988 = vmatpush1.bf16.msra.mxu1 %v2102_v38  ;;  %v2863_v26 = vpack.c.bf16 %v396_v1, %v394_v62  ;;  %v356_v19 = vmul.f32 %v2781_v15, %v312_v46  ;;  %v393_v38 = vadd.f32 %v2796_v61, %v349_v32  ;;  %v263_v1 = vmul.f32 0.00390625, %v245_v34  ;;  %v2123_v34 = vld [vmem:[%s3326_s3 + $0x190] ss:$24 sps:$4 sm:$0xff]  }
 0x14d   :  { %1330 = vmatprep.subr.bf16.mxu0 %v2107_v42  ;;  %1973 = vmatprep.subr.bf16.mxu1 %v2107_v42  ;;  %v2164_v4 = vpop.eup %2163  ;;  %v354_v59 = vmul.f32 %v2781_v15, %v310_v47  ;;  %v309_v42 = vmul.f32 %v2162_v39, %v2573_v21  ;;  %v355_v9 = vmul.f32 %v2787_v49, %v311_v55  ;;  %2171 = vrsqrt.f32 %v278_v13  ;;  %v2125_v13 = vld [vmem:[%s3326_s3 + $0x194] ss:$24 sps:$4 sm:$0xff]  }
 0x14e   :  { %v400_v43 = vadd.f32 %v2792_v57, %v356_v19  ;;  %v316_v63 = vmul.f32 %v2164_v4, %v2609_v7  ;;  %v2886_v45 = vpack.c.bf16 %v395_v54, %v393_v38  ;;  %v264_v21 = vmul.f32 0.00390625, %v248_v51  ;;  %v2116_v7 = vld [vmem:[%s3326_s3 + $0x104] ss:$24 sps:$4 sm:$0xff]  }
 0x14f   :  { %1143 = vmatmul.mubr.bf16.gmra.mrb[4].mxu0 %v2852_v3  ;;  %1256 = vmatmul.mubr.bf16.gmra.mrb[4].mxu1 %v2852_v3  ;;  %v2166_v18 = vpop.eup %2165  ;;  %v398_v40 = vadd.f32 %v2792_v57, %v354_v59  ;;  %2173 = vrsqrt.f32 %v277_v41  ;;  %v353_v39 = vmul.f32 %v2787_v49, %v309_v42  ;;  %v399_v46 = vadd.f32 %v2796_v61, %v355_v9 }
 0x150   :  { %1331 = vmatpush1.bf16.msra.mxu0 %v2105_v58  ;;  %1989 = vmatpush1.bf16.msra.mxu1 %v2105_v58  ;;  %v314_v24 = vmul.f32 %v2166_v18, %v2601_v10  ;;  %v360_v2 = vmul.f32 %v2781_v15, %v316_v63  ;;  %v2119_v58 = vld [vmem:[%s3326_s3 + $0x134] ss:$24 sps:$4 sm:$0xff]   ;;  %v315_v62 = vmul.f32 %v2164_v4, %v2605_v11  ;;  %v280_v47 = vadd.f32 1e-05, %v264_v21 }
 0x151   :  { %1152 = vmatprep.mubr.bf16.mxu0 %v2863_v26  ;;  %1265 = vmatprep.mubr.bf16.mxu1 %v2863_v26  ;;  %v2895_v10 = vpack.c.bf16 %v400_v43, %v398_v40  ;;  %v2168_v6 = vpop.eup %2167  ;;  %v397_v12 = vadd.f32 %v2796_v61, %v353_v39  ;;  %v279_v19 = vadd.f32 1e-05, %v263_v1  ;;  %v2131_v1 = vld [vmem:[%s3326_s3 + $0x1f4] ss:$24 sps:$4 sm:$0xff]  }
 0x152   :  { %1332 = vmatprep.subr.bf16.mxu0 %v2110_v56  ;;  %1974 = vmatprep.subr.bf16.mxu1 %v2110_v56  ;;  %v358_v14 = vmul.f32 %v2781_v15, %v314_v24  ;;  %v404_v48 = vadd.f32 %v2792_v57, %v360_v2  ;;  %v313_v56 = vmul.f32 %v2166_v18, %v2597_v29  ;;  %2175 = vrsqrt.f32 %v280_v47  ;;  %v2122_v29 = vld [vmem:[%s3326_s3 + $0x164] ss:$24 sps:$4 sm:$0xff]   ;;  %v2126_v2 = vld [vmem:[%s3326_s3 + $0x1c0] ss:$24 sps:$4 sm:$0xff]  }
 0x153   :  { %v2170_v52 = vpop.eup %2169  ;;  %v320_v32 = vmul.f32 %v2168_v6, %v2633_v17  ;;  %v2918_v4 = vpack.c.bf16 %v399_v46, %v397_v12  ;;  %2177 = vrsqrt.f32 %v279_v19  ;;  %v319_v43 = vmul.f32 %v2168_v6, %v2629_v8  ;;  %v2129_v12 = vld [vmem:[%s3326_s3 + $0x1f0] ss:$24 sps:$4 sm:$0xff]  }
 0x154   :  { %1333 = vmatpush1.bf16.msra.mxu0 %v2108_v5  ;;  %1990 = vmatpush1.bf16.msra.mxu1 %v2108_v5  ;;  %v2117_v5 = vld [vmem:[%s3326_s3 + $0x130] ss:$24 sps:$4 sm:$0xff]   ;;  %v402_v11 = vadd.f32 %v2792_v57, %v358_v14  ;;  %v318_v54 = vmul.f32 %v2170_v52, %v2625_v16  ;;  %v357_v18 = vmul.f32 %v2787_v49, %v313_v56  ;;  %v2120_v16 = vld [vmem:[%s3326_s3 + $0x160] ss:$24 sps:$4 sm:$0xff]  }
 0x155   :  { %1334 = vmatprep.subr.bf16.mxu0 %v2113_v20  ;;  %1975 = vmatprep.subr.bf16.mxu1 %v2113_v20  ;;  %v359_v20 = vmul.f32 %v2787_v49, %v315_v62  ;;  %v364_v59 = vmul.f32 %v2781_v15, %v320_v32  ;;  %v363_v21 = vmul.f32 %v2787_v49, %v319_v43 }
 0x156   :  { %v2927_v17 = vpack.c.bf16 %v404_v48, %v402_v11  ;;  %v362_v38 = vmul.f32 %v2781_v15, %v318_v54  ;;  %v401_v42 = vadd.f32 %v2796_v61, %v357_v18  ;;  %v2137_v11 = vld [vmem:[%s3326_s3 + $0x254] ss:$24 sps:$4 sm:$0xff]  }
 0x157   :  { %1153 = vmatmul.mubr.bf16.gmra.mrb[8].mxu0 %v2886_v45  ;;  %1266 = vmatmul.mubr.bf16.gmra.mrb[8].mxu1 %v2886_v45  ;;  %v2172_v55 = vpop.eup %2171  ;;  %v403_v51 = vadd.f32 %v2796_v61, %v359_v20  ;;  %v408_v63 = vadd.f32 %v2792_v57, %v364_v59 }
 0x158   :  { %1335 = vmatpush1.bf16.msra.mxu0 %v2111_v35  ;;  %1991 = vmatpush1.bf16.msra.mxu1 %v2111_v35  ;;  %v317_v35 = vmul.f32 %v2170_v52, %v2621_v37  ;;  %v324_v24 = vmul.f32 %v2172_v55, %v2669_v23  ;;  %v406_v9 = vadd.f32 %v2792_v57, %v362_v38  ;;  %v2128_v37 = vld [vmem:[%s3326_s3 + $0x1c4] ss:$24 sps:$4 sm:$0xff]   ;;  %v2138_v38 = vld [vmem:[%s3326_s3 + $0x280] ss:$24 sps:$4 sm:$0xff]  }
 0x159   :  { %1162 = vmatprep.mubr.bf16.mxu0 %v2895_v10  ;;  %1275 = vmatprep.mubr.bf16.mxu1 %v2895_v10  ;;  %v2174_v41 = vpop.eup %2173  ;;  %v2950_v8 = vpack.c.bf16 %v403_v51, %v401_v42  ;;  %v323_v14 = vmul.f32 %v2172_v55, %v2665_v28 }
 0x15a   :  { %1336 = vmatprep.subr.bf16.mxu0 %v2116_v7  ;;  %1976 = vmatprep.subr.bf16.mxu1 %v2116_v7  ;;  %v322_v40 = vmul.f32 %v2174_v41, %v2661_v27  ;;  %v2959_v23 = vpack.c.bf16 %v408_v63, %v406_v9  ;;  %v361_v27 = vmul.f32 %v2787_v49, %v317_v35  ;;  %v2146_v35 = vld [vmem:[%s3326_s3 + $0x2e4] ss:$24 sps:$4 sm:$0xff]  }
 0x15b   :  { %v368_v7 = vmul.f32 %v2781_v15, %v324_v24  ;;  %v321_v52 = vmul.f32 %v2174_v41, %v2657_v22  ;;  %v367_v56 = vmul.f32 %v2787_v49, %v323_v14  ;;  %v2134_v22 = vld [vmem:[%s3326_s3 + $0x224] ss:$24 sps:$4 sm:$0xff]  }
 0x15c   :  { %1337 = vmatpush1.bf16.msra.mxu0 %v2114_v25  ;;  %1992 = vmatpush1.bf16.msra.mxu1 %v2114_v25  ;;  %v2176_v39 = vpop.eup %2175  ;;  %v366_v6 = vmul.f32 %v2781_v15, %v322_v40  ;;  %v407_v25 = vadd.f32 %v2796_v61, %v363_v21  ;;  %v405_v46 = vadd.f32 %v2796_v61, %v361_v27 }
 0x15d   :  { %1338 = vmatprep.subr.bf16.mxu0 %v2119_v58  ;;  %1977 = vmatprep.subr.bf16.mxu1 %v2119_v58  ;;  %v2178_v58 = vpop.eup %2177  ;;  %v412_v62 = vadd.f32 %v2792_v57, %v368_v7  ;;  %v328_v47 = vmul.f32 %v2176_v39, %v2699_v31  ;;  %v365_v19 = vmul.f32 %v2787_v49, %v321_v52 }
 0x15e   :  { %v410_v48 = vadd.f32 %v2792_v57, %v366_v6  ;;  %v2982_v28 = vpack.c.bf16 %v407_v25, %v405_v46  ;;  %v326_v32 = vmul.f32 %v2178_v58, %v2691_v33  ;;  %v2132_v33 = vld [vmem:[%s3326_s3 + $0x220] ss:$24 sps:$4 sm:$0xff]   ;;  %v411_v20 = vadd.f32 %v2796_v61, %v367_v56 }
 0x15f   :  { %1163 = vmatmul.mubr.bf16.gmra.mrb[12].mxu0 %v2918_v4  ;;  %1276 = vmatmul.mubr.bf16.gmra.mrb[12].mxu1 %v2918_v4  ;;  %v409_v18 = vadd.f32 %v2796_v61, %v365_v19  ;;  %v325_v55 = vmul.f32 %v2178_v58, %v2687_v30 }
 0x160   :  { %1339 = vmatpush1.bf16.msra.mxu0 %v2117_v5  ;;  %1993 = vmatpush1.bf16.msra.mxu1 %v2117_v5  ;;  %v2991_v31 = vpack.c.bf16 %v412_v62, %v410_v48  ;;  %v372_v5 = vmul.f32 %v2781_v15, %v328_v47  ;;  %v370_v54 = vmul.f32 %v2781_v15, %v326_v32 }
 0x161   :  { %1172 = vmatprep.mubr.bf16.mxu0 %v2927_v17  ;;  %1285 = vmatprep.mubr.bf16.mxu1 %v2927_v17  ;;  %v429_v41 = vpack.c.bf16 %v411_v20, %v409_v18  ;;  %v369_v51 = vmul.f32 %v2787_v49, %v325_v55 }
 0x162   :  { %1340 = vmatprep.subr.bf16.mxu0 %v2122_v29  ;;  %1978 = vmatprep.subr.bf16.mxu1 %v2122_v29  ;;  %v327_v29 = vmul.f32 %v2176_v39, %v2695_v36  ;;  %v416_v59 = vadd.f32 %v2792_v57, %v372_v5  ;;  %v414_v15 = vadd.f32 %v2792_v57, %v370_v54  ;;  %v2143_v57 = vld [vmem:[%s3326_s3 + $0x2b4] ss:$24 sps:$4 sm:$0xff]  }
 0x163   :  { %v413_v42 = vadd.f32 %v2796_v61, %v369_v51 }
 0x164   :  { %1341 = vmatpush1.bf16.msra.mxu0 %v2120_v16  ;;  %1994 = vmatpush1.bf16.msra.mxu1 %v2120_v16  ;;  %v2135_v16 = vld [vmem:[%s3326_s3 + $0x250] ss:$24 sps:$4 sm:$0xff]   ;;  %v371_v36 = vmul.f32 %v2787_v49, %v327_v29  ;;  %v432_v30 = vpack.c.bf16 %v416_v59, %v414_v15 }
 0x165   :  { %1342 = vmatprep.subr.bf16.mxu0 %v2125_v13  ;;  %1979 = vmatprep.subr.bf16.mxu1 %v2125_v13  ;;  %v2140_v13 = vld [vmem:[%s3326_s3 + $0x284] ss:$24 sps:$4 sm:$0xff]   ;;  %v2141_v49 = vld [vmem:[%s3326_s3 + $0x2b0] ss:$24 sps:$4 sm:$0xff]  }
 0x166   :  { %v415_v43 = vadd.f32 %v2796_v61, %v371_v36  ;;  %v2144_v61 = vld [vmem:[%s3326_s3 + $0x2e0] ss:$24 sps:$4 sm:$0xff]  }
 0x167   :  { %1173 = vmatmul.mubr.bf16.gmra.mrb[16].mxu0 %v2950_v8  ;;  %1286 = vmatmul.mubr.bf16.gmra.mrb[16].mxu1 %v2950_v8 }
 0x168   :  { %1343 = vmatpush1.bf16.msra.mxu0 %v2123_v34  ;;  %1995 = vmatpush1.bf16.msra.mxu1 %v2123_v34  ;;  %v431_v63 = vpack.c.bf16 %v415_v43, %v413_v42 }
 0x169   :  { %1182 = vmatprep.mubr.bf16.mxu0 %v2959_v23  ;;  %1295 = vmatprep.mubr.bf16.mxu1 %v2959_v23 }
 0x16a   :  { %1344 = vmatprep.subr.bf16.mxu0 %v2128_v37  ;;  %1980 = vmatprep.subr.bf16.mxu1 %v2128_v37 }
 0x16c   :  { %1345 = vmatpush1.bf16.msra.mxu0 %v2126_v2  ;;  %1996 = vmatpush1.bf16.msra.mxu1 %v2126_v2 }
 0x16d   :  { %1346 = vmatprep.subr.bf16.mxu0 %v2131_v1  ;;  %1981 = vmatprep.subr.bf16.mxu1 %v2131_v1 }
 0x16f   :  { %1183 = vmatmul.mubr.bf16.gmra.mrb[20].mxu0 %v2982_v28  ;;  %1296 = vmatmul.mubr.bf16.gmra.mrb[20].mxu1 %v2982_v28 }
 0x170   :  { %1347 = vmatpush1.bf16.msra.mxu0 %v2129_v12  ;;  %1997 = vmatpush1.bf16.msra.mxu1 %v2129_v12 }
 0x171   :  { %1192 = vmatprep.mubr.bf16.mxu0 %v2991_v31  ;;  %1305 = vmatprep.mubr.bf16.mxu1 %v2991_v31 }
 0x172   :  { %1348 = vmatprep.subr.bf16.mxu0 %v2134_v22  ;;  %1982 = vmatprep.subr.bf16.mxu1 %v2134_v22 }
 0x174   :  { %1349 = vmatpush1.bf16.msra.mxu0 %v2132_v33  ;;  %1998 = vmatpush1.bf16.msra.mxu1 %v2132_v33 }
 0x175   :  { %1350 = vmatprep.subr.bf16.mxu0 %v2137_v11  ;;  %1983 = vmatprep.subr.bf16.mxu1 %v2137_v11 }
 0x177   :  { %1193 = vmatmul.mubr.bf16.gmra.mrb[24].mxu0 %v429_v41  ;;  %1306 = vmatmul.mubr.bf16.gmra.mrb[24].mxu1 %v429_v41 }
 0x178   :  { %1351 = vmatpush1.bf16.msra.mxu0 %v2135_v16  ;;  %1999 = vmatpush1.bf16.msra.mxu1 %v2135_v16 }
 0x179   :  { %1202 = vmatprep.mubr.bf16.mxu0 %v432_v30  ;;  %1315 = vmatprep.mubr.bf16.mxu1 %v432_v30 }
 0x17a   :  { %1352 = vmatprep.subr.bf16.mxu0 %v2140_v13  ;;  %1984 = vmatprep.subr.bf16.mxu1 %v2140_v13 }
 0x17c   :  { %1353 = vmatpush1.bf16.msra.mxu0 %v2138_v38  ;;  %2000 = vmatpush1.bf16.msra.mxu1 %v2138_v38 }
 0x17d   :  { %1354 = vmatprep.subr.bf16.mxu0 %v2143_v57  ;;  %1985 = vmatprep.subr.bf16.mxu1 %v2143_v57 }
 0x17f   :  { %1203 = vmatmul.mubr.bf16.gmra.mrb[28].mxu0 %v431_v63  ;;  %1316 = vmatmul.mubr.bf16.gmra.mrb[28].mxu1 %v431_v63 }
 0x180   :  { %1355 = vmatpush1.bf16.msra.mxu0 %v2141_v49  ;;  %2001 = vmatpush1.bf16.msra.mxu1 %v2141_v49 }
 0x181   :  { %1358 = vmatprep.mubr.bf16.mxu0 %v2814_v53  ;;  %1398 = vmatprep.mubr.bf16.mxu1 %v2927_v17  ;;  %v3051_v53 = vld [vmem:[%s3329_s4] sm:$0x3f] }
 0x182   :  { %1356 = vmatprep.subr.bf16.mxu0 %v2146_v35  ;;  %1986 = vmatprep.subr.bf16.mxu1 %v2146_v35 }
 0x184   :  { %1357 = vmatpush1.bf16.msra.mxu0 %v2144_v61  ;;  %2002 = vmatpush1.bf16.msra.mxu1 %v2144_v61 }
 0x187   :  { %1359 = vmatmul.mubr.bf16.vlgmr.msra.gmra.mrb[32].mxu0 %v2816_v0  ;;  %1399 = vmatmul.mubr.bf16.vlgmr.msra.gmra.mrb[32].mxu1 %v2950_v8  ;;  %v572_v0 = vsub.s32 2, %v2772_v60 }
 0x188   :  { %1368 = vmatprep.mubr.bf16.mxu0 %v2832_v50  ;;  %1408 = vmatprep.mubr.bf16.mxu1 %v2959_v23  ;;  %v563_v50 = vunpack.c.h.bf16 %v3051_v53 }
 0x18f   :  { %1369 = vmatmul.mubr.bf16.gmra.mrb[36].mxu0 %v2852_v3  ;;  %1409 = vmatmul.mubr.bf16.gmra.mrb[36].mxu1 %v2982_v28  ;;  %v3057_v3 = vrot.slane %v563_v50, %v572_v0 }
 0x190   :  { %1378 = vmatprep.mubr.bf16.mxu0 %v2863_v26  ;;  %1418 = vmatprep.mubr.bf16.mxu1 %v2991_v31  ;;  %v562_v26 = vunpack.c.l.bf16 %v3051_v53 }
 0x192   :  { %v573_v24 = vrot.slane %v562_v26, %v572_v0 }
 0x194   :  { %v3070_v9 = vrot.slane %v573_v24, %v2776_v44 }
 0x197   :  { %1379 = vmatmul.mubr.bf16.gmra.mrb[40].mxu0 %v2886_v45  ;;  %1419 = vmatmul.mubr.bf16.gmra.mrb[40].mxu1 %v429_v41  ;;  %v576_v45 = vsub.s32 4, %v2772_v60 }
 0x198   :  { %1388 = vmatprep.mubr.bf16.mxu0 %v2895_v10  ;;  %1428 = vmatprep.mubr.bf16.mxu1 %v432_v30  ;;  %v580_v10 = vsub.s32 6, %v2772_v60 }
 0x199   :  { %v577_v17 = vrot.slane %v562_v26, %v576_v45 }
 0x19a   :  { %v581_v34 = vrot.slane %v562_v26, %v580_v10 }
 0x19b   :  { %v3067_v8 = vrot.slane %v577_v17, %v2776_v44 }
 0x19c   :  { %v3073_v21 = vrot.slane %v581_v34, %v2776_v44 }
 0x19f   :  { %1389 = vmatmul.mubr.bf16.gmra.mrb[44].mxu0 %v2918_v4  ;;  %1429 = vmatmul.mubr.bf16.gmra.mrb[44].mxu1 %v431_v63  ;;  %v569_v4 = vrot.slane %v562_v26, %v2776_v44 }
 0x1a1   :  { %v3064_v40 = vrot.slane %v569_v4, %v2776_v44 }
 0x21a   :  { %v1134_v37 = vpop.f32.mrb[0].mxu0  ;;  %v1247_v23 = vpop.f32.mrb[0].mxu1 }
 0x21b   :  { %v1135_v60 = vadd.f32 %v1134_v37, %v3064_v40  ;;  %v1248_v27 = vadd.f32 %v1247_v23, %v3067_v8  ;;  %v1136_v7 = vpop.f32.mrb[1].mxu0  ;;  %v1249_v39 = vpop.f32.mrb[1].mxu1 }
 0x21c   :  { %v1137_v2 = vadd.f32 %v1136_v7, %v3070_v9  ;;  %v1250_v6 = vadd.f32 %v1249_v39, %v3073_v21  ;;  %v1138_v1 = vpop.f32.mrb[2].mxu0  ;;  %v1251_v25 = vpop.f32.mrb[2].mxu1 }
 0x21d   :  { %v1139_v14 = vadd.f32 %v1138_v1, %v3064_v40  ;;  %v1252_v58 = vadd.f32 %v1251_v25, %v3067_v8  ;;  %v1140_v46 = vpop.f32.mrb[3].mxu0  ;;  %v1253_v62 = vpop.f32.mrb[3].mxu1 }
 0x21e   :  { %v1923_v52 = vpack.c.bf16 %v1137_v2, %v1135_v60  ;;  %v1924_v47 = vpack.c.bf16 %v1250_v6, %v1248_v27  ;;  %v1141_v12 = vadd.f32 %v1140_v46, %v3070_v9  ;;  %v1254_v48 = vadd.f32 %v1253_v62, %v3073_v21 }
 0x220   :  { %1727 = vst [vmem:[%s3330_s5] sm:$0xff] %v1923_v52  ;;  %1728 = vst [vmem:[%s3330_s5 + $0x8] sm:$0xff] %v1924_v47  ;;  %v1926_v28 = vpack.c.bf16 %v1141_v12, %v1139_v14  ;;  %v1927_v56 = vpack.c.bf16 %v1254_v48, %v1252_v58 }
 0x222   :  { %1730 = vst [vmem:[%s3330_s5 + $0x18] sm:$0xff] %v1926_v28  ;;  %1731 = vst [vmem:[%s3330_s5 + $0x20] sm:$0xff] %v1927_v56  ;;  %v1144_v32 = vpop.f32.mrb[4].mxu0  ;;  %v1257_v22 = vpop.f32.mrb[4].mxu1 }
 0x223   :  { %v1145_v31 = vadd.f32 %v1144_v32, %v3064_v40  ;;  %v1258_v19 = vadd.f32 %v1257_v22, %v3067_v8  ;;  %v1146_v5 = vpop.f32.mrb[5].mxu0  ;;  %v1259_v33 = vpop.f32.mrb[5].mxu1 }
 0x224   :  { %v1147_v11 = vadd.f32 %v1146_v5, %v3070_v9  ;;  %v1260_v20 = vadd.f32 %v1259_v33, %v3073_v21  ;;  %v1148_v54 = vpop.f32.mrb[6].mxu0  ;;  %v1261_v29 = vpop.f32.mrb[6].mxu1 }
 0x225   :  { %v1149_v18 = vadd.f32 %v1148_v54, %v3064_v40  ;;  %v1262_v59 = vadd.f32 %v1261_v29, %v3067_v8  ;;  %v1150_v55 = vpop.f32.mrb[7].mxu0  ;;  %v1263_v16 = vpop.f32.mrb[7].mxu1 }
 0x226   :  { %v1929_v41 = vpack.c.bf16 %v1147_v11, %v1145_v31  ;;  %v1930_v15 = vpack.c.bf16 %v1260_v20, %v1258_v19  ;;  %v1151_v36 = vadd.f32 %v1150_v55, %v3070_v9  ;;  %v1264_v13 = vadd.f32 %v1263_v16, %v3073_v21 }
 0x228   :  { %1733 = vst [vmem:[%s3330_s5 + $0x30] sm:$0xff] %v1929_v41  ;;  %1734 = vst [vmem:[%s3330_s5 + $0x38] sm:$0xff] %v1930_v15  ;;  %v1932_v30 = vpack.c.bf16 %v1151_v36, %v1149_v18  ;;  %v1933_v51 = vpack.c.bf16 %v1264_v13, %v1262_v59 }
 0x22a   :  { %1736 = vst [vmem:[%s3330_s5 + $0x48] sm:$0xff] %v1932_v30  ;;  %1737 = vst [vmem:[%s3330_s5 + $0x50] sm:$0xff] %v1933_v51  ;;  %v1154_v38 = vpop.f32.mrb[8].mxu0  ;;  %v1267_v57 = vpop.f32.mrb[8].mxu1 }
 0x22b   :  { %v1155_v43 = vadd.f32 %v1154_v38, %v3064_v40  ;;  %v1268_v42 = vadd.f32 %v1267_v57, %v3067_v8  ;;  %v1156_v49 = vpop.f32.mrb[9].mxu0  ;;  %v1269_v63 = vpop.f32.mrb[9].mxu1 }
 0x22c   :  { %v1157_v35 = vadd.f32 %v1156_v49, %v3070_v9  ;;  %v1270_v61 = vadd.f32 %v1269_v63, %v3073_v21  ;;  %v1158_v0 = vpop.f32.mrb[10].mxu0  ;;  %v1271_v26 = vpop.f32.mrb[10].mxu1 }
 0x22d   :  { %v1159_v45 = vadd.f32 %v1158_v0, %v3064_v40  ;;  %v1272_v10 = vadd.f32 %v1271_v26, %v3067_v8  ;;  %v1160_v4 = vpop.f32.mrb[11].mxu0  ;;  %v1273_v17 = vpop.f32.mrb[11].mxu1 }
 0x22e   :  { %v1935_v24 = vpack.c.bf16 %v1157_v35, %v1155_v43  ;;  %v1936_v34 = vpack.c.bf16 %v1270_v61, %v1268_v42  ;;  %v1161_v37 = vadd.f32 %v1160_v4, %v3070_v9  ;;  %v1274_v23 = vadd.f32 %v1273_v17, %v3073_v21 }
 0x230   :  { %1739 = vst [vmem:[%s3330_s5 + $0x60] sm:$0xff] %v1935_v24  ;;  %1740 = vst [vmem:[%s3330_s5 + $0x68] sm:$0xff] %v1936_v34  ;;  %v1938_v60 = vpack.c.bf16 %v1161_v37, %v1159_v45  ;;  %v1939_v27 = vpack.c.bf16 %v1274_v23, %v1272_v10 }
 0x232   :  { %1742 = vst [vmem:[%s3330_s5 + $0x78] sm:$0xff] %v1938_v60  ;;  %1743 = vst [vmem:[%s3330_s5 + $0x80] sm:$0xff] %v1939_v27  ;;  %v1164_v7 = vpop.f32.mrb[12].mxu0  ;;  %v1277_v39 = vpop.f32.mrb[12].mxu1 }
 0x233   :  { %v1165_v2 = vadd.f32 %v1164_v7, %v3064_v40  ;;  %v1278_v6 = vadd.f32 %v1277_v39, %v3067_v8  ;;  %v1166_v1 = vpop.f32.mrb[13].mxu0  ;;  %v1279_v25 = vpop.f32.mrb[13].mxu1 }
 0x234   :  { %v1167_v14 = vadd.f32 %v1166_v1, %v3070_v9  ;;  %v1280_v58 = vadd.f32 %v1279_v25, %v3073_v21  ;;  %v1168_v46 = vpop.f32.mrb[14].mxu0  ;;  %v1281_v62 = vpop.f32.mrb[14].mxu1 }
 0x235   :  { %v1169_v52 = vadd.f32 %v1168_v46, %v3064_v40  ;;  %v1282_v47 = vadd.f32 %v1281_v62, %v3067_v8  ;;  %v1170_v12 = vpop.f32.mrb[15].mxu0  ;;  %v1283_v48 = vpop.f32.mrb[15].mxu1 }
 0x236   :  { %v1941_v28 = vpack.c.bf16 %v1167_v14, %v1165_v2  ;;  %v1942_v56 = vpack.c.bf16 %v1280_v58, %v1278_v6  ;;  %v1171_v32 = vadd.f32 %v1170_v12, %v3070_v9  ;;  %v1284_v22 = vadd.f32 %v1283_v48, %v3073_v21 }
 0x238   :  { %1745 = vst [vmem:[%s3330_s5 + $0x90] sm:$0xff] %v1941_v28  ;;  %1746 = vst [vmem:[%s3330_s5 + $0x98] sm:$0xff] %v1942_v56  ;;  %v1944_v31 = vpack.c.bf16 %v1171_v32, %v1169_v52  ;;  %v1945_v19 = vpack.c.bf16 %v1284_v22, %v1282_v47 }
 0x23a   :  { %1748 = vst [vmem:[%s3330_s5 + $0xa8] sm:$0xff] %v1944_v31  ;;  %1749 = vst [vmem:[%s3330_s5 + $0xb0] sm:$0xff] %v1945_v19  ;;  %v1174_v5 = vpop.f32.mrb[16].mxu0  ;;  %v1287_v33 = vpop.f32.mrb[16].mxu1 }
 0x23b   :  { %v1175_v11 = vadd.f32 %v1174_v5, %v3064_v40  ;;  %v1288_v20 = vadd.f32 %v1287_v33, %v3067_v8  ;;  %v1176_v54 = vpop.f32.mrb[17].mxu0  ;;  %v1289_v29 = vpop.f32.mrb[17].mxu1 }
 0x23c   :  { %v1177_v18 = vadd.f32 %v1176_v54, %v3070_v9  ;;  %v1290_v59 = vadd.f32 %v1289_v29, %v3073_v21  ;;  %v1178_v55 = vpop.f32.mrb[18].mxu0  ;;  %v1291_v16 = vpop.f32.mrb[18].mxu1 }
 0x23d   :  { %v1179_v41 = vadd.f32 %v1178_v55, %v3064_v40  ;;  %v1292_v15 = vadd.f32 %v1291_v16, %v3067_v8  ;;  %v1180_v36 = vpop.f32.mrb[19].mxu0  ;;  %v1293_v13 = vpop.f32.mrb[19].mxu1 }
 0x23e   :  { %v1947_v30 = vpack.c.bf16 %v1177_v18, %v1175_v11  ;;  %v1948_v51 = vpack.c.bf16 %v1290_v59, %v1288_v20  ;;  %v1181_v38 = vadd.f32 %v1180_v36, %v3070_v9  ;;  %v1294_v57 = vadd.f32 %v1293_v13, %v3073_v21 }
 0x240   :  { %1751 = vst [vmem:[%s3330_s5 + $0xc0] sm:$0xff] %v1947_v30  ;;  %1752 = vst [vmem:[%s3330_s5 + $0xc8] sm:$0xff] %v1948_v51  ;;  %v1950_v43 = vpack.c.bf16 %v1181_v38, %v1179_v41  ;;  %v1951_v42 = vpack.c.bf16 %v1294_v57, %v1292_v15  ;;  %v585_v41 = vrot.slane %v563_v50, %v2776_v44 }
 0x242   :  { %1754 = vst [vmem:[%s3330_s5 + $0xd8] sm:$0xff] %v1950_v43  ;;  %1755 = vst [vmem:[%s3330_s5 + $0xe0] sm:$0xff] %v1951_v42  ;;  %v1184_v49 = vpop.f32.mrb[20].mxu0  ;;  %v1297_v63 = vpop.f32.mrb[20].mxu1  ;;  %v3227_v53 = vrot.slane %v585_v41, %v2776_v44 }
 0x243   :  { %v1185_v35 = vadd.f32 %v1184_v49, %v3064_v40  ;;  %v1298_v61 = vadd.f32 %v1297_v63, %v3067_v8  ;;  %v1186_v0 = vpop.f32.mrb[21].mxu0  ;;  %v1299_v26 = vpop.f32.mrb[21].mxu1 }
 0x244   :  { %v1187_v45 = vadd.f32 %v1186_v0, %v3070_v9  ;;  %v1300_v10 = vadd.f32 %v1299_v26, %v3073_v21  ;;  %v1188_v4 = vpop.f32.mrb[22].mxu0  ;;  %v1301_v17 = vpop.f32.mrb[22].mxu1 }
 0x245   :  { %v1189_v24 = vadd.f32 %v1188_v4, %v3064_v40  ;;  %v1302_v34 = vadd.f32 %v1301_v17, %v3067_v8  ;;  %v1190_v37 = vpop.f32.mrb[23].mxu0  ;;  %v1303_v23 = vpop.f32.mrb[23].mxu1 }
 0x246   :  { %v1953_v60 = vpack.c.bf16 %v1187_v45, %v1185_v35  ;;  %v1954_v27 = vpack.c.bf16 %v1300_v10, %v1298_v61  ;;  %v1191_v7 = vadd.f32 %v1190_v37, %v3070_v9  ;;  %v1304_v39 = vadd.f32 %v1303_v23, %v3073_v21 }
 0x248   :  { %1757 = vst [vmem:[%s3330_s5 + $0xf0] sm:$0xff] %v1953_v60  ;;  %1758 = vst [vmem:[%s3330_s5 + $0xf8] sm:$0xff] %v1954_v27  ;;  %v1956_v2 = vpack.c.bf16 %v1191_v7, %v1189_v24  ;;  %v1957_v6 = vpack.c.bf16 %v1304_v39, %v1302_v34 }
 0x24a   :  { %1760 = vst [vmem:[%s3330_s5 + $0x108] sm:$0xff] %v1956_v2  ;;  %1761 = vst [vmem:[%s3330_s5 + $0x110] sm:$0xff] %v1957_v6  ;;  %v1194_v1 = vpop.f32.mrb[24].mxu0  ;;  %v1307_v25 = vpop.f32.mrb[24].mxu1 }
 0x24b   :  { %v1195_v14 = vadd.f32 %v1194_v1, %v3064_v40  ;;  %v1308_v58 = vadd.f32 %v1307_v25, %v3067_v8  ;;  %v1196_v46 = vpop.f32.mrb[25].mxu0  ;;  %v1309_v62 = vpop.f32.mrb[25].mxu1 }
 0x24c   :  { %v1197_v52 = vadd.f32 %v1196_v46, %v3070_v9  ;;  %v1310_v47 = vadd.f32 %v1309_v62, %v3073_v21  ;;  %v1198_v12 = vpop.f32.mrb[26].mxu0  ;;  %v1311_v48 = vpop.f32.mrb[26].mxu1 }
 0x24d   :  { %v1199_v28 = vadd.f32 %v1198_v12, %v3064_v40  ;;  %v1312_v56 = vadd.f32 %v1311_v48, %v3067_v8  ;;  %v1200_v32 = vpop.f32.mrb[27].mxu0  ;;  %v1313_v22 = vpop.f32.mrb[27].mxu1 }
 0x24e   :  { %v1959_v31 = vpack.c.bf16 %v1197_v52, %v1195_v14  ;;  %v1960_v19 = vpack.c.bf16 %v1310_v47, %v1308_v58  ;;  %v1201_v5 = vadd.f32 %v1200_v32, %v3070_v9  ;;  %v1314_v33 = vadd.f32 %v1313_v22, %v3073_v21 }
 0x250   :  { %1763 = vst [vmem:[%s3330_s5 + $0x120] sm:$0xff] %v1959_v31  ;;  %1764 = vst [vmem:[%s3330_s5 + $0x128] sm:$0xff] %v1960_v19  ;;  %v1962_v11 = vpack.c.bf16 %v1201_v5, %v1199_v28  ;;  %v1963_v20 = vpack.c.bf16 %v1314_v33, %v1312_v56 }
 0x252   :  { %1766 = vst [vmem:[%s3330_s5 + $0x138] sm:$0xff] %v1962_v11  ;;  %1767 = vst [vmem:[%s3330_s5 + $0x140] sm:$0xff] %v1963_v20  ;;  %v1204_v54 = vpop.f32.mrb[28].mxu0  ;;  %v1317_v29 = vpop.f32.mrb[28].mxu1 }
 0x253   :  { %v1205_v18 = vadd.f32 %v1204_v54, %v3064_v40  ;;  %v1318_v59 = vadd.f32 %v1317_v29, %v3067_v8  ;;  %v1206_v55 = vpop.f32.mrb[29].mxu0  ;;  %v1319_v16 = vpop.f32.mrb[29].mxu1 }
 0x254   :  { %v1207_v15 = vadd.f32 %v1206_v55, %v3070_v9  ;;  %v1320_v36 = vadd.f32 %v1319_v16, %v3073_v21  ;;  %v1208_v13 = vpop.f32.mrb[30].mxu0  ;;  %v1321_v30 = vpop.f32.mrb[30].mxu1 }
 0x255   :  { %v1209_v51 = vadd.f32 %v1208_v13, %v3064_v40  ;;  %v1322_v38 = vadd.f32 %v1321_v30, %v3067_v8  ;;  %v1210_v57 = vpop.f32.mrb[31].mxu0  ;;  %v1323_v43 = vpop.f32.mrb[31].mxu1  ;;  %v3237_v8 = vrot.slane %v3057_v3, %v2776_v44 }
 0x256   :  { %v1965_v42 = vpack.c.bf16 %v1207_v15, %v1205_v18  ;;  %v1966_v49 = vpack.c.bf16 %v1320_v36, %v1318_v59  ;;  %v1211_v63 = vadd.f32 %v1210_v57, %v3070_v9  ;;  %v1324_v35 = vadd.f32 %v1323_v43, %v3073_v21 }
 0x258   :  { %1769 = vst [vmem:[%s3330_s5 + $0x150] sm:$0xff] %v1965_v42  ;;  %1770 = vst [vmem:[%s3330_s5 + $0x158] sm:$0xff] %v1966_v49  ;;  %v1968_v50 = vpack.c.bf16 %v1211_v63, %v1209_v51  ;;  %v1969_v40 = vpack.c.bf16 %v1324_v35, %v1322_v38 }
 0x25a   :  { %1772 = vst [vmem:[%s3330_s5 + $0x168] sm:$0xff] %v1968_v50  ;;  %1773 = vst [vmem:[%s3330_s5 + $0x170] sm:$0xff] %v1969_v40  ;;  %v1360_v9 = vpop.f32.mrb[32].mxu0  ;;  %v1400_v21 = vpop.f32.mrb[32].mxu1 }
 0x25b   :  { %v1361_v61 = vadd.f32 %v1360_v9, %v3227_v53  ;;  %v1401_v0 = vadd.f32 %v1400_v21, %v3227_v53  ;;  %v1362_v26 = vpop.f32.mrb[33].mxu0  ;;  %v1402_v45 = vpop.f32.mrb[33].mxu1 }
 0x25c   :  { %v1363_v10 = vadd.f32 %v1362_v26, %v3237_v8  ;;  %v1403_v44 = vadd.f32 %v1402_v45, %v3237_v8  ;;  %v1364_v3 = vpop.f32.mrb[34].mxu0  ;;  %v1404_v4 = vpop.f32.mrb[34].mxu1 }
 0x25d   :  { %v1365_v17 = vadd.f32 %v1364_v3, %v3227_v53  ;;  %v1405_v24 = vadd.f32 %v1404_v4, %v3227_v53  ;;  %v1366_v34 = vpop.f32.mrb[35].mxu0  ;;  %v1406_v37 = vpop.f32.mrb[35].mxu1 }
 0x25e   :  { %v1925_v23 = vpack.c.bf16 %v1363_v10, %v1361_v61  ;;  %v1949_v60 = vpack.c.bf16 %v1403_v44, %v1401_v0  ;;  %v1367_v27 = vadd.f32 %v1366_v34, %v3237_v8  ;;  %v1407_v7 = vadd.f32 %v1406_v37, %v3237_v8 }
 0x260   :  { %1729 = vst [vmem:[%s3330_s5 + $0x10] sm:$0xff] %v1925_v23  ;;  %1753 = vst [vmem:[%s3330_s5 + $0xd0] sm:$0xff] %v1949_v60  ;;  %v1928_v39 = vpack.c.bf16 %v1367_v27, %v1365_v17  ;;  %v1952_v2 = vpack.c.bf16 %v1407_v7, %v1405_v24 }
 0x262   :  { %1732 = vst [vmem:[%s3330_s5 + $0x28] sm:$0xff] %v1928_v39  ;;  %1756 = vst [vmem:[%s3330_s5 + $0xe8] sm:$0xff] %v1952_v2  ;;  %v1370_v6 = vpop.f32.mrb[36].mxu0  ;;  %v1410_v1 = vpop.f32.mrb[36].mxu1 }
 0x263   :  { %v1371_v25 = vadd.f32 %v1370_v6, %v3227_v53  ;;  %v1411_v14 = vadd.f32 %v1410_v1, %v3227_v53  ;;  %v1372_v58 = vpop.f32.mrb[37].mxu0  ;;  %v1412_v46 = vpop.f32.mrb[37].mxu1 }
 0x264   :  { %v1373_v62 = vadd.f32 %v1372_v58, %v3237_v8  ;;  %v1413_v52 = vadd.f32 %v1412_v46, %v3237_v8  ;;  %v1374_v47 = vpop.f32.mrb[38].mxu0  ;;  %v1414_v12 = vpop.f32.mrb[38].mxu1 }
 0x265   :  { %v1375_v48 = vadd.f32 %v1374_v47, %v3227_v53  ;;  %v1415_v28 = vadd.f32 %v1414_v12, %v3227_v53  ;;  %v1376_v56 = vpop.f32.mrb[39].mxu0  ;;  %v1416_v32 = vpop.f32.mrb[39].mxu1 }
 0x266   :  { %v1931_v22 = vpack.c.bf16 %v1373_v62, %v1371_v25  ;;  %v1955_v31 = vpack.c.bf16 %v1413_v52, %v1411_v14  ;;  %v1377_v19 = vadd.f32 %v1376_v56, %v3237_v8  ;;  %v1417_v5 = vadd.f32 %v1416_v32, %v3237_v8 }
 0x268   :  { %1735 = vst [vmem:[%s3330_s5 + $0x40] sm:$0xff] %v1931_v22  ;;  %1759 = vst [vmem:[%s3330_s5 + $0x100] sm:$0xff] %v1955_v31  ;;  %v1934_v33 = vpack.c.bf16 %v1377_v19, %v1375_v48  ;;  %v1958_v11 = vpack.c.bf16 %v1417_v5, %v1415_v28 }
 0x26a   :  { %1738 = vst [vmem:[%s3330_s5 + $0x58] sm:$0xff] %v1934_v33  ;;  %1762 = vst [vmem:[%s3330_s5 + $0x118] sm:$0xff] %v1958_v11  ;;  %v1380_v20 = vpop.f32.mrb[40].mxu0  ;;  %v1420_v54 = vpop.f32.mrb[40].mxu1 }
 0x26b   :  { %v1381_v29 = vadd.f32 %v1380_v20, %v3227_v53  ;;  %v1421_v18 = vadd.f32 %v1420_v54, %v3227_v53  ;;  %v1382_v59 = vpop.f32.mrb[41].mxu0  ;;  %v1422_v55 = vpop.f32.mrb[41].mxu1 }
 0x26c   :  { %v1383_v16 = vadd.f32 %v1382_v59, %v3237_v8  ;;  %v1423_v41 = vadd.f32 %v1422_v55, %v3237_v8  ;;  %v1384_v15 = vpop.f32.mrb[42].mxu0  ;;  %v1424_v36 = vpop.f32.mrb[42].mxu1 }
 0x26d   :  { %v1385_v13 = vadd.f32 %v1384_v15, %v3227_v53  ;;  %v1425_v30 = vadd.f32 %v1424_v36, %v3227_v53  ;;  %v1386_v51 = vpop.f32.mrb[43].mxu0  ;;  %v1426_v38 = vpop.f32.mrb[43].mxu1 }
 0x26e   :  { %v1937_v57 = vpack.c.bf16 %v1383_v16, %v1381_v29  ;;  %v1961_v43 = vpack.c.bf16 %v1423_v41, %v1421_v18  ;;  %v1387_v42 = vadd.f32 %v1386_v51, %v3237_v8  ;;  %v1427_v49 = vadd.f32 %v1426_v38, %v3237_v8 }
 0x270   :  { %1741 = vst [vmem:[%s3330_s5 + $0x70] sm:$0xff] %v1937_v57  ;;  %1765 = vst [vmem:[%s3330_s5 + $0x130] sm:$0xff] %v1961_v43  ;;  %v1940_v63 = vpack.c.bf16 %v1387_v42, %v1385_v13  ;;  %v1964_v35 = vpack.c.bf16 %v1427_v49, %v1425_v30 }
 0x272   :  { %1744 = vst [vmem:[%s3330_s5 + $0x88] sm:$0xff] %v1940_v63  ;;  %1768 = vst [vmem:[%s3330_s5 + $0x148] sm:$0xff] %v1964_v35  ;;  %v1390_v50 = vpop.f32.mrb[44].mxu0  ;;  %v1430_v40 = vpop.f32.mrb[44].mxu1 }
 0x273   :  { %v1391_v9 = vadd.f32 %v1390_v50, %v3227_v53  ;;  %v1431_v21 = vadd.f32 %v1430_v40, %v3227_v53  ;;  %v1392_v61 = vpop.f32.mrb[45].mxu0  ;;  %v1432_v0 = vpop.f32.mrb[45].mxu1 }
 0x274   :  { %v1393_v26 = vadd.f32 %v1392_v61, %v3237_v8  ;;  %v1433_v45 = vadd.f32 %v1432_v0, %v3237_v8  ;;  %v1394_v10 = vpop.f32.mrb[46].mxu0  ;;  %v1434_v44 = vpop.f32.mrb[46].mxu1 }
 0x275   :  { %v1395_v3 = vadd.f32 %v1394_v10, %v3227_v53  ;;  %v1435_v4 = vadd.f32 %v1434_v44, %v3227_v53  ;;  %v1396_v17 = vpop.f32.mrb[47].mxu0  ;;  %v1436_v24 = vpop.f32.mrb[47].mxu1 }
 0x276   :  { %v1943_v34 = vpack.c.bf16 %v1393_v26, %v1391_v9  ;;  %v1967_v37 = vpack.c.bf16 %v1433_v45, %v1431_v21  ;;  %v1397_v23 = vadd.f32 %v1396_v17, %v3237_v8  ;;  %v1437_v60 = vadd.f32 %v1436_v24, %v3237_v8 }
 0x278   :  { %1747 = vst [vmem:[%s3330_s5 + $0xa0] sm:$0xff] %v1943_v34  ;;  %1771 = vst [vmem:[%s3330_s5 + $0x160] sm:$0xff] %v1967_v37  ;;  %v1946_v27 = vpack.c.bf16 %v1397_v23, %v1395_v3  ;;  %v1970_v7 = vpack.c.bf16 %v1437_v60, %v1435_v4 }
 0x27a   :  { %1750 = vst [vmem:[%s3330_s5 + $0xb8] sm:$0xff] %v1946_v27  ;;  %1774 = vst [vmem:[%s3330_s5 + $0x178] sm:$0xff] %v1970_v7 }

// kernel: gpt_forward.12
= control target key start
LH: loop header
LB: loop body
LE: loop exit
PB: predicated region body
PF: predicated region fallthrough
CT: control target
= control target key end

     0   :  { %s3157_s12 = smov 0   ;;  %s3159_s13 = smov 0   ;;  %s4263_s0 = inlined_call_operand.vmem [shape: bf16[2,64,768], index: 0, kind: input, shape index: {}, may-alias: {0,1,2}]   ;;  %s4264_s1 = inlined_call_operand.vmem [shape: bf16[2,64,768], index: 1, kind: input, shape index: {}, may-alias: {0,1,2}]   ;;  %s4265_s2 = inlined_call_operand.vmem [shape: bf16[2,64,768], index: 2, kind: input, shape index: {}, may-alias: {0,1,2}]   ;;  %s4266_s3 = inlined_call_operand.vmem [shape: bf16[2,64,256], index: 3, kind: output, shape index: {}]  }
   0x1   :  { %s3161_s14 = smov 0   ;;  %s3163_s15 = smov 0  }
   0x2   :  { %s3165_s16 = smov 0  }
   0x3 LB: > { %s32_s17 = sadd.s32 1, %s3128_s15  ;;  %p48_p1 = scmp.ne.s32.totalorder %s3120_s13, %s3116_s12  ;;  %s3132_s16 = sphi %s3165_s16, %s13_s16   ;;  %s3128_s15 = sphi %s3163_s15, %s4371_s15   ;;  %s3124_s14 = sphi %s3161_s14, %s4370_s14   ;;  %s3120_s13 = sphi %s3159_s13, %s4369_s13   ;;  %s3116_s12 = sphi %s3157_s12, %s4368_s12  }
   0x4   : > { %p34_p0 = scmp.ge.s32.totalorder %s32_s17, 2  ;;  %p49_p2 = scmp.eq.s32.totalorder %s3132_s16, 0 }
   0x5   : > { %s41_s20 = sadd.s32 1, %s3120_s13  ;;  %p2562_p5 = scmp.ge.s32.totalorder %s3132_s16, 2 }
   0x6   : > { %s4373_s17 = smov (%p34_p0, %s32_s17), 0  ;;  %p3188_p3 = por %p49_p2, %p48_p1 }
   0x7   : > { %s36_s19 = ssub.s32 %s3128_s15, %s4373_s17  ;;  %166 = sbr.rel (%p2562_p5) target bundleno = 41 (0x29), region = 16 }
   0x8   : > { %p39_p4 = scmp.eq.s32.totalorder %s36_s19, 0 }
   0xa   : > { %s3196_s21 = scalar_select %p39_p4, %s3120_s13, %s41_s20  }
   0xe   : > { %169 = sbr.rel (!%p3188_p3) target bundleno = 23 (0x17), region = 20  ;;  %s171_s22 = sand.u32 (%p3188_p3), 1, %s3120_s13  }
   0xf   : > { %s2890_s23 = smul.u32 (%p3188_p3), 192, %s3128_s15  ;;  %s2563_s24 = sshll.u32 (%p3188_p3), %s171_s22, 6 }
  0x10   : > { %s173_s28 = scalar_lea.vmem (%p3188_p3), [#allocation5], %s2563_s24 }
  0x11   : > { %s179_s27 = scalar_lea.vmem (%p3188_p3), %s4263_s0, %s2890_s23 }
  0x12   : > { %v221_v0 = vld [vmem:[%s179_s27] sm:$0xff] (%p3188_p3)  ;;  %v223_v1 = vld [vmem:[%s179_s27 + $0x18] sm:$0xff] (%p3188_p3)  ;;  %v225_v2 = vld [vmem:[%s179_s27 + $0x30] sm:$0xff] (%p3188_p3) }
  0x13   : > { %222 = vst [vmem:[%s173_s28] sm:$0xff] (%p3188_p3), %v221_v0  ;;  %224 = vst [vmem:[%s173_s28 + $0x8] sm:$0xff] (%p3188_p3), %v223_v1  ;;  %v227_v3 = vld [vmem:[%s179_s27 + $0x48] sm:$0xff] (%p3188_p3)  ;;  %v229_v4 = vld [vmem:[%s179_s27 + $0x60] sm:$0xff] (%p3188_p3) }
  0x14   : > { %226 = vst [vmem:[%s173_s28 + $0x10] sm:$0xff] (%p3188_p3), %v225_v2  ;;  %v231_v5 = vld [vmem:[%s179_s27 + $0x78] sm:$0xff] (%p3188_p3)  ;;  %228 = vst [vmem:[%s173_s28 + $0x18] sm:$0xff] (%p3188_p3), %v227_v3  ;;  %v233_v6 = vld [vmem:[%s179_s27 + $0x90] sm:$0xff] (%p3188_p3) }
  0x15   : > { %230 = vst [vmem:[%s173_s28 + $0x20] sm:$0xff] %v229_v4  ;;  %232 = vst [vmem:[%s173_s28 + $0x28] sm:$0xff] %v231_v5  ;;  %v235_v7 = vld [vmem:[%s179_s27 + $0xa8] sm:$0xff] }
  0x16   : > { %234 = vst [vmem:[%s173_s28 + $0x30] sm:$0xff] %v233_v6  ;;  %236 = vst [vmem:[%s173_s28 + $0x38] sm:$0xff] %v235_v7 }
  0x17 PF: > { %242 = sbr.rel (!%p3188_p3) target bundleno = 32 (0x20), region = 58  ;;  %s244_s29 = sand.u32 (%p3188_p3), 1, %s3120_s13  }
  0x18   : > { %s2566_s30 = smul.u32 (%p3188_p3), 192, %s3128_s15  ;;  %s2565_s4 = sshll.u32 (%p3188_p3), %s244_s29, 6 }
  0x19   : > { %s246_s8 = scalar_lea.vmem (%p3188_p3), [#allocation6], %s2565_s4 }
  0x1a   : > { %s2461_s7 = scalar_lea.vmem (%p3188_p3), %s4264_s1, %s2566_s30 }
  0x1b   : > { %v2567_v8 = vld [vmem:[%s2461_s7 + $0x8] sm:$0xff] (%p3188_p3)  ;;  %v2568_v9 = vld [vmem:[%s2461_s7 + $0x20] sm:$0xff] (%p3188_p3)  ;;  %v2569_v10 = vld [vmem:[%s2461_s7 + $0x38] sm:$0xff] (%p3188_p3) }
  0x1c   : > { %298 = vst [vmem:[%s246_s8] sm:$0xff] (%p3188_p3), %v2567_v8  ;;  %300 = vst [vmem:[%s246_s8 + $0x8] sm:$0xff] (%p3188_p3), %v2568_v9  ;;  %v2570_v11 = vld [vmem:[%s2461_s7 + $0x50] sm:$0xff] (%p3188_p3)  ;;  %v2571_v12 = vld [vmem:[%s2461_s7 + $0x68] sm:$0xff] (%p3188_p3) }
  0x1d   : > { %302 = vst [vmem:[%s246_s8 + $0x10] sm:$0xff] (%p3188_p3), %v2569_v10  ;;  %v2572_v13 = vld [vmem:[%s2461_s7 + $0x80] sm:$0xff] (%p3188_p3)  ;;  %304 = vst [vmem:[%s246_s8 + $0x18] sm:$0xff] (%p3188_p3), %v2570_v11  ;;  %v2573_v14 = vld [vmem:[%s2461_s7 + $0x98] sm:$0xff] (%p3188_p3) }
  0x1e   : > { %306 = vst [vmem:[%s246_s8 + $0x20] sm:$0xff] %v2571_v12  ;;  %308 = vst [vmem:[%s246_s8 + $0x28] sm:$0xff] %v2572_v13  ;;  %v2574_v15 = vld [vmem:[%s2461_s7 + $0xb0] sm:$0xff] }
  0x1f   : > { %310 = vst [vmem:[%s246_s8 + $0x30] sm:$0xff] %v2573_v14  ;;  %312 = vst [vmem:[%s246_s8 + $0x38] sm:$0xff] %v2574_v15 }
  0x20 PF: > { %318 = sbr.rel (!%p3188_p3) target bundleno = 41 (0x29), region = 96  ;;  %s320_s9 = sand.u32 (%p3188_p3), 1, %s3120_s13  }
  0x21   : > { %s2576_s10 = smul.u32 (%p3188_p3), 192, %s3128_s15  ;;  %s2575_s11 = sshll.u32 (%p3188_p3), %s320_s9, 6 }
  0x22   : > { %s322_s23 = scalar_lea.vmem (%p3188_p3), [#allocation7], %s2575_s11 }
  0x23   : > { %s2469_s22 = scalar_lea.vmem (%p3188_p3), %s4265_s2, %s2576_s10 }
  0x24   : > { %v2577_v16 = vld [vmem:[%s2469_s22 + $0x10] sm:$0xff] (%p3188_p3)  ;;  %v2578_v17 = vld [vmem:[%s2469_s22 + $0x28] sm:$0xff] (%p3188_p3)  ;;  %v2579_v18 = vld [vmem:[%s2469_s22 + $0x40] sm:$0xff] (%p3188_p3) }
  0x25   : > { %374 = vst [vmem:[%s322_s23] sm:$0xff] (%p3188_p3), %v2577_v16  ;;  %376 = vst [vmem:[%s322_s23 + $0x8] sm:$0xff] (%p3188_p3), %v2578_v17  ;;  %v2580_v19 = vld [vmem:[%s2469_s22 + $0x58] sm:$0xff] (%p3188_p3)  ;;  %v2581_v20 = vld [vmem:[%s2469_s22 + $0x70] sm:$0xff] (%p3188_p3) }
  0x26   : > { %378 = vst [vmem:[%s322_s23 + $0x10] sm:$0xff] (%p3188_p3), %v2579_v18  ;;  %v2582_v21 = vld [vmem:[%s2469_s22 + $0x88] sm:$0xff] (%p3188_p3)  ;;  %380 = vst [vmem:[%s322_s23 + $0x18] sm:$0xff] (%p3188_p3), %v2580_v19  ;;  %v2583_v22 = vld [vmem:[%s2469_s22 + $0xa0] sm:$0xff] (%p3188_p3) }
  0x27   : > { %382 = vst [vmem:[%s322_s23 + $0x20] sm:$0xff] %v2581_v20  ;;  %384 = vst [vmem:[%s322_s23 + $0x28] sm:$0xff] %v2582_v21  ;;  %v2584_v23 = vld [vmem:[%s2469_s22 + $0xb8] sm:$0xff] }
  0x28   : > { %386 = vst [vmem:[%s322_s23 + $0x30] sm:$0xff] %v2583_v22  ;;  %388 = vst [vmem:[%s322_s23 + $0x38] sm:$0xff] %v2584_v23 }
  0x29 PF: > { %p2585_p6 = scmp.ge.s32.totalorder %s3132_s16, 1  ;;  %p393_p7 = scmp.lt.s32.totalorder %s3132_s16, 3 }
  0x2b   : > { %p394_p8 = pnand %p2585_p6, %p393_p7 }
  0x2d   : > { %397 = sbr.rel (%p394_p8) target bundleno = 2622 (0xa3e), region = 134 }
  0x34   : > { %s400_s18 = sand.u32 1, %s3116_s12   ;;  %vm638_vm0 = vcmask 523264   ;;  %v559_v54 = vlaneseq  ;;  %s3135_s26 = smov 64  }
  0x35   : > { %s3223_s24 = sshll.u32 %s400_s18, 6  ;;  %p458_p9 = scmp.lt.s32.totalorder %s3124_s14, 1 }
  0x36   : > { %s3226_s25 = scalar_lea.vmem [#allocation6], %s3223_s24  ;;  %s402_s12 = scalar_lea.vmem [#allocation5], %s3223_s24  ;;  %v3297_v55 = vshrl.u32 %v559_v54, 7  ;;  %v3302_v57 = vand.u32 127, %v559_v54 }
  0x37   : > { %v3229_v24 = vld [vmem:[%s3226_s25] ss:$8 sps:$4 sm:$0xff]   ;;  %v3236_v26 = vld [vmem:[%s3226_s25 + $0x10] ss:$8 sps:$4 sm:$0xff]   ;;  %s3399_s27 = scalar_lea.vmem [#allocation7], %s3223_s24  ;;  %s4375_s14 = smov (!%p458_p9, %s3124_s14), 1 }
  0x38   : > { %2874 = vmatprep.subr.msk.bf16.mxu0 %vm638_vm0, %v3229_v24  ;;  %v652_v25 = vsel %vm638_vm0, %v3229_v24, 0  ;;  %v526_v27 = vld [vmem:[%s402_s12] sm:$0xff]  ;;  %v527_v28 = vld [vmem:[%s402_s12 + $0x8] sm:$0xff]  ;;  %v528_v31 = vld [vmem:[%s402_s12 + $0x10] sm:$0xff]  ;;  %v655_v37 = vsel %vm638_vm0, %v3236_v26, 0  ;;  %v3300_v56 = vadd.s32 16, %v3297_v55  ;;  %vm582_vm2 = vcmp.le.s32.totalorder %v3302_v57, %v3297_v55 }
  0x39   : > { %2747 = vmatpush3.bf16.xpose.msra.mxu0 %v652_v25  ;;  %v534_v29 = vmul.bf16 1040203264, %v526_v27  ;;  %v535_v30 = vmul.bf16 1040203264, %v527_v28  ;;  %v529_v32 = vld [vmem:[%s402_s12 + $0x18] sm:$0xff]  ;;  %v3265_v43 = vld [vmem:[%s402_s12 + $0x20] sm:$0xff] }
  0x3a   : > { %2875 = vmatprep.subr.msk.bf16.mxu0 %vm638_vm0, %v3236_v26  ;;  %v536_v35 = vmul.bf16 1040203264, %v528_v31  ;;  %v537_v36 = vmul.bf16 1040203264, %v529_v32  ;;  %v3248_v38 = vld [vmem:[%s3226_s25 + $0x20] ss:$8 sps:$4 sm:$0xff]   ;;  %vm584_vm1 = vcmp.le.s32.totalorder %v3302_v57, %v3300_v56 }
  0x3b   : > { %v3241_v33 = vcombine.low %v534_v29, %v535_v30  ;;  %v3243_v34 = vcombine.high %v534_v29, %v535_v30  ;;  %v658_v40 = vsel %vm638_vm0, %v3248_v38, 0  ;;  %v3259_v41 = vld [vmem:[%s3226_s25 + $0x30] ss:$8 sps:$4 sm:$0xff]   ;;  %v3267_v44 = vld [vmem:[%s402_s12 + $0x28] sm:$0xff]  ;;  %v4269_v45 = vmul.bf16 1040203264, %v3265_v43 }
  0x3c   : > { %v3252_v39 = vcombine.high %v536_v35, %v537_v36  ;;  %v661_v42 = vsel %vm638_vm0, %v3259_v41, 0  ;;  %v4270_v46 = vmul.bf16 1040203264, %v3267_v44  ;;  %v3271_v47 = vcombine.low %v536_v35, %v537_v36  ;;  %v3279_v49 = vld [vmem:[%s402_s12 + $0x30] sm:$0xff]  ;;  %v3281_v50 = vld [vmem:[%s402_s12 + $0x38] sm:$0xff]  ;;  %s2665_s28 = sshll.u32 %s4375_s14, 6 }
  0x3d   : > { %2754 = vmatprep.mubr.msk.bf16.mxu0 %vm638_vm0, %v3241_v33  ;;  %v4267_v51 = vmul.bf16 1040203264, %v3279_v49  ;;  %v4268_v52 = vmul.bf16 1040203264, %v3281_v50  ;;  %v3305_v58 = vadd.s32 24, %v3297_v55  ;;  %v3308_v59 = vadd.s32 8, %v3297_v55  ;;  %s4121_s4 = scalar_lea.vmem %s4266_s3, %s2665_s28 }
  0x3e   : > { %v3277_v48 = vcombine.low %v4269_v45, %v4270_v46  ;;  %v3338_v5 = vadd.s32 32, %v3297_v55  ;;  %v3346_v7 = vadd.s32 48, %v3297_v55  ;;  %v3349_v8 = vadd.s32 40, %v3297_v55 }
  0x3f   : > { %v3293_v53 = vcombine.low %v4267_v51, %v4268_v52  ;;  %vm585_vm3 = vcmp.le.s32.totalorder %v3302_v57, %v3305_v58  ;;  %vm583_vm4 = vcmp.le.s32.totalorder %v3302_v57, %v3308_v59  ;;  %v3358_v11 = vadd.s32 56, %v3297_v55 }
  0x40   : > { %vm586_vm5 = vcmp.le.s32.totalorder %v3302_v57, %v3338_v5  ;;  %vm588_vm6 = vcmp.le.s32.totalorder %v3302_v57, %v3346_v7  ;;  %vm587_vm7 = vcmp.le.s32.totalorder %v3302_v57, %v3349_v8  ;;  %v4271_v25 = vmov 0  }
  0x41   : > { %2749 = vmatpush3.bf16.xpose.msra.mxu0 %v655_v37  ;;  %vm589_vm8 = vcmp.le.s32.totalorder %v3302_v57, %v3358_v11  ;;  %2934 = vset.pattern.permute.xlu0 %v4271_v25  ;;  %v3402_v37 = vld [vmem:[%s3399_s27] ss:$8 sps:$4 sm:$0xff]   ;;  %vm1287_vm9 = vcmp.ge.s32.totalorder %v3302_v57, 64 }
  0x42   : > { %2876 = vmatprep.subr.msk.bf16.mxu0 %vm638_vm0, %v3248_v38  ;;  %2935 = vset.pattern.permute.xlu1 %v4271_v25 }
  0x43   : > { %2762 = vmatprep.subr.bf16.mxu1 %v3402_v37 }
  0x44   : > { %2763 = vmatpush3.bf16.msra.mxu1 %v3402_v37 }
  0x49   : > { %2751 = vmatpush3.bf16.xpose.msra.mxu0 %v658_v40 }
  0x4a   : > { %2877 = vmatprep.subr.msk.bf16.mxu0 %vm638_vm0, %v3259_v41 }
  0x51   : > { %2753 = vmatpush3.bf16.xpose.msra.mxu0 %v661_v42 }
  0x58   : > { %2755 = vmatmul.mubr.msk.bf16.vlgmr.msra.gmra.mrb[0].mxu0 %vm638_vm0, %v3271_v47 }
  0x59   : > { %2758 = vmatprep.mubr.msk.bf16.mxu0 %vm638_vm0, %v3277_v48 }
  0x60   : > { %2759 = vmatmul.mubr.msk.bf16.gmra.mrb[4].mxu0 %vm638_vm0, %v3293_v53 }
 0x12b   : > { %v2756_v60 = vpop.f32.mrb[0].mxu0 }
 0x12c   : > { %v3319_v61 = vsel %vm584_vm1, %v2756_v60, -1e+30  ;;  %v697_v62 = vpop.f32.mrb[1].mxu0 }
 0x12d   : > { %v3326_v63 = vsel %vm582_vm2, %v697_v62, -1e+30  ;;  %v2757_v0 = vpop.f32.mrb[2].mxu0  ;;  %v742_v1 = vsel %vm638_vm0, %v3319_v61, -inf  ;;  %v3416_v62 = vld [vmem:[%s3399_s27 + $0x20] ss:$8 sps:$4 sm:$0xff]  }
 0x12e   : > { %v3333_v2 = vsel %vm585_vm3, %v2757_v0, -1e+30  ;;  %743 = vmax.xlane.f32.xlu1 %v742_v1  ;;  %v700_v3 = vpop.f32.mrb[3].mxu0  ;;  %v736_v4 = vsel %vm638_vm0, %v3326_v63, -inf  ;;  %v3423_v1 = vld [vmem:[%s3399_s27 + $0x30] ss:$8 sps:$4 sm:$0xff]  }
 0x12f   : > { %v3343_v6 = vsel %vm583_vm4, %v700_v3, -1e+30  ;;  %737 = vmax.xlane.f32.xlu0 %v736_v4  ;;  %v745_v9 = vsel %vm638_vm0, %v3333_v2, -inf }
 0x130   : > { %v739_v10 = vsel %vm638_vm0, %v3343_v6, -inf }
 0x132   : > { %746 = vmax.xlane.f32.xlu1 %v745_v9 }
 0x133   : > { %740 = vmax.xlane.f32.xlu0 %v739_v10  ;;  %v2760_v12 = vpop.f32.mrb[4].mxu0 }
 0x134   : > { %v713_v13 = vpop.f32.mrb[5].mxu0  ;;  %v3376_v18 = vsel %vm588_vm6, %v2760_v12, -1e+30 }
 0x135   : > { %v3367_v14 = vsel %vm586_vm5, %v713_v13, -1e+30  ;;  %v2761_v15 = vpop.f32.mrb[6].mxu0  ;;  %v754_v22 = vsel %vm638_vm0, %v3376_v18, -inf }
 0x136   : > { %v716_v16 = vpop.f32.mrb[7].mxu0  ;;  %v748_v17 = vsel %vm638_vm0, %v3367_v14, -inf  ;;  %v3388_v21 = vsel %vm589_vm8, %v2761_v15, -1e+30 }
 0x137   : > { %v3381_v19 = vsel %vm587_vm7, %v716_v16, -1e+30  ;;  %749 = vmax.xlane.f32.xlu0 %v748_v17  ;;  %v757_v23 = vsel %vm638_vm0, %v3388_v21, -inf }
 0x138   : > { %v751_v20 = vsel %vm638_vm0, %v3381_v19, -inf }
 0x139   : > { %752 = vmax.xlane.f32.xlu1 %v751_v20 }
 0x13b   : > { %755 = vmax.xlane.f32.xlu0 %v754_v22 }
 0x13d   : > { %758 = vmax.xlane.f32.xlu1 %v757_v23 }
 0x1bb   : > { %v744_v27 = vpop.xlane.xlu1 %743 }
 0x1bc   : > { %v762_v28 = vmax.f32 %v744_v27, -1e+30  ;;  %v738_v29 = vpop.xlane.xlu0 %737 }
 0x1bd   : > { %v760_v30 = vmax.f32 %v738_v29, -1e+30 }
 0x1be   : > { %780 = vperm.xlu1 %2935, %v762_v28  }
 0x1bf   : > { %770 = vperm.xlu0 %2934, %v760_v30   ;;  %v747_v35 = vpop.xlane.xlu1 %746 }
 0x1c0   : > { %v741_v31 = vpop.xlane.xlu0 %740  ;;  %v763_v40 = vmax.f32 %v747_v35, -1e+30 }
 0x1c1   : > { %v761_v32 = vmax.f32 %v741_v31, -1e+30 }
 0x1c3   : > { %775 = vperm.xlu1 %2935, %v761_v32   ;;  %971 = vrot.lane.b32.xlu0 %v3236_v26, %s3135_s26  ;;  %v3409_v26 = vld [vmem:[%s3399_s27 + $0x10] ss:$8 sps:$4 sm:$0xff]  }
 0x1c4   : > { %v750_v36 = vpop.xlane.xlu0 %749  ;;  %2764 = vmatprep.subr.bf16.mxu1 %v3409_v26 }
 0x1c5   : > { %2765 = vmatpush3.bf16.msra.mxu1 %v3409_v26  ;;  %v764_v0 = vmax.f32 %v750_v36, -1e+30 }
 0x1c6   : > { %v753_v42 = vpop.xlane.xlu1 %752  ;;  %2766 = vmatprep.subr.bf16.mxu1 %v3416_v62 }
 0x1c7   : > { %785 = vperm.xlu1 %2935, %v763_v40   ;;  %975 = vrot.lane.b32.xlu0 %v3259_v41, %s3135_s26 }
 0x1c8   : > { %v756_v54 = vpop.xlane.xlu0 %755 }
 0x1c9   : > { %v766_v60 = vmax.f32 %v756_v54, -1e+30  ;;  %2767 = vmatpush3.bf16.msra.mxu1 %v3416_v62 }
 0x1ca   : > { %v759_v41 = vpop.xlane.xlu1 %758  ;;  %2768 = vmatprep.subr.bf16.mxu1 %v3423_v1 }
 0x1cb   : > { %800 = vperm.xlu1 %2935, %v766_v60   ;;  %963 = vrot.lane.b32.xlu0 %v3271_v47, %s3135_s26  ;;  %v767_v3 = vmax.f32 %v759_v41, -1e+30  ;;  %v765_v47 = vmax.f32 %v753_v42, -1e+30 }
 0x1cd   : > { %2769 = vmatpush3.bf16.msra.mxu1 %v3423_v1 }
 0x1cf   : > { %790 = vperm.xlu1 %2935, %v764_v0   ;;  %967 = vrot.lane.b32.xlu0 %v3293_v53, %s3135_s26 }
 0x1d3   : > { %805 = vperm.xlu1 %2935, %v767_v3  }
 0x1d7   : > { %795 = vperm.xlu1 %2935, %v765_v47  }
 0x1db   : > { %969 = vrot.lane.b32.xlu1 %v3229_v24, %s3135_s26 }
 0x1df   : > { %973 = vrot.lane.b32.xlu1 %v3248_v38, %s3135_s26 }
 0x1e3   : > { %961 = vrot.lane.b32.xlu1 %v3241_v33, %s3135_s26 }
 0x1e7   : > { %965 = vrot.lane.b32.xlu1 %v3277_v48, %s3135_s26 }
 0x23d   : > { %v3435_v53 = vpop.permute.xlu1 %780 }
 0x23e   : > { %4294 = vst [vmem:[#allocation8_spill] sm:$0xff] %v3435_v53  ;;  %v3437_v4 = vpop.permute.xlu0 %770  ;;  %v810_v10 = vsub.f32 %v3319_v61, %v3435_v53 }
 0x23f   : > { %v808_v9 = vsub.f32 %v3326_v63, %v3437_v4 }
 0x240   : > { %v820_v13 = vmul.f32 1.442695, %v810_v10 }
 0x241   : > { %v816_v24 = vmul.f32 1.442695, %v808_v9 }
 0x242   : > { %v3443_v12 = vpop.permute.xlu1 %775  ;;  %v972_v40 = vpop.permute.xlu0 %971 }
 0x243   : > { %4295 = vst [vmem:[#allocation9_spill] sm:$0xff] %v3443_v12  ;;  %v809_v38 = vsub.f32 %v3343_v6, %v3443_v12  ;;  %2966 = vpow2.f32 %v816_v24  ;;  %v993_v54 = vsel %vm638_vm0, %v972_v40, 0 }
 0x245   : > { %v818_v33 = vmul.f32 1.442695, %v809_v38 }
 0x246   : > { %v3447_v48 = vpop.permute.xlu1 %785  ;;  %v976_v38 = vpop.permute.xlu0 %975 }
 0x247   : > { %4296 = vst [vmem:[#allocation10_spill] sm:$0xff] %v3447_v48  ;;  %2968 = vpow2.f32 %v818_v33  ;;  %v811_v15 = vsub.f32 %v3333_v2, %v3447_v48  ;;  %v999_v33 = vsel %vm638_vm0, %v976_v38, 0 }
 0x248   : > { %2970 = vpow2.f32 %v820_v13 }
 0x249   : > { %v822_v16 = vmul.f32 1.442695, %v811_v15 }
 0x24a   : > { %v3451_v63 = vpop.permute.xlu1 %800  ;;  %v964_v13 = vpop.permute.xlu0 %963 }
 0x24b   : > { %4297 = vst [vmem:[#allocation11_spill] sm:$0xff] %v3451_v63  ;;  %2972 = vpow2.f32 %v822_v16  ;;  %v814_v28 = vsub.f32 %v3376_v18, %v3451_v63 }
 0x24d   : > { %v3455_v17 = vpop.eup %2966 }
 0x24e   : > { %v3453_v61 = vpop.permute.xlu1 %790  ;;  %v968_v16 = vpop.permute.xlu0 %967 }
 0x24f   : > { %v812_v6 = vsub.f32 %v3367_v14, %v3453_v61 }
 0x251   : > { %v3457_v20 = vpop.eup %2968  ;;  %v824_v30 = vmul.f32 1.442695, %v812_v6 }
 0x252   : > { %v3461_v22 = vpop.permute.xlu1 %805  ;;  %v856_v23 = vpack.c.bf16 %v3457_v20, %v3455_v17  ;;  %v3467_v27 = vpop.eup %2970 }
 0x253   : > { %4298 = vst [vmem:[#allocation12_spill] sm:$0xff] %v3461_v22  ;;  %v815_v2 = vsub.f32 %v3388_v21, %v3461_v22  ;;  %v828_v21 = vmul.f32 1.442695, %v814_v28  ;;  %2974 = vpow2.f32 %v824_v30 }
 0x254   : > { %2770 = vmatprep.mubr.msk.bf16.mxu1 %vm638_vm0, %v856_v23 }
 0x255   : > { %v3472_v29 = vpop.eup %2972  ;;  %v830_v31 = vmul.f32 1.442695, %v815_v2 }
 0x256   : > { %v3474_v14 = vpop.permute.xlu1 %795  ;;  %v857_v32 = vpack.c.bf16 %v3472_v29, %v3467_v27 }
 0x257   : > { %4299 = vst [vmem:[#allocation13_spill] sm:$0xff] %v3474_v14  ;;  %v813_v35 = vsub.f32 %v3381_v19, %v3474_v14  ;;  %2976 = vpow2.f32 %v830_v31 }
 0x258   : > { %2771 = vmatmul.mubr.msk.bf16.vlgmr.msra.gmra.mrb[0].mxu1 %vm638_vm0, %v857_v32 }
 0x259   : > { %v826_v36 = vmul.f32 1.442695, %v813_v35 }
 0x25a   : > { %v970_v18 = vpop.permute.xlu1 %969 }
 0x25b   : > { %2978 = vpow2.f32 %v826_v36  ;;  %2878 = vmatprep.subr.msk.bf16.mxu1 %vm638_vm0, %v970_v18  ;;  %v990_v42 = vsel %vm638_vm0, %v970_v18, 0 }
 0x25c   : > { %2980 = vpow2.f32 %v828_v21  ;;  %2779 = vmatpush3.bf16.xpose.msra.mxu1 %v990_v42 }
 0x25d   : > { %2879 = vmatprep.subr.msk.bf16.mxu1 %vm638_vm0, %v972_v40  ;;  %v3485_v60 = vpop.eup %2974 }
 0x25e   : > { %v974_v19 = vpop.permute.xlu1 %973 }
 0x25f   : > { %v996_v24 = vsel %vm638_vm0, %v974_v19, 0 }
 0x261   : > { %v3487_v0 = vpop.eup %2976 }
 0x262   : > { %v962_v10 = vpop.permute.xlu1 %961 }
 0x264   : > { %2781 = vmatpush3.bf16.xpose.msra.mxu1 %v993_v54 }
 0x265   : > { %v3489_v41 = vpop.eup %2978  ;;  %2880 = vmatprep.subr.msk.bf16.mxu1 %vm638_vm0, %v974_v19 }
 0x266   : > { %v3492_v3 = vpop.eup %2980  ;;  %v858_v47 = vpack.c.bf16 %v3489_v41, %v3485_v60  ;;  %v966_v15 = vpop.permute.xlu1 %965 }
 0x267   : > { %v859_v9 = vpack.c.bf16 %v3487_v0, %v3492_v3 }
 0x268   : > { %2774 = vmatprep.mubr.msk.bf16.mxu1 %vm638_vm0, %v858_v47 }
 0x269   : > { %2775 = vmatmul.mubr.msk.bf16.gmra.mrb[4].mxu1 %vm638_vm0, %v859_v9 }
 0x26a   : > { %2786 = vmatprep.mubr.msk.bf16.mxu1 %vm638_vm0, %v962_v10 }
 0x26c   : > { %2783 = vmatpush3.bf16.xpose.msra.mxu1 %v996_v24 }
 0x26d   : > { %2881 = vmatprep.subr.msk.bf16.mxu1 %vm638_vm0, %v976_v38 }
 0x274   : > { %2785 = vmatpush3.bf16.xpose.msra.mxu1 %v999_v33 }
 0x27b   : > { %2787 = vmatmul.mubr.msk.bf16.vlgmr.msra.gmra.mrb[8].mxu1 %vm638_vm0, %v964_v13 }
 0x27c   : > { %2790 = vmatprep.mubr.msk.bf16.mxu1 %vm638_vm0, %v966_v15 }
 0x283   : > { %2791 = vmatmul.mubr.msk.bf16.gmra.mrb[12].mxu1 %vm638_vm0, %v968_v16 }
 0x32b   : > { %v3507_v6 = vpop.f32.mrb[0].mxu1 }
 0x32c   : > { %4300 = vst [vmem:[#allocation14_spill] sm:$0xff] %v3507_v6  ;;  %v3509_v23 = vpop.f32.mrb[1].mxu1 }
 0x32d   : > { %4301 = vst [vmem:[#allocation15_spill] sm:$0xff] %v3509_v23  ;;  %v3511_v2 = vpop.f32.mrb[2].mxu1 }
 0x32e   : > { %4302 = vst [vmem:[#allocation16_spill] sm:$0xff] %v3511_v2  ;;  %v3513_v28 = vpop.f32.mrb[3].mxu1 }
 0x32f   : > { %4303 = vst [vmem:[#allocation17_spill] sm:$0xff] %v3513_v28 }
 0x33c   : > { %v3515_v30 = vpop.f32.mrb[4].mxu1 }
 0x33d   : > { %4304 = vst [vmem:[#allocation18_spill] sm:$0xff] %v3515_v30  ;;  %v3517_v31 = vpop.f32.mrb[5].mxu1 }
 0x33e   : > { %4305 = vst [vmem:[#allocation19_spill] sm:$0xff] %v3517_v31  ;;  %v3519_v32 = vpop.f32.mrb[6].mxu1 }
 0x33f   : > { %4306 = vst [vmem:[#allocation20_spill] sm:$0xff] %v3519_v32  ;;  %v3521_v35 = vpop.f32.mrb[7].mxu1 }
 0x340   : > { %4307 = vst [vmem:[#allocation21_spill] sm:$0xff] %v3521_v35 }
 0x34e   : > { %v2788_v21 = vpop.f32.mrb[8].mxu1 }
 0x34f   : > { %v1035_v36 = vpop.f32.mrb[9].mxu1  ;;  %v3545_v10 = vsel %vm584_vm1, %v2788_v21, -1e+30 }
 0x350   : > { %v3526_v18 = vsel %vm582_vm2, %v1035_v36, -1e+30  ;;  %v2789_v40 = vpop.f32.mrb[10].mxu1  ;;  %v1080_v13 = vsel %vm638_vm0, %v3545_v10, -inf }
 0x351   : > { %v1038_v42 = vpop.f32.mrb[11].mxu1  ;;  %v1074_v54 = vsel %vm638_vm0, %v3526_v18, -inf  ;;  %v3533_v19 = vsel %vm585_vm3, %v2789_v40, -1e+30 }
 0x352   : > { %v3538_v47 = vsel %vm583_vm4, %v1038_v42, -1e+30  ;;  %1075 = vmax.xlane.f32.xlu1 %v1074_v54  ;;  %v1083_v24 = vsel %vm638_vm0, %v3533_v19, -inf }
 0x353   : > { %v1077_v9 = vsel %vm638_vm0, %v3538_v47, -inf }
 0x354   : > { %1078 = vmax.xlane.f32.xlu0 %v1077_v9 }
 0x356   : > { %1084 = vmax.xlane.f32.xlu1 %v1083_v24  ;;  %v2792_v38 = vpop.f32.mrb[12].mxu1 }
 0x357   : > { %v1051_v33 = vpop.f32.mrb[13].mxu1  ;;  %v3561_v40 = vsel %vm588_vm6, %v2792_v38, -1e+30 }
 0x358   : > { %v3554_v15 = vsel %vm586_vm5, %v1051_v33, -1e+30  ;;  %1081 = vmax.xlane.f32.xlu0 %v1080_v13  ;;  %v2793_v16 = vpop.f32.mrb[14].mxu1  ;;  %v1092_v38 = vsel %vm638_vm0, %v3561_v40, -inf  ;;  %v4273_v33 = vmov 64  }
 0x359   : > { %v1054_v36 = vpop.f32.mrb[15].mxu1  ;;  %v1086_v21 = vsel %vm638_vm0, %v3554_v15, -inf  ;;  %v3566_v42 = vsel %vm589_vm8, %v2793_v16, -1e+30  ;;  %2936 = vset.pattern.permute.xlu0 %v4273_v33  ;;  %2937 = vset.pattern.permute.xlu1 %v4273_v33  ;;  %v3643_v33 = vld [vmem:[%s3226_s25 + $0x14] ss:$8 sps:$4 sm:$0xff]  }
 0x35a   : > { %v3571_v54 = vsel %vm587_vm7, %v1054_v36, -1e+30  ;;  %v1095_v24 = vsel %vm638_vm0, %v3566_v42, -inf }
 0x35b   : > { %v1089_v9 = vsel %vm638_vm0, %v3571_v54, -inf }
 0x35c   : > { %1090 = vmax.xlane.f32.xlu1 %v1089_v9  ;;  %1087 = vmax.xlane.f32.xlu0 %v1086_v21 }
 0x360   : > { %1096 = vmax.xlane.f32.xlu1 %v1095_v24  ;;  %1093 = vmax.xlane.f32.xlu0 %v1092_v38 }
 0x3df   : > { %v1076_v13 = vpop.xlane.xlu1 %1075 }
 0x3e0   : > { %v1098_v16 = vmax.f32 %v1076_v13, -1e+30  ;;  %v4308_v13 = vmov 0  }
 0x3e1   : > { %v1079_v36 = vpop.xlane.xlu0 %1078 }
 0x3e2   : > { %1108 = vperm.xlu0 %2936, %v1098_v16   ;;  %v1099_v38 = vmax.f32 %v1079_v36, -1e+30 }
 0x3e3   : > { %v1085_v51 = vpop.xlane.xlu1 %1084 }
 0x3e4   : > { %v1101_v45 = vmax.f32 %v1085_v51, -1e+30 }
 0x3e5   : > { %v1082_v9 = vpop.xlane.xlu0 %1081 }
 0x3e6   : > { %v1100_v21 = vmax.f32 %v1082_v9, -1e+30 }
 0x3e8   : > { %1118 = vperm.xlu1 %2937, %v1100_v21  }
 0x3e9   : > { %v1091_v52 = vpop.xlane.xlu1 %1090  ;;  %v1088_v16 = vpop.xlane.xlu0 %1087 }
 0x3ea   : > { %v1103_v46 = vmax.f32 %v1091_v52, -1e+30 }
 0x3ec   : > { %1123 = vperm.xlu1 %2937, %v1101_v45   ;;  %1133 = vperm.xlu0 %2936, %v1103_v46   ;;  %v1102_v45 = vmax.f32 %v1088_v16, -1e+30 }
 0x3ed   : > { %v1097_v24 = vpop.xlane.xlu1 %1096  ;;  %v1094_v46 = vpop.xlane.xlu0 %1093 }
 0x3ee   : > { %v1105_v25 = vmax.f32 %v1097_v24, -1e+30  ;;  %v1104_v51 = vmax.f32 %v1094_v46, -1e+30 }
 0x3f0   : > { %1113 = vperm.xlu1 %2937, %v1099_v38   ;;  %1143 = vperm.xlu0 %2936, %v1105_v25  }
 0x3f4   : > { %1198 = vrot.lane.b32.xlu1 %v3402_v37, %s3135_s26  ;;  %2939 = vset.pattern.permute.xlu0 %v4308_v13 }
 0x3f8   : > { %1200 = vrot.lane.b32.xlu1 %v3409_v26, %s3135_s26 }
 0x3fc   : > { %1202 = vrot.lane.b32.xlu1 %v3416_v62, %s3135_s26 }
 0x400   : > { %1204 = vrot.lane.b32.xlu1 %v3423_v1, %s3135_s26 }
 0x404   : > { %1128 = vperm.xlu1 %2937, %v1102_v45  }
 0x408   : > { %1138 = vperm.xlu1 %2937, %v1104_v51  }
 0x40c   : > { %2938 = vset.pattern.permute.xlu1 %v4308_v13 }
 0x461   : > { %v3593_v25 = vpop.permute.xlu0 %1108 }
 0x462   : > { %v1146_v26 = vsub.f32 %v3526_v18, %v3593_v25 }
 0x464   : > { %v1154_v9 = vmul.f32 1.442695, %v1146_v26 }
 0x466   : > { %2982 = vpow2.f32 %v1154_v9 }
 0x467   : > { %v3591_v52 = vpop.permute.xlu1 %1118 }
 0x468   : > { %4309 = vst [vmem:[#allocation22_spill] sm:$0xff] %v3591_v52  ;;  %v1148_v1 = vsub.f32 %v3545_v10, %v3591_v52 }
 0x46a   : > { %v1158_v38 = vmul.f32 1.442695, %v1148_v1 }
 0x46b   : > { %v3595_v37 = vpop.permute.xlu1 %1123 }
 0x46c   : > { %4310 = vst [vmem:[#allocation23_spill] sm:$0xff] %v3595_v37  ;;  %v1149_v62 = vsub.f32 %v3533_v19, %v3595_v37  ;;  %v3607_v19 = vpop.permute.xlu0 %1133 }
 0x46d   : > { %4312 = vst [vmem:[#allocation25_spill] sm:$0xff] %v3607_v19  ;;  %v1151_v51 = vsub.f32 %v3571_v54, %v3607_v19 }
 0x46e   : > { %v1160_v21 = vmul.f32 1.442695, %v1149_v62 }
 0x46f   : > { %v3603_v36 = vpop.permute.xlu1 %1113  ;;  %v1164_v54 = vmul.f32 1.442695, %v1151_v51 }
 0x470   : > { %4311 = vst [vmem:[#allocation24_spill] sm:$0xff] %v3603_v36  ;;  %v1147_v24 = vsub.f32 %v3538_v47, %v3603_v36  ;;  %2984 = vpow2.f32 %v1160_v21  ;;  %v3609_v45 = vpop.eup %2982  ;;  %v3612_v47 = vld [vmem:[%s3226_s25 + $0x4] ss:$8 sps:$4 sm:$0xff]   ;;  %v3620_v1 = vpop.permute.xlu0 %1143 }
 0x471   : > { %4313 = vst [vmem:[#allocation26_spill] sm:$0xff] %v3620_v1  ;;  %v1488_v51 = vsel %vm638_vm0, %v3612_v47, 0 }
 0x472   : > { %v1156_v13 = vmul.f32 1.442695, %v1147_v24 }
 0x473   : > { %v1199_v16 = vpop.permute.xlu1 %1198 }
 0x474   : > { %2794 = vmatprep.subr.bf16.mxu0 %v1199_v16  ;;  %2986 = vpow2.f32 %v1156_v13 }
 0x475   : > { %2795 = vmatpush3.bf16.msra.mxu0 %v1199_v16  ;;  %2988 = vpow2.f32 %v1158_v38  ;;  %v1153_v38 = vsub.f32 %v3566_v42, %v3620_v1 }
 0x476   : > { %2990 = vpow2.f32 %v1164_v54 }
 0x477   : > { %v1201_v18 = vpop.permute.xlu1 %1200 }
 0x478   : > { %2796 = vmatprep.subr.bf16.mxu0 %v1201_v18 }
 0x479   : > { %2797 = vmatpush3.bf16.msra.mxu0 %v1201_v18 }
 0x47a   : > { %v3614_v46 = vpop.eup %2984 }
 0x47b   : > { %v1203_v10 = vpop.permute.xlu1 %1202 }
 0x47c   : > { %2798 = vmatprep.subr.bf16.mxu0 %v1203_v10 }
 0x47d   : > { %2799 = vmatpush3.bf16.msra.mxu0 %v1203_v10  ;;  %v1168_v10 = vmul.f32 1.442695, %v1153_v38 }
 0x47e   : > { %v3618_v62 = vpop.eup %2986 }
 0x47f   : > { %v1205_v26 = vpop.permute.xlu1 %1204  ;;  %v3622_v9 = vpop.eup %2988  ;;  %v1194_v21 = vpack.c.bf16 %v3618_v62, %v3609_v45 }
 0x480   : > { %2800 = vmatprep.subr.bf16.mxu0 %v1205_v26  ;;  %v1195_v24 = vpack.c.bf16 %v3614_v46, %v3622_v9  ;;  %v3654_v54 = vpop.eup %2990 }
 0x481   : > { %2801 = vmatpush3.bf16.msra.mxu0 %v1205_v26  ;;  %2802 = vmatprep.mubr.msk.bf16.mxu0 %vm638_vm0, %v1194_v21 }
 0x482   : > { %2882 = vmatprep.subr.msk.bf16.mxu0 %vm638_vm0, %v3612_v47 }
 0x483   : > { %v3633_v13 = vpop.permute.xlu1 %1128 }
 0x484   : > { %4314 = vst [vmem:[#allocation27_spill] sm:$0xff] %v3633_v13  ;;  %v1150_v16 = vsub.f32 %v3554_v15, %v3633_v13  ;;  %2803 = vmatmul.mubr.msk.bf16.vlgmr.msra.gmra.mrb[8].mxu0 %vm638_vm0, %v1195_v24  ;;  %v1491_v15 = vsel %vm638_vm0, %v3643_v33, 0  ;;  %v3652_v24 = vld [vmem:[%s3226_s25 + $0x24] ss:$8 sps:$4 sm:$0xff]  }
 0x486   : > { %v1162_v18 = vmul.f32 1.442695, %v1150_v16 }
 0x487   : > { %v3638_v26 = vpop.permute.xlu1 %1138 }
 0x488   : > { %4315 = vst [vmem:[#allocation28_spill] sm:$0xff] %v3638_v26  ;;  %2992 = vpow2.f32 %v1162_v18  ;;  %v1152_v42 = vsub.f32 %v3561_v40, %v3638_v26 }
 0x489   : > { %2994 = vpow2.f32 %v1168_v10 }
 0x48a   : > { %v1166_v21 = vmul.f32 1.442695, %v1152_v42  ;;  %2811 = vmatpush3.bf16.xpose.msra.mxu0 %v1488_v51  ;;  %v1494_v51 = vsel %vm638_vm0, %v3652_v24, 0  ;;  %v3672_v42 = vld [vmem:[%s3226_s25 + $0x34] ss:$8 sps:$4 sm:$0xff]  }
 0x48b   : > { %2883 = vmatprep.subr.msk.bf16.mxu0 %vm638_vm0, %v3643_v33 }
 0x48c   : > { %2996 = vpow2.f32 %v1166_v21  ;;  %v1497_v21 = vsel %vm638_vm0, %v3672_v42, 0 }
 0x492   : > { %v3656_v38 = vpop.eup %2992  ;;  %2813 = vmatpush3.bf16.xpose.msra.mxu0 %v1491_v15  ;;  %v4316_v15 = vmul.bf16 1040203264, %v3267_v44 }
 0x493   : > { %v1196_v40 = vpack.c.bf16 %v3654_v54, %v3656_v38  ;;  %2884 = vmatprep.subr.msk.bf16.mxu0 %vm638_vm0, %v3652_v24  ;;  %v3662_v16 = vpop.eup %2994 }
 0x495   : > { %2806 = vmatprep.mubr.msk.bf16.mxu0 %vm638_vm0, %v1196_v40  ;;  %v4317_v40 = vmul.bf16 1040203264, %v3265_v43 }
 0x496   : > { %v3665_v18 = vpop.eup %2996 }
 0x497   : > { %v1197_v10 = vpack.c.bf16 %v3662_v16, %v3665_v18  ;;  %v3685_v32 = vcombine.high %v4317_v40, %v4316_v15 }
 0x499   : > { %2807 = vmatmul.mubr.msk.bf16.gmra.mrb[12].mxu0 %vm638_vm0, %v1197_v10  ;;  %v4318_v10 = vmul.bf16 1040203264, %v3281_v50 }
 0x49a   : > { %2815 = vmatpush3.bf16.xpose.msra.mxu0 %v1494_v51  ;;  %2818 = vmatprep.mubr.msk.bf16.mxu0 %vm638_vm0, %v3243_v34  ;;  %v4319_v51 = vmul.bf16 1040203264, %v3279_v49 }
 0x49b   : > { %2885 = vmatprep.subr.msk.bf16.mxu0 %vm638_vm0, %v3672_v42 }
 0x49c   : > { %v3695_v35 = vcombine.high %v4319_v51, %v4318_v10 }
 0x4a2   : > { %2817 = vmatpush3.bf16.xpose.msra.mxu0 %v1497_v21 }
 0x4a9   : > { %2819 = vmatmul.mubr.msk.bf16.vlgmr.msra.gmra.mrb[16].mxu0 %vm638_vm0, %v3252_v39 }
 0x4aa   : > { %2822 = vmatprep.mubr.msk.bf16.mxu0 %vm638_vm0, %v3685_v32 }
 0x4b1   : > { %2823 = vmatmul.mubr.msk.bf16.gmra.mrb[20].mxu0 %vm638_vm0, %v3695_v35 }
 0x557   : > { %v3699_v44 = vpop.f32.mrb[8].mxu0 }
 0x558   : > { %v3701_v43 = vpop.f32.mrb[9].mxu0 }
 0x559   : > { %v3703_v21 = vpop.f32.mrb[10].mxu0 }
 0x55a   : > { %v3705_v15 = vpop.f32.mrb[11].mxu0 }
 0x56c   : > { %v3707_v40 = vpop.f32.mrb[12].mxu0 }
 0x56d   : > { %v3709_v2 = vpop.f32.mrb[13].mxu0 }
 0x56e   : > { %v3711_v50 = vpop.f32.mrb[14].mxu0 }
 0x56f   : > { %v3713_v49 = vpop.f32.mrb[15].mxu0 }
 0x57c   : > { %v2820_v10 = vpop.f32.mrb[16].mxu0 }
 0x57d   : > { %v3718_v51 = vsel %vm584_vm1, %v2820_v10, -1e+30  ;;  %v1533_v6 = vpop.f32.mrb[17].mxu0 }
 0x57e   : > { %v3723_v28 = vsel %vm582_vm2, %v1533_v6, -1e+30  ;;  %v2821_v30 = vpop.f32.mrb[18].mxu0  ;;  %v1578_v1 = vsel %vm638_vm0, %v3718_v51, -inf }
 0x57f   : > { %1579 = vmax.xlane.f32.xlu0 %v1578_v1  ;;  %v1536_v22 = vpop.f32.mrb[19].mxu0  ;;  %v1572_v31 = vsel %vm638_vm0, %v3723_v28, -inf  ;;  %v3739_v6 = vsel %vm585_vm3, %v2821_v30, -1e+30 }
 0x580   : > { %v3732_v10 = vsel %vm583_vm4, %v1536_v22, -1e+30  ;;  %1573 = vmax.xlane.f32.xlu1 %v1572_v31  ;;  %v1581_v22 = vsel %vm638_vm0, %v3739_v6, -inf }
 0x581   : > { %v1575_v19 = vsel %vm638_vm0, %v3732_v10, -inf }
 0x583   : > { %1576 = vmax.xlane.f32.xlu0 %v1575_v19 }
 0x584   : > { %v2824_v1 = vpop.f32.mrb[20].mxu0 }
 0x585   : > { %v1549_v14 = vpop.f32.mrb[21].mxu0  ;;  %v3753_v30 = vsel %vm588_vm6, %v2824_v1, -1e+30 }
 0x586   : > { %v3744_v23 = vsel %vm586_vm5, %v1549_v14, -1e+30  ;;  %v2825_v37 = vpop.f32.mrb[22].mxu0  ;;  %v1590_v52 = vsel %vm638_vm0, %v3753_v30, -inf }
 0x587   : > { %1582 = vmax.xlane.f32.xlu0 %v1581_v22  ;;  %v1552_v31 = vpop.f32.mrb[23].mxu0  ;;  %v1584_v48 = vsel %vm638_vm0, %v3744_v23, -inf  ;;  %v3765_v22 = vsel %vm589_vm8, %v2825_v37, -1e+30 }
 0x588   : > { %v3758_v19 = vsel %vm587_vm7, %v1552_v31, -1e+30  ;;  %1585 = vmax.xlane.f32.xlu1 %v1584_v48  ;;  %v1593_v1 = vsel %vm638_vm0, %v3765_v22, -inf }
 0x589   : > { %v1587_v14 = vsel %vm638_vm0, %v3758_v19, -inf }
 0x58b   : > { %1588 = vmax.xlane.f32.xlu0 %v1587_v14 }
 0x58c   : > { %1591 = vmax.xlane.f32.xlu1 %v1590_v52  ;;  %v3774_v52 = vld [vmem:[%s3399_s27 + $0x4] ss:$8 sps:$4 sm:$0xff]  }
 0x58d   : > { %2826 = vmatprep.subr.bf16.mxu1 %v3774_v52 }
 0x58e   : > { %2827 = vmatpush3.bf16.msra.mxu1 %v3774_v52 }
 0x58f   : > { %1594 = vmax.xlane.f32.xlu0 %v1593_v1  ;;  %v4320_v1 = vmov 64  }
 0x60c   : > { %v1580_v31 = vpop.xlane.xlu0 %1579 }
 0x60d   : > { %v1574_v48 = vpop.xlane.xlu1 %1573  ;;  %v1598_v26 = vmax.f32 %v1580_v31, -1e+30 }
 0x60e   : > { %v1596_v53 = vmax.f32 %v1574_v48, -1e+30 }
 0x610   : > { %v1577_v36 = vpop.xlane.xlu0 %1576  ;;  %1606 = vperm.xlu1 %2938, %v1596_v53  }
 0x611   : > { %v1597_v12 = vmax.f32 %v1577_v36, -1e+30 }
 0x613   : > { %1611 = vperm.xlu0 %2939, %v1597_v12   ;;  %v3782_v12 = vld [vmem:[%s3399_s27 + $0x14] ss:$8 sps:$4 sm:$0xff]  }
 0x614   : > { %v1583_v37 = vpop.xlane.xlu0 %1582  ;;  %1616 = vperm.xlu1 %2938, %v1598_v26   ;;  %2828 = vmatprep.subr.bf16.mxu1 %v3782_v12 }
 0x615   : > { %v1599_v14 = vmax.f32 %v1583_v37, -1e+30  ;;  %v1586_v63 = vpop.xlane.xlu1 %1585  ;;  %2829 = vmatpush3.bf16.msra.mxu1 %v3782_v12 }
 0x616   : > { %v1600_v36 = vmax.f32 %v1586_v63, -1e+30 }
 0x617   : > { %1801 = vrot.lane.b32.xlu0 %v3652_v24, %s3135_s26  ;;  %v3789_v24 = vld [vmem:[%s3399_s27 + $0x24] ss:$8 sps:$4 sm:$0xff]  }
 0x618   : > { %1621 = vperm.xlu1 %2938, %v1599_v14   ;;  %2941 = vset.pattern.permute.xlu0 %v4320_v1  ;;  %v1589_v48 = vpop.xlane.xlu0 %1588 }
 0x619   : > { %v1592_v13 = vpop.xlane.xlu1 %1591  ;;  %2830 = vmatprep.subr.bf16.mxu1 %v3789_v24  ;;  %v1601_v63 = vmax.f32 %v1589_v48, -1e+30 }
 0x61a   : > { %v1602_v53 = vmax.f32 %v1592_v13, -1e+30  ;;  %2831 = vmatpush3.bf16.msra.mxu1 %v3789_v24 }
 0x61b   : > { %1789 = vrot.lane.b32.xlu0 %v3243_v34, %s3135_s26  ;;  %v3794_v34 = vld [vmem:[%s3399_s27 + $0x34] ss:$8 sps:$4 sm:$0xff]  }
 0x61c   : > { %1636 = vperm.xlu1 %2938, %v1602_v53   ;;  %v1595_v26 = vpop.xlane.xlu0 %1594  ;;  %2832 = vmatprep.subr.bf16.mxu1 %v3794_v34 }
 0x61d   : > { %v1603_v13 = vmax.f32 %v1595_v26, -1e+30 }
 0x61e   : > { %2833 = vmatpush3.bf16.msra.mxu1 %v3794_v34 }
 0x61f   : > { %1793 = vrot.lane.b32.xlu0 %v3685_v32, %s3135_s26 }
 0x620   : > { %1626 = vperm.xlu1 %2938, %v1600_v36  }
 0x624   : > { %1641 = vperm.xlu1 %2938, %v1603_v13  }
 0x628   : > { %1631 = vperm.xlu1 %2938, %v1601_v63  }
 0x62c   : > { %1797 = vrot.lane.b32.xlu1 %v3612_v47, %s3135_s26 }
 0x62d   : > { %2940 = vset.pattern.permute.xlu1 %v4320_v1 }
 0x630   : > { %1799 = vrot.lane.b32.xlu1 %v3643_v33, %s3135_s26 }
 0x634   : > { %1803 = vrot.lane.b32.xlu1 %v3672_v42, %s3135_s26 }
 0x638   : > { %1791 = vrot.lane.b32.xlu1 %v3252_v39, %s3135_s26 }
 0x63c   : > { %1795 = vrot.lane.b32.xlu1 %v3695_v35, %s3135_s26 }
 0x68f   : > { %v3809_v32 = vpop.permute.xlu1 %1606 }
 0x690   : > { %v1644_v31 = vsub.f32 %v3723_v28, %v3809_v32 }
 0x692   : > { %v1652_v47 = vmul.f32 1.442695, %v1644_v31  ;;  %v3813_v37 = vpop.permute.xlu0 %1611 }
 0x693   : > { %4321 = vst [vmem:[#allocation29_spill] sm:$0xff] %v3813_v37  ;;  %v1645_v33 = vsub.f32 %v3732_v10, %v3813_v37  ;;  %v3817_v14 = vpop.permute.xlu1 %1616 }
 0x694   : > { %v1646_v42 = vsub.f32 %v3718_v51, %v3817_v14  ;;  %2998 = vpow2.f32 %v1652_v47 }
 0x695   : > { %v1654_v39 = vmul.f32 1.442695, %v1645_v33 }
 0x696   : > { %v1656_v35 = vmul.f32 1.442695, %v1646_v42 }
 0x697   : > { %3000 = vpow2.f32 %v1654_v39  ;;  %v3821_v1 = vpop.permute.xlu1 %1621 }
 0x698   : > { %v1647_v28 = vsub.f32 %v3739_v6, %v3821_v1  ;;  %3002 = vpow2.f32 %v1656_v35 }
 0x69a   : > { %v1658_v48 = vmul.f32 1.442695, %v1647_v28 }
 0x69b   : > { %v3825_v53 = vpop.permute.xlu1 %1636 }
 0x69c   : > { %4322 = vst [vmem:[#allocation30_spill] sm:$0xff] %v3825_v53  ;;  %3004 = vpow2.f32 %v1658_v48  ;;  %v1650_v47 = vsub.f32 %v3753_v30, %v3825_v53 }
 0x69e   : > { %v3829_v36 = vpop.eup %2998 }
 0x69f   : > { %v3827_v10 = vpop.permute.xlu1 %1626 }
 0x6a0   : > { %4323 = vst [vmem:[#allocation31_spill] sm:$0xff] %v3827_v10  ;;  %v1648_v51 = vsub.f32 %v3744_v23, %v3827_v10 }
 0x6a1   : > { %v3831_v26 = vpop.eup %3000 }
 0x6a2   : > { %v1692_v13 = vpack.c.bf16 %v3831_v26, %v3829_v36  ;;  %v3842_v31 = vpop.eup %3002  ;;  %v1660_v42 = vmul.f32 1.442695, %v1648_v51 }
 0x6a3   : > { %v3837_v63 = vpop.permute.xlu1 %1641 }
 0x6a4   : > { %4324 = vst [vmem:[#allocation32_spill] sm:$0xff] %v3837_v63  ;;  %v1651_v6 = vsub.f32 %v3765_v22, %v3837_v63  ;;  %2834 = vmatprep.mubr.msk.bf16.mxu1 %vm638_vm0, %v1692_v13  ;;  %v1664_v22 = vmul.f32 1.442695, %v1650_v47  ;;  %3006 = vpow2.f32 %v1660_v42 }
 0x6a6   : > { %v3846_v33 = vpop.eup %3004  ;;  %v1666_v39 = vmul.f32 1.442695, %v1651_v6 }
 0x6a7   : > { %v1693_v23 = vpack.c.bf16 %v3846_v33, %v3842_v31  ;;  %v3850_v35 = vpop.permute.xlu1 %1631 }
 0x6a8   : > { %4325 = vst [vmem:[#allocation33_spill] sm:$0xff] %v3850_v35  ;;  %v1649_v28 = vsub.f32 %v3758_v19, %v3850_v35  ;;  %3008 = vpow2.f32 %v1666_v39  ;;  %v1802_v19 = vpop.permute.xlu0 %1801 }
 0x6a9   : > { %2835 = vmatmul.mubr.msk.bf16.vlgmr.msra.gmra.mrb[16].mxu1 %vm638_vm0, %v1693_v23 }
 0x6aa   : > { %v1662_v48 = vmul.f32 1.442695, %v1649_v28 }
 0x6ab   : > { %v1798_v13 = vpop.permute.xlu1 %1797 }
 0x6ac   : > { %3010 = vpow2.f32 %v1662_v48  ;;  %v1818_v30 = vsel %vm638_vm0, %v1798_v13, 0  ;;  %2886 = vmatprep.subr.msk.bf16.mxu1 %vm638_vm0, %v1798_v13  ;;  %v1790_v48 = vpop.permute.xlu0 %1789  ;;  %v1824_v13 = vsel %vm638_vm0, %v1802_v19, 0 }
 0x6ad   : > { %3012 = vpow2.f32 %v1664_v22  ;;  %2843 = vmatpush3.bf16.xpose.msra.mxu1 %v1818_v30 }
 0x6ae   : > { %v3859_v47 = vpop.eup %3006 }
 0x6af   : > { %v1800_v51 = vpop.permute.xlu1 %1799 }
 0x6b0   : > { %2887 = vmatprep.subr.msk.bf16.mxu1 %vm638_vm0, %v1800_v51  ;;  %v1821_v6 = vsel %vm638_vm0, %v1800_v51, 0  ;;  %v1794_v63 = vpop.permute.xlu0 %1793 }
 0x6b2   : > { %v3861_v23 = vpop.eup %3008 }
 0x6b3   : > { %v1804_v30 = vpop.permute.xlu1 %1803 }
 0x6b4   : > { %v1827_v51 = vsel %vm638_vm0, %v1804_v30, 0 }
 0x6b5   : > { %2845 = vmatpush3.bf16.xpose.msra.mxu1 %v1821_v6 }
 0x6b6   : > { %v3863_v42 = vpop.eup %3010  ;;  %2888 = vmatprep.subr.msk.bf16.mxu1 %vm638_vm0, %v1802_v19 }
 0x6b7   : > { %v3866_v39 = vpop.eup %3012  ;;  %v1694_v28 = vpack.c.bf16 %v3863_v42, %v3859_v47  ;;  %v1792_v6 = vpop.permute.xlu1 %1791 }
 0x6b8   : > { %v1695_v22 = vpack.c.bf16 %v3861_v23, %v3866_v39 }
 0x6b9   : > { %2838 = vmatprep.mubr.msk.bf16.mxu1 %vm638_vm0, %v1694_v28 }
 0x6ba   : > { %2839 = vmatmul.mubr.msk.bf16.gmra.mrb[20].mxu1 %vm638_vm0, %v1695_v22 }
 0x6bb   : > { %2850 = vmatprep.mubr.msk.bf16.mxu1 %vm638_vm0, %v1790_v48  ;;  %v1796_v28 = vpop.permute.xlu1 %1795 }
 0x6bd   : > { %2847 = vmatpush3.bf16.xpose.msra.mxu1 %v1824_v13 }
 0x6be   : > { %2889 = vmatprep.subr.msk.bf16.mxu1 %vm638_vm0, %v1804_v30 }
 0x6c5   : > { %2849 = vmatpush3.bf16.xpose.msra.mxu1 %v1827_v51 }
 0x6cc   : > { %2851 = vmatmul.mubr.msk.bf16.vlgmr.msra.gmra.mrb[24].mxu1 %vm638_vm0, %v1792_v6 }
 0x6cd   : > { %2854 = vmatprep.mubr.msk.bf16.mxu1 %vm638_vm0, %v1794_v63 }
 0x6d4   : > { %2855 = vmatmul.mubr.msk.bf16.gmra.mrb[28].mxu1 %vm638_vm0, %v1796_v28 }
 0x77c   : > { %v3881_v22 = vpop.f32.mrb[16].mxu1 }
 0x77d   : > { %4326 = vst [vmem:[#allocation34_spill] sm:$0xff] %v3881_v22  ;;  %v3883_v19 = vpop.f32.mrb[17].mxu1 }
 0x77e   : > { %4327 = vst [vmem:[#allocation35_spill] sm:$0xff] %v3883_v19  ;;  %v3885_v48 = vpop.f32.mrb[18].mxu1 }
 0x77f   : > { %4328 = vst [vmem:[#allocation36_spill] sm:$0xff] %v3885_v48  ;;  %v3887_v13 = vpop.f32.mrb[19].mxu1 }
 0x780   : > { %4329 = vst [vmem:[#allocation37_spill] sm:$0xff] %v3887_v13 }
 0x78d   : > { %v3889_v35 = vpop.f32.mrb[20].mxu1 }
 0x78e   : > { %4330 = vst [vmem:[#allocation38_spill] sm:$0xff] %v3889_v35  ;;  %v3891_v30 = vpop.f32.mrb[21].mxu1 }
 0x78f   : > { %4331 = vst [vmem:[#allocation39_spill] sm:$0xff] %v3891_v30  ;;  %v3893_v51 = vpop.f32.mrb[22].mxu1 }
 0x790   : > { %4332 = vst [vmem:[#allocation40_spill] sm:$0xff] %v3893_v51  ;;  %v3895_v6 = vpop.f32.mrb[23].mxu1 }
 0x791   : > { %4333 = vst [vmem:[#allocation41_spill] sm:$0xff] %v3895_v6 }
 0x79f   : > { %v2852_v63 = vpop.f32.mrb[24].mxu1 }
 0x7a0   : > { %v1863_v53 = vpop.f32.mrb[25].mxu1  ;;  %v3907_v35 = vsel %vm584_vm1, %v2852_v63, -1e+30 }
 0x7a1   : > { %v3900_v28 = vsel %vm582_vm2, %v1863_v53, -1e+30  ;;  %v2853_v19 = vpop.f32.mrb[26].mxu1  ;;  %v1908_v53 = vsel %vm638_vm0, %v3907_v35, -inf }
 0x7a2   : > { %v1866_v22 = vpop.f32.mrb[27].mxu1  ;;  %v1902_v13 = vsel %vm638_vm0, %v3900_v28, -inf  ;;  %v3921_v6 = vsel %vm585_vm3, %v2853_v19, -1e+30 }
 0x7a3   : > { %v3912_v51 = vsel %vm583_vm4, %v1866_v22, -1e+30  ;;  %1903 = vmax.xlane.f32.xlu0 %v1902_v13 }
 0x7a4   : > { %v1905_v55 = vsel %vm638_vm0, %v3912_v51, -inf }
 0x7a5   : > { %1906 = vmax.xlane.f32.xlu1 %v1905_v55  ;;  %v1911_v55 = vsel %vm638_vm0, %v3921_v6, -inf }
 0x7a7   : > { %1909 = vmax.xlane.f32.xlu0 %v1908_v53  ;;  %v2856_v56 = vpop.f32.mrb[28].mxu1 }
 0x7a8   : > { %v1879_v63 = vpop.f32.mrb[29].mxu1  ;;  %v3935_v58 = vsel %vm588_vm6, %v2856_v56, -1e+30 }
 0x7a9   : > { %v3926_v59 = vsel %vm586_vm5, %v1879_v63, -1e+30  ;;  %v2857_v22 = vpop.f32.mrb[30].mxu1  ;;  %v1920_v5 = vsel %vm638_vm0, %v3935_v58, -inf }
 0x7aa   : > { %v1882_v13 = vpop.f32.mrb[31].mxu1  ;;  %v1914_v30 = vsel %vm638_vm0, %v3926_v59, -inf  ;;  %v3949_v63 = vsel %vm589_vm8, %v2857_v22, -1e+30 }
 0x7ab   : > { %v3940_v19 = vsel %vm587_vm7, %v1882_v13, -1e+30  ;;  %1912 = vmax.xlane.f32.xlu0 %v1911_v55  ;;  %1915 = vmax.xlane.f32.xlu1 %v1914_v30  ;;  %v1923_v7 = vsel %vm638_vm0, %v3949_v63, -inf }
 0x7ac   : > { %v1917_v53 = vsel %vm638_vm0, %v3940_v19, -inf }
 0x7af   : > { %1921 = vmax.xlane.f32.xlu1 %v1920_v5  ;;  %1918 = vmax.xlane.f32.xlu0 %v1917_v53 }
 0x7b3   : > { %1924 = vmax.xlane.f32.xlu0 %v1923_v7 }
 0x830   : > { %v1904_v8 = vpop.xlane.xlu0 %1903 }
 0x831   : > { %v1926_v56 = vmax.f32 %v1904_v8, -1e+30 }
 0x832   : > { %v1907_v30 = vpop.xlane.xlu1 %1906 }
 0x833   : > { %v1927_v13 = vmax.f32 %v1907_v30, -1e+30  ;;  %1936 = vperm.xlu1 %2940, %v1926_v56  }
 0x834   : > { %v1910_v55 = vpop.xlane.xlu0 %1909 }
 0x835   : > { %v1928_v48 = vmax.f32 %v1910_v55, -1e+30  ;;  %1941 = vperm.xlu0 %2941, %v1927_v13   ;;  %v1686_v13 = vsel %vm638_vm0, %v3866_v39, 0.0 }
 0x837   : > { %1946 = vperm.xlu1 %2940, %v1928_v48  }
 0x838   : > { %v1916_v10 = vpop.xlane.xlu1 %1915  ;;  %v1913_v37 = vpop.xlane.xlu0 %1912 }
 0x839   : > { %v1929_v11 = vmax.f32 %v1913_v37, -1e+30  ;;  %2030 = vrot.lane.b32.xlu0 %v3789_v24, %s3135_s26  ;;  %v1930_v7 = vmax.f32 %v1916_v10, -1e+30  ;;  %v832_v24 = vsel %vm638_vm0, %v3455_v17, 0.0  ;;  %v838_v37 = vsel %vm638_vm0, %v3467_v27, 0.0 }
 0x83a   : > { %v841_v10 = vsel %vm638_vm0, %v3472_v29, 0.0  ;;  %v1170_v17 = vsel %vm638_vm0, %v3609_v45, 0.0  ;;  %v1176_v27 = vsel %vm638_vm0, %v3622_v9, 0.0  ;;  %v1182_v29 = vsel %vm638_vm0, %v3656_v38, 0.0 }
 0x83b   : > { %1951 = vperm.xlu1 %2940, %v1929_v11   ;;  %v847_v45 = vsel %vm638_vm0, %v3489_v41, 0.0  ;;  %v853_v9 = vsel %vm638_vm0, %v3487_v0, 0.0  ;;  %v1173_v38 = vsel %vm638_vm0, %v3618_v62, 0.0  ;;  %v1191_v0 = vsel %vm638_vm0, %v3662_v16, 0.0 }
 0x83c   : > { %v1922_v22 = vpop.xlane.xlu1 %1921  ;;  %v1919_v5 = vpop.xlane.xlu0 %1918  ;;  %v1668_v62 = vsel %vm638_vm0, %v3829_v36, 0.0 }
 0x83d   : > { %v1932_v53 = vmax.f32 %v1922_v22, -1e+30  ;;  %v1931_v56 = vmax.f32 %v1919_v5, -1e+30 }
 0x83f   : > { %1966 = vperm.xlu1 %2940, %v1932_v53  }
 0x840   : > { %v1925_v8 = vpop.xlane.xlu0 %1924 }
 0x841   : > { %v1933_v30 = vmax.f32 %v1925_v8, -1e+30 }
 0x843   : > { %1956 = vperm.xlu1 %2940, %v1930_v7  }
 0x847   : > { %1971 = vperm.xlu1 %2940, %v1933_v30  }
 0x84b   : > { %1961 = vperm.xlu1 %2940, %v1931_v56  }
 0x84f   : > { %2026 = vrot.lane.b32.xlu1 %v3774_v52, %s3135_s26  ;;  %v844_v52 = vsel %vm638_vm0, %v3485_v60, 0.0  ;;  %v1188_v60 = vsel %vm638_vm0, %v3665_v18, 0.0  ;;  %v1179_v18 = vsel %vm638_vm0, %v3614_v46, 0.0 }
 0x853   : > { %2028 = vrot.lane.b32.xlu1 %v3782_v12, %s3135_s26  ;;  %v850_v12 = vsel %vm638_vm0, %v3492_v3, 0.0  ;;  %v835_v3 = vsel %vm638_vm0, %v3457_v20, 0.0  ;;  %v1185_v20 = vsel %vm638_vm0, %v3654_v54, 0.0 }
 0x857   : > { %2032 = vrot.lane.b32.xlu1 %v3794_v34, %s3135_s26 }
 0x858   : > { %833 = vadd.xlane.f32.xlu0 %v832_v24 }
 0x85c   : > { %839 = vadd.xlane.f32.xlu0 %v838_v37 }
 0x860   : > { %842 = vadd.xlane.f32.xlu0 %v841_v10 }
 0x864   : > { %845 = vadd.xlane.f32.xlu0 %v844_v52 }
 0x868   : > { %851 = vadd.xlane.f32.xlu0 %v850_v12 }
 0x86c   : > { %1171 = vadd.xlane.f32.xlu0 %v1170_v17 }
 0x870   : > { %1177 = vadd.xlane.f32.xlu0 %v1176_v27  ;;  %v1671_v27 = vsel %vm638_vm0, %v3831_v26, 0.0 }
 0x874   : > { %1183 = vadd.xlane.f32.xlu0 %v1182_v29 }
 0x878   : > { %1189 = vadd.xlane.f32.xlu0 %v1188_v60  ;;  %v1683_v60 = vsel %vm638_vm0, %v3863_v42, 0.0  ;;  %v1290_v42 = vsel %vm1287_vm9, %v3593_v25, %v3437_v4 }
 0x87b   : > { %836 = vadd.xlane.f32.xlu1 %v835_v3 }
 0x87f   : > { %848 = vadd.xlane.f32.xlu1 %v847_v45 }
 0x883   : > { %854 = vadd.xlane.f32.xlu1 %v853_v9  ;;  %v1689_v9 = vsel %vm638_vm0, %v3861_v23, 0.0 }
 0x887   : > { %1174 = vadd.xlane.f32.xlu1 %v1173_v38 }
 0x88b   : > { %1180 = vadd.xlane.f32.xlu1 %v1179_v18 }
 0x88e   : > { %1338 = vrot.lane.b32.xlu0 %v3701_v43, %s3135_s26 }
 0x88f   : > { %1186 = vadd.xlane.f32.xlu1 %v1185_v20 }
 0x892   : > { %1346 = vrot.lane.b32.xlu0 %v3709_v2, %s3135_s26 }
 0x893   : > { %1192 = vadd.xlane.f32.xlu1 %v1191_v0  ;;  %v1306_v0 = vsub.f32 -1e+30, %v1290_v42 }
 0x896   : > { %1350 = vrot.lane.b32.xlu0 %v3707_v40, %s3135_s26 }
 0x8a4   : > { %1340 = vrot.lane.b32.xlu1 %v3705_v15, %s3135_s26  ;;  %v1674_v15 = vsel %vm638_vm0, %v3842_v31, 0.0 }
 0x8a8   : > { %1342 = vrot.lane.b32.xlu1 %v3699_v44, %s3135_s26 }
 0x8ac   : > { %1344 = vrot.lane.b32.xlu1 %v3703_v21, %s3135_s26 }
 0x8b0   : > { %1348 = vrot.lane.b32.xlu1 %v3713_v49, %s3135_s26  ;;  %v1677_v49 = vsel %vm638_vm0, %v3846_v33, 0.0 }
 0x8b2   : > { %v4007_v41 = vpop.permute.xlu1 %1936 }
 0x8b3   : > { %v1974_v2 = vsub.f32 %v3900_v28, %v4007_v41 }
 0x8b4   : > { %1352 = vrot.lane.b32.xlu1 %v3711_v50, %s3135_s26  ;;  %v4013_v46 = vpop.permute.xlu0 %1941 }
 0x8b5   : > { %v1982_v54 = vmul.f32 1.442695, %v1974_v2  ;;  %v1975_v16 = vsub.f32 %v3912_v51, %v4013_v46  ;;  %1669 = vadd.xlane.f32.xlu0 %v1668_v62  ;;  %v4334_v2 = vld [vmem:[#allocation27_spill] sm:$0xff] }
 0x8b6   : > { %v4019_v44 = vpop.permute.xlu1 %1946  ;;  %v1294_v62 = vsel %vm1287_vm9, %v4334_v2, %v3453_v61 }
 0x8b7   : > { %v1984_v43 = vmul.f32 1.442695, %v1975_v16  ;;  %v1976_v21 = vsub.f32 %v3907_v35, %v4019_v44  ;;  %3014 = vpow2.f32 %v1982_v54  ;;  %v1680_v35 = vsel %vm638_vm0, %v3859_v47, 0.0 }
 0x8b8   : > { %v1314_v16 = vmul.f32 1.442695, %v1306_v0  ;;  %v1310_v25 = vsub.f32 -1e+30, %v1294_v62  ;;  %v4344_v0 = vld [vmem:[#allocation13_spill] sm:$0xff] }
 0x8b9   : > { %3016 = vpow2.f32 %v1984_v43  ;;  %v1986_v40 = vmul.f32 1.442695, %v1976_v21  ;;  %1675 = vadd.xlane.f32.xlu0 %v1674_v15  ;;  %v4335_v43 = vld [vmem:[#allocation11_spill] sm:$0xff]  ;;  %v4336_v21 = vld [vmem:[#allocation28_spill] sm:$0xff] }
 0x8ba   : > { %v4025_v50 = vpop.permute.xlu1 %1951  ;;  %v1296_v15 = vsel %vm1287_vm9, %v4336_v21, %v4335_v43 }
 0x8bb   : > { %3018 = vpow2.f32 %v1986_v40  ;;  %v1977_v22 = vsub.f32 %v3921_v6, %v4025_v50 }
 0x8bd   : > { %1678 = vadd.xlane.f32.xlu0 %v1677_v49  ;;  %v1988_v53 = vmul.f32 1.442695, %v1977_v22 }
 0x8be   : > { %v4029_v34 = vpop.permute.xlu1 %1966 }
 0x8bf   : > { %v1980_v36 = vsub.f32 %v3935_v58, %v4029_v34 }
 0x8c1   : > { %v1994_v48 = vmul.f32 1.442695, %v1980_v36  ;;  %1681 = vadd.xlane.f32.xlu0 %v1680_v35  ;;  %v3015_v31 = vpop.eup %3014  ;;  %v1322_v36 = vmul.f32 1.442695, %v1310_v25  ;;  %v1312_v35 = vsub.f32 -1e+30, %v1296_v15 }
 0x8c2   : > { %v4035_v51 = vpop.permute.xlu1 %1956  ;;  %v1998_v7 = vsel %vm638_vm0, %v3015_v31, 0.0 }
 0x8c3   : > { %v4037_v28 = vpop.eup %3016  ;;  %3020 = vpow2.f32 %v1994_v48  ;;  %v1978_v33 = vsub.f32 %v3926_v59, %v4035_v51  ;;  %v1326_v48 = vmul.f32 1.442695, %v1312_v35 }
 0x8c4   : > { %v2022_v55 = vpack.c.bf16 %v4037_v28, %v3015_v31  ;;  %v2001_v23 = vsel %vm638_vm0, %v4037_v28, 0.0 }
 0x8c5   : > { %v3019_v58 = vpop.eup %3018  ;;  %v1990_v11 = vmul.f32 1.442695, %v1978_v33  ;;  %1687 = vadd.xlane.f32.xlu0 %v1686_v13 }
 0x8c6   : > { %v4044_v47 = vpop.permute.xlu1 %1971  ;;  %2866 = vmatprep.mubr.msk.bf16.mxu0 %vm638_vm0, %v2022_v55  ;;  %v2004_v5 = vsel %vm638_vm0, %v3019_v58, 0.0 }
 0x8c7   : > { %3022 = vpow2.f32 %v1990_v11  ;;  %v1981_v6 = vsub.f32 %v3949_v63, %v4044_v47 }
 0x8c8   : > { %3024 = vpow2.f32 %v1988_v53 }
 0x8c9   : > { %2005 = vadd.xlane.f32.xlu0 %v2004_v5  ;;  %v1996_v52 = vmul.f32 1.442695, %v1981_v6  ;;  %v4337_v5 = vld [vmem:[#allocation9_spill] sm:$0xff] }
 0x8ca   : > { %v4050_v59 = vpop.permute.xlu1 %1961 }
 0x8cb   : > { %v1979_v39 = vsub.f32 %v3940_v19, %v4050_v59  ;;  %v2031_v19 = vpop.permute.xlu0 %2030 }
 0x8cd   : > { %v3021_v8 = vpop.eup %3020  ;;  %v1992_v30 = vmul.f32 1.442695, %v1979_v39  ;;  %1999 = vadd.xlane.f32.xlu0 %v1998_v7  ;;  %v4338_v39 = vld [vmem:[#allocation24_spill] sm:$0xff] }
 0x8ce   : > { %v2027_v56 = vpop.permute.xlu1 %2026  ;;  %v2016_v24 = vsel %vm638_vm0, %v3021_v8, 0.0  ;;  %v1291_v53 = vsel %vm1287_vm9, %v4338_v39, %v4337_v5  ;;  %v4349_v39 = vld [vmem:[#allocation18_spill] sm:$0xff] }
 0x8cf   : > { %2858 = vmatprep.subr.bf16.mxu0 %v2027_v56  ;;  %3026 = vpow2.f32 %v1992_v30 }
 0x8d0   : > { %2859 = vmatpush3.bf16.msra.mxu0 %v2027_v56  ;;  %3028 = vpow2.f32 %v1996_v52  ;;  %v1307_v56 = vsub.f32 -1e+30, %v1291_v53 }
 0x8d1   : > { %v3023_v37 = vpop.eup %3022  ;;  %2017 = vadd.xlane.f32.xlu0 %v2016_v24  ;;  %3030 = vpow2.f32 %v1314_v16  ;;  %v4339_v24 = vld [vmem:[#allocation8_spill] sm:$0xff] }
 0x8d2   : > { %v2029_v10 = vpop.permute.xlu1 %2028  ;;  %v2010_v12 = vsel %vm638_vm0, %v3023_v37, 0.0  ;;  %v3025_v63 = vpop.eup %3024  ;;  %3032 = vpow2.f32 %v1322_v36 }
 0x8d3   : > { %2860 = vmatprep.subr.bf16.mxu0 %v2029_v10  ;;  %v2023_v3 = vpack.c.bf16 %v3025_v63, %v3019_v58  ;;  %v2007_v38 = vsel %vm638_vm0, %v3025_v63, 0.0  ;;  %3034 = vpow2.f32 %v1326_v48  ;;  %v4348_v48 = vld [vmem:[#allocation26_spill] sm:$0xff] }
 0x8d4   : > { %2861 = vmatpush3.bf16.msra.mxu0 %v2029_v10 }
 0x8d5   : > { %2011 = vadd.xlane.f32.xlu0 %v2010_v12  ;;  %2862 = vmatprep.subr.bf16.mxu0 %v2031_v19 }
 0x8d6   : > { %v2033_v17 = vpop.permute.xlu1 %2032 }
 0x8d8   : > { %1672 = vadd.xlane.f32.xlu1 %v1671_v27  ;;  %2863 = vmatpush3.bf16.msra.mxu0 %v2031_v19  ;;  %v1316_v27 = vmul.f32 1.442695, %v1307_v56 }
 0x8d9   : > { %2864 = vmatprep.subr.bf16.mxu0 %v2033_v17  ;;  %v3027_v29 = vpop.eup %3026 }
 0x8da   : > { %v2024_v45 = vpack.c.bf16 %v3027_v29, %v3023_v37  ;;  %v3029_v26 = vpop.eup %3028  ;;  %v2013_v49 = vsel %vm638_vm0, %v3027_v29, 0.0  ;;  %v4340_v37 = vld [vmem:[#allocation22_spill] sm:$0xff] }
 0x8db   : > { %v2025_v20 = vpack.c.bf16 %v3029_v26, %v3021_v8  ;;  %v2019_v4 = vsel %vm638_vm0, %v3029_v26, 0.0  ;;  %v3031_v28 = vpop.eup %3030  ;;  %v1292_v10 = vsel %vm1287_vm9, %v4340_v37, %v4339_v24  ;;  %v4341_v29 = vld [vmem:[#allocation10_spill] sm:$0xff] }
 0x8dc   : > { %1684 = vadd.xlane.f32.xlu1 %v1683_v60  ;;  %2865 = vmatpush3.bf16.msra.mxu0 %v2033_v17  ;;  %v1378_v55 = vmul.f32 0.0, %v3031_v28  ;;  %v3033_v11 = vpop.eup %3032  ;;  %v1308_v17 = vsub.f32 -1e+30, %v1292_v10  ;;  %v4342_v60 = vld [vmem:[#allocation23_spill] sm:$0xff] }
 0x8dd   : > { %v1382_v7 = vmul.f32 0.0, %v3033_v11  ;;  %v3035_v30 = vpop.eup %3034 }
 0x8de   : > { %v1384_v52 = vmul.f32 0.0, %v3035_v30 }
 0x8df   : > { %2867 = vmatmul.mubr.msk.bf16.vlgmr.msra.gmra.mrb[24].mxu0 %vm638_vm0, %v2023_v3  ;;  %v1293_v3 = vsel %vm1287_vm9, %v4342_v60, %v4341_v29 }
 0x8e0   : > { %1690 = vadd.xlane.f32.xlu1 %v1689_v9  ;;  %2870 = vmatprep.mubr.msk.bf16.mxu0 %vm638_vm0, %v2024_v45  ;;  %v1309_v42 = vsub.f32 -1e+30, %v1293_v3 }
 0x8e2   : > { %v1320_v15 = vmul.f32 1.442695, %v1309_v42 }
 0x8e4   : > { %2008 = vadd.xlane.f32.xlu1 %v2007_v38  ;;  %v1318_v38 = vmul.f32 1.442695, %v1308_v17 }
 0x8e5   : > { %v834_v18 = vpop.xlane.xlu0 %833 }
 0x8e7   : > { %2871 = vmatmul.mubr.msk.bf16.gmra.mrb[28].mxu0 %vm638_vm0, %v2025_v20 }
 0x8e8   : > { %2002 = vadd.xlane.f32.xlu1 %v2001_v23  ;;  %v4345_v23 = vld [vmem:[#allocation25_spill] sm:$0xff] }
 0x8e9   : > { %v4080_v54 = vpop.xlane.xlu0 %839  ;;  %v1295_v2 = vsel %vm1287_vm9, %v4345_v23, %v4344_v0 }
 0x8ea   : > { %v1311_v21 = vsub.f32 -1e+30, %v1295_v2  ;;  %v4350_v2 = vld [vmem:[#allocation17_spill] sm:$0xff] }
 0x8ec   : > { %2020 = vadd.xlane.f32.xlu1 %v2019_v4 }
 0x8ed   : > { %v4087_v40 = vpop.xlane.xlu0 %842 }
 0x8f0   : > { %2014 = vadd.xlane.f32.xlu1 %v2013_v49  ;;  %v4346_v49 = vld [vmem:[#allocation19_spill] sm:$0xff] }
 0x8f1   : > { %v846_v61 = vpop.xlane.xlu0 %845 }
 0x8f5   : > { %v852_v31 = vpop.xlane.xlu0 %851 }
 0x8f9   : > { %v1172_v33 = vpop.xlane.xlu0 %1171 }
 0x8fa   : > { %v1298_v13 = vsel %vm1287_vm9, %v1172_v33, %v834_v18  ;;  %v4343_v18 = vld [vmem:[#allocation15_spill] sm:$0xff] }
 0x8fb   : > { %v1386_v22 = vadd.f32 %v1378_v55, %v1298_v13 }
 0x8fd   : > { %v4092_v58 = vpop.xlane.xlu0 %1177  ;;  %3036 = vrcp.f32 %v1386_v22  ;;  %v1324_v22 = vmul.f32 1.442695, %v1311_v21 }
 0x901   : > { %v1184_v8 = vpop.xlane.xlu0 %1183 }
 0x902   : > { %v1302_v6 = vsel %vm1287_vm9, %v1184_v8, %v846_v61  ;;  %v4347_v61 = vld [vmem:[#allocation12_spill] sm:$0xff] }
 0x903   : > { %v1390_v19 = vadd.f32 %v1382_v7, %v1302_v6 }
 0x905   : > { %3038 = vrcp.f32 %v1390_v19  ;;  %v1190_v12 = vpop.xlane.xlu0 %1189 }
 0x906   : > { %v1304_v63 = vsel %vm1287_vm9, %v1190_v12, %v852_v31  ;;  %v1297_v31 = vsel %vm1287_vm9, %v4348_v48, %v4347_v61 }
 0x907   : > { %v1392_v45 = vadd.f32 %v1384_v52, %v1304_v63  ;;  %v3037_v16 = vpop.eup %3036  ;;  %v1313_v5 = vsub.f32 -1e+30, %v1297_v31 }
 0x908   : > { %v837_v9 = vpop.xlane.xlu1 %836 }
 0x909   : > { %3040 = vrcp.f32 %v1392_v45  ;;  %v1339_v26 = vpop.permute.xlu0 %1338 }
 0x90a   : > { %3042 = vpow2.f32 %v1316_v27  ;;  %v1362_v20 = vsel %vm638_vm0, %v4343_v18, %v1339_v26 }
 0x90b   : > { %v1418_v62 = vadd.f32 %v1378_v55, %v1362_v20  ;;  %3044 = vpow2.f32 %v1318_v38 }
 0x90c   : > { %v849_v4 = vpop.xlane.xlu1 %848  ;;  %3046 = vpow2.f32 %v1320_v15 }
 0x90d   : > { %v2295_v25 = vmul.f32 %v3037_v16, %v1418_v62  ;;  %v1347_v43 = vpop.permute.xlu0 %1346  ;;  %3048 = vpow2.f32 %v1324_v22 }
 0x90e   : > { %v1366_v36 = vsel %vm638_vm0, %v4346_v49, %v1347_v43  ;;  %v4351_v49 = vld [vmem:[#allocation14_spill] sm:$0xff] }
 0x90f   : > { %v3039_v35 = vpop.eup %3038  ;;  %v2666_v28 = vpack.c.bf16 %v2295_v25, %v2295_v25  ;;  %v1422_v33 = vadd.f32 %v1382_v7, %v1366_v36  ;;  %v1328_v7 = vmul.f32 1.442695, %v1313_v5 }
 0x910   : > { %v855_v13 = vpop.xlane.xlu1 %854 }
 0x911   : > { %2335 = vst [vmem:[%s4121_s4] sm:$0xf] %v2666_v28  ;;  %v2299_v55 = vmul.f32 %v3039_v35, %v1422_v33  ;;  %v1351_v11 = vpop.permute.xlu0 %1350  ;;  %3050 = vpow2.f32 %v1328_v7  ;;  %v4352_v33 = vld [vmem:[#allocation16_spill] sm:$0xff] }
 0x912   : > { %v1368_v53 = vsel %vm638_vm0, %v4349_v39, %v1351_v11  ;;  %v4354_v7 = vld [vmem:[#allocation20_spill] sm:$0xff] }
 0x913   : > { %v3041_v8 = vpop.eup %3040  ;;  %v2670_v30 = vpack.c.bf16 %v2299_v55, %v2299_v55  ;;  %v1424_v56 = vadd.f32 %v1384_v52, %v1368_v53  ;;  %v1300_v52 = vsel %vm1287_vm9, %v4092_v58, %v4080_v54  ;;  %v4353_v53 = vld [vmem:[#allocation21_spill] sm:$0xff] }
 0x914   : > { %v3043_v6 = vpop.eup %3042  ;;  %v1175_v24 = vpop.xlane.xlu1 %1174 }
 0x915   : > { %2339 = vst [vmem:[%s4121_s4 + $0x20] sm:$0xf] %v2670_v30  ;;  %v2301_v37 = vmul.f32 %v3041_v8, %v1424_v56  ;;  %v1299_v10 = vsel %vm1287_vm9, %v1175_v24, %v837_v9  ;;  %v1379_v12 = vmul.f32 0.0, %v3043_v6  ;;  %v3045_v17 = vpop.eup %3044 }
 0x916   : > { %v1380_v29 = vmul.f32 0.0, %v3045_v17  ;;  %v3047_v60 = vpop.eup %3046 }
 0x917   : > { %v2672_v19 = vpack.c.bf16 %v2301_v37, %v2301_v37  ;;  %v1387_v63 = vadd.f32 %v1379_v12, %v1299_v10  ;;  %v1381_v26 = vmul.f32 0.0, %v3047_v60  ;;  %v3049_v38 = vpop.eup %3048 }
 0x918   : > { %v1181_v27 = vpop.xlane.xlu1 %1180  ;;  %v1388_v45 = vadd.f32 %v1380_v29, %v1300_v52  ;;  %v1383_v0 = vmul.f32 0.0, %v3049_v38 }
 0x919   : > { %2341 = vst [vmem:[%s4121_s4 + $0x30] sm:$0xf] %v2672_v19  ;;  %3052 = vrcp.f32 %v1387_v63  ;;  %v1301_v9 = vsel %vm1287_vm9, %v1181_v27, %v4087_v40 }
 0x91a   : > { %3054 = vrcp.f32 %v1388_v45  ;;  %v1389_v18 = vadd.f32 %v1381_v26, %v1301_v9 }
 0x91b   : > { %v3051_v23 = vpop.eup %3050 }
 0x91c   : > { %v1187_v3 = vpop.xlane.xlu1 %1186  ;;  %3056 = vrcp.f32 %v1389_v18  ;;  %v1385_v43 = vmul.f32 0.0, %v3051_v23 }
 0x91d   : > { %v1303_v20 = vsel %vm1287_vm9, %v1187_v3, %v849_v4 }
 0x91e   : > { %v1391_v58 = vadd.f32 %v1383_v0, %v1303_v20 }
 0x920   : > { %v1193_v42 = vpop.xlane.xlu1 %1192  ;;  %3058 = vrcp.f32 %v1391_v58  ;;  %v2115_v58 = vsel %vm1287_vm9, %v4007_v41, %v3809_v32  ;;  %v4356_v32 = vld [vmem:[#allocation31_spill] sm:$0xff] }
 0x921   : > { %v1305_v40 = vsel %vm1287_vm9, %v1193_v42, %v855_v13  ;;  %v2119_v41 = vsel %vm1287_vm9, %v4035_v51, %v4356_v32 }
 0x922   : > { %v1393_v4 = vadd.f32 %v1385_v43, %v1305_v40  ;;  %v2131_v40 = vsub.f32 -1e+30, %v2115_v58 }
 0x923   : > { %v3053_v25 = vpop.eup %3052 }
 0x924   : > { %v1341_v54 = vpop.permute.xlu1 %1340  ;;  %v3055_v48 = vpop.eup %3054  ;;  %3060 = vrcp.f32 %v1393_v4  ;;  %v4355_v4 = vld [vmem:[#allocation29_spill] sm:$0xff] }
 0x925   : > { %v1363_v62 = vsel %vm638_vm0, %v4350_v2, %v1341_v54  ;;  %v2117_v54 = vsel %vm1287_vm9, %v4019_v44, %v3817_v14  ;;  %v2116_v14 = vsel %vm1287_vm9, %v4013_v46, %v4355_v4 }
 0x926   : > { %v1419_v16 = vadd.f32 %v1379_v12, %v1363_v62  ;;  %v3057_v22 = vpop.eup %3056  ;;  %v2133_v62 = vsub.f32 -1e+30, %v2117_v54 }
 0x928   : > { %v2296_v21 = vmul.f32 %v3053_v25, %v1419_v16  ;;  %v1343_v15 = vpop.permute.xlu1 %1342  ;;  %v2118_v16 = vsel %vm1287_vm9, %v4025_v50, %v3821_v1  ;;  %v4357_v1 = vld [vmem:[#allocation30_spill] sm:$0xff] }
 0x929   : > { %v1364_v36 = vsel %vm638_vm0, %v4351_v49, %v1343_v15  ;;  %v2139_v15 = vmul.f32 1.442695, %v2131_v40  ;;  %v2132_v49 = vsub.f32 -1e+30, %v2116_v14  ;;  %v2121_v50 = vsel %vm1287_vm9, %v4029_v34, %v4357_v1 }
 0x92a   : > { %v2667_v35 = vpack.c.bf16 %v2296_v21, %v2296_v21  ;;  %v1420_v61 = vadd.f32 %v1380_v29, %v1364_v36  ;;  %v3059_v6 = vpop.eup %3058  ;;  %v2134_v21 = vsub.f32 -1e+30, %v2118_v16 }
 0x92c   : > { %2336 = vst [vmem:[%s4121_s4 + $0x8] sm:$0xf] %v2667_v35  ;;  %v2297_v31 = vmul.f32 %v3055_v48, %v1420_v61  ;;  %v1345_v28 = vpop.permute.xlu1 %1344  ;;  %v2145_v36 = vmul.f32 1.442695, %v2134_v21  ;;  %v2135_v61 = vsub.f32 -1e+30, %v2119_v41 }
 0x92d   : > { %v1365_v13 = vsel %vm638_vm0, %v4352_v33, %v1345_v28  ;;  %v4358_v48 = vld [vmem:[#allocation33_spill] sm:$0xff]  ;;  %v2141_v33 = vmul.f32 1.442695, %v2132_v49  ;;  %v4361_v41 = vld [vmem:[#allocation35_spill] sm:$0xff] }
 0x92e   : > { %v2668_v55 = vpack.c.bf16 %v2297_v31, %v2297_v31  ;;  %v1421_v11 = vadd.f32 %v1381_v26, %v1365_v13  ;;  %v3061_v17 = vpop.eup %3060  ;;  %v2120_v46 = vsel %vm1287_vm9, %v4050_v59, %v4358_v48  ;;  %v2137_v31 = vsub.f32 -1e+30, %v2121_v50 }
 0x92f   : > { %v2136_v51 = vsub.f32 -1e+30, %v2120_v46  ;;  %v2147_v13 = vmul.f32 1.442695, %v2135_v61 }
 0x930   : > { %2337 = vst [vmem:[%s4121_s4 + $0x10] sm:$0xf] %v2668_v55  ;;  %v2298_v5 = vmul.f32 %v3057_v22, %v1421_v11  ;;  %v1349_v39 = vpop.permute.xlu1 %1348  ;;  %v4359_v55 = vld [vmem:[#allocation32_spill] sm:$0xff]  ;;  %v2151_v22 = vmul.f32 1.442695, %v2137_v31 }
 0x931   : > { %v1367_v8 = vsel %vm638_vm0, %v4353_v53, %v1349_v39  ;;  %v2122_v11 = vsel %vm1287_vm9, %v4044_v47, %v4359_v55  ;;  %v2149_v39 = vmul.f32 1.442695, %v2136_v51  ;;  %v4362_v31 = vld [vmem:[#allocation36_spill] sm:$0xff] }
 0x932   : > { %v2669_v30 = vpack.c.bf16 %v2298_v5, %v2298_v5  ;;  %v1423_v56 = vadd.f32 %v1383_v0, %v1367_v8  ;;  %v2138_v5 = vsub.f32 -1e+30, %v2122_v11  ;;  %v4363_v11 = vld [vmem:[#allocation37_spill] sm:$0xff] }
 0x934   : > { %2338 = vst [vmem:[%s4121_s4 + $0x18] sm:$0xf] %v2669_v30  ;;  %v2300_v24 = vmul.f32 %v3059_v6, %v1423_v56  ;;  %v1353_v37 = vpop.permute.xlu1 %1352  ;;  %v2153_v30 = vmul.f32 1.442695, %v2138_v5 }
 0x935   : > { %v1369_v10 = vsel %vm638_vm0, %v4354_v7, %v1353_v37 }
 0x936   : > { %v2671_v19 = vpack.c.bf16 %v2300_v24, %v2300_v24  ;;  %v1425_v12 = vadd.f32 %v1385_v43, %v1369_v10  ;;  %v2143_v43 = vmul.f32 1.442695, %v2133_v62 }
 0x938   : > { %2340 = vst [vmem:[%s4121_s4 + $0x28] sm:$0xf] %v2671_v19  ;;  %v2302_v27 = vmul.f32 %v3061_v17, %v1425_v12  ;;  %3062 = vpow2.f32 %v2143_v43 }
 0x939   : > { %3064 = vpow2.f32 %v2139_v15  ;;  %v4360_v15 = vld [vmem:[#allocation34_spill] sm:$0xff] }
 0x93a   : > { %v2673_v63 = vpack.c.bf16 %v2302_v27, %v2302_v27  ;;  %3066 = vpow2.f32 %v2145_v36 }
 0x93b   : > { %3068 = vpow2.f32 %v2141_v33 }
 0x93c   : > { %2342 = vst [vmem:[%s4121_s4 + $0x38] sm:$0xf] %v2673_v63  ;;  %3070 = vpow2.f32 %v2147_v13 }
 0x93d   : > { %3072 = vpow2.f32 %v2151_v22 }
 0x93e   : > { %3074 = vpow2.f32 %v2149_v39 }
 0x93f   : > { %3076 = vpow2.f32 %v2153_v30 }
 0x942   : > { %v1670_v42 = vpop.xlane.xlu0 %1669  ;;  %v3063_v8 = vpop.eup %3062 }
 0x943   : > { %v3065_v59 = vpop.eup %3064  ;;  %v2206_v24 = vmul.f32 0.0, %v3063_v8 }
 0x944   : > { %v3067_v37 = vpop.eup %3066  ;;  %v2204_v7 = vmul.f32 0.0, %v3065_v59 }
 0x945   : > { %v2207_v27 = vmul.f32 0.0, %v3067_v37  ;;  %v3069_v63 = vpop.eup %3068  ;;  %v4365_v37 = vld [vmem:[#allocation41_spill] sm:$0xff] }
 0x946   : > { %v1676_v18 = vpop.xlane.xlu0 %1675 }
 0x94a   : > { %v1679_v20 = vpop.xlane.xlu0 %1678 }
 0x94e   : > { %v1682_v23 = vpop.xlane.xlu0 %1681 }
 0x952   : > { %v1688_v25 = vpop.xlane.xlu0 %1687 }
 0x956   : > { %v2006_v35 = vpop.xlane.xlu0 %2005 }
 0x957   : > { %v2125_v56 = vsel %vm1287_vm9, %v2006_v35, %v1676_v18 }
 0x958   : > { %v2214_v10 = vadd.f32 %v2206_v24, %v2125_v56 }
 0x95a   : > { %v2000_v34 = vpop.xlane.xlu0 %1999  ;;  %3078 = vrcp.f32 %v2214_v10 }
 0x95b   : > { %v2123_v47 = vsel %vm1287_vm9, %v2000_v34, %v1670_v42 }
 0x95c   : > { %v2212_v12 = vadd.f32 %v2204_v7, %v2123_v47 }
 0x95e   : > { %v2018_v6 = vpop.xlane.xlu0 %2017  ;;  %3080 = vrcp.f32 %v2212_v12 }
 0x95f   : > { %v2129_v54 = vsel %vm1287_vm9, %v2018_v6, %v1688_v25 }
 0x965   : > { %v1673_v0 = vpop.xlane.xlu1 %1672 }
 0x969   : > { %v4178_v2 = vpop.xlane.xlu1 %1684 }
 0x96d   : > { %v4188_v44 = vpop.xlane.xlu1 %1690 }
 0x971   : > { %v2009_v28 = vpop.xlane.xlu1 %2008 }
 0x972   : > { %v2126_v17 = vsel %vm1287_vm9, %v2009_v28, %v1679_v20 }
 0x975   : > { %v2003_v53 = vpop.xlane.xlu1 %2002 }
 0x979   : > { %v2021_v19 = vpop.xlane.xlu1 %2020 }
 0x97a   : > { %v2130_v25 = vsel %vm1287_vm9, %v2021_v19, %v4188_v44 }
 0x9b2   : > { %v2868_v52 = vpop.f32.mrb[24].mxu0 }
 0x9b3   : > { %2167 = vrot.lane.b32.xlu1 %v2868_v52, %s3135_s26  ;;  %v2084_v29 = vpop.f32.mrb[25].mxu0  ;;  %v2012_v52 = vpop.xlane.xlu0 %2011 }
 0x9b4   : > { %v2869_v60 = vpop.f32.mrb[26].mxu0  ;;  %2163 = vrot.lane.b32.xlu0 %v2084_v29, %s3135_s26  ;;  %v3071_v29 = vpop.eup %3070 }
 0x9b5   : > { %v2087_v3 = vpop.f32.mrb[27].mxu0  ;;  %v2208_v18 = vmul.f32 0.0, %v3071_v29 }
 0x9b7   : > { %2169 = vrot.lane.b32.xlu1 %v2869_v60, %s3135_s26  ;;  %v2215_v60 = vadd.f32 %v2207_v27, %v2126_v17  ;;  %v4366_v17 = vld [vmem:[#allocation38_spill] sm:$0xff] }
 0x9b9   : > { %3082 = vrcp.f32 %v2215_v60 }
 0x9ba   : > { %v2872_v45 = vpop.f32.mrb[28].mxu0 }
 0x9bb   : > { %2165 = vrot.lane.b32.xlu1 %v2087_v3, %s3135_s26  ;;  %v2100_v9 = vpop.f32.mrb[29].mxu0  ;;  %v2124_v3 = vsel %vm1287_vm9, %v2003_v53, %v1673_v0  ;;  %v4364_v53 = vld [vmem:[#allocation39_spill] sm:$0xff] }
 0x9bc   : > { %v2873_v26 = vpop.f32.mrb[30].mxu0  ;;  %2171 = vrot.lane.b32.xlu0 %v2100_v9, %s3135_s26  ;;  %v2127_v9 = vsel %vm1287_vm9, %v2012_v52, %v1682_v23 }
 0x9bd   : > { %v2103_v38 = vpop.f32.mrb[31].mxu0  ;;  %v2216_v58 = vadd.f32 %v2208_v18, %v2127_v9 }
 0x9bf   : > { %2173 = vrot.lane.b32.xlu1 %v2103_v38, %s3135_s26  ;;  %v2015_v38 = vpop.xlane.xlu1 %2014 }
 0x9c0   : > { %2175 = vrot.lane.b32.xlu0 %v2872_v45, %s3135_s26  ;;  %v3073_v45 = vpop.eup %3072  ;;  %v2128_v62 = vsel %vm1287_vm9, %v2015_v38, %v4178_v2 }
 0x9c1   : > { %v3075_v42 = vpop.eup %3074  ;;  %v2210_v40 = vmul.f32 0.0, %v3073_v45 }
 0x9c2   : > { %v2209_v0 = vmul.f32 0.0, %v3075_v42  ;;  %v3077_v16 = vpop.eup %3076 }
 0x9c3   : > { %2177 = vrot.lane.b32.xlu1 %v2873_v26, %s3135_s26  ;;  %v2205_v26 = vmul.f32 0.0, %v3069_v63  ;;  %v2218_v21 = vadd.f32 %v2210_v40, %v2129_v54  ;;  %v3079_v49 = vpop.eup %3078  ;;  %v2211_v36 = vmul.f32 0.0, %v3077_v16 }
 0x9c4   : > { %v2217_v23 = vadd.f32 %v2209_v0, %v2128_v62  ;;  %v3081_v50 = vpop.eup %3080 }
 0x9c5   : > { %v2213_v20 = vadd.f32 %v2205_v26, %v2124_v3  ;;  %v2219_v48 = vadd.f32 %v2211_v36, %v2130_v25  ;;  %v3083_v33 = vpop.eup %3082 }
 0x9c7   : > { %3084 = vrcp.f32 %v2213_v20 }
 0x9c8   : > { %3086 = vrcp.f32 %v2216_v58 }
 0x9c9   : > { %3088 = vrcp.f32 %v2217_v23 }
 0x9ca   : > { %3090 = vrcp.f32 %v2218_v21 }
 0x9cb   : > { %3092 = vrcp.f32 %v2219_v48 }
 0x9d1   : > { %v3085_v59 = vpop.eup %3084 }
 0x9d2   : > { %v3087_v56 = vpop.eup %3086 }
 0x9d3   : > { %v3089_v63 = vpop.eup %3088 }
 0x9d4   : > { %v3091_v60 = vpop.eup %3090 }
 0x9d5   : > { %v3093_v20 = vpop.eup %3092 }
 0xa25   : > { %v2168_v43 = vpop.permute.xlu1 %2167 }
 0xa26   : > { %v2189_v4 = vsel %vm638_vm0, %v4360_v15, %v2168_v43  ;;  %v2164_v14 = vpop.permute.xlu0 %2163 }
 0xa27   : > { %v2246_v32 = vadd.f32 %v2206_v24, %v2189_v4  ;;  %v2187_v2 = vsel %vm638_vm0, %v4361_v41, %v2164_v14 }
 0xa28   : > { %v2244_v1 = vadd.f32 %v2204_v7, %v2187_v2 }
 0xa29   : > { %v2370_v35 = vmul.f32 %v3079_v49, %v2246_v32  ;;  %v2170_v61 = vpop.permute.xlu1 %2169 }
 0xa2a   : > { %v2368_v46 = vmul.f32 %v3081_v50, %v2244_v1  ;;  %v2190_v28 = vsel %vm638_vm0, %v4362_v31, %v2170_v61 }
 0xa2b   : > { %v2676_v57 = vpack.c.bf16 %v2370_v35, %v2370_v35  ;;  %v2247_v44 = vadd.f32 %v2207_v27, %v2190_v28 }
 0xa2c   : > { %v2674_v51 = vpack.c.bf16 %v2368_v46, %v2368_v46 }
 0xa2d   : > { %2410 = vst [vmem:[%s4121_s4 + $0x14] sm:$0xf] %v2676_v57  ;;  %v2371_v13 = vmul.f32 %v3083_v33, %v2247_v44  ;;  %v2166_v55 = vpop.permute.xlu1 %2165 }
 0xa2e   : > { %2408 = vst [vmem:[%s4121_s4 + $0x4] sm:$0xf] %v2674_v51  ;;  %v2188_v34 = vsel %vm638_vm0, %v4363_v11, %v2166_v55  ;;  %v2172_v22 = vpop.permute.xlu0 %2171 }
 0xa2f   : > { %v2677_v5 = vpack.c.bf16 %v2371_v13, %v2371_v13  ;;  %v2245_v39 = vadd.f32 %v2205_v26, %v2188_v34  ;;  %v2191_v8 = vsel %vm638_vm0, %v4364_v53, %v2172_v22  ;;  %v4367_v26 = vld [vmem:[#allocation40_spill] sm:$0xff] }
 0xa30   : > { %v2248_v30 = vadd.f32 %v2208_v18, %v2191_v8 }
 0xa31   : > { %2411 = vst [vmem:[%s4121_s4 + $0x1c] sm:$0xf] %v2677_v5  ;;  %v2369_v6 = vmul.f32 %v3085_v59, %v2245_v39  ;;  %v2174_v24 = vpop.permute.xlu1 %2173 }
 0xa32   : > { %v2372_v47 = vmul.f32 %v3087_v56, %v2248_v30  ;;  %v2192_v7 = vsel %vm638_vm0, %v4365_v37, %v2174_v24  ;;  %v2176_v10 = vpop.permute.xlu0 %2175 }
 0xa33   : > { %v2675_v19 = vpack.c.bf16 %v2369_v6, %v2369_v6  ;;  %v2249_v12 = vadd.f32 %v2209_v0, %v2192_v7  ;;  %v2193_v27 = vsel %vm638_vm0, %v4366_v17, %v2176_v10 }
 0xa34   : > { %v2678_v52 = vpack.c.bf16 %v2372_v47, %v2372_v47  ;;  %v2250_v29 = vadd.f32 %v2210_v40, %v2193_v27 }
 0xa35   : > { %2409 = vst [vmem:[%s4121_s4 + $0xc] sm:$0xf] %v2675_v19  ;;  %v2373_v3 = vmul.f32 %v3089_v63, %v2249_v12  ;;  %v2178_v45 = vpop.permute.xlu1 %2177 }
 0xa36   : > { %2412 = vst [vmem:[%s4121_s4 + $0x24] sm:$0xf] %v2678_v52  ;;  %v2374_v9 = vmul.f32 %v3091_v60, %v2250_v29  ;;  %v2194_v38 = vsel %vm638_vm0, %v4367_v26, %v2178_v45 }
 0xa37   : > { %v2679_v42 = vpack.c.bf16 %v2373_v3, %v2373_v3  ;;  %v2251_v18 = vadd.f32 %v2211_v36, %v2194_v38 }
 0xa38   : > { %v2680_v54 = vpack.c.bf16 %v2374_v9, %v2374_v9 }
 0xa39   : > { %2413 = vst [vmem:[%s4121_s4 + $0x2c] sm:$0xf] %v2679_v42  ;;  %v2375_v58 = vmul.f32 %v3093_v20, %v2251_v18 }
 0xa3a   : > { %2414 = vst [vmem:[%s4121_s4 + $0x34] sm:$0xf] %v2680_v54 }
 0xa3b   : > { %v2681_v62 = vpack.c.bf16 %v2375_v58, %v2375_v58 }
 0xa3d   : > { %2415 = vst [vmem:[%s4121_s4 + $0x3c] sm:$0xf] %v2681_v62 }
 0xa3e PF: > { %s13_s16 = sadd.s32 1, %s3132_s16   ;;  %s4368_s12 = smov %s3120_s13 }
 0xa3f   : > { %p10_p10 = scmp.ge.s32.totalorder %s13_s16, 4   ;;  %s4369_s13 = smov %s3196_s21 }
 0xa40   : > { %s4370_s14 = smov %s3128_s15  ;;  %s4371_s15 = smov %s4373_s17 }
 0xa41   :  { %12 = sbr.rel (!%p10_p10) target bundleno = 3 (0x3), region = 212 }

// kernel: gpt_forward.21
= control target key start
LH: loop header
LB: loop body
LE: loop exit
PB: predicated region body
PF: predicated region fallthrough
CT: control target
= control target key end

     0   :  { %s2082_s0 = inlined_call_operand.vmem [shape: bf16[128,256], index: 0, kind: input, shape index: {}]   ;;  %s2083_s1 = inlined_call_operand.vmem [shape: f32[1,256], index: 1, kind: input, shape index: {}]   ;;  %s2084_s2 = inlined_call_operand.vmem [shape: f32[1,256], index: 2, kind: input, shape index: {}]   ;;  %s2085_s3 = inlined_call_operand.vmem [shape: bf16[512,256], index: 3, kind: input, shape index: {}]   ;;  %s2086_s4 = inlined_call_operand.hbm [shape: f32[128,512], index: 4, kind: output, shape index: {}]  }
   0x1   :  { %v1403_v0 = vld [vmem:[%s2082_s0] sm:$0xff]  ;;  %v1408_v1 = vld [vmem:[%s2082_s0 + $0x10] sm:$0xff]  ;;  %v1413_v2 = vld [vmem:[%s2082_s0 + $0x8] sm:$0xff] }
   0x2   :  { %v38_v3 = vunpack.c.l.bf16 %v1403_v0  ;;  %v39_v4 = vunpack.c.h.bf16 %v1403_v0  ;;  %v42_v5 = vunpack.c.l.bf16 %v1408_v1  ;;  %v43_v6 = vunpack.c.h.bf16 %v1408_v1  ;;  %v1422_v7 = vld [vmem:[%s2082_s0 + $0x18] sm:$0xff]  ;;  %v1427_v8 = vld [vmem:[%s2082_s0 + $0x20] sm:$0xff]  ;;  %v1436_v13 = vld [vmem:[%s2082_s0 + $0x28] sm:$0xff] }
   0x3   :  { %v40_v9 = vunpack.c.l.bf16 %v1413_v2  ;;  %v41_v10 = vunpack.c.h.bf16 %v1413_v2  ;;  %v44_v11 = vunpack.c.l.bf16 %v1422_v7  ;;  %v45_v12 = vunpack.c.h.bf16 %v1422_v7  ;;  %v1451_v18 = vld [vmem:[%s2082_s0 + $0x30] sm:$0xff]  ;;  %v1466_v23 = vld [vmem:[%s2082_s0 + $0x38] sm:$0xff]  ;;  %v1471_v24 = vld [vmem:[%s2082_s0 + $0x40] sm:$0xff] }
   0x4   :  { %v70_v14 = vadd.f32 %v39_v4, %v38_v3  ;;  %v76_v15 = vadd.f32 %v43_v6, %v42_v5  ;;  %v46_v16 = vunpack.c.l.bf16 %v1427_v8  ;;  %v47_v17 = vunpack.c.h.bf16 %v1427_v8  ;;  %v1481_v27 = vld [vmem:[%s2082_s0 + $0x48] sm:$0xff]  ;;  %v1493_v32 = vld [vmem:[%s2082_s0 + $0x50] sm:$0xff]  ;;  %v1500_v35 = vld [vmem:[%s2082_s0 + $0x58] sm:$0xff] }
   0x5   :  { %v73_v19 = vadd.f32 %v41_v10, %v40_v9  ;;  %v79_v20 = vadd.f32 %v45_v12, %v44_v11  ;;  %v48_v21 = vunpack.c.l.bf16 %v1436_v13  ;;  %v49_v22 = vunpack.c.h.bf16 %v1436_v13  ;;  %v1515_v40 = vld [vmem:[%s2082_s0 + $0x60] sm:$0xff]  ;;  %v1525_v43 = vld [vmem:[%s2082_s0 + $0x68] sm:$0xff]  ;;  %v1537_v48 = vld [vmem:[%s2082_s0 + $0x70] sm:$0xff] }
   0x6   :  { %71 = vadd.xlane.f32.xlu0 %v70_v14  ;;  %77 = vadd.xlane.f32.xlu1 %v76_v15  ;;  %v82_v25 = vadd.f32 %v47_v17, %v46_v16  ;;  %v50_v26 = vunpack.c.l.bf16 %v1451_v18  ;;  %v51_v29 = vunpack.c.h.bf16 %v1451_v18  ;;  %v52_v30 = vunpack.c.l.bf16 %v1466_v23  ;;  %v1544_v51 = vld [vmem:[%s2082_s0 + $0x78] sm:$0xff] }
   0x7   :  { %v85_v28 = vadd.f32 %v49_v22, %v48_v21  ;;  %v53_v31 = vunpack.c.h.bf16 %v1466_v23  ;;  %v54_v33 = vunpack.c.l.bf16 %v1471_v24  ;;  %v55_v34 = vunpack.c.h.bf16 %v1471_v24 }
   0x8   :  { %v88_v36 = vadd.f32 %v51_v29, %v50_v26  ;;  %v56_v38 = vunpack.c.l.bf16 %v1481_v27  ;;  %v57_v39 = vunpack.c.h.bf16 %v1481_v27  ;;  %v58_v42 = vunpack.c.l.bf16 %v1493_v32 }
   0x9   :  { %v91_v37 = vadd.f32 %v53_v31, %v52_v30  ;;  %v94_v41 = vadd.f32 %v55_v34, %v54_v33  ;;  %v59_v45 = vunpack.c.h.bf16 %v1493_v32  ;;  %v60_v46 = vunpack.c.l.bf16 %v1500_v35 }
   0xa   :  { %74 = vadd.xlane.f32.xlu0 %v73_v19  ;;  %80 = vadd.xlane.f32.xlu1 %v79_v20  ;;  %v97_v44 = vadd.f32 %v57_v39, %v56_v38  ;;  %v61_v47 = vunpack.c.h.bf16 %v1500_v35  ;;  %v62_v49 = vunpack.c.l.bf16 %v1515_v40  ;;  %v63_v50 = vunpack.c.h.bf16 %v1515_v40 }
   0xb   :  { %v100_v52 = vadd.f32 %v59_v45, %v58_v42  ;;  %v64_v54 = vunpack.c.l.bf16 %v1525_v43  ;;  %v65_v55 = vunpack.c.h.bf16 %v1525_v43  ;;  %v66_v57 = vunpack.c.l.bf16 %v1537_v48 }
   0xc   :  { %v103_v53 = vadd.f32 %v61_v47, %v60_v46  ;;  %v106_v56 = vadd.f32 %v63_v50, %v62_v49  ;;  %v67_v59 = vunpack.c.h.bf16 %v1537_v48  ;;  %v68_v60 = vunpack.c.l.bf16 %v1544_v51 }
   0xd   :  { %v109_v58 = vadd.f32 %v65_v55, %v64_v54  ;;  %v69_v61 = vunpack.c.h.bf16 %v1544_v51 }
   0xe   :  { %83 = vadd.xlane.f32.xlu0 %v82_v25  ;;  %86 = vadd.xlane.f32.xlu1 %v85_v28 }
  0x12   :  { %89 = vadd.xlane.f32.xlu0 %v88_v36  ;;  %92 = vadd.xlane.f32.xlu1 %v91_v37 }
  0x16   :  { %95 = vadd.xlane.f32.xlu0 %v94_v41  ;;  %98 = vadd.xlane.f32.xlu1 %v97_v44 }
  0x1a   :  { %101 = vadd.xlane.f32.xlu0 %v100_v52  ;;  %104 = vadd.xlane.f32.xlu1 %v103_v53 }
  0x1b   :  { %9 = vsyncpa [#allocation4], 0  ;;  %v112_v62 = vadd.f32 %v67_v59, %v66_v57  ;;  %v115_v63 = vadd.f32 %v69_v61, %v68_v60  ;;  %v1220_v14 = vld [vmem:[%s2085_s3 + $0x4] ss:$8 sps:$4 sm:$0xff]   ;;  %v1224_v19 = vld [vmem:[%s2085_s3] ss:$8 sps:$4 sm:$0xff]  }
  0x1c   :  { %v1222_v15 = vld [vmem:[%s2085_s3 + $0x104] ss:$8 sps:$4 sm:$0xff]   ;;  %v1225_v20 = vld [vmem:[%s2085_s3 + $0x100] ss:$8 sps:$4 sm:$0xff]   ;;  %v1226_v25 = vld [vmem:[%s2085_s3 + $0x14] ss:$8 sps:$4 sm:$0xff]   ;;  %847 = vmatprep.subr.bf16.mxu0 %v1220_v14 }
  0x1d   :  { %v1228_v28 = vld [vmem:[%s2085_s3 + $0x114] ss:$8 sps:$4 sm:$0xff]   ;;  %960 = vmatprep.subr.bf16.mxu1 %v1222_v15  ;;  %848 = vmatpush1.bf16.xpose.msra.mxu0 %v1224_v19  ;;  %v1230_v36 = vld [vmem:[%s2085_s3 + $0x10] ss:$8 sps:$4 sm:$0xff]   ;;  %v1232_v41 = vld [vmem:[%s2085_s3 + $0x24] ss:$8 sps:$4 sm:$0xff]  }
  0x1e   :  { %107 = vadd.xlane.f32.xlu0 %v106_v56  ;;  %110 = vadd.xlane.f32.xlu1 %v109_v58  ;;  %v1231_v37 = vld [vmem:[%s2085_s3 + $0x110] ss:$8 sps:$4 sm:$0xff]   ;;  %v1234_v44 = vld [vmem:[%s2085_s3 + $0x124] ss:$8 sps:$4 sm:$0xff]   ;;  %v1236_v52 = vld [vmem:[%s2085_s3 + $0x20] ss:$8 sps:$4 sm:$0xff]  }
  0x1f   :  { %961 = vmatpush1.bf16.xpose.msra.mxu1 %v1225_v20  ;;  %849 = vmatprep.subr.bf16.mxu0 %v1226_v25  ;;  %v1237_v53 = vld [vmem:[%s2085_s3 + $0x120] ss:$8 sps:$4 sm:$0xff]   ;;  %v1238_v56 = vld [vmem:[%s2085_s3 + $0x34] ss:$8 sps:$4 sm:$0xff]   ;;  %v1244_v14 = vld [vmem:[%s2085_s3 + $0x44] ss:$8 sps:$4 sm:$0xff]  }
  0x20   :  { %962 = vmatprep.subr.bf16.mxu1 %v1228_v28  ;;  %v1240_v58 = vld [vmem:[%s2085_s3 + $0x134] ss:$8 sps:$4 sm:$0xff]   ;;  %v1246_v15 = vld [vmem:[%s2085_s3 + $0x144] ss:$8 sps:$4 sm:$0xff]   ;;  %v1248_v19 = vld [vmem:[%s2085_s3 + $0x40] ss:$8 sps:$4 sm:$0xff]  }
  0x21   :  { %v1249_v20 = vld [vmem:[%s2085_s3 + $0x140] ss:$8 sps:$4 sm:$0xff]   ;;  %v1250_v25 = vld [vmem:[%s2085_s3 + $0x54] ss:$8 sps:$4 sm:$0xff]   ;;  %v1303_v43 = vld [vmem:[%s2085_s3 + $0x1d0] ss:$8 sps:$4 sm:$0xff]  }
  0x22   :  { %113 = vadd.xlane.f32.xlu0 %v112_v62  ;;  %116 = vadd.xlane.f32.xlu1 %v115_v63  ;;  %v1242_v62 = vld [vmem:[%s2085_s3 + $0x30] ss:$8 sps:$4 sm:$0xff]   ;;  %v1252_v28 = vld [vmem:[%s2085_s3 + $0x154] ss:$8 sps:$4 sm:$0xff]   ;;  %v1297_v7 = vld [vmem:[%s2085_s3 + $0x1c0] ss:$8 sps:$4 sm:$0xff]  }
  0x23   :  { %v1243_v63 = vld [vmem:[%s2085_s3 + $0x130] ss:$8 sps:$4 sm:$0xff]  }
  0x25   :  { %850 = vmatpush1.bf16.xpose.msra.mxu0 %v1230_v36  ;;  %v1254_v36 = vld [vmem:[%s2085_s3 + $0x50] ss:$8 sps:$4 sm:$0xff]  }
  0x26   :  { %851 = vmatprep.subr.bf16.mxu0 %v1232_v41  ;;  %v1256_v41 = vld [vmem:[%s2085_s3 + $0x64] ss:$8 sps:$4 sm:$0xff]  }
  0x27   :  { %963 = vmatpush1.bf16.xpose.msra.mxu1 %v1231_v37  ;;  %v1255_v37 = vld [vmem:[%s2085_s3 + $0x150] ss:$8 sps:$4 sm:$0xff]  }
  0x28   :  { %964 = vmatprep.subr.bf16.mxu1 %v1234_v44  ;;  %v1258_v44 = vld [vmem:[%s2085_s3 + $0x164] ss:$8 sps:$4 sm:$0xff]  }
  0x2d   :  { %852 = vmatpush1.bf16.xpose.msra.mxu0 %v1236_v52  ;;  %v1260_v52 = vld [vmem:[%s2085_s3 + $0x60] ss:$8 sps:$4 sm:$0xff]  }
  0x2e   :  { %853 = vmatprep.subr.bf16.mxu0 %v1238_v56  ;;  %v1262_v56 = vld [vmem:[%s2085_s3 + $0x74] ss:$8 sps:$4 sm:$0xff]  }
  0x2f   :  { %965 = vmatpush1.bf16.xpose.msra.mxu1 %v1237_v53  ;;  %v1261_v53 = vld [vmem:[%s2085_s3 + $0x160] ss:$8 sps:$4 sm:$0xff]  }
  0x30   :  { %966 = vmatprep.subr.bf16.mxu1 %v1240_v58  ;;  %v1264_v58 = vld [vmem:[%s2085_s3 + $0x174] ss:$8 sps:$4 sm:$0xff]  }
  0x35   :  { %854 = vmatpush1.bf16.xpose.msra.mxu0 %v1242_v62  ;;  %v1266_v62 = vld [vmem:[%s2085_s3 + $0x70] ss:$8 sps:$4 sm:$0xff]  }
  0x36   :  { %855 = vmatprep.subr.bf16.mxu0 %v1244_v14  ;;  %v1268_v14 = vld [vmem:[%s2085_s3 + $0x84] ss:$8 sps:$4 sm:$0xff]  }
  0x37   :  { %967 = vmatpush1.bf16.xpose.msra.mxu1 %v1243_v63  ;;  %v1267_v63 = vld [vmem:[%s2085_s3 + $0x170] ss:$8 sps:$4 sm:$0xff]  }
  0x38   :  { %968 = vmatprep.subr.bf16.mxu1 %v1246_v15  ;;  %v1270_v15 = vld [vmem:[%s2085_s3 + $0x184] ss:$8 sps:$4 sm:$0xff]  }
  0x3d   :  { %856 = vmatpush1.bf16.xpose.msra.mxu0 %v1248_v19  ;;  %v1272_v19 = vld [vmem:[%s2085_s3 + $0x80] ss:$8 sps:$4 sm:$0xff]  }
  0x3e   :  { %857 = vmatprep.subr.bf16.mxu0 %v1250_v25  ;;  %v1274_v25 = vld [vmem:[%s2085_s3 + $0x94] ss:$8 sps:$4 sm:$0xff]  }
  0x3f   :  { %969 = vmatpush1.bf16.xpose.msra.mxu1 %v1249_v20  ;;  %v1273_v20 = vld [vmem:[%s2085_s3 + $0x180] ss:$8 sps:$4 sm:$0xff]  }
  0x40   :  { %970 = vmatprep.subr.bf16.mxu1 %v1252_v28  ;;  %v1276_v28 = vld [vmem:[%s2085_s3 + $0x194] ss:$8 sps:$4 sm:$0xff]  }
  0x45   :  { %858 = vmatpush1.bf16.xpose.msra.mxu0 %v1254_v36  ;;  %v1278_v36 = vld [vmem:[%s2085_s3 + $0x90] ss:$8 sps:$4 sm:$0xff]  }
  0x46   :  { %859 = vmatprep.subr.bf16.mxu0 %v1256_v41  ;;  %v1280_v41 = vld [vmem:[%s2085_s3 + $0xa4] ss:$8 sps:$4 sm:$0xff]  }
  0x47   :  { %971 = vmatpush1.bf16.xpose.msra.mxu1 %v1255_v37  ;;  %v1279_v37 = vld [vmem:[%s2085_s3 + $0x190] ss:$8 sps:$4 sm:$0xff]  }
  0x48   :  { %972 = vmatprep.subr.bf16.mxu1 %v1258_v44  ;;  %v1282_v44 = vld [vmem:[%s2085_s3 + $0x1a4] ss:$8 sps:$4 sm:$0xff]  }
  0x4d   :  { %860 = vmatpush1.bf16.xpose.msra.mxu0 %v1260_v52  ;;  %v1284_v52 = vld [vmem:[%s2085_s3 + $0xa0] ss:$8 sps:$4 sm:$0xff]  }
  0x4e   :  { %861 = vmatprep.subr.bf16.mxu0 %v1262_v56  ;;  %v1286_v56 = vld [vmem:[%s2085_s3 + $0xb4] ss:$8 sps:$4 sm:$0xff]  }
  0x4f   :  { %973 = vmatpush1.bf16.xpose.msra.mxu1 %v1261_v53  ;;  %v1285_v53 = vld [vmem:[%s2085_s3 + $0x1a0] ss:$8 sps:$4 sm:$0xff]  }
  0x50   :  { %974 = vmatprep.subr.bf16.mxu1 %v1264_v58  ;;  %v1288_v58 = vld [vmem:[%s2085_s3 + $0x1b4] ss:$8 sps:$4 sm:$0xff]  }
  0x55   :  { %862 = vmatpush1.bf16.xpose.msra.mxu0 %v1266_v62 }
  0x56   :  { %863 = vmatprep.subr.bf16.mxu0 %v1268_v14 }
  0x57   :  { %975 = vmatpush1.bf16.xpose.msra.mxu1 %v1267_v63 }
  0x58   :  { %976 = vmatprep.subr.bf16.mxu1 %v1270_v15 }
  0x5d   :  { %864 = vmatpush1.bf16.xpose.msra.mxu0 %v1272_v19  ;;  %v1290_v19 = vld [vmem:[%s2085_s3 + $0xb0] ss:$8 sps:$4 sm:$0xff]  }
  0x5e   :  { %865 = vmatprep.subr.bf16.mxu0 %v1274_v25  ;;  %v1292_v25 = vld [vmem:[%s2085_s3 + $0xc4] ss:$8 sps:$4 sm:$0xff]  }
  0x5f   :  { %977 = vmatpush1.bf16.xpose.msra.mxu1 %v1273_v20  ;;  %v1291_v20 = vld [vmem:[%s2085_s3 + $0x1b0] ss:$8 sps:$4 sm:$0xff]  }
  0x60   :  { %978 = vmatprep.subr.bf16.mxu1 %v1276_v28  ;;  %v1294_v28 = vld [vmem:[%s2085_s3 + $0x1c4] ss:$8 sps:$4 sm:$0xff]  }
  0x65   :  { %866 = vmatpush1.bf16.xpose.msra.mxu0 %v1278_v36 }
  0x66   :  { %867 = vmatprep.subr.bf16.mxu0 %v1280_v41 }
  0x67   :  { %979 = vmatpush1.bf16.xpose.msra.mxu1 %v1279_v37 }
  0x68   :  { %980 = vmatprep.subr.bf16.mxu1 %v1282_v44 }
  0x6d   :  { %868 = vmatpush1.bf16.xpose.msra.mxu0 %v1284_v52 }
  0x6e   :  { %869 = vmatprep.subr.bf16.mxu0 %v1286_v56 }
  0x6f   :  { %981 = vmatpush1.bf16.xpose.msra.mxu1 %v1285_v53 }
  0x70   :  { %982 = vmatprep.subr.bf16.mxu1 %v1288_v58 }
  0x75   :  { %870 = vmatpush1.bf16.xpose.msra.mxu0 %v1290_v19 }
  0x76   :  { %871 = vmatprep.subr.bf16.mxu0 %v1292_v25 }
  0x77   :  { %983 = vmatpush1.bf16.xpose.msra.mxu1 %v1291_v20 }
  0x78   :  { %984 = vmatprep.subr.bf16.mxu1 %v1294_v28 }
  0x7f   :  { %985 = vmatpush1.bf16.xpose.msra.mxu1 %v1297_v7 }
  0x93   :  { %v72_v62 = vpop.xlane.xlu0 %71  ;;  %v78_v63 = vpop.xlane.xlu1 %77 }
  0x94   :  { %v119_v14 = vmul.f32 0.00390625, %v72_v62  ;;  %v121_v15 = vmul.f32 0.00390625, %v78_v63 }
  0x96   :  { %v1728_v36 = vsub.f32 %v38_v3, %v119_v14  ;;  %v1732_v37 = vsub.f32 %v39_v4, %v119_v14  ;;  %v1736_v41 = vsub.f32 %v42_v5, %v121_v15  ;;  %v1740_v44 = vsub.f32 %v43_v6, %v121_v15 }
  0x97   :  { %v75_v52 = vpop.xlane.xlu0 %74  ;;  %v81_v53 = vpop.xlane.xlu1 %80 }
  0x98   :  { %v120_v56 = vmul.f32 0.00390625, %v75_v52  ;;  %v122_v58 = vmul.f32 0.00390625, %v81_v53  ;;  %v167_v3 = vmul.f32 %v1728_v36, %v1728_v36  ;;  %v168_v0 = vmul.f32 %v1732_v37, %v1732_v37 }
  0x99   :  { %v171_v4 = vmul.f32 %v1736_v41, %v1736_v41  ;;  %v172_v1 = vmul.f32 %v1740_v44, %v1740_v44 }
  0x9a   :  { %v1752_v5 = vsub.f32 %v40_v9, %v120_v56  ;;  %v1756_v6 = vsub.f32 %v41_v10, %v120_v56  ;;  %v1760_v62 = vsub.f32 %v44_v11, %v122_v58  ;;  %v1764_v63 = vsub.f32 %v45_v12, %v122_v58  ;;  %v1296_v10 = vld [vmem:[%s2085_s3 + $0xc0] ss:$8 sps:$4 sm:$0xff]  }
  0x9b   :  { %v84_v14 = vpop.xlane.xlu0 %83  ;;  %v199_v15 = vadd.f32 %v168_v0, %v167_v3  ;;  %v87_v19 = vpop.xlane.xlu1 %86  ;;  %v205_v11 = vadd.f32 %v172_v1, %v171_v4  ;;  %872 = vmatpush1.bf16.xpose.msra.mxu0 %v1296_v10 }
  0x9c   :  { %v123_v20 = vmul.f32 0.00390625, %v84_v14  ;;  %v124_v25 = vmul.f32 0.00390625, %v87_v19  ;;  %v169_v9 = vmul.f32 %v1752_v5, %v1752_v5  ;;  %v170_v2 = vmul.f32 %v1756_v6, %v1756_v6 }
  0x9d   :  { %200 = vadd.xlane.f32.xlu0 %v199_v15  ;;  %v173_v12 = vmul.f32 %v1760_v62, %v1760_v62  ;;  %v174_v28 = vmul.f32 %v1764_v63, %v1764_v63 }
  0x9e   :  { %v1782_v52 = vsub.f32 %v46_v16, %v123_v20  ;;  %v1786_v53 = vsub.f32 %v47_v17, %v123_v20  ;;  %v1790_v56 = vsub.f32 %v48_v21, %v124_v25  ;;  %v1794_v58 = vsub.f32 %v49_v22, %v124_v25 }
  0x9f   :  { %v90_v3 = vpop.xlane.xlu0 %89  ;;  %v202_v0 = vadd.f32 %v170_v2, %v169_v9  ;;  %v93_v4 = vpop.xlane.xlu1 %92  ;;  %v208_v17 = vadd.f32 %v174_v28, %v173_v12 }
  0xa0   :  { %v125_v1 = vmul.f32 0.00390625, %v90_v3  ;;  %v126_v14 = vmul.f32 0.00390625, %v93_v4  ;;  %v175_v16 = vmul.f32 %v1782_v52, %v1782_v52  ;;  %v176_v8 = vmul.f32 %v1786_v53, %v1786_v53 }
  0xa1   :  { %206 = vadd.xlane.f32.xlu0 %v205_v11  ;;  %203 = vadd.xlane.f32.xlu1 %v202_v0  ;;  %v177_v13 = vmul.f32 %v1790_v56, %v1790_v56  ;;  %v178_v21 = vmul.f32 %v1794_v58, %v1794_v58 }
  0xa2   :  { %v1806_v22 = vsub.f32 %v50_v26, %v125_v1  ;;  %v1810_v15 = vsub.f32 %v51_v29, %v125_v1  ;;  %v1814_v19 = vsub.f32 %v52_v30, %v126_v14  ;;  %v1818_v20 = vsub.f32 %v53_v31, %v126_v14 }
  0xa3   :  { %v96_v25 = vpop.xlane.xlu0 %95  ;;  %v211_v9 = vadd.f32 %v176_v8, %v175_v16  ;;  %v99_v2 = vpop.xlane.xlu1 %98  ;;  %v214_v29 = vadd.f32 %v178_v21, %v177_v13 }
  0xa4   :  { %v127_v10 = vmul.f32 0.00390625, %v96_v25  ;;  %v128_v7 = vmul.f32 0.00390625, %v99_v2  ;;  %v179_v26 = vmul.f32 %v1806_v22, %v1806_v22  ;;  %v180_v18 = vmul.f32 %v1810_v15, %v1810_v15 }
  0xa5   :  { %209 = vadd.xlane.f32.xlu1 %v208_v17  ;;  %212 = vadd.xlane.f32.xlu0 %v211_v9  ;;  %v181_v30 = vmul.f32 %v1814_v19, %v1814_v19  ;;  %v182_v23 = vmul.f32 %v1818_v20, %v1818_v20 }
  0xa6   :  { %v1830_v31 = vsub.f32 %v54_v33, %v127_v10  ;;  %v1834_v11 = vsub.f32 %v55_v34, %v127_v10  ;;  %v1838_v12 = vsub.f32 %v56_v38, %v128_v7  ;;  %v1842_v28 = vsub.f32 %v57_v39, %v128_v7 }
  0xa7   :  { %v102_v3 = vpop.xlane.xlu0 %101  ;;  %v217_v0 = vadd.f32 %v180_v18, %v179_v26  ;;  %v105_v4 = vpop.xlane.xlu1 %104  ;;  %v220_v34 = vadd.f32 %v182_v23, %v181_v30  ;;  %v1298_v18 = vld [vmem:[%s2085_s3 + $0xd4] ss:$8 sps:$4 sm:$0xff]  }
  0xa8   :  { %v129_v1 = vmul.f32 0.00390625, %v102_v3  ;;  %v130_v14 = vmul.f32 0.00390625, %v105_v4  ;;  %v183_v33 = vmul.f32 %v1830_v31, %v1830_v31  ;;  %v184_v24 = vmul.f32 %v1834_v11, %v1834_v11  ;;  %873 = vmatprep.subr.bf16.mxu0 %v1298_v18 }
  0xa9   :  { %215 = vadd.xlane.f32.xlu1 %v214_v29  ;;  %218 = vadd.xlane.f32.xlu0 %v217_v0  ;;  %v185_v38 = vmul.f32 %v1838_v12, %v1838_v12  ;;  %v186_v27 = vmul.f32 %v1842_v28, %v1842_v28 }
  0xaa   :  { %v1854_v39 = vsub.f32 %v58_v42, %v129_v1  ;;  %v1858_v16 = vsub.f32 %v59_v45, %v129_v1  ;;  %v1862_v8 = vsub.f32 %v60_v46, %v130_v14  ;;  %v1866_v17 = vsub.f32 %v61_v47, %v130_v14 }
  0xab   :  { %v108_v13 = vpop.xlane.xlu0 %107  ;;  %v223_v21 = vadd.f32 %v184_v24, %v183_v33  ;;  %v111_v25 = vpop.xlane.xlu1 %110  ;;  %v226_v45 = vadd.f32 %v186_v27, %v185_v38 }
  0xac   :  { %v131_v9 = vmul.f32 0.00390625, %v108_v13  ;;  %v132_v2 = vmul.f32 0.00390625, %v111_v25  ;;  %v187_v42 = vmul.f32 %v1854_v39, %v1854_v39  ;;  %v188_v32 = vmul.f32 %v1858_v16, %v1858_v16  ;;  %v1306_v13 = vld [vmem:[%s2085_s3 + $0x1e4] ss:$8 sps:$4 sm:$0xff]   ;;  %v1309_v25 = vld [vmem:[%s2085_s3 + $0x1e0] ss:$8 sps:$4 sm:$0xff]  }
  0xad   :  { %221 = vadd.xlane.f32.xlu1 %v220_v34  ;;  %224 = vadd.xlane.f32.xlu0 %v223_v21  ;;  %v189_v46 = vmul.f32 %v1862_v8, %v1862_v8  ;;  %v190_v35 = vmul.f32 %v1866_v17, %v1866_v17  ;;  %v1308_v21 = vld [vmem:[%s2085_s3 + $0xe0] ss:$8 sps:$4 sm:$0xff]  }
  0xae   :  { %v1878_v47 = vsub.f32 %v62_v49, %v131_v9  ;;  %v1882_v10 = vsub.f32 %v63_v50, %v131_v9  ;;  %v1886_v7 = vsub.f32 %v64_v54, %v132_v2  ;;  %v1890_v26 = vsub.f32 %v65_v55, %v132_v2  ;;  %v1300_v49 = vld [vmem:[%s2085_s3 + $0x1d4] ss:$8 sps:$4 sm:$0xff]   ;;  %v1302_v54 = vld [vmem:[%s2085_s3 + $0xd0] ss:$8 sps:$4 sm:$0xff]  }
  0xaf   :  { %v114_v29 = vpop.xlane.xlu0 %113  ;;  %v229_v40 = vadd.f32 %v188_v32, %v187_v42  ;;  %v117_v50 = vpop.xlane.xlu1 %116  ;;  %986 = vmatprep.subr.bf16.mxu1 %v1300_v49  ;;  %v232_v0 = vadd.f32 %v190_v35, %v189_v46  ;;  %874 = vmatpush1.bf16.xpose.msra.mxu0 %v1302_v54  ;;  %v1310_v2 = vld [vmem:[%s2085_s3 + $0xf4] ss:$8 sps:$4 sm:$0xff]   ;;  %v1314_v32 = vld [vmem:[%s2085_s3 + $0xf0] ss:$8 sps:$4 sm:$0xff]   ;;  %v329_v49 = vlaneseq }
  0xb0   :  { %v133_v55 = vmul.f32 0.00390625, %v114_v29  ;;  %v134_v30 = vmul.f32 0.00390625, %v117_v50  ;;  %v191_v23 = vmul.f32 %v1878_v47, %v1878_v47  ;;  %v192_v3 = vmul.f32 %v1882_v10, %v1882_v10  ;;  %987 = vmatpush1.bf16.xpose.msra.mxu1 %v1303_v43  ;;  %v1312_v42 = vld [vmem:[%s2085_s3 + $0x1f4] ss:$8 sps:$4 sm:$0xff]  }
  0xb1   :  { %227 = vadd.xlane.f32.xlu1 %v226_v45  ;;  %230 = vadd.xlane.f32.xlu0 %v229_v40  ;;  %v193_v4 = vmul.f32 %v1886_v7, %v1886_v7  ;;  %v194_v1 = vmul.f32 %v1890_v26, %v1890_v26  ;;  %v1315_v45 = vld [vmem:[%s2085_s3 + $0x1f0] ss:$8 sps:$4 sm:$0xff]  }
  0xb2   :  { %v1914_v14 = vsub.f32 %v66_v57, %v133_v55  ;;  %v1918_v33 = vsub.f32 %v67_v59, %v133_v55  ;;  %v1922_v24 = vsub.f32 %v68_v60, %v134_v30  ;;  %v1926_v34 = vsub.f32 %v69_v61, %v134_v30  ;;  %v1304_v61 = vld [vmem:[%s2085_s3 + $0xe4] ss:$8 sps:$4 sm:$0xff]   ;;  %988 = vmatprep.subr.bf16.mxu1 %v1306_v13 }
  0xb3   :  { %v235_v38 = vadd.f32 %v192_v3, %v191_v23  ;;  %v238_v48 = vadd.f32 %v194_v1, %v193_v4  ;;  %875 = vmatprep.subr.bf16.mxu0 %v1304_v61  ;;  %v330_v30 = vshrl.u32 %v329_v49, 7 }
  0xb4   :  { %v195_v27 = vmul.f32 %v1914_v14, %v1914_v14  ;;  %v196_v57 = vmul.f32 %v1918_v33, %v1918_v33  ;;  %v197_v59 = vmul.f32 %v1922_v24, %v1922_v24  ;;  %v198_v51 = vmul.f32 %v1926_v34, %v1926_v34 }
  0xb5   :  { %233 = vadd.xlane.f32.xlu1 %v232_v0  ;;  %236 = vadd.xlane.f32.xlu0 %v235_v38 }
  0xb6   :  { %v241_v60 = vadd.f32 %v196_v57, %v195_v27  ;;  %v244_v9 = vadd.f32 %v198_v51, %v197_v59  ;;  %v331_v27 = vsub.s32 0, %v330_v30  ;;  %v335_v57 = vsub.s32 1, %v330_v30  ;;  %v327_v51 = vld [vmem:[%s2083_s1] sm:$0x3]  ;;  %s1372_s1 = smov [#allocation3]  }
  0xb7   :  { %876 = vmatpush1.bf16.xpose.msra.mxu0 %v1308_v21 }
  0xb8   :  { %989 = vmatpush1.bf16.xpose.msra.mxu1 %v1309_v25  ;;  %877 = vmatprep.subr.bf16.mxu0 %v1310_v2  ;;  %v1963_v25 = vrot.slane %v327_v51, %v331_v27  ;;  %v371_v2 = vld [vmem:[%s2084_s2] sm:$0x3]  ;;  %s1142_s2 = sshll.u32 %s1372_s1, 4  ;;  %s1143_s2 = int_to_ptr.vmem [resolvable:$true] %s1142_s2 }
  0xb9   :  { %239 = vadd.xlane.f32.xlu1 %v238_v48  ;;  %242 = vadd.xlane.f32.xlu0 %v241_v60  ;;  %v1972_v49 = vrot.slane %v371_v2, %v331_v27  ;;  %s1348_s17 = scalar_lea.vmem %s1143_s2, 8192  ;;  %p1353_p1 = scmp.lt.s32.totalorder %s1143_s2, %s1143_s2 }
  0xba   :  { %990 = vmatprep.subr.bf16.mxu1 %v1312_v42  ;;  %p1349_p0 = scmp.ne.s32.totalorder %s1143_s2, %s1348_s17  ;;  %p1354_p2 = scmp.lt.s32.totalorder %s1348_s17, %s1348_s17 }
  0xbc   :  { %p1355_p3 = por %p1354_p2, %p1353_p1 }
  0xbd   :  { %245 = vadd.xlane.f32.xlu1 %v244_v9  ;;  %v1965_v9 = vrot.slane %v327_v51, %v335_v57 }
  0xbe   :  { %p1356_p4 = pnand %p1355_p3, %p1349_p0 }
  0xbf   :  { %878 = vmatpush1.bf16.xpose.msra.mxu0 %v1314_v32 }
  0xc0   :  { %991 = vmatpush1.bf16.xpose.msra.mxu1 %v1315_v45 }
 0x12a   :  { %v201_v46 = vpop.xlane.xlu0 %200 }
 0x12b   :  { %v247_v35 = vmul.f32 0.00390625, %v201_v46 }
 0x12d   :  { %v263_v18 = vadd.f32 1e-05, %v247_v35 }
 0x12e   :  { %v204_v29 = vpop.xlane.xlu1 %203  ;;  %v207_v40 = vpop.xlane.xlu0 %206 }
 0x12f   :  { %1316 = vrsqrt.f32 %v263_v18  ;;  %v248_v50 = vmul.f32 0.00390625, %v204_v29  ;;  %v249_v54 = vmul.f32 0.00390625, %v207_v40 }
 0x131   :  { %v264_v43 = vadd.f32 1e-05, %v248_v50  ;;  %v265_v55 = vadd.f32 1e-05, %v249_v54  ;;  %v1975_v54 = vrot.slane %v371_v2, %v335_v57 }
 0x132   :  { %v210_v23 = vpop.xlane.xlu1 %209  ;;  %v213_v3 = vpop.xlane.xlu0 %212 }
 0x133   :  { %1318 = vrsqrt.f32 %v264_v43  ;;  %v250_v0 = vmul.f32 0.00390625, %v210_v23  ;;  %v251_v4 = vmul.f32 0.00390625, %v213_v3 }
 0x134   :  { %1320 = vrsqrt.f32 %v265_v55 }
 0x135   :  { %v266_v1 = vadd.f32 1e-05, %v250_v0  ;;  %v267_v38 = vadd.f32 1e-05, %v251_v4 }
 0x136   :  { %v216_v48 = vpop.xlane.xlu1 %215  ;;  %v219_v59 = vpop.xlane.xlu0 %218 }
 0x137   :  { %1322 = vrsqrt.f32 %v266_v1  ;;  %v252_v60 = vmul.f32 0.00390625, %v216_v48  ;;  %v253_v61 = vmul.f32 0.00390625, %v219_v59 }
 0x138   :  { %1324 = vrsqrt.f32 %v267_v38 }
 0x139   :  { %v1317_v13 = vpop.eup %1316  ;;  %v268_v21 = vadd.f32 1e-05, %v252_v60  ;;  %v269_v42 = vadd.f32 1e-05, %v253_v61 }
 0x13a   :  { %v222_v32 = vpop.xlane.xlu1 %221  ;;  %v296_v45 = vmul.f32 %v1317_v13, %v1732_v37  ;;  %v295_v46 = vmul.f32 %v1317_v13, %v1728_v36  ;;  %v225_v18 = vpop.xlane.xlu0 %224 }
 0x13b   :  { %1326 = vrsqrt.f32 %v268_v21  ;;  %v254_v35 = vmul.f32 0.00390625, %v222_v32  ;;  %v255_v23 = vmul.f32 0.00390625, %v225_v18 }
 0x13c   :  { %v340_v50 = vmul.f32 %v1965_v9, %v296_v45  ;;  %v339_v43 = vmul.f32 %v1963_v25, %v295_v46  ;;  %1328 = vrsqrt.f32 %v269_v42 }
 0x13d   :  { %v1319_v29 = vpop.eup %1318  ;;  %v270_v40 = vadd.f32 1e-05, %v254_v35  ;;  %v271_v13 = vadd.f32 1e-05, %v255_v23 }
 0x13e   :  { %v1321_v55 = vpop.eup %1320  ;;  %v228_v30 = vpop.xlane.xlu1 %227  ;;  %v298_v37 = vmul.f32 %v1319_v29, %v1756_v6  ;;  %v297_v36 = vmul.f32 %v1319_v29, %v1752_v5  ;;  %v384_v57 = vadd.f32 %v1975_v54, %v340_v50  ;;  %v383_v48 = vadd.f32 %v1972_v49, %v339_v43 }
 0x13f   :  { %1330 = vrsqrt.f32 %v270_v40  ;;  %v256_v3 = vmul.f32 0.00390625, %v228_v30  ;;  %v300_v0 = vmul.f32 %v1321_v55, %v1740_v44  ;;  %v299_v21 = vmul.f32 %v1321_v55, %v1736_v41  ;;  %v231_v2 = vpop.xlane.xlu0 %230 }
 0x140   :  { %v342_v4 = vmul.f32 %v1965_v9, %v298_v37  ;;  %v341_v1 = vmul.f32 %v1963_v25, %v297_v36  ;;  %v257_v40 = vmul.f32 0.00390625, %v231_v2 }
 0x141   :  { %v1323_v38 = vpop.eup %1322  ;;  %v272_v27 = vadd.f32 1e-05, %v256_v3  ;;  %v344_v59 = vmul.f32 %v1965_v9, %v300_v0  ;;  %v343_v50 = vmul.f32 %v1963_v25, %v299_v21 }
 0x142   :  { %v234_v6 = vpop.xlane.xlu1 %233  ;;  %v386_v5 = vadd.f32 %v1975_v54, %v342_v4  ;;  %v385_v51 = vadd.f32 %v1972_v49, %v341_v1  ;;  %v302_v60 = vmul.f32 %v1323_v38, %v1764_v63  ;;  %v301_v44 = vmul.f32 %v1323_v38, %v1760_v62  ;;  %v1325_v61 = vpop.eup %1324 }
 0x143   :  { %1332 = vrsqrt.f32 %v272_v27  ;;  %v258_v35 = vmul.f32 0.00390625, %v234_v6  ;;  %v388_v18 = vadd.f32 %v1975_v54, %v344_v59  ;;  %v304_v63 = vmul.f32 %v1325_v61, %v1786_v53  ;;  %v237_v27 = vpop.xlane.xlu0 %236 }
 0x144   :  { %v416_v42 = vpack.c.bf16 %v386_v5, %v384_v57  ;;  %v415_v32 = vpack.c.bf16 %v385_v51, %v383_v48  ;;  %v346_v45 = vmul.f32 %v1965_v9, %v302_v60  ;;  %v345_v29 = vmul.f32 %v1963_v25, %v301_v44 }
 0x145   :  { %v1327_v46 = vpop.eup %1326  ;;  %1334 = vrsqrt.f32 %v271_v13  ;;  %v348_v30 = vmul.f32 %v1965_v9, %v304_v63  ;;  %v274_v36 = vadd.f32 1e-05, %v258_v35  ;;  %v387_v4 = vadd.f32 %v1972_v49, %v343_v50 }
 0x146   :  { %879 = vmatprep.mubr.bf16.mxu0 %v416_v42  ;;  %992 = vmatprep.mubr.bf16.mxu1 %v416_v42  ;;  %v390_v62 = vadd.f32 %v1975_v54, %v346_v45  ;;  %v306_v41 = vmul.f32 %v1327_v46, %v1794_v58  ;;  %v1329_v43 = vpop.eup %1328  ;;  %v389_v23 = vadd.f32 %v1972_v49, %v345_v29  ;;  %v240_v0 = vpop.xlane.xlu1 %239  ;;  %v273_v58 = vadd.f32 1e-05, %v257_v40 }
 0x147   :  { %880 = vmatmul.mubr.bf16.vlgmr.msra.gmra.mrb[0].mxu0 %v415_v32  ;;  %993 = vmatmul.mubr.bf16.vlgmr.msra.gmra.mrb[0].mxu1 %v415_v32  ;;  %v305_v53 = vmul.f32 %v1327_v46, %v1790_v56  ;;  %v303_v38 = vmul.f32 %v1325_v61, %v1782_v52  ;;  %v392_v57 = vadd.f32 %v1975_v54, %v348_v30  ;;  %1336 = vrsqrt.f32 %v274_v36  ;;  %v243_v29 = vpop.xlane.xlu0 %242 }
 0x148   :  { %v418_v55 = vpack.c.bf16 %v390_v62, %v388_v18  ;;  %v350_v3 = vmul.f32 %v1965_v9, %v306_v41  ;;  %v308_v48 = vmul.f32 %v1329_v43, %v1810_v15  ;;  %v260_v6 = vmul.f32 0.00390625, %v240_v0 }
 0x149   :  { %v1331_v37 = vpop.eup %1330  ;;  %v417_v5 = vpack.c.bf16 %v389_v23, %v387_v4  ;;  %v349_v51 = vmul.f32 %v1963_v25, %v305_v53  ;;  %1338 = vrsqrt.f32 %v273_v58  ;;  %v259_v13 = vmul.f32 0.00390625, %v237_v27 }
 0x14a   :  { %889 = vmatprep.mubr.bf16.mxu0 %v418_v55  ;;  %1002 = vmatprep.mubr.bf16.mxu1 %v418_v55  ;;  %v394_v1 = vadd.f32 %v1975_v54, %v350_v3  ;;  %v310_v59 = vmul.f32 %v1331_v37, %v1818_v20  ;;  %v347_v52 = vmul.f32 %v1963_v25, %v303_v38  ;;  %v276_v61 = vadd.f32 1e-05, %v260_v6  ;;  %v246_v42 = vpop.xlane.xlu1 %245 }
 0x14b   :  { %v352_v15 = vmul.f32 %v1965_v9, %v308_v48  ;;  %v393_v21 = vadd.f32 %v1972_v49, %v349_v51  ;;  %v309_v2 = vmul.f32 %v1331_v37, %v1814_v19  ;;  %v275_v46 = vadd.f32 1e-05, %v259_v13 }
 0x14c   :  { %v420_v56 = vpack.c.bf16 %v394_v1, %v392_v57  ;;  %v354_v60 = vmul.f32 %v1965_v9, %v310_v59  ;;  %v391_v35 = vadd.f32 %v1972_v49, %v347_v52  ;;  %v307_v18 = vmul.f32 %v1329_v43, %v1806_v22 }
 0x14d   :  { %v1333_v44 = vpop.eup %1332  ;;  %v396_v62 = vadd.f32 %v1975_v54, %v352_v15  ;;  %1340 = vrsqrt.f32 %v276_v61  ;;  %v262_v41 = vmul.f32 0.00390625, %v246_v42  ;;  %v353_v19 = vmul.f32 %v1963_v25, %v309_v2 }
 0x14e   :  { %v398_v32 = vadd.f32 %v1975_v54, %v354_v60  ;;  %v314_v45 = vmul.f32 %v1333_v44, %v1842_v28  ;;  %v419_v40 = vpack.c.bf16 %v393_v21, %v391_v35  ;;  %1342 = vrsqrt.f32 %v275_v46 }
 0x14f   :  { %890 = vmatmul.mubr.bf16.gmra.mrb[4].mxu0 %v417_v5  ;;  %1003 = vmatmul.mubr.bf16.gmra.mrb[4].mxu1 %v417_v5  ;;  %v1335_v20 = vpop.eup %1334  ;;  %v261_v28 = vmul.f32 0.00390625, %v243_v29  ;;  %v351_v22 = vmul.f32 %v1963_v25, %v307_v18  ;;  %v278_v37 = vadd.f32 1e-05, %v262_v41  ;;  %v397_v36 = vadd.f32 %v1972_v49, %v353_v19 }
 0x150   :  { %899 = vmatprep.mubr.bf16.mxu0 %v420_v56  ;;  %1012 = vmatprep.mubr.bf16.mxu1 %v420_v56  ;;  %v312_v63 = vmul.f32 %v1335_v20, %v1834_v11  ;;  %v422_v50 = vpack.c.bf16 %v398_v32, %v396_v62  ;;  %v358_v55 = vmul.f32 %v1965_v9, %v314_v45 }
 0x151   :  { %v1337_v30 = vpop.eup %1336  ;;  %v313_v23 = vmul.f32 %v1333_v44, %v1838_v12  ;;  %v277_v53 = vadd.f32 1e-05, %v261_v28  ;;  %v395_v58 = vadd.f32 %v1972_v49, %v351_v22  ;;  %v311_v4 = vmul.f32 %v1335_v20, %v1830_v31 }
 0x152   :  { %v356_v43 = vmul.f32 %v1965_v9, %v312_v63  ;;  %v402_v3 = vadd.f32 %v1975_v54, %v358_v55  ;;  %v318_v0 = vmul.f32 %v1337_v30, %v1866_v17  ;;  %1344 = vrsqrt.f32 %v278_v37 }
 0x153   :  { %v1339_v11 = vpop.eup %1338  ;;  %v421_v27 = vpack.c.bf16 %v397_v36, %v395_v58  ;;  %v357_v57 = vmul.f32 %v1963_v25, %v313_v23  ;;  %1346 = vrsqrt.f32 %v277_v53  ;;  %v355_v17 = vmul.f32 %v1963_v25, %v311_v4 }
 0x154   :  { %v400_v1 = vadd.f32 %v1975_v54, %v356_v43  ;;  %v316_v38 = vmul.f32 %v1339_v11, %v1858_v16  ;;  %v362_v12 = vmul.f32 %v1965_v9, %v318_v0  ;;  %v317_v5 = vmul.f32 %v1337_v30, %v1862_v8 }
 0x155   :  { %v401_v16 = vadd.f32 %v1972_v49, %v357_v57  ;;  %v399_v60 = vadd.f32 %v1972_v49, %v355_v17  ;;  %v315_v44 = vmul.f32 %v1339_v11, %v1854_v39 }
 0x156   :  { %v424_v48 = vpack.c.bf16 %v402_v3, %v400_v1  ;;  %v360_v31 = vmul.f32 %v1965_v9, %v316_v38  ;;  %v406_v51 = vadd.f32 %v1975_v54, %v362_v12  ;;  %v361_v20 = vmul.f32 %v1963_v25, %v317_v5 }
 0x157   :  { %900 = vmatmul.mubr.bf16.gmra.mrb[8].mxu0 %v419_v40  ;;  %1013 = vmatmul.mubr.bf16.gmra.mrb[8].mxu1 %v419_v40  ;;  %v1341_v59 = vpop.eup %1340  ;;  %v423_v15 = vpack.c.bf16 %v401_v16, %v399_v60  ;;  %v359_v8 = vmul.f32 %v1963_v25, %v315_v44 }
 0x158   :  { %909 = vmatprep.mubr.bf16.mxu0 %v422_v50  ;;  %1022 = vmatprep.mubr.bf16.mxu1 %v422_v50  ;;  %v1343_v6 = vpop.eup %1342  ;;  %v322_v56 = vmul.f32 %v1341_v59, %v1890_v26  ;;  %v404_v13 = vadd.f32 %v1975_v54, %v360_v31  ;;  %v405_v42 = vadd.f32 %v1972_v49, %v361_v20 }
 0x159   :  { %v320_v52 = vmul.f32 %v1343_v6, %v1882_v10  ;;  %v321_v10 = vmul.f32 %v1341_v59, %v1886_v7  ;;  %v403_v46 = vadd.f32 %v1972_v49, %v359_v8  ;;  %v319_v35 = vmul.f32 %v1343_v6, %v1878_v47 }
 0x15a   :  { %v426_v61 = vpack.c.bf16 %v406_v51, %v404_v13  ;;  %v366_v21 = vmul.f32 %v1965_v9, %v322_v56 }
 0x15b   :  { %v364_v26 = vmul.f32 %v1965_v9, %v320_v52  ;;  %v425_v62 = vpack.c.bf16 %v405_v42, %v403_v46  ;;  %v365_v63 = vmul.f32 %v1963_v25, %v321_v10  ;;  %v363_v7 = vmul.f32 %v1963_v25, %v319_v35 }
 0x15c   :  { %v1345_v2 = vpop.eup %1344  ;;  %v410_v32 = vadd.f32 %v1975_v54, %v366_v21 }
 0x15d   :  { %v1347_v39 = vpop.eup %1346  ;;  %v326_v45 = vmul.f32 %v1345_v2, %v1926_v34  ;;  %v408_v18 = vadd.f32 %v1975_v54, %v364_v26  ;;  %v409_v47 = vadd.f32 %v1972_v49, %v365_v63  ;;  %v325_v19 = vmul.f32 %v1345_v2, %v1922_v24 }
 0x15e   :  { %v324_v29 = vmul.f32 %v1347_v39, %v1918_v33  ;;  %v407_v50 = vadd.f32 %v1972_v49, %v363_v7  ;;  %v323_v55 = vmul.f32 %v1347_v39, %v1914_v14 }
 0x15f   :  { %910 = vmatmul.mubr.bf16.gmra.mrb[12].mxu0 %v421_v27  ;;  %1023 = vmatmul.mubr.bf16.gmra.mrb[12].mxu1 %v421_v27  ;;  %v428_v41 = vpack.c.bf16 %v410_v32, %v408_v18  ;;  %v370_v40 = vmul.f32 %v1965_v9, %v326_v45  ;;  %v369_v22 = vmul.f32 %v1963_v25, %v325_v19 }
 0x160   :  { %919 = vmatprep.mubr.bf16.mxu0 %v424_v48  ;;  %1032 = vmatprep.mubr.bf16.mxu1 %v424_v48  ;;  %v368_v34 = vmul.f32 %v1965_v9, %v324_v29  ;;  %v427_v28 = vpack.c.bf16 %v409_v47, %v407_v50  ;;  %v367_v9 = vmul.f32 %v1963_v25, %v323_v55 }
 0x161   :  { %v414_v33 = vadd.f32 %v1975_v54, %v370_v40  ;;  %v413_v24 = vadd.f32 %v1972_v49, %v369_v22 }
 0x162   :  { %v412_v30 = vadd.f32 %v1975_v54, %v368_v34  ;;  %v411_v11 = vadd.f32 %v1972_v49, %v367_v9 }
 0x164   :  { %v430_v43 = vpack.c.bf16 %v414_v33, %v412_v30  ;;  %v429_v37 = vpack.c.bf16 %v413_v24, %v411_v11 }
 0x167   :  { %920 = vmatmul.mubr.bf16.gmra.mrb[16].mxu0 %v423_v15  ;;  %1033 = vmatmul.mubr.bf16.gmra.mrb[16].mxu1 %v423_v15 }
 0x168   :  { %929 = vmatprep.mubr.bf16.mxu0 %v426_v61  ;;  %1042 = vmatprep.mubr.bf16.mxu1 %v426_v61 }
 0x16f   :  { %930 = vmatmul.mubr.bf16.gmra.mrb[20].mxu0 %v425_v62  ;;  %1043 = vmatmul.mubr.bf16.gmra.mrb[20].mxu1 %v425_v62 }
 0x170   :  { %939 = vmatprep.mubr.bf16.mxu0 %v428_v41  ;;  %1052 = vmatprep.mubr.bf16.mxu1 %v428_v41 }
 0x177   :  { %940 = vmatmul.mubr.bf16.gmra.mrb[24].mxu0 %v427_v28  ;;  %1053 = vmatmul.mubr.bf16.gmra.mrb[24].mxu1 %v427_v28 }
 0x178   :  { %949 = vmatprep.mubr.bf16.mxu0 %v430_v43  ;;  %1062 = vmatprep.mubr.bf16.mxu1 %v430_v43 }
 0x17f   :  { %950 = vmatmul.mubr.bf16.gmra.mrb[28].mxu0 %v429_v37  ;;  %1063 = vmatmul.mubr.bf16.gmra.mrb[28].mxu1 %v429_v37 }
 0x21a   :  { %v881_v14 = vpop.f32.mrb[0].mxu0  ;;  %v994_v36 = vpop.f32.mrb[0].mxu1 }
 0x21b   :  { %1073 = vst [vmem:[#allocation3] sm:$0xff] %v881_v14  ;;  %1075 = vst [vmem:[#allocation3 + $0x10] sm:$0xff] %v994_v36  ;;  %v883_v54 = vpop.f32.mrb[1].mxu0  ;;  %v996_v23 = vpop.f32.mrb[1].mxu1 }
 0x21c   :  { %1074 = vst [vmem:[#allocation3 + $0x8] sm:$0xff] %v883_v54  ;;  %1076 = vst [vmem:[#allocation3 + $0x18] sm:$0xff] %v996_v23  ;;  %v885_v3 = vpop.f32.mrb[2].mxu0  ;;  %v998_v0 = vpop.f32.mrb[2].mxu1 }
 0x21d   :  { %1077 = vst [vmem:[#allocation3 + $0x20] sm:$0xff] %v885_v3  ;;  %1079 = vst [vmem:[#allocation3 + $0x30] sm:$0xff] %v998_v0  ;;  %v887_v25 = vpop.f32.mrb[3].mxu0  ;;  %v1000_v53 = vpop.f32.mrb[3].mxu1 }
 0x21e   :  { %1078 = vst [vmem:[#allocation3 + $0x28] sm:$0xff] %v887_v25  ;;  %1080 = vst [vmem:[#allocation3 + $0x38] sm:$0xff] %v1000_v53 }
 0x222   :  { %v891_v49 = vpop.f32.mrb[4].mxu0  ;;  %v1004_v58 = vpop.f32.mrb[4].mxu1 }
 0x223   :  { %1081 = vst [vmem:[#allocation3 + $0x40] sm:$0xff] %v891_v49  ;;  %1083 = vst [vmem:[#allocation3 + $0x50] sm:$0xff] %v1004_v58  ;;  %v893_v4 = vpop.f32.mrb[5].mxu0  ;;  %v1006_v1 = vpop.f32.mrb[5].mxu1 }
 0x224   :  { %1082 = vst [vmem:[#allocation3 + $0x48] sm:$0xff] %v893_v4  ;;  %1084 = vst [vmem:[#allocation3 + $0x58] sm:$0xff] %v1006_v1  ;;  %v895_v38 = vpop.f32.mrb[6].mxu0  ;;  %v1008_v27 = vpop.f32.mrb[6].mxu1 }
 0x225   :  { %1085 = vst [vmem:[#allocation3 + $0x60] sm:$0xff] %v895_v38  ;;  %1087 = vst [vmem:[#allocation3 + $0x70] sm:$0xff] %v1008_v27  ;;  %v897_v57 = vpop.f32.mrb[7].mxu0  ;;  %v1010_v48 = vpop.f32.mrb[7].mxu1 }
 0x226   :  { %1086 = vst [vmem:[#allocation3 + $0x68] sm:$0xff] %v897_v57  ;;  %1088 = vst [vmem:[#allocation3 + $0x78] sm:$0xff] %v1010_v48 }
 0x22a   :  { %v901_v12 = vpop.f32.mrb[8].mxu0  ;;  %v1014_v59 = vpop.f32.mrb[8].mxu1 }
 0x22b   :  { %1089 = vst [vmem:[#allocation3 + $0x80] sm:$0xff] %v901_v12  ;;  %1091 = vst [vmem:[#allocation3 + $0x90] sm:$0xff] %v1014_v59  ;;  %v903_v17 = vpop.f32.mrb[9].mxu0  ;;  %v1016_v31 = vpop.f32.mrb[9].mxu1 }
 0x22c   :  { %1090 = vst [vmem:[#allocation3 + $0x88] sm:$0xff] %v903_v17  ;;  %1092 = vst [vmem:[#allocation3 + $0x98] sm:$0xff] %v1016_v31  ;;  %v905_v6 = vpop.f32.mrb[10].mxu0  ;;  %v1018_v16 = vpop.f32.mrb[10].mxu1 }
 0x22d   :  { %1093 = vst [vmem:[#allocation3 + $0xa0] sm:$0xff] %v905_v6  ;;  %1095 = vst [vmem:[#allocation3 + $0xb0] sm:$0xff] %v1018_v16  ;;  %v907_v5 = vpop.f32.mrb[11].mxu0  ;;  %v1020_v51 = vpop.f32.mrb[11].mxu1 }
 0x22e   :  { %1094 = vst [vmem:[#allocation3 + $0xa8] sm:$0xff] %v907_v5  ;;  %1096 = vst [vmem:[#allocation3 + $0xb8] sm:$0xff] %v1020_v51 }
 0x232   :  { %v911_v56 = vpop.f32.mrb[12].mxu0  ;;  %v1024_v60 = vpop.f32.mrb[12].mxu1 }
 0x233   :  { %1097 = vst [vmem:[#allocation3 + $0xc0] sm:$0xff] %v911_v56  ;;  %1099 = vst [vmem:[#allocation3 + $0xd0] sm:$0xff] %v1024_v60  ;;  %v913_v44 = vpop.f32.mrb[13].mxu0  ;;  %v1026_v13 = vpop.f32.mrb[13].mxu1 }
 0x234   :  { %1098 = vst [vmem:[#allocation3 + $0xc8] sm:$0xff] %v913_v44  ;;  %1100 = vst [vmem:[#allocation3 + $0xd8] sm:$0xff] %v1026_v13  ;;  %v915_v52 = vpop.f32.mrb[14].mxu0  ;;  %v1028_v15 = vpop.f32.mrb[14].mxu1 }
 0x235   :  { %1101 = vst [vmem:[#allocation3 + $0xe0] sm:$0xff] %v915_v52  ;;  %1103 = vst [vmem:[#allocation3 + $0xf0] sm:$0xff] %v1028_v15  ;;  %v917_v20 = vpop.f32.mrb[15].mxu0  ;;  %v1030_v61 = vpop.f32.mrb[15].mxu1 }
 0x236   :  { %1102 = vst [vmem:[#allocation3 + $0xe8] sm:$0xff] %v917_v20  ;;  %1104 = vst [vmem:[#allocation3 + $0xf8] sm:$0xff] %v1030_v61 }
 0x23a   :  { %v921_v21 = vpop.f32.mrb[16].mxu0  ;;  %v1034_v2 = vpop.f32.mrb[16].mxu1 }
 0x23b   :  { %1105 = vst [vmem:[#allocation3 + $0x100] sm:$0xff] %v921_v21  ;;  %1107 = vst [vmem:[#allocation3 + $0x110] sm:$0xff] %v1034_v2  ;;  %v923_v8 = vpop.f32.mrb[17].mxu0  ;;  %v1036_v26 = vpop.f32.mrb[17].mxu1 }
 0x23c   :  { %1106 = vst [vmem:[#allocation3 + $0x108] sm:$0xff] %v923_v8  ;;  %1108 = vst [vmem:[#allocation3 + $0x118] sm:$0xff] %v1036_v26  ;;  %v925_v39 = vpop.f32.mrb[18].mxu0  ;;  %v1038_v42 = vpop.f32.mrb[18].mxu1 }
 0x23d   :  { %1109 = vst [vmem:[#allocation3 + $0x120] sm:$0xff] %v925_v39  ;;  %1111 = vst [vmem:[#allocation3 + $0x130] sm:$0xff] %v1038_v42  ;;  %v927_v10 = vpop.f32.mrb[19].mxu0  ;;  %v1040_v32 = vpop.f32.mrb[19].mxu1 }
 0x23e   :  { %1110 = vst [vmem:[#allocation3 + $0x128] sm:$0xff] %v927_v10  ;;  %1112 = vst [vmem:[#allocation3 + $0x138] sm:$0xff] %v1040_v32 }
 0x242   :  { %v931_v45 = vpop.f32.mrb[20].mxu0  ;;  %v1044_v46 = vpop.f32.mrb[20].mxu1 }
 0x243   :  { %1113 = vst [vmem:[#allocation3 + $0x140] sm:$0xff] %v931_v45  ;;  %1115 = vst [vmem:[#allocation3 + $0x150] sm:$0xff] %v1044_v46  ;;  %v933_v35 = vpop.f32.mrb[21].mxu0  ;;  %v1046_v18 = vpop.f32.mrb[21].mxu1 }
 0x244   :  { %1114 = vst [vmem:[#allocation3 + $0x148] sm:$0xff] %v933_v35  ;;  %1116 = vst [vmem:[#allocation3 + $0x158] sm:$0xff] %v1046_v18  ;;  %v935_v29 = vpop.f32.mrb[22].mxu0  ;;  %v1048_v62 = vpop.f32.mrb[22].mxu1 }
 0x245   :  { %1117 = vst [vmem:[#allocation3 + $0x160] sm:$0xff] %v935_v29  ;;  %1119 = vst [vmem:[#allocation3 + $0x170] sm:$0xff] %v1048_v62  ;;  %v937_v63 = vpop.f32.mrb[23].mxu0  ;;  %v1050_v41 = vpop.f32.mrb[23].mxu1 }
 0x246   :  { %1118 = vst [vmem:[#allocation3 + $0x168] sm:$0xff] %v937_v63  ;;  %1120 = vst [vmem:[#allocation3 + $0x178] sm:$0xff] %v1050_v41 }
 0x24a   :  { %v941_v40 = vpop.f32.mrb[24].mxu0  ;;  %v1054_v7 = vpop.f32.mrb[24].mxu1 }
 0x24b   :  { %1121 = vst [vmem:[#allocation3 + $0x180] sm:$0xff] %v941_v40  ;;  %1123 = vst [vmem:[#allocation3 + $0x190] sm:$0xff] %v1054_v7  ;;  %v943_v34 = vpop.f32.mrb[25].mxu0  ;;  %v1056_v47 = vpop.f32.mrb[25].mxu1 }
 0x24c   :  { %1122 = vst [vmem:[#allocation3 + $0x188] sm:$0xff] %v943_v34  ;;  %1124 = vst [vmem:[#allocation3 + $0x198] sm:$0xff] %v1056_v47  ;;  %v945_v19 = vpop.f32.mrb[26].mxu0  ;;  %v1058_v33 = vpop.f32.mrb[26].mxu1 }
 0x24d   :  { %1125 = vst [vmem:[#allocation3 + $0x1a0] sm:$0xff] %v945_v19  ;;  %1127 = vst [vmem:[#allocation3 + $0x1b0] sm:$0xff] %v1058_v33  ;;  %v947_v50 = vpop.f32.mrb[27].mxu0  ;;  %v1060_v55 = vpop.f32.mrb[27].mxu1 }
 0x24e   :  { %1126 = vst [vmem:[#allocation3 + $0x1a8] sm:$0xff] %v947_v50  ;;  %1128 = vst [vmem:[#allocation3 + $0x1b8] sm:$0xff] %v1060_v55 }
 0x252   :  { %v951_v30 = vpop.f32.mrb[28].mxu0  ;;  %v1064_v28 = vpop.f32.mrb[28].mxu1 }
 0x253   :  { %1129 = vst [vmem:[#allocation3 + $0x1c0] sm:$0xff] %v951_v30  ;;  %1131 = vst [vmem:[#allocation3 + $0x1d0] sm:$0xff] %v1064_v28  ;;  %v953_v22 = vpop.f32.mrb[29].mxu0  ;;  %v1066_v43 = vpop.f32.mrb[29].mxu1 }
 0x254   :  { %1130 = vst [vmem:[#allocation3 + $0x1c8] sm:$0xff] %v953_v22  ;;  %1132 = vst [vmem:[#allocation3 + $0x1d8] sm:$0xff] %v1066_v43  ;;  %v955_v9 = vpop.f32.mrb[30].mxu0  ;;  %v1068_v24 = vpop.f32.mrb[30].mxu1 }
 0x255   :  { %1133 = vst [vmem:[#allocation3 + $0x1e0] sm:$0xff] %v955_v9  ;;  %1135 = vst [vmem:[#allocation3 + $0x1f0] sm:$0xff] %v1068_v24  ;;  %v957_v11 = vpop.f32.mrb[31].mxu0  ;;  %v1070_v37 = vpop.f32.mrb[31].mxu1 }
 0x256   :  { %1134 = vst [vmem:[#allocation3 + $0x1e8] sm:$0xff] %v957_v11  ;;  %1136 = vst [vmem:[#allocation3 + $0x1f8] sm:$0xff] %v1070_v37 }
 0x257   :  { %1359 = shalt.err (!%p1356_p4)
}
 0x258   :  { %s1360_s20 = scalar_lea.hbm %s2086_s4, 8192 }
 0x259   :  { %p1361_p5 = scmp.ne.s32.totalorder %s2086_s4, %s1360_s20  ;;  %p1364_p6 = scmp.lt.u32.totalorder %s1360_s20, %s2086_s4 }
 0x25b   :  { %p1366_p7 = pnand %p1364_p6, %p1361_p5 }
 0x25d   :  { %1369 = shalt.err (!%p1366_p7)
}
 0x25e   :  { %s1373_s24 = smov 512   ;;  %s1374_s25 = smov 32  }
 0x25f   :  { %1148 = dma.vmem_to_hbm [thread:$0]  %s1143_s2, 8192, %s2086_s4, [#allocation4], %s1373_s24, %s1373_s24, %s1374_s25  }
 0x260   :  { %1370 = dma.done.wait [#allocation4], 8192  }
 0x261   :  { %1371 = vsyncadd [#allocation4], 4294959104 }
 0x262   :  { %1152 = vsyncpa [#allocation4], 1 }

// kernel: gpt_forward.15
= control target key start
LH: loop header
LB: loop body
LE: loop exit
PB: predicated region body
PF: predicated region fallthrough
CT: control target
= control target key end

     0   :  { %s2212_s15 = smov 0   ;;  %s2214_s16 = smov 0   ;;  %s2594_s0 = inlined_call_operand.vmem [shape: bf16[128,1024], index: 0, kind: input, shape index: {}]   ;;  %s2595_s1 = inlined_call_operand.vmem [shape: bf16[1024,256], index: 1, kind: input, shape index: {}]   ;;  %s2596_s2 = inlined_call_operand.vmem [shape: bf16[1,256], index: 2, kind: input, shape index: {}]   ;;  %s2597_s3 = inlined_call_operand.vmem [shape: bf16[128,256], index: 3, kind: input, shape index: {}, may-alias: {3,4}]   ;;  %s2598_s4 = inlined_call_operand.vmem [shape: bf16[128,256], index: 4, kind: output, shape index: {}, may-alias: {3,4}]  }
   0x1   :  { %s2216_s17 = smov 0   ;;  %s2218_s18 = smov 0  }
   0x2   :  { %s2220_s19 = smov 0  }
   0x3 LB: > { %s26_s20 = sadd.s32 1, %s2180_s18  ;;  %p49_p1 = scmp.ne.s32.totalorder %s2172_s16, %s2168_s15  ;;  %s2184_s19 = sphi %s2220_s19, %s14_s19   ;;  %s2180_s18 = sphi %s2218_s18, %s2602_s18   ;;  %s2176_s17 = sphi %s2216_s17, %s2601_s17   ;;  %s2172_s16 = sphi %s2214_s16, %s2600_s16   ;;  %s2168_s15 = sphi %s2212_s15, %s2599_s15  }
   0x4   : > { %p27_p0 = scmp.ge.s32.totalorder %s26_s20, 2  ;;  %p50_p2 = scmp.eq.s32.totalorder %s2184_s19, 0 }
   0x5   : > { %s42_s22 = sadd.s32 1, %s2172_s16  ;;  %p1784_p5 = scmp.ge.s32.totalorder %s2184_s19, 2 }
   0x6   : > { %s2604_s20 = smov (%p27_p0, %s26_s20), 0  ;;  %p51_p3 = por %p50_p2, %p49_p1 }
   0x7   : > { %s38_s21 = ssub.s32 %s2180_s18, %s2604_s20  ;;  %208 = sbr.rel (%p1784_p5) target bundleno = 34 (0x22), region = 24 }
   0x8   : > { %p40_p4 = scmp.eq.s32.totalorder %s38_s21, 0 }
   0xa   : > { %s2247_s23 = scalar_select %p40_p4, %s2172_s16, %s42_s22  }
   0xe   : > { %211 = sbr.rel (!%p51_p3) target bundleno = 34 (0x22), region = 28  ;;  %s213_s24 = sand.u32 (%p51_p3), 1, %s2172_s16  }
   0xf   : > { %s1911_s25 = sshll.u32 (%p51_p3), %s2180_s18, 4  ;;  %s1785_s26 = sshll.u32 (%p51_p3), %s213_s24, 8 }
  0x10   : > { %s2255_s29 = scalar_lea.vmem (%p51_p3), %s2594_s0, %s1911_s25  ;;  %s2260_s30 = scalar_lea.vmem (%p51_p3), [#allocation3], %s1785_s26 }
  0x11   : > { %v234_v0 = vld [vmem:[%s2255_s29] sm:$0xff] (%p51_p3)  ;;  %v236_v1 = vld [vmem:[%s2255_s29 + $0x8] sm:$0xff] (%p51_p3) }
  0x12   : > { %v238_v2 = vld [vmem:[%s2255_s29 + $0x20] sm:$0xff] (%p51_p3)  ;;  %235 = vst [vmem:[%s2260_s30] sm:$0xff] (%p51_p3), %v234_v0  ;;  %237 = vst [vmem:[%s2260_s30 + $0x8] sm:$0xff] (%p51_p3), %v236_v1  ;;  %v240_v3 = vld [vmem:[%s2255_s29 + $0x28] sm:$0xff] (%p51_p3) }
  0x13   : > { %239 = vst [vmem:[%s2260_s30 + $0x10] sm:$0xff] (%p51_p3), %v238_v2  ;;  %v242_v4 = vld [vmem:[%s2255_s29 + $0x40] sm:$0xff] (%p51_p3)  ;;  %v244_v5 = vld [vmem:[%s2255_s29 + $0x48] sm:$0xff] (%p51_p3)  ;;  %241 = vst [vmem:[%s2260_s30 + $0x18] sm:$0xff] (%p51_p3), %v240_v3 }
  0x14   : > { %243 = vst [vmem:[%s2260_s30 + $0x20] sm:$0xff] (%p51_p3), %v242_v4  ;;  %245 = vst [vmem:[%s2260_s30 + $0x28] sm:$0xff] (%p51_p3), %v244_v5  ;;  %v246_v6 = vld [vmem:[%s2255_s29 + $0x60] sm:$0xff] (%p51_p3)  ;;  %v248_v7 = vld [vmem:[%s2255_s29 + $0x68] sm:$0xff] (%p51_p3) }
  0x15   : > { %v250_v8 = vld [vmem:[%s2255_s29 + $0x80] sm:$0xff]  ;;  %247 = vst [vmem:[%s2260_s30 + $0x30] sm:$0xff] %v246_v6  ;;  %249 = vst [vmem:[%s2260_s30 + $0x38] sm:$0xff] %v248_v7  ;;  %v252_v9 = vld [vmem:[%s2255_s29 + $0x88] sm:$0xff] }
  0x16   : > { %251 = vst [vmem:[%s2260_s30 + $0x40] sm:$0xff] %v250_v8  ;;  %v254_v10 = vld [vmem:[%s2255_s29 + $0xa0] sm:$0xff]  ;;  %v256_v11 = vld [vmem:[%s2255_s29 + $0xa8] sm:$0xff]  ;;  %253 = vst [vmem:[%s2260_s30 + $0x48] sm:$0xff] %v252_v9 }
  0x17   : > { %255 = vst [vmem:[%s2260_s30 + $0x50] sm:$0xff] %v254_v10  ;;  %257 = vst [vmem:[%s2260_s30 + $0x58] sm:$0xff] %v256_v11  ;;  %v258_v12 = vld [vmem:[%s2255_s29 + $0xc0] sm:$0xff]  ;;  %v260_v13 = vld [vmem:[%s2255_s29 + $0xc8] sm:$0xff] }
  0x18   : > { %v262_v14 = vld [vmem:[%s2255_s29 + $0xe0] sm:$0xff]  ;;  %259 = vst [vmem:[%s2260_s30 + $0x60] sm:$0xff] %v258_v12  ;;  %261 = vst [vmem:[%s2260_s30 + $0x68] sm:$0xff] %v260_v13  ;;  %v264_v15 = vld [vmem:[%s2255_s29 + $0xe8] sm:$0xff] }
  0x19   : > { %263 = vst [vmem:[%s2260_s30 + $0x70] sm:$0xff] %v262_v14  ;;  %v266_v16 = vld [vmem:[%s2255_s29 + $0x100] sm:$0xff]  ;;  %v268_v17 = vld [vmem:[%s2255_s29 + $0x108] sm:$0xff]  ;;  %265 = vst [vmem:[%s2260_s30 + $0x78] sm:$0xff] %v264_v15 }
  0x1a   : > { %267 = vst [vmem:[%s2260_s30 + $0x80] sm:$0xff] %v266_v16  ;;  %269 = vst [vmem:[%s2260_s30 + $0x88] sm:$0xff] %v268_v17  ;;  %v270_v18 = vld [vmem:[%s2255_s29 + $0x120] sm:$0xff]  ;;  %v272_v19 = vld [vmem:[%s2255_s29 + $0x128] sm:$0xff] }
  0x1b   : > { %v274_v20 = vld [vmem:[%s2255_s29 + $0x140] sm:$0xff]  ;;  %271 = vst [vmem:[%s2260_s30 + $0x90] sm:$0xff] %v270_v18  ;;  %273 = vst [vmem:[%s2260_s30 + $0x98] sm:$0xff] %v272_v19  ;;  %v276_v21 = vld [vmem:[%s2255_s29 + $0x148] sm:$0xff] }
  0x1c   : > { %275 = vst [vmem:[%s2260_s30 + $0xa0] sm:$0xff] %v274_v20  ;;  %v278_v22 = vld [vmem:[%s2255_s29 + $0x160] sm:$0xff]  ;;  %v280_v23 = vld [vmem:[%s2255_s29 + $0x168] sm:$0xff]  ;;  %277 = vst [vmem:[%s2260_s30 + $0xa8] sm:$0xff] %v276_v21 }
  0x1d   : > { %279 = vst [vmem:[%s2260_s30 + $0xb0] sm:$0xff] %v278_v22  ;;  %281 = vst [vmem:[%s2260_s30 + $0xb8] sm:$0xff] %v280_v23  ;;  %v282_v24 = vld [vmem:[%s2255_s29 + $0x180] sm:$0xff]  ;;  %v284_v25 = vld [vmem:[%s2255_s29 + $0x188] sm:$0xff] }
  0x1e   : > { %v286_v26 = vld [vmem:[%s2255_s29 + $0x1a0] sm:$0xff]  ;;  %283 = vst [vmem:[%s2260_s30 + $0xc0] sm:$0xff] %v282_v24  ;;  %285 = vst [vmem:[%s2260_s30 + $0xc8] sm:$0xff] %v284_v25  ;;  %v288_v27 = vld [vmem:[%s2255_s29 + $0x1a8] sm:$0xff] }
  0x1f   : > { %287 = vst [vmem:[%s2260_s30 + $0xd0] sm:$0xff] %v286_v26  ;;  %v290_v28 = vld [vmem:[%s2255_s29 + $0x1c0] sm:$0xff]  ;;  %v292_v29 = vld [vmem:[%s2255_s29 + $0x1c8] sm:$0xff]  ;;  %289 = vst [vmem:[%s2260_s30 + $0xd8] sm:$0xff] %v288_v27 }
  0x20   : > { %291 = vst [vmem:[%s2260_s30 + $0xe0] sm:$0xff] %v290_v28  ;;  %293 = vst [vmem:[%s2260_s30 + $0xe8] sm:$0xff] %v292_v29  ;;  %v294_v30 = vld [vmem:[%s2255_s29 + $0x1e0] sm:$0xff]  ;;  %v296_v31 = vld [vmem:[%s2255_s29 + $0x1e8] sm:$0xff] }
  0x21   : > { %295 = vst [vmem:[%s2260_s30 + $0xf0] sm:$0xff] %v294_v30  ;;  %297 = vst [vmem:[%s2260_s30 + $0xf8] sm:$0xff] %v296_v31 }
  0x22 PF: > { %p1788_p6 = scmp.ge.s32.totalorder %s2184_s19, 1  ;;  %p317_p7 = scmp.lt.s32.totalorder %s2184_s19, 3 }
  0x24   : > { %p318_p8 = pnand %p1788_p6, %p317_p7 }
  0x25   : > { %s324_s5 = sand.u32 (!%p318_p8), 1, %s2168_s15   ;;  %s1790_s6 = sshll.u32 (!%p318_p8), %s2176_s17, 6 }
  0x26   : > { %321 = sbr.rel (%p318_p8) target bundleno = 454 (0x1c6), region = 55  ;;  %s1789_s7 = sshll.u32 (!%p318_p8), %s324_s5, 8 }
  0x27   : > { %p382_p9 = scmp.lt.s32.totalorder (!%p318_p8), %s1790_s6, 127  ;;  %s2332_s12 = scalar_lea.vmem (!%p318_p8), [#allocation3], %s1789_s7 }
  0x28   : > { %p1793_p10 = scmp.ne.s32.totalorder (!%p318_p8), %s2176_s17, 0 }
  0x2d   : > { %s2606_s6 = smov (!%p382_p9, %s1790_s6), 127  ;;  %424 = sbr.rel (%p1793_p10) target bundleno = 63 (0x3f), region = 63 }
  0x2e   : > { %s1912_s8 = sshll.u32 %s2606_s6, 3  ;;  %v2186_v32 = vmov (!%p1793_p10), 0.0  }
  0x2f   : > { %s2330_s11 = scalar_lea.vmem %s2595_s1, %s1912_s8  ;;  %425 = vst [vmem:[#allocation2] sm:$0xff] (!%p1793_p10), %v2186_v32  ;;  %426 = vst [vmem:[#allocation2 + $0x8] sm:$0xff] (!%p1793_p10), %v2186_v32 }
  0x30   : > { %427 = vst [vmem:[#allocation2 + $0x10] sm:$0xff] (!%p1793_p10), %v2186_v32  ;;  %428 = vst [vmem:[#allocation2 + $0x18] sm:$0xff] (!%p1793_p10), %v2186_v32 }
  0x31   : > { %429 = vst [vmem:[#allocation2 + $0x20] sm:$0xff] (!%p1793_p10), %v2186_v32  ;;  %430 = vst [vmem:[#allocation2 + $0x28] sm:$0xff] (!%p1793_p10), %v2186_v32 }
  0x32   : > { %431 = vst [vmem:[#allocation2 + $0x30] sm:$0xff] (!%p1793_p10), %v2186_v32  ;;  %432 = vst [vmem:[#allocation2 + $0x38] sm:$0xff] (!%p1793_p10), %v2186_v32 }
  0x33   : > { %433 = vst [vmem:[#allocation2 + $0x40] sm:$0xff] (!%p1793_p10), %v2186_v32  ;;  %434 = vst [vmem:[#allocation2 + $0x48] sm:$0xff] (!%p1793_p10), %v2186_v32 }
  0x34   : > { %435 = vst [vmem:[#allocation2 + $0x50] sm:$0xff] %v2186_v32  ;;  %436 = vst [vmem:[#allocation2 + $0x58] sm:$0xff] %v2186_v32 }
  0x35   : > { %437 = vst [vmem:[#allocation2 + $0x60] sm:$0xff] %v2186_v32  ;;  %438 = vst [vmem:[#allocation2 + $0x68] sm:$0xff] %v2186_v32 }
  0x36   : > { %439 = vst [vmem:[#allocation2 + $0x70] sm:$0xff] %v2186_v32  ;;  %440 = vst [vmem:[#allocation2 + $0x78] sm:$0xff] %v2186_v32 }
  0x37   : > { %441 = vst [vmem:[#allocation2 + $0x80] sm:$0xff] %v2186_v32  ;;  %442 = vst [vmem:[#allocation2 + $0x88] sm:$0xff] %v2186_v32 }
  0x38   : > { %443 = vst [vmem:[#allocation2 + $0x90] sm:$0xff] %v2186_v32  ;;  %444 = vst [vmem:[#allocation2 + $0x98] sm:$0xff] %v2186_v32 }
  0x39   : > { %445 = vst [vmem:[#allocation2 + $0xa0] sm:$0xff] %v2186_v32  ;;  %446 = vst [vmem:[#allocation2 + $0xa8] sm:$0xff] %v2186_v32 }
  0x3a   : > { %447 = vst [vmem:[#allocation2 + $0xb0] sm:$0xff] %v2186_v32  ;;  %448 = vst [vmem:[#allocation2 + $0xb8] sm:$0xff] %v2186_v32 }
  0x3b   : > { %449 = vst [vmem:[#allocation2 + $0xc0] sm:$0xff] %v2186_v32  ;;  %450 = vst [vmem:[#allocation2 + $0xc8] sm:$0xff] %v2186_v32 }
  0x3c   : > { %451 = vst [vmem:[#allocation2 + $0xd0] sm:$0xff] %v2186_v32  ;;  %452 = vst [vmem:[#allocation2 + $0xd8] sm:$0xff] %v2186_v32 }
  0x3d   : > { %453 = vst [vmem:[#allocation2 + $0xe0] sm:$0xff] %v2186_v32  ;;  %454 = vst [vmem:[#allocation2 + $0xe8] sm:$0xff] %v2186_v32 }
  0x3e   : > { %455 = vst [vmem:[#allocation2 + $0xf0] sm:$0xff] %v2186_v32  ;;  %456 = vst [vmem:[#allocation2 + $0xf8] sm:$0xff] %v2186_v32 }
  0x3f PF: > { %v2002_v33 = vld [vmem:[%s2330_s11 + $0x4] ss:$8 sps:$4 sm:$0xff]   ;;  %v2006_v35 = vld [vmem:[%s2330_s11] ss:$8 sps:$4 sm:$0xff]   ;;  %v2008_v37 = vld [vmem:[%s2330_s11 + $0x14] ss:$8 sps:$4 sm:$0xff]  }
  0x40   : > { %v2004_v34 = vld [vmem:[%s2330_s11 + $0x104] ss:$8 sps:$4 sm:$0xff]   ;;  %1065 = vmatprep.subr.bf16.mxu1 %v2002_v33  ;;  %v2007_v36 = vld [vmem:[%s2330_s11 + $0x100] ss:$8 sps:$4 sm:$0xff]   ;;  %v2010_v38 = vld [vmem:[%s2330_s11 + $0x114] ss:$8 sps:$4 sm:$0xff]  }
  0x41   : > { %1178 = vmatprep.subr.bf16.mxu0 %v2004_v34  ;;  %1066 = vmatpush1.bf16.msra.mxu1 %v2006_v35  ;;  %v2012_v39 = vld [vmem:[%s2330_s11 + $0x10] ss:$8 sps:$4 sm:$0xff]   ;;  %v2014_v41 = vld [vmem:[%s2330_s11 + $0x24] ss:$8 sps:$4 sm:$0xff]   ;;  %v2018_v43 = vld [vmem:[%s2330_s11 + $0x20] ss:$8 sps:$4 sm:$0xff]  }
  0x42   : > { %1179 = vmatpush1.bf16.msra.mxu0 %v2007_v36  ;;  %1067 = vmatprep.subr.bf16.mxu1 %v2008_v37  ;;  %v2013_v40 = vld [vmem:[%s2330_s11 + $0x110] ss:$8 sps:$4 sm:$0xff]   ;;  %v2016_v42 = vld [vmem:[%s2330_s11 + $0x124] ss:$8 sps:$4 sm:$0xff]   ;;  %v2019_v44 = vld [vmem:[%s2330_s11 + $0x120] ss:$8 sps:$4 sm:$0xff]  }
  0x43   : > { %1180 = vmatprep.subr.bf16.mxu0 %v2010_v38  ;;  %v2020_v45 = vld [vmem:[%s2330_s11 + $0x34] ss:$8 sps:$4 sm:$0xff]   ;;  %v2024_v47 = vld [vmem:[%s2330_s11 + $0x30] ss:$8 sps:$4 sm:$0xff]   ;;  %v2026_v49 = vld [vmem:[%s2330_s11 + $0x44] ss:$8 sps:$4 sm:$0xff]  }
  0x44   : > { %v2022_v46 = vld [vmem:[%s2330_s11 + $0x134] ss:$8 sps:$4 sm:$0xff]   ;;  %v2025_v48 = vld [vmem:[%s2330_s11 + $0x130] ss:$8 sps:$4 sm:$0xff]   ;;  %v2028_v50 = vld [vmem:[%s2330_s11 + $0x144] ss:$8 sps:$4 sm:$0xff]  }
  0x45   : > { %1068 = vmatpush1.bf16.msra.mxu1 %v2012_v39  ;;  %v2030_v51 = vld [vmem:[%s2330_s11 + $0x40] ss:$8 sps:$4 sm:$0xff]   ;;  %v2032_v53 = vld [vmem:[%s2330_s11 + $0x54] ss:$8 sps:$4 sm:$0xff]   ;;  %v2036_v55 = vld [vmem:[%s2330_s11 + $0x50] ss:$8 sps:$4 sm:$0xff]  }
  0x46   : > { %1181 = vmatpush1.bf16.msra.mxu0 %v2013_v40  ;;  %1069 = vmatprep.subr.bf16.mxu1 %v2014_v41  ;;  %v2031_v52 = vld [vmem:[%s2330_s11 + $0x140] ss:$8 sps:$4 sm:$0xff]   ;;  %v2034_v54 = vld [vmem:[%s2330_s11 + $0x154] ss:$8 sps:$4 sm:$0xff]   ;;  %v2037_v56 = vld [vmem:[%s2330_s11 + $0x150] ss:$8 sps:$4 sm:$0xff]  }
  0x47   : > { %1182 = vmatprep.subr.bf16.mxu0 %v2016_v42  ;;  %v2038_v57 = vld [vmem:[%s2330_s11 + $0x64] ss:$8 sps:$4 sm:$0xff]   ;;  %v2042_v59 = vld [vmem:[%s2330_s11 + $0x60] ss:$8 sps:$4 sm:$0xff]   ;;  %v2044_v61 = vld [vmem:[%s2330_s11 + $0x74] ss:$8 sps:$4 sm:$0xff]  }
  0x48   : > { %v2040_v58 = vld [vmem:[%s2330_s11 + $0x164] ss:$8 sps:$4 sm:$0xff]   ;;  %v2043_v60 = vld [vmem:[%s2330_s11 + $0x160] ss:$8 sps:$4 sm:$0xff]   ;;  %v2046_v62 = vld [vmem:[%s2330_s11 + $0x174] ss:$8 sps:$4 sm:$0xff]  }
  0x49   : > { %1070 = vmatpush1.bf16.msra.mxu1 %v2018_v43  ;;  %v2048_v63 = vld [vmem:[%s2330_s11 + $0x70] ss:$8 sps:$4 sm:$0xff]   ;;  %v2050_v1 = vld [vmem:[%s2330_s11 + $0x84] ss:$8 sps:$4 sm:$0xff]   ;;  %v2054_v3 = vld [vmem:[%s2330_s11 + $0x80] ss:$8 sps:$4 sm:$0xff]  }
  0x4a   : > { %1183 = vmatpush1.bf16.msra.mxu0 %v2019_v44  ;;  %1071 = vmatprep.subr.bf16.mxu1 %v2020_v45  ;;  %v2049_v0 = vld [vmem:[%s2330_s11 + $0x170] ss:$8 sps:$4 sm:$0xff]   ;;  %v2052_v2 = vld [vmem:[%s2330_s11 + $0x184] ss:$8 sps:$4 sm:$0xff]   ;;  %v2055_v4 = vld [vmem:[%s2330_s11 + $0x180] ss:$8 sps:$4 sm:$0xff]  }
  0x4b   : > { %1184 = vmatprep.subr.bf16.mxu0 %v2022_v46  ;;  %v2056_v5 = vld [vmem:[%s2330_s11 + $0x94] ss:$8 sps:$4 sm:$0xff]   ;;  %v2060_v7 = vld [vmem:[%s2330_s11 + $0x90] ss:$8 sps:$4 sm:$0xff]   ;;  %v2062_v9 = vld [vmem:[%s2330_s11 + $0xa4] ss:$8 sps:$4 sm:$0xff]  }
  0x4c   : > { %v2058_v6 = vld [vmem:[%s2330_s11 + $0x194] ss:$8 sps:$4 sm:$0xff]   ;;  %v2061_v8 = vld [vmem:[%s2330_s11 + $0x190] ss:$8 sps:$4 sm:$0xff]   ;;  %v2064_v10 = vld [vmem:[%s2330_s11 + $0x1a4] ss:$8 sps:$4 sm:$0xff]  }
  0x4d   : > { %1072 = vmatpush1.bf16.msra.mxu1 %v2024_v47  ;;  %v2066_v11 = vld [vmem:[%s2330_s11 + $0xa0] ss:$8 sps:$4 sm:$0xff]   ;;  %v2068_v13 = vld [vmem:[%s2330_s11 + $0xb4] ss:$8 sps:$4 sm:$0xff]   ;;  %v2072_v15 = vld [vmem:[%s2330_s11 + $0xb0] ss:$8 sps:$4 sm:$0xff]  }
  0x4e   : > { %1185 = vmatpush1.bf16.msra.mxu0 %v2025_v48  ;;  %1073 = vmatprep.subr.bf16.mxu1 %v2026_v49  ;;  %v2067_v12 = vld [vmem:[%s2330_s11 + $0x1a0] ss:$8 sps:$4 sm:$0xff]   ;;  %v2070_v14 = vld [vmem:[%s2330_s11 + $0x1b4] ss:$8 sps:$4 sm:$0xff]   ;;  %v2073_v16 = vld [vmem:[%s2330_s11 + $0x1b0] ss:$8 sps:$4 sm:$0xff]  }
  0x4f   : > { %1186 = vmatprep.subr.bf16.mxu0 %v2028_v50  ;;  %v2074_v17 = vld [vmem:[%s2330_s11 + $0xc4] ss:$8 sps:$4 sm:$0xff]   ;;  %v2078_v21 = vld [vmem:[%s2330_s11 + $0xc0] ss:$8 sps:$4 sm:$0xff]   ;;  %v2080_v23 = vld [vmem:[%s2330_s11 + $0xd4] ss:$8 sps:$4 sm:$0xff]  }
  0x50   : > { %v2100_v18 = vld [vmem:[%s2332_s12 + $0x4] ss:$16 sps:$4 sm:$0xff]   ;;  %v2103_v20 = vld [vmem:[%s2332_s12 + $0xc] ss:$16 sps:$4 sm:$0xff]   ;;  %v2079_v22 = vld [vmem:[%s2330_s11 + $0x1c0] ss:$8 sps:$4 sm:$0xff]  }
  0x51   : > { %1074 = vmatpush1.bf16.msra.mxu1 %v2030_v51  ;;  %v2076_v19 = vld [vmem:[%s2330_s11 + $0x1c4] ss:$8 sps:$4 sm:$0xff]   ;;  %1097 = vmatprep.mubr.bf16.mxu1 %v2100_v18  ;;  %v2082_v24 = vld [vmem:[%s2330_s11 + $0x1d4] ss:$8 sps:$4 sm:$0xff]   ;;  %v2084_v25 = vld [vmem:[%s2330_s11 + $0xd0] ss:$8 sps:$4 sm:$0xff]  }
  0x52   : > { %1187 = vmatpush1.bf16.msra.mxu0 %v2031_v52  ;;  %1075 = vmatprep.subr.bf16.mxu1 %v2032_v53  ;;  %v2085_v26 = vld [vmem:[%s2330_s11 + $0x1d0] ss:$8 sps:$4 sm:$0xff]   ;;  %v2086_v27 = vld [vmem:[%s2330_s11 + $0xe4] ss:$8 sps:$4 sm:$0xff]   ;;  %v2090_v29 = vld [vmem:[%s2330_s11 + $0xe0] ss:$8 sps:$4 sm:$0xff]  }
  0x53   : > { %1188 = vmatprep.subr.bf16.mxu0 %v2034_v54  ;;  %1210 = vmatprep.mubr.bf16.mxu0 %v2103_v20  ;;  %v2088_v28 = vld [vmem:[%s2330_s11 + $0x1e4] ss:$8 sps:$4 sm:$0xff]   ;;  %v2091_v30 = vld [vmem:[%s2330_s11 + $0x1e0] ss:$8 sps:$4 sm:$0xff]   ;;  %v2092_v31 = vld [vmem:[%s2330_s11 + $0xf4] ss:$8 sps:$4 sm:$0xff]  }
  0x54   : > { %v2094_v32 = vld [vmem:[%s2330_s11 + $0x1f4] ss:$8 sps:$4 sm:$0xff]   ;;  %v2096_v33 = vld [vmem:[%s2330_s11 + $0xf0] ss:$8 sps:$4 sm:$0xff]   ;;  %p1890_p11 = scmp.ne.s32.totalorder %s2176_s17, 1 }
  0x55   : > { %1076 = vmatpush1.bf16.msra.mxu1 %v2036_v55  ;;  %v2097_v34 = vld [vmem:[%s2330_s11 + $0x1f0] ss:$8 sps:$4 sm:$0xff]   ;;  %v2104_v37 = vld [vmem:[%s2332_s12 + $0x24] ss:$16 sps:$4 sm:$0xff]   ;;  %v2106_v38 = vld [vmem:[%s2332_s12 + $0x2c] ss:$16 sps:$4 sm:$0xff]  }
  0x56   : > { %1189 = vmatpush1.bf16.msra.mxu0 %v2037_v56  ;;  %1077 = vmatprep.subr.bf16.mxu1 %v2038_v57  ;;  %v2098_v35 = vld [vmem:[%s2332_s12] ss:$16 sps:$4 sm:$0xff]   ;;  %v2101_v36 = vld [vmem:[%s2332_s12 + $0x8] ss:$16 sps:$4 sm:$0xff]   ;;  %v2110_v41 = vld [vmem:[%s2332_s12 + $0x44] ss:$16 sps:$4 sm:$0xff]  }
  0x57   : > { %1190 = vmatprep.subr.bf16.mxu0 %v2040_v58  ;;  %v2108_v39 = vld [vmem:[%s2332_s12 + $0x20] ss:$16 sps:$4 sm:$0xff]   ;;  %v2109_v40 = vld [vmem:[%s2332_s12 + $0x28] ss:$16 sps:$4 sm:$0xff]   ;;  %v2112_v42 = vld [vmem:[%s2332_s12 + $0x4c] ss:$16 sps:$4 sm:$0xff]  }
  0x58   : > { %v2114_v43 = vld [vmem:[%s2332_s12 + $0x40] ss:$16 sps:$4 sm:$0xff]   ;;  %v2115_v44 = vld [vmem:[%s2332_s12 + $0x48] ss:$16 sps:$4 sm:$0xff]   ;;  %v2116_v45 = vld [vmem:[%s2332_s12 + $0x64] ss:$16 sps:$4 sm:$0xff]  }
  0x59   : > { %1078 = vmatpush1.bf16.msra.mxu1 %v2042_v59  ;;  %v2118_v46 = vld [vmem:[%s2332_s12 + $0x6c] ss:$16 sps:$4 sm:$0xff]   ;;  %v2120_v47 = vld [vmem:[%s2332_s12 + $0x60] ss:$16 sps:$4 sm:$0xff]   ;;  %v2121_v48 = vld [vmem:[%s2332_s12 + $0x68] ss:$16 sps:$4 sm:$0xff]  }
  0x5a   : > { %1191 = vmatpush1.bf16.msra.mxu0 %v2043_v60  ;;  %1079 = vmatprep.subr.bf16.mxu1 %v2044_v61  ;;  %v2122_v49 = vld [vmem:[%s2332_s12 + $0x84] ss:$16 sps:$4 sm:$0xff]   ;;  %v2124_v50 = vld [vmem:[%s2332_s12 + $0x8c] ss:$16 sps:$4 sm:$0xff]   ;;  %v2126_v51 = vld [vmem:[%s2332_s12 + $0x80] ss:$16 sps:$4 sm:$0xff]  }
  0x5b   : > { %1192 = vmatprep.subr.bf16.mxu0 %v2046_v62  ;;  %v2127_v52 = vld [vmem:[%s2332_s12 + $0x88] ss:$16 sps:$4 sm:$0xff]   ;;  %v2128_v53 = vld [vmem:[%s2332_s12 + $0xa4] ss:$16 sps:$4 sm:$0xff]   ;;  %v2130_v54 = vld [vmem:[%s2332_s12 + $0xac] ss:$16 sps:$4 sm:$0xff]  }
  0x5c   : > { %v2132_v55 = vld [vmem:[%s2332_s12 + $0xa0] ss:$16 sps:$4 sm:$0xff]   ;;  %v2133_v56 = vld [vmem:[%s2332_s12 + $0xa8] ss:$16 sps:$4 sm:$0xff]   ;;  %v2134_v57 = vld [vmem:[%s2332_s12 + $0xc4] ss:$16 sps:$4 sm:$0xff]  }
  0x5d   : > { %1080 = vmatpush1.bf16.msra.mxu1 %v2048_v63  ;;  %v2136_v58 = vld [vmem:[%s2332_s12 + $0xcc] ss:$16 sps:$4 sm:$0xff]   ;;  %v2138_v59 = vld [vmem:[%s2332_s12 + $0xc0] ss:$16 sps:$4 sm:$0xff]   ;;  %v2139_v60 = vld [vmem:[%s2332_s12 + $0xc8] ss:$16 sps:$4 sm:$0xff]  }
  0x5e   : > { %1193 = vmatpush1.bf16.msra.mxu0 %v2049_v0  ;;  %1081 = vmatprep.subr.bf16.mxu1 %v2050_v1  ;;  %v2140_v61 = vld [vmem:[%s2332_s12 + $0xe4] ss:$16 sps:$4 sm:$0xff]   ;;  %v2142_v62 = vld [vmem:[%s2332_s12 + $0xec] ss:$16 sps:$4 sm:$0xff]   ;;  %v2144_v63 = vld [vmem:[%s2332_s12 + $0xe0] ss:$16 sps:$4 sm:$0xff]  }
  0x5f   : > { %1194 = vmatprep.subr.bf16.mxu0 %v2052_v2  ;;  %v2145_v0 = vld [vmem:[%s2332_s12 + $0xe8] ss:$16 sps:$4 sm:$0xff]   ;;  %v457_v2 = vld [vmem:[#allocation2] sm:$0xff] }
  0x61   : > { %1082 = vmatpush1.bf16.msra.mxu1 %v2054_v3 }
  0x62   : > { %1195 = vmatpush1.bf16.msra.mxu0 %v2055_v4  ;;  %1083 = vmatprep.subr.bf16.mxu1 %v2056_v5 }
  0x63   : > { %1196 = vmatprep.subr.bf16.mxu0 %v2058_v6  ;;  %v458_v6 = vld [vmem:[#allocation2 + $0x8] sm:$0xff] }
  0x65   : > { %1084 = vmatpush1.bf16.msra.mxu1 %v2060_v7 }
  0x66   : > { %1197 = vmatpush1.bf16.msra.mxu0 %v2061_v8  ;;  %1085 = vmatprep.subr.bf16.mxu1 %v2062_v9 }
  0x67   : > { %1198 = vmatprep.subr.bf16.mxu0 %v2064_v10  ;;  %v459_v10 = vld [vmem:[#allocation2 + $0x10] sm:$0xff] }
  0x69   : > { %1086 = vmatpush1.bf16.msra.mxu1 %v2066_v11 }
  0x6a   : > { %1199 = vmatpush1.bf16.msra.mxu0 %v2067_v12  ;;  %1087 = vmatprep.subr.bf16.mxu1 %v2068_v13 }
  0x6b   : > { %1200 = vmatprep.subr.bf16.mxu0 %v2070_v14 }
  0x6d   : > { %1088 = vmatpush1.bf16.msra.mxu1 %v2072_v15  ;;  %v460_v15 = vld [vmem:[#allocation2 + $0x18] sm:$0xff] }
  0x6e   : > { %1201 = vmatpush1.bf16.msra.mxu0 %v2073_v16  ;;  %1089 = vmatprep.subr.bf16.mxu1 %v2074_v17 }
  0x6f   : > { %1202 = vmatprep.subr.bf16.mxu0 %v2076_v19 }
  0x71   : > { %1090 = vmatpush1.bf16.msra.mxu1 %v2078_v21 }
  0x72   : > { %1203 = vmatpush1.bf16.msra.mxu0 %v2079_v22  ;;  %1091 = vmatprep.subr.bf16.mxu1 %v2080_v23  ;;  %v461_v22 = vld [vmem:[#allocation2 + $0x20] sm:$0xff] }
  0x73   : > { %1204 = vmatprep.subr.bf16.mxu0 %v2082_v24 }
  0x75   : > { %1092 = vmatpush1.bf16.msra.mxu1 %v2084_v25 }
  0x76   : > { %1205 = vmatpush1.bf16.msra.mxu0 %v2085_v26  ;;  %1093 = vmatprep.subr.bf16.mxu1 %v2086_v27  ;;  %v462_v26 = vld [vmem:[#allocation2 + $0x28] sm:$0xff] }
  0x77   : > { %1206 = vmatprep.subr.bf16.mxu0 %v2088_v28 }
  0x79   : > { %1094 = vmatpush1.bf16.msra.mxu1 %v2090_v29 }
  0x7a   : > { %1207 = vmatpush1.bf16.msra.mxu0 %v2091_v30  ;;  %1095 = vmatprep.subr.bf16.mxu1 %v2092_v31  ;;  %v463_v30 = vld [vmem:[#allocation2 + $0x30] sm:$0xff] }
  0x7b   : > { %1208 = vmatprep.subr.bf16.mxu0 %v2094_v32 }
  0x7d   : > { %1096 = vmatpush1.bf16.msra.mxu1 %v2096_v33 }
  0x7e   : > { %1209 = vmatpush1.bf16.msra.mxu0 %v2097_v34 }
  0x80   : > { %1098 = vmatmul.mubr.bf16.vlgmr.msra.gmra.mrb[0].mxu1 %v2098_v35  ;;  %v464_v35 = vld [vmem:[#allocation2 + $0x38] sm:$0xff] }
  0x81   : > { %1211 = vmatmul.mubr.bf16.vlgmr.msra.gmra.mrb[0].mxu0 %v2101_v36  ;;  %1107 = vmatprep.mubr.bf16.mxu1 %v2104_v37 }
  0x82   : > { %1220 = vmatprep.mubr.bf16.mxu0 %v2106_v38 }
  0x88   : > { %1108 = vmatmul.mubr.bf16.gmra.mrb[4].mxu1 %v2108_v39 }
  0x89   : > { %1221 = vmatmul.mubr.bf16.gmra.mrb[4].mxu0 %v2109_v40  ;;  %1117 = vmatprep.mubr.bf16.mxu1 %v2110_v41 }
  0x8a   : > { %1230 = vmatprep.mubr.bf16.mxu0 %v2112_v42  ;;  %v465_v42 = vld [vmem:[#allocation2 + $0x40] sm:$0xff] }
  0x90   : > { %1118 = vmatmul.mubr.bf16.gmra.mrb[8].mxu1 %v2114_v43 }
  0x91   : > { %1231 = vmatmul.mubr.bf16.gmra.mrb[8].mxu0 %v2115_v44  ;;  %1127 = vmatprep.mubr.bf16.mxu1 %v2116_v45 }
  0x92   : > { %1240 = vmatprep.mubr.bf16.mxu0 %v2118_v46  ;;  %v466_v46 = vld [vmem:[#allocation2 + $0x48] sm:$0xff] }
  0x98   : > { %1128 = vmatmul.mubr.bf16.gmra.mrb[12].mxu1 %v2120_v47 }
  0x99   : > { %1241 = vmatmul.mubr.bf16.gmra.mrb[12].mxu0 %v2121_v48  ;;  %1137 = vmatprep.mubr.bf16.mxu1 %v2122_v49 }
  0x9a   : > { %1250 = vmatprep.mubr.bf16.mxu0 %v2124_v50  ;;  %v467_v50 = vld [vmem:[#allocation2 + $0x50] sm:$0xff] }
  0xa0   : > { %1138 = vmatmul.mubr.bf16.gmra.mrb[16].mxu1 %v2126_v51 }
  0xa1   : > { %1251 = vmatmul.mubr.bf16.gmra.mrb[16].mxu0 %v2127_v52  ;;  %1147 = vmatprep.mubr.bf16.mxu1 %v2128_v53 }
  0xa2   : > { %1260 = vmatprep.mubr.bf16.mxu0 %v2130_v54 }
  0xa8   : > { %1148 = vmatmul.mubr.bf16.gmra.mrb[20].mxu1 %v2132_v55  ;;  %v468_v55 = vld [vmem:[#allocation2 + $0x58] sm:$0xff] }
  0xa9   : > { %1261 = vmatmul.mubr.bf16.gmra.mrb[20].mxu0 %v2133_v56  ;;  %1157 = vmatprep.mubr.bf16.mxu1 %v2134_v57 }
  0xaa   : > { %1270 = vmatprep.mubr.bf16.mxu0 %v2136_v58 }
  0xb0   : > { %1158 = vmatmul.mubr.bf16.gmra.mrb[24].mxu1 %v2138_v59 }
  0xb1   : > { %1271 = vmatmul.mubr.bf16.gmra.mrb[24].mxu0 %v2139_v60  ;;  %1167 = vmatprep.mubr.bf16.mxu1 %v2140_v61 }
  0xb2   : > { %1280 = vmatprep.mubr.bf16.mxu0 %v2142_v62  ;;  %v469_v62 = vld [vmem:[#allocation2 + $0x60] sm:$0xff] }
  0xb8   : > { %1168 = vmatmul.mubr.bf16.gmra.mrb[28].mxu1 %v2144_v63 }
  0xb9   : > { %1281 = vmatmul.mubr.bf16.gmra.mrb[28].mxu0 %v2145_v0 }
 0x153   : > { %v1099_v1 = vpop.f32.mrb[0].mxu1 }
 0x154   : > { %v1212_v3 = vpop.f32.mrb[0].mxu0  ;;  %v1101_v5 = vpop.f32.mrb[1].mxu1 }
 0x155   : > { %v1213_v4 = vadd.f32 %v1212_v3, %v1099_v1  ;;  %v1214_v7 = vpop.f32.mrb[1].mxu0  ;;  %v1103_v9 = vpop.f32.mrb[2].mxu1 }
 0x156   : > { %v1215_v8 = vadd.f32 %v1214_v7, %v1101_v5  ;;  %v1216_v11 = vpop.f32.mrb[2].mxu0  ;;  %v1105_v14 = vpop.f32.mrb[3].mxu1 }
 0x157   : > { %v1291_v12 = vadd.f32 %v1213_v4, %v457_v2  ;;  %v1217_v13 = vadd.f32 %v1216_v11, %v1103_v9  ;;  %v1218_v16 = vpop.f32.mrb[3].mxu0  ;;  %v470_v2 = vld [vmem:[#allocation2 + $0x68] sm:$0xff]  ;;  %v472_v11 = vld [vmem:[#allocation2 + $0x78] sm:$0xff] }
 0x158   : > { %v1292_v17 = vadd.f32 %v1215_v8, %v458_v6  ;;  %v1219_v18 = vadd.f32 %v1218_v16, %v1105_v14  ;;  %v471_v6 = vld [vmem:[#allocation2 + $0x70] sm:$0xff] }
 0x159   : > { %1323 = vst [vmem:[#allocation2] sm:$0xff] %v1291_v12  ;;  %v1293_v19 = vadd.f32 %v1217_v13, %v459_v10 }
 0x15a   : > { %1324 = vst [vmem:[#allocation2 + $0x8] sm:$0xff] %v1292_v17  ;;  %v1294_v20 = vadd.f32 %v1219_v18, %v460_v15  ;;  %v473_v18 = vld [vmem:[#allocation2 + $0x80] sm:$0xff] }
 0x15b   : > { %1325 = vst [vmem:[#allocation2 + $0x10] sm:$0xff] %v1293_v19  ;;  %v1109_v21 = vpop.f32.mrb[4].mxu1 }
 0x15c   : > { %1326 = vst [vmem:[#allocation2 + $0x18] sm:$0xff] %v1294_v20  ;;  %v1222_v23 = vpop.f32.mrb[4].mxu0  ;;  %v1111_v25 = vpop.f32.mrb[5].mxu1 }
 0x15d   : > { %v1223_v24 = vadd.f32 %v1222_v23, %v1109_v21  ;;  %v1224_v27 = vpop.f32.mrb[5].mxu0  ;;  %v1113_v29 = vpop.f32.mrb[6].mxu1 }
 0x15e   : > { %v1225_v28 = vadd.f32 %v1224_v27, %v1111_v25  ;;  %v1226_v31 = vpop.f32.mrb[6].mxu0  ;;  %v1115_v34 = vpop.f32.mrb[7].mxu1 }
 0x15f   : > { %v1295_v32 = vadd.f32 %v1223_v24, %v461_v22  ;;  %v1227_v33 = vadd.f32 %v1226_v31, %v1113_v29  ;;  %v1228_v36 = vpop.f32.mrb[7].mxu0  ;;  %v474_v22 = vld [vmem:[#allocation2 + $0x88] sm:$0xff]  ;;  %v476_v31 = vld [vmem:[#allocation2 + $0x98] sm:$0xff] }
 0x160   : > { %v1296_v37 = vadd.f32 %v1225_v28, %v462_v26  ;;  %v1229_v38 = vadd.f32 %v1228_v36, %v1115_v34  ;;  %v475_v26 = vld [vmem:[#allocation2 + $0x90] sm:$0xff] }
 0x161   : > { %1327 = vst [vmem:[#allocation2 + $0x20] sm:$0xff] %v1295_v32  ;;  %v1297_v39 = vadd.f32 %v1227_v33, %v463_v30 }
 0x162   : > { %1328 = vst [vmem:[#allocation2 + $0x28] sm:$0xff] %v1296_v37  ;;  %v1298_v40 = vadd.f32 %v1229_v38, %v464_v35  ;;  %v477_v38 = vld [vmem:[#allocation2 + $0xa0] sm:$0xff] }
 0x163   : > { %1329 = vst [vmem:[#allocation2 + $0x30] sm:$0xff] %v1297_v39  ;;  %v1119_v41 = vpop.f32.mrb[8].mxu1 }
 0x164   : > { %1330 = vst [vmem:[#allocation2 + $0x38] sm:$0xff] %v1298_v40  ;;  %v1232_v43 = vpop.f32.mrb[8].mxu0  ;;  %v1121_v45 = vpop.f32.mrb[9].mxu1 }
 0x165   : > { %v1233_v44 = vadd.f32 %v1232_v43, %v1119_v41  ;;  %v1234_v47 = vpop.f32.mrb[9].mxu0  ;;  %v1123_v49 = vpop.f32.mrb[10].mxu1 }
 0x166   : > { %v1235_v48 = vadd.f32 %v1234_v47, %v1121_v45  ;;  %v1236_v51 = vpop.f32.mrb[10].mxu0  ;;  %v1125_v54 = vpop.f32.mrb[11].mxu1 }
 0x167   : > { %v1299_v52 = vadd.f32 %v1233_v44, %v465_v42  ;;  %v1237_v53 = vadd.f32 %v1236_v51, %v1123_v49  ;;  %v1238_v56 = vpop.f32.mrb[11].mxu0  ;;  %v478_v42 = vld [vmem:[#allocation2 + $0xa8] sm:$0xff]  ;;  %v480_v51 = vld [vmem:[#allocation2 + $0xb8] sm:$0xff] }
 0x168   : > { %v1300_v57 = vadd.f32 %v1235_v48, %v466_v46  ;;  %v1239_v58 = vadd.f32 %v1238_v56, %v1125_v54  ;;  %v479_v46 = vld [vmem:[#allocation2 + $0xb0] sm:$0xff] }
 0x169   : > { %1331 = vst [vmem:[#allocation2 + $0x40] sm:$0xff] %v1299_v52  ;;  %v1301_v59 = vadd.f32 %v1237_v53, %v467_v50 }
 0x16a   : > { %1332 = vst [vmem:[#allocation2 + $0x48] sm:$0xff] %v1300_v57  ;;  %v1302_v60 = vadd.f32 %v1239_v58, %v468_v55  ;;  %v481_v58 = vld [vmem:[#allocation2 + $0xc0] sm:$0xff] }
 0x16b   : > { %1333 = vst [vmem:[#allocation2 + $0x50] sm:$0xff] %v1301_v59  ;;  %v1129_v61 = vpop.f32.mrb[12].mxu1 }
 0x16c   : > { %1334 = vst [vmem:[#allocation2 + $0x58] sm:$0xff] %v1302_v60  ;;  %v1242_v63 = vpop.f32.mrb[12].mxu0  ;;  %v1131_v1 = vpop.f32.mrb[13].mxu1 }
 0x16d   : > { %v1243_v0 = vadd.f32 %v1242_v63, %v1129_v61  ;;  %v1244_v3 = vpop.f32.mrb[13].mxu0  ;;  %v1133_v5 = vpop.f32.mrb[14].mxu1 }
 0x16e   : > { %v1245_v4 = vadd.f32 %v1244_v3, %v1131_v1  ;;  %v1246_v7 = vpop.f32.mrb[14].mxu0  ;;  %v1135_v10 = vpop.f32.mrb[15].mxu1 }
 0x16f   : > { %v1303_v8 = vadd.f32 %v1243_v0, %v469_v62  ;;  %v1247_v9 = vadd.f32 %v1246_v7, %v1133_v5  ;;  %v1248_v12 = vpop.f32.mrb[15].mxu0  ;;  %v482_v62 = vld [vmem:[#allocation2 + $0xc8] sm:$0xff]  ;;  %v484_v7 = vld [vmem:[#allocation2 + $0xd8] sm:$0xff] }
 0x170   : > { %v1304_v13 = vadd.f32 %v1245_v4, %v470_v2  ;;  %v1249_v14 = vadd.f32 %v1248_v12, %v1135_v10  ;;  %v483_v2 = vld [vmem:[#allocation2 + $0xd0] sm:$0xff] }
 0x171   : > { %1335 = vst [vmem:[#allocation2 + $0x60] sm:$0xff] %v1303_v8  ;;  %v1305_v15 = vadd.f32 %v1247_v9, %v471_v6 }
 0x172   : > { %1336 = vst [vmem:[#allocation2 + $0x68] sm:$0xff] %v1304_v13  ;;  %v1306_v16 = vadd.f32 %v1249_v14, %v472_v11  ;;  %v485_v14 = vld [vmem:[#allocation2 + $0xe0] sm:$0xff] }
 0x173   : > { %1337 = vst [vmem:[#allocation2 + $0x70] sm:$0xff] %v1305_v15  ;;  %v1139_v17 = vpop.f32.mrb[16].mxu1 }
 0x174   : > { %1338 = vst [vmem:[#allocation2 + $0x78] sm:$0xff] %v1306_v16  ;;  %v1252_v19 = vpop.f32.mrb[16].mxu0  ;;  %v1141_v21 = vpop.f32.mrb[17].mxu1 }
 0x175   : > { %v1253_v20 = vadd.f32 %v1252_v19, %v1139_v17  ;;  %v1254_v23 = vpop.f32.mrb[17].mxu0  ;;  %v1143_v25 = vpop.f32.mrb[18].mxu1 }
 0x176   : > { %v1255_v24 = vadd.f32 %v1254_v23, %v1141_v21  ;;  %v1256_v27 = vpop.f32.mrb[18].mxu0  ;;  %v1145_v30 = vpop.f32.mrb[19].mxu1 }
 0x177   : > { %v1307_v28 = vadd.f32 %v1253_v20, %v473_v18  ;;  %v1257_v29 = vadd.f32 %v1256_v27, %v1143_v25  ;;  %v1258_v32 = vpop.f32.mrb[19].mxu0  ;;  %v486_v18 = vld [vmem:[#allocation2 + $0xe8] sm:$0xff]  ;;  %v488_v27 = vld [vmem:[#allocation2 + $0xf8] sm:$0xff] }
 0x178   : > { %v1308_v33 = vadd.f32 %v1255_v24, %v474_v22  ;;  %v1259_v34 = vadd.f32 %v1258_v32, %v1145_v30  ;;  %v487_v22 = vld [vmem:[#allocation2 + $0xf0] sm:$0xff] }
 0x179   : > { %1339 = vst [vmem:[#allocation2 + $0x80] sm:$0xff] %v1307_v28  ;;  %v1309_v35 = vadd.f32 %v1257_v29, %v475_v26 }
 0x17a   : > { %1340 = vst [vmem:[#allocation2 + $0x88] sm:$0xff] %v1308_v33  ;;  %v1310_v36 = vadd.f32 %v1259_v34, %v476_v31  ;;  %v1391_v33 = vld [vmem:[%s2596_s2] sm:$0x3] (!%p1890_p11)  ;;  %v1394_v34 = vlaneseq (!%p1890_p11) }
 0x17b   : > { %1341 = vst [vmem:[#allocation2 + $0x90] sm:$0xff] %v1309_v35  ;;  %v1149_v37 = vpop.f32.mrb[20].mxu1  ;;  %v1392_v35 = vunpack.c.l.bf16 (!%p1890_p11), %v1391_v33 }
 0x17c   : > { %1342 = vst [vmem:[#allocation2 + $0x98] sm:$0xff] %v1310_v36  ;;  %v1262_v39 = vpop.f32.mrb[20].mxu0  ;;  %v1151_v41 = vpop.f32.mrb[21].mxu1  ;;  %v1395_v36 = vshrl.u32 (!%p1890_p11), %v1394_v34, 7 }
 0x17d   : > { %v1263_v40 = vadd.f32 %v1262_v39, %v1149_v37  ;;  %v1264_v43 = vpop.f32.mrb[21].mxu0  ;;  %v1153_v45 = vpop.f32.mrb[22].mxu1  ;;  %v1444_v37 = vld [vmem:[%s2597_s3] sm:$0xff] (!%p1890_p11)  ;;  %v1446_v39 = vld [vmem:[%s2597_s3 + $0x10] sm:$0xff] (!%p1890_p11) }
 0x17e   : > { %v1265_v44 = vadd.f32 %v1264_v43, %v1151_v41  ;;  %v1266_v47 = vpop.f32.mrb[22].mxu0  ;;  %v1155_v50 = vpop.f32.mrb[23].mxu1  ;;  %v1400_v41 = vsub.s32 (!%p1890_p11), 2, %v1395_v36  ;;  %v1359_v43 = vld [vmem:[#allocation2] sm:$0xff] (!%p1890_p11) }
 0x17f   : > { %v1311_v48 = vadd.f32 %v1263_v40, %v477_v38  ;;  %v1267_v49 = vadd.f32 %v1266_v47, %v1153_v45  ;;  %v1268_v52 = vpop.f32.mrb[23].mxu0  ;;  %v1445_v38 = vld [vmem:[%s2597_s3 + $0x8] sm:$0xff] (!%p1890_p11)  ;;  %v1396_v40 = vsub.s32 (!%p1890_p11), 0, %v1395_v36  ;;  %v1460_v45 = vunpack.c.l.bf16 (!%p1890_p11), %v1444_v37 }
 0x180   : > { %v1312_v53 = vadd.f32 %v1265_v44, %v478_v42  ;;  %v1269_v54 = vadd.f32 %v1268_v52, %v1155_v50  ;;  %v1447_v42 = vld [vmem:[%s2597_s3 + $0x18] sm:$0xff] (!%p1890_p11)  ;;  %v1360_v44 = vld [vmem:[#allocation2 + $0x8] sm:$0xff] (!%p1890_p11)  ;;  %v1462_v47 = vunpack.c.l.bf16 (!%p1890_p11), %v1445_v38  ;;  %v1361_v52 = vld [vmem:[#allocation2 + $0x10] sm:$0xff] (!%p1890_p11) }
 0x181   : > { %1343 = vst [vmem:[#allocation2 + $0xa0] sm:$0xff] %v1311_v48  ;;  %v1313_v55 = vadd.f32 %v1267_v49, %v479_v46  ;;  %v1461_v46 = vunpack.c.h.bf16 (!%p1890_p11), %v1444_v37  ;;  %v1463_v48 = vunpack.c.h.bf16 (!%p1890_p11), %v1445_v38  ;;  %v2450_v49 = vld [vmem:[%s2597_s3 + $0x20] sm:$0xff] (!%p1890_p11)  ;;  %v1397_v50 = vrot.slane (!%p1890_p11), %v1392_v35, %v1396_v40  ;;  %v1373_v37 = vld [vmem:[#allocation2 + $0x70] sm:$0xff] (!%p1890_p11)  ;;  %v1374_v38 = vld [vmem:[#allocation2 + $0x78] sm:$0xff] (!%p1890_p11) }
 0x182   : > { %1344 = vst [vmem:[#allocation2 + $0xa8] sm:$0xff] %v1312_v53  ;;  %v1314_v56 = vadd.f32 %v1269_v54, %v480_v51  ;;  %v1401_v51 = vrot.slane (!%p1890_p11), %v1392_v35, %v1400_v41  ;;  %v1362_v53 = vld [vmem:[#allocation2 + $0x18] sm:$0xff] (!%p1890_p11)  ;;  %v1464_v54 = vunpack.c.l.bf16 (!%p1890_p11), %v1446_v39 }
 0x183   : > { %1345 = vst [vmem:[#allocation2 + $0xb0] sm:$0xff] %v1313_v55  ;;  %v1159_v57 = vpop.f32.mrb[24].mxu1  ;;  %v1465_v55 = vunpack.c.h.bf16 (!%p1890_p11), %v1446_v39 }
 0x184   : > { %1346 = vst [vmem:[#allocation2 + $0xb8] sm:$0xff] %v1314_v56  ;;  %v1272_v59 = vpop.f32.mrb[24].mxu0  ;;  %v1161_v61 = vpop.f32.mrb[25].mxu1  ;;  %v2455_v56 = vld [vmem:[%s2597_s3 + $0x28] sm:$0xff] (!%p1890_p11) }
 0x185   : > { %v1273_v60 = vadd.f32 %v1272_v59, %v1159_v57  ;;  %v1274_v63 = vpop.f32.mrb[25].mxu0  ;;  %v1163_v1 = vpop.f32.mrb[26].mxu1  ;;  %v1363_v57 = vld [vmem:[#allocation2 + $0x20] sm:$0xff] (!%p1890_p11)  ;;  %v1466_v59 = vunpack.c.l.bf16 (!%p1890_p11), %v1447_v42 }
 0x186   : > { %v1275_v0 = vadd.f32 %v1274_v63, %v1161_v61  ;;  %v1276_v3 = vpop.f32.mrb[26].mxu0  ;;  %v1165_v6 = vpop.f32.mrb[27].mxu1  ;;  %v1468_v61 = vunpack.c.l.bf16 (!%p1890_p11), %v2450_v49  ;;  %v2462_v63 = vld [vmem:[%s2597_s3 + $0x30] sm:$0xff] (!%p1890_p11) }
 0x187   : > { %v1315_v4 = vadd.f32 %v1273_v60, %v481_v58  ;;  %v1277_v5 = vadd.f32 %v1276_v3, %v1163_v1  ;;  %v1278_v8 = vpop.f32.mrb[27].mxu0  ;;  %v1364_v58 = vld [vmem:[#allocation2 + $0x28] sm:$0xff] (!%p1890_p11)  ;;  %v1467_v60 = vunpack.c.h.bf16 (!%p1890_p11), %v1447_v42  ;;  %v2466_v1 = vrot.slane (!%p1890_p11), %v1401_v51, %v1396_v40  ;;  %v1366_v3 = vld [vmem:[#allocation2 + $0x38] sm:$0xff] (!%p1890_p11) }
 0x188   : > { %v1316_v9 = vadd.f32 %v1275_v0, %v482_v62  ;;  %v1279_v10 = vadd.f32 %v1278_v8, %v1165_v6  ;;  %v1469_v62 = vunpack.c.h.bf16 (!%p1890_p11), %v2450_v49  ;;  %v2464_v0 = vrot.slane (!%p1890_p11), %v1397_v50, %v1396_v40  ;;  %v1451_v6 = vld [vmem:[%s2597_s3 + $0x38] sm:$0xff] (!%p1890_p11) }
 0x189   : > { %1347 = vst [vmem:[#allocation2 + $0xc0] sm:$0xff] %v1315_v4  ;;  %v1317_v11 = vadd.f32 %v1277_v5, %v483_v2  ;;  %v1365_v2 = vld [vmem:[#allocation2 + $0x30] sm:$0xff] (!%p1890_p11)  ;;  %v1470_v4 = vunpack.c.l.bf16 (!%p1890_p11), %v2455_v56  ;;  %v1471_v5 = vunpack.c.h.bf16 (!%p1890_p11), %v2455_v56  ;;  %v1473_v8 = vunpack.c.h.bf16 (!%p1890_p11), %v2462_v63 }
 0x18a   : > { %1348 = vst [vmem:[#allocation2 + $0xc8] sm:$0xff] %v1316_v9  ;;  %v1318_v12 = vadd.f32 %v1279_v10, %v484_v7  ;;  %v1472_v7 = vunpack.c.l.bf16 (!%p1890_p11), %v2462_v63  ;;  %v1474_v9 = vunpack.c.l.bf16 (!%p1890_p11), %v1451_v6  ;;  %v1475_v10 = vunpack.c.h.bf16 (!%p1890_p11), %v1451_v6 }
 0x18b   : > { %1349 = vst [vmem:[#allocation2 + $0xd0] sm:$0xff] %v1317_v11  ;;  %v1169_v13 = vpop.f32.mrb[28].mxu1  ;;  %v1412_v11 = vadd.f32 (!%p1890_p11), %v2464_v0, %v1359_v43  ;;  %v1375_v43 = vld [vmem:[#allocation2 + $0x80] sm:$0xff] (!%p1890_p11)  ;;  %v1426_v51 = vadd.f32 (!%p1890_p11), %v2464_v0, %v1373_v37 }
 0x18c   : > { %1350 = vst [vmem:[#allocation2 + $0xd8] sm:$0xff] %v1318_v12  ;;  %v1282_v15 = vpop.f32.mrb[28].mxu0  ;;  %v1171_v17 = vpop.f32.mrb[29].mxu1  ;;  %v1413_v12 = vadd.f32 (!%p1890_p11), %v2466_v1, %v1360_v44 }
 0x18d   : > { %v1283_v16 = vadd.f32 %v1282_v15, %v1169_v13  ;;  %v1284_v19 = vpop.f32.mrb[29].mxu0  ;;  %v1173_v21 = vpop.f32.mrb[30].mxu1  ;;  %v1414_v13 = vadd.f32 (!%p1890_p11), %v2464_v0, %v1361_v52  ;;  %v1416_v15 = vadd.f32 (!%p1890_p11), %v2464_v0, %v1363_v57  ;;  %v1427_v52 = vadd.f32 (!%p1890_p11), %v2466_v1, %v1374_v38 }
 0x18e   : > { %v1285_v20 = vadd.f32 %v1284_v19, %v1171_v17  ;;  %v1286_v23 = vpop.f32.mrb[30].mxu0  ;;  %v1175_v26 = vpop.f32.mrb[31].mxu1  ;;  %1358 = sbr.rel (%p1890_p11) target bundleno = 454 (0x1c6), region = 67  ;;  %v1418_v17 = vadd.f32 (!%p1890_p11), %v2464_v0, %v1365_v2  ;;  %v1367_v19 = vld [vmem:[#allocation2 + $0x40] sm:$0xff] (!%p1890_p11) }
 0x18f   : > { %v1319_v24 = vadd.f32 %v1283_v16, %v485_v14  ;;  %v1287_v25 = vadd.f32 %v1286_v23, %v1173_v21  ;;  %v1288_v28 = vpop.f32.mrb[31].mxu0  ;;  %v1415_v14 = vadd.f32 (!%p1890_p11), %v2466_v1, %v1362_v53  ;;  %v1417_v16 = vadd.f32 (!%p1890_p11), %v2466_v1, %v1364_v58 }
 0x190   : > { %v1320_v29 = vadd.f32 %v1285_v20, %v486_v18  ;;  %v1289_v30 = vadd.f32 %v1288_v28, %v1175_v26  ;;  %v1419_v18 = vadd.f32 (!%p1890_p11), %v2466_v1, %v1366_v3  ;;  %v1368_v20 = vld [vmem:[#allocation2 + $0x48] sm:$0xff] (!%p1890_p11)  ;;  %v1492_v21 = vadd.f32 (!%p1890_p11), %v1460_v45, %v1412_v11  ;;  %v1370_v26 = vld [vmem:[#allocation2 + $0x58] sm:$0xff] (!%p1890_p11)  ;;  %v1379_v3 = vld [vmem:[#allocation2 + $0xa0] sm:$0xff] (!%p1890_p11) }
 0x191   : > { %1351 = vst [vmem:[#allocation2 + $0xe0] sm:$0xff] %v1319_v24  ;;  %v1321_v31 = vadd.f32 %v1287_v25, %v487_v22  ;;  %v1493_v22 = vadd.f32 (!%p1890_p11), %v1461_v46, %v1413_v12  ;;  %v1494_v23 = vadd.f32 (!%p1890_p11), %v1462_v47, %v1414_v13  ;;  %v1495_v24 = vadd.f32 (!%p1890_p11), %v1463_v48, %v1415_v14  ;;  %v1369_v25 = vld [vmem:[#allocation2 + $0x50] sm:$0xff] (!%p1890_p11)  ;;  %v1376_v48 = vld [vmem:[#allocation2 + $0x88] sm:$0xff] (!%p1890_p11) }
 0x192   : > { %1352 = vst [vmem:[#allocation2 + $0xe8] sm:$0xff] %v1320_v29  ;;  %v1322_v32 = vadd.f32 %v1289_v30, %v488_v27  ;;  %v1496_v27 = vadd.f32 (!%p1890_p11), %v1464_v54, %v1416_v15  ;;  %v1497_v28 = vadd.f32 (!%p1890_p11), %v1465_v55, %v1417_v16  ;;  %v1498_v29 = vadd.f32 (!%p1890_p11), %v1466_v59, %v1418_v17  ;;  %v1377_v54 = vld [vmem:[#allocation2 + $0x90] sm:$0xff] (!%p1890_p11)  ;;  %v1378_v59 = vld [vmem:[#allocation2 + $0x98] sm:$0xff] (!%p1890_p11) }
 0x193   : > { %1353 = vst [vmem:[#allocation2 + $0xf0] sm:$0xff] %v1321_v31  ;;  %v1499_v30 = vadd.f32 (!%p1890_p11), %v1467_v60, %v1419_v18  ;;  %v1371_v31 = vld [vmem:[#allocation2 + $0x60] sm:$0xff] (!%p1890_p11)  ;;  %v1913_v33 = vpack.c.bf16 (!%p1890_p11), %v1493_v22, %v1492_v21  ;;  %v1914_v34 = vpack.c.bf16 (!%p1890_p11), %v1495_v24, %v1494_v23  ;;  %v1420_v35 = vadd.f32 (!%p1890_p11), %v2464_v0, %v1367_v19  ;;  %v1381_v14 = vld [vmem:[#allocation2 + $0xb0] sm:$0xff] (!%p1890_p11)  ;;  %v1382_v15 = vld [vmem:[#allocation2 + $0xb8] sm:$0xff] (!%p1890_p11) }
 0x194   : > { %1354 = vst [vmem:[#allocation2 + $0xf8] sm:$0xff] %v1322_v32  ;;  %v1372_v32 = vld [vmem:[#allocation2 + $0x68] sm:$0xff] (!%p1890_p11)  ;;  %v1421_v36 = vadd.f32 (!%p1890_p11), %v2466_v1, %v1368_v20  ;;  %v1915_v39 = vpack.c.bf16 (!%p1890_p11), %v1497_v28, %v1496_v27  ;;  %v1422_v41 = vadd.f32 (!%p1890_p11), %v2464_v0, %v1369_v25  ;;  %v1423_v42 = vadd.f32 (!%p1890_p11), %v2466_v1, %v1370_v26  ;;  %v1383_v25 = vld [vmem:[#allocation2 + $0xc0] sm:$0xff] (!%p1890_p11)  ;;  %v1386_v37 = vld [vmem:[#allocation2 + $0xd8] sm:$0xff] (!%p1890_p11) }
 0x195   : > { %v1916_v40 = vpack.c.bf16 %v1499_v30, %v1498_v29  ;;  %1620 = vst [vmem:[%s2598_s4] sm:$0xff] %v1913_v33  ;;  %1621 = vst [vmem:[%s2598_s4 + $0x8] sm:$0xff] %v1914_v34  ;;  %v1500_v44 = vadd.f32 %v1468_v61, %v1420_v35  ;;  %v1424_v46 = vadd.f32 %v2464_v0, %v1371_v31  ;;  %v1384_v26 = vld [vmem:[#allocation2 + $0xc8] sm:$0xff] }
 0x196   : > { %v1501_v45 = vadd.f32 %v1469_v62, %v1421_v36  ;;  %v1425_v47 = vadd.f32 %v2466_v1, %v1372_v32  ;;  %1622 = vst [vmem:[%s2598_s4 + $0x10] sm:$0xff] %v1915_v39  ;;  %v1502_v49 = vadd.f32 %v1470_v4, %v1422_v41  ;;  %v1503_v50 = vadd.f32 %v1471_v5, %v1423_v42  ;;  %v1380_v4 = vld [vmem:[#allocation2 + $0xa8] sm:$0xff]  ;;  %v1385_v32 = vld [vmem:[#allocation2 + $0xd0] sm:$0xff] }
 0x197   : > { %1623 = vst [vmem:[%s2598_s4 + $0x18] sm:$0xff] %v1916_v40  ;;  %v1504_v56 = vadd.f32 %v1472_v7, %v1424_v46  ;;  %v1428_v58 = vadd.f32 %v2464_v0, %v1375_v43  ;;  %v1506_v62 = vadd.f32 %v1474_v9, %v1426_v51  ;;  %v1507_v63 = vadd.f32 %v1475_v10, %v1427_v52 }
 0x198   : > { %v1917_v55 = vpack.c.bf16 %v1501_v45, %v1500_v44  ;;  %v1505_v57 = vadd.f32 %v1473_v8, %v1425_v47  ;;  %v1918_v61 = vpack.c.bf16 %v1503_v50, %v1502_v49  ;;  %v1429_v2 = vadd.f32 %v2466_v1, %v1376_v48  ;;  %v1387_v43 = vld [vmem:[#allocation2 + $0xe0] sm:$0xff] }
 0x199   : > { %v1430_v8 = vadd.f32 %v2464_v0, %v1377_v54  ;;  %v1920_v9 = vpack.c.bf16 %v1507_v63, %v1506_v62  ;;  %v1431_v10 = vadd.f32 %v2466_v1, %v1378_v59  ;;  %v1432_v19 = vadd.f32 %v2464_v0, %v1379_v3  ;;  %v1388_v44 = vld [vmem:[#allocation2 + $0xe8] sm:$0xff] }
 0x19a   : > { %v1919_v5 = vpack.c.bf16 %v1505_v57, %v1504_v56  ;;  %v1433_v20 = vadd.f32 %v2466_v1, %v1380_v4  ;;  %v1434_v29 = vadd.f32 %v2464_v0, %v1381_v14  ;;  %v1435_v30 = vadd.f32 %v2466_v1, %v1382_v15  ;;  %v1389_v54 = vld [vmem:[#allocation2 + $0xf0] sm:$0xff] }
 0x19b   : > { %v1436_v40 = vadd.f32 %v2464_v0, %v1383_v25  ;;  %v1437_v41 = vadd.f32 %v2466_v1, %v1384_v26  ;;  %v1438_v48 = vadd.f32 %v2464_v0, %v1385_v32  ;;  %v1439_v51 = vadd.f32 %v2466_v1, %v1386_v37 }
 0x19c   : > { %v1440_v59 = vadd.f32 %v2464_v0, %v1387_v43  ;;  %v1442_v4 = vadd.f32 %v2464_v0, %v1389_v54 }
 0x19e   : > { %v1452_v53 = vld [vmem:[%s2597_s3 + $0x40] sm:$0xff]  ;;  %v1453_v60 = vld [vmem:[%s2597_s3 + $0x48] sm:$0xff] }
 0x19f   : > { %1624 = vst [vmem:[%s2598_s4 + $0x20] sm:$0xff] %v1917_v55  ;;  %v1476_v6 = vunpack.c.l.bf16 %v1452_v53  ;;  %v1477_v7 = vunpack.c.h.bf16 %v1452_v53  ;;  %v1478_v12 = vunpack.c.l.bf16 %v1453_v60  ;;  %v1479_v13 = vunpack.c.h.bf16 %v1453_v60  ;;  %v1390_v55 = vld [vmem:[#allocation2 + $0xf8] sm:$0xff] }
 0x1a0   : > { %v1441_v60 = vadd.f32 %v2466_v1, %v1388_v44 }
 0x1a1   : > { %v1508_v17 = vadd.f32 %v1476_v6, %v1428_v58  ;;  %v1509_v18 = vadd.f32 %v1477_v7, %v1429_v2  ;;  %v1510_v21 = vadd.f32 %v1478_v12, %v1430_v8  ;;  %v1511_v22 = vadd.f32 %v1479_v13, %v1431_v10 }
 0x1a3   : > { %v1921_v28 = vpack.c.bf16 %v1509_v18, %v1508_v17  ;;  %v1922_v33 = vpack.c.bf16 %v1511_v22, %v1510_v21 }
 0x1a6   : > { %v1454_v11 = vld [vmem:[%s2597_s3 + $0x50] sm:$0xff] }
 0x1a7   : > { %1625 = vst [vmem:[%s2598_s4 + $0x28] sm:$0xff] %v1918_v61  ;;  %v1480_v23 = vunpack.c.l.bf16 %v1454_v11  ;;  %v1481_v24 = vunpack.c.h.bf16 %v1454_v11 }
 0x1a9   : > { %v1512_v34 = vadd.f32 %v1480_v23, %v1432_v19  ;;  %v1513_v35 = vadd.f32 %v1481_v24, %v1433_v20 }
 0x1ab   : > { %v1923_v45 = vpack.c.bf16 %v1513_v35, %v1512_v34 }
 0x1ae   : > { %v1455_v16 = vld [vmem:[%s2597_s3 + $0x58] sm:$0xff] }
 0x1af   : > { %1626 = vst [vmem:[%s2598_s4 + $0x30] sm:$0xff] %v1919_v5  ;;  %1627 = vst [vmem:[%s2598_s4 + $0x38] sm:$0xff] %v1920_v9  ;;  %v1482_v31 = vunpack.c.l.bf16 %v1455_v16  ;;  %v1483_v36 = vunpack.c.h.bf16 %v1455_v16  ;;  %v1443_v5 = vadd.f32 %v2466_v1, %v1390_v55 }
 0x1b1   : > { %v1514_v39 = vadd.f32 %v1482_v31, %v1434_v29  ;;  %v1515_v46 = vadd.f32 %v1483_v36, %v1435_v30 }
 0x1b3   : > { %v1924_v57 = vpack.c.bf16 %v1515_v46, %v1514_v39 }
 0x1b6   : > { %v1456_v27 = vld [vmem:[%s2597_s3 + $0x60] sm:$0xff]  ;;  %v1457_v38 = vld [vmem:[%s2597_s3 + $0x68] sm:$0xff] }
 0x1b7   : > { %1628 = vst [vmem:[%s2598_s4 + $0x40] sm:$0xff] %v1921_v28  ;;  %v1484_v42 = vunpack.c.l.bf16 %v1456_v27  ;;  %1629 = vst [vmem:[%s2598_s4 + $0x48] sm:$0xff] %v1922_v33  ;;  %v1485_v47 = vunpack.c.h.bf16 %v1456_v27  ;;  %v1486_v52 = vunpack.c.l.bf16 %v1457_v38  ;;  %v1487_v53 = vunpack.c.h.bf16 %v1457_v38 }
 0x1b9   : > { %v1516_v50 = vadd.f32 %v1484_v42, %v1436_v40  ;;  %v1517_v58 = vadd.f32 %v1485_v47, %v1437_v41  ;;  %v1518_v61 = vadd.f32 %v1486_v52, %v1438_v48  ;;  %v1519_v62 = vadd.f32 %v1487_v53, %v1439_v51 }
 0x1bb   : > { %v1925_v3 = vpack.c.bf16 %v1517_v58, %v1516_v50  ;;  %v1926_v7 = vpack.c.bf16 %v1519_v62, %v1518_v61 }
 0x1be   : > { %v1458_v49 = vld [vmem:[%s2597_s3 + $0x70] sm:$0xff]  ;;  %v1459_v56 = vld [vmem:[%s2597_s3 + $0x78] sm:$0xff] }
 0x1bf   : > { %1630 = vst [vmem:[%s2598_s4 + $0x50] sm:$0xff] %v1923_v45  ;;  %v1488_v63 = vunpack.c.l.bf16 %v1458_v49  ;;  %v1489_v2 = vunpack.c.h.bf16 %v1458_v49  ;;  %1631 = vst [vmem:[%s2598_s4 + $0x58] sm:$0xff] %v1924_v57  ;;  %v1490_v6 = vunpack.c.l.bf16 %v1459_v56  ;;  %v1491_v9 = vunpack.c.h.bf16 %v1459_v56 }
 0x1c0   : > { %1632 = vst [vmem:[%s2598_s4 + $0x60] sm:$0xff] %v1925_v3  ;;  %1633 = vst [vmem:[%s2598_s4 + $0x68] sm:$0xff] %v1926_v7 }
 0x1c1   : > { %v1520_v8 = vadd.f32 %v1488_v63, %v1440_v59  ;;  %v1521_v11 = vadd.f32 %v1489_v2, %v1441_v60  ;;  %v1522_v10 = vadd.f32 %v1490_v6, %v1442_v4  ;;  %v1523_v13 = vadd.f32 %v1491_v9, %v1443_v5 }
 0x1c3   : > { %v1927_v12 = vpack.c.bf16 %v1521_v11, %v1520_v8  ;;  %v1928_v0 = vpack.c.bf16 %v1523_v13, %v1522_v10 }
 0x1c5   : > { %1634 = vst [vmem:[%s2598_s4 + $0x70] sm:$0xff] %v1927_v12  ;;  %1635 = vst [vmem:[%s2598_s4 + $0x78] sm:$0xff] %v1928_v0 }
 0x1c6 PF: > { %s14_s19 = sadd.s32 1, %s2184_s19   ;;  %s2599_s15 = smov %s2172_s16 }
 0x1c7   : > { %p11_p12 = scmp.ge.s32.totalorder %s14_s19, 4   ;;  %s2600_s16 = smov %s2247_s23 }
 0x1c8   : > { %s2601_s17 = smov %s2180_s18  ;;  %s2602_s18 = smov %s2604_s20 }
 0x1c9   :  { %13 = sbr.rel (!%p11_p12) target bundleno = 3 (0x3), region = 111 }

</bundles_post_ra>
